<compile_context>
chip_gen: v7x
topology: tpu7x:2x2x1
jax: 0.10.0
libtpu: 0.0.40
codegen_flags: <defaults>
</compile_context>

<pallas_src>
import jax
import jax.numpy as jnp
from jax import lax
from jax.experimental import pallas as pl
from jax.experimental.pallas import tpu as pltpu


_VMEM_LIMIT = 32 * 1024 * 1024  # explicit (v5e default scoped limit is ~16 MiB)


def _cparams(semantics):
    return pltpu.CompilerParams(dimension_semantics=semantics,
                                vmem_limit_bytes=_VMEM_LIMIT)


# ----------------------------------------------------------------------------
# Pallas kernel 1: fused conv (as channel-major GEMM) + bias + ReLU + 2x2 pool.
#   P : (4, K, M)  bf16   4 = pool window positions, K = Cin*kh*kw,
#                          M = N * Hout_pool * Wout_pool   (lane-dense)
#   W : (Cout, K)  bf16
#   B : (Cout, 1)  f32
#   O : (Cout, M)  bf16   = relu(max_a(W @ P[a]) + B)
# ----------------------------------------------------------------------------
def _conv_pool_kernel(p_ref, w_ref, b_ref, o_ref):
    w = w_ref[...]
    acc = jnp.dot(w, p_ref[0], preferred_element_type=jnp.float32)
    for a in range(1, 4):  # unrolled at trace time
        acc = jnp.maximum(
            acc, jnp.dot(w, p_ref[a], preferred_element_type=jnp.float32))
    y = jnp.maximum(acc + b_ref[...], 0.0)
    o_ref[...] = y.astype(o_ref.dtype)


def conv_relu_pool(P, w, b):
    """P:(4,K,M) bf16, w:(Cout,K) bf16, b:(Cout,1) f32 -> (Cout,M) bf16."""
    _, K, M = P.shape
    cout = w.shape[0]
    return pl.pallas_call(
        _conv_pool_kernel,
        out_shape=jax.ShapeDtypeStruct((cout, M), jnp.bfloat16),
        grid_spec=pltpu.PrefetchScalarGridSpec(
            num_scalar_prefetch=0,
            grid=(1,),
            in_specs=[
                pl.BlockSpec((4, K, M), lambda i: (0, 0, 0)),
                pl.BlockSpec((cout, K), lambda i: (0, 0)),
                pl.BlockSpec((cout, 1), lambda i: (0, 0)),
            ],
            out_specs=pl.BlockSpec((cout, M), lambda i: (0, 0)),
        ),
        compiler_params=_cparams(("arbitrary",)),
    )(P, w, b)


# ----------------------------------------------------------------------------
# Pallas kernel 2: fc1 + ReLU.  x stays resident (tiny), the big weight is
# streamed in 128-wide lane tiles along a parallel grid axis.
# ----------------------------------------------------------------------------
def _fc_relu_kernel(x_ref, w_ref, b_ref, o_ref):
    y = jnp.dot(x_ref[...], w_ref[...],
                preferred_element_type=jnp.float32) + b_ref[...]
    o_ref[...] = jnp.maximum(y, 0.0).astype(o_ref.dtype)


def fc1_relu(x, w, b, tn=128):
    """x:(M,K) bf16, w:(K,Nf) bf16, b:(1,Nf) f32 -> (M,Nf) bf16."""
    M, K = x.shape
    Nf = w.shape[1]
    assert Nf % tn == 0
    return pl.pallas_call(
        _fc_relu_kernel,
        out_shape=jax.ShapeDtypeStruct((M, Nf), jnp.bfloat16),
        grid_spec=pltpu.PrefetchScalarGridSpec(
            num_scalar_prefetch=0,
            grid=(Nf // tn,),
            in_specs=[
                pl.BlockSpec((M, K), lambda j: (0, 0)),   # resident across j
                pl.BlockSpec((K, tn), lambda j: (0, j)),  # streamed weight
                pl.BlockSpec((1, tn), lambda j: (0, j)),
            ],
            out_specs=pl.BlockSpec((M, tn), lambda j: (0, j)),
        ),
        compiler_params=_cparams(("parallel",)),
    )(x, w, b)


# ----------------------------------------------------------------------------
# Pallas kernel 3: fused head  out = relu(h @ W2 + b2) @ W3 + b3
# ----------------------------------------------------------------------------
def _head_kernel(x_ref, w2_ref, b2_ref, w3_ref, b3_ref, o_ref):
    h = jnp.dot(x_ref[...], w2_ref[...],
                preferred_element_type=jnp.float32) + b2_ref[...]
    h = jnp.maximum(h, 0.0).astype(jnp.bfloat16)
    y = jnp.dot(h, w3_ref[...],
                preferred_element_type=jnp.float32) + b3_ref[...]
    o_ref[...] = y


def head(x, w2, b2, w3, b3):
    M = x.shape[0]
    K2, N2 = w2.shape
    K3, N3 = w3.shape
    return pl.pallas_call(
        _head_kernel,
        out_shape=jax.ShapeDtypeStruct((M, N3), jnp.float32),
        grid_spec=pltpu.PrefetchScalarGridSpec(
            num_scalar_prefetch=0,
            grid=(1,),
            in_specs=[
                pl.BlockSpec((M, K2), lambda i: (0, 0)),
                pl.BlockSpec((K2, N2), lambda i: (0, 0)),
                pl.BlockSpec((1, N2), lambda i: (0, 0)),
                pl.BlockSpec((K3, N3), lambda i: (0, 0)),
                pl.BlockSpec((1, N3), lambda i: (0, 0)),
            ],
            out_specs=pl.BlockSpec((M, N3), lambda i: (0, 0)),
        ),
        compiler_params=_cparams(("arbitrary",)),
    )(x, w2, b2, w3, b3)


# ----------------------------------------------------------------------------
# Glue: channel-major im2col with the 4 pool positions split out.
# Pure layout (the MACs happen in the Pallas kernels).
# ----------------------------------------------------------------------------
def _im2col_pool_cm(xcm, k, pooled_hw):
    """xcm: (Cin, N, H, W) -> (4, Cin*k*k, N*pooled_hw*pooled_hw) bf16.

    K axis order is (cin, kh, kw) to match torch weight.reshape(Cout, -1).
    Leading axis 0 enumerates the 2x2 pool-window positions (a, b).
    """
    cin, n, h, w = xcm.shape
    ho, wo = h - k + 1, w - k + 1
    pats = jnp.stack([xcm[:, :, kh:kh + ho, kw:kw + wo]
                      for kh in range(k) for kw in range(k)], axis=1)
    pats = pats.reshape(cin * k * k, n, ho, wo)
    slabs = [pats[:, :, a::2, b::2][:, :, :pooled_hw, :pooled_hw]
             for a in (0, 1) for b in (0, 1)]
    P = jnp.stack(slabs, axis=0)                       # (4, K, N, ph, pw)
    return P.reshape(4, cin * k * k, n * pooled_hw * pooled_hw)


# ----------------------------------------------------------------------------
# Parameter prep (runs once): reshape / transpose / bf16-cast the weights so
# the forward pass never pads or copies them.
# ----------------------------------------------------------------------------
def prepare_params(p):
    bf16, f32 = jnp.bfloat16, jnp.float32
    return {
        "w1": p["conv1_w"].reshape(6, 27).astype(bf16),        # (Cout, Cin*3*3)
        "b1": p["conv1_b"].reshape(6, 1).astype(f32),
        "w2": p["conv2_w"].reshape(16, 150).astype(bf16),      # (Cout, Cin*5*5)
        "b2": p["conv2_b"].reshape(16, 1).astype(f32),
        "fc1_w": p["fc1_w"].T.astype(bf16),                    # (7056, 640)
        "fc1_b": p["fc1_b"].reshape(1, 640).astype(f32),
        "fc2_w": p["fc2_w"].T.astype(bf16),                    # (640, 120)
        "fc2_b": p["fc2_b"].reshape(1, 120).astype(f32),
        "fc3_w": p["fc3_w"].T.astype(bf16),                    # (120, 10)
        "fc3_b": p["fc3_b"].reshape(1, 10).astype(f32),
    }


# ----------------------------------------------------------------------------
# Full forward pass of Net (expects prepared params)
# ----------------------------------------------------------------------------
def net_forward(x_nchw, pp):
    n = x_nchw.shape[0]

    # channel-major bf16 input: (3, N, 96, 96)
    xcm = jnp.transpose(x_nchw, (1, 0, 2, 3)).astype(jnp.bfloat16)

    # conv1 (3->6, k=3) + ReLU + 2x2 pool, fused:  96 -> 94 -> 47
    P1 = _im2col_pool_cm(xcm, 3, 47)                   # (4, 27, N*2209)
    y1 = conv_relu_pool(P1, pp["w1"], pp["b1"])        # (6, N*2209) bf16
    y1 = y1.reshape(6, n, 47, 47)

    # conv2 (6->16, k=5) + ReLU + 2x2 pool, fused:  47 -> 43 -> 21
    P2 = _im2col_pool_cm(y1, 5, 21)                    # (4, 150, N*441)
    y2 = conv_relu_pool(P2, pp["w2"], pp["b2"])        # (16, N*441) bf16

    # flatten exactly like PyTorch's x.view(-1, 16*21*21) on NCHW
    xf = y2.reshape(16, n, 441).transpose(1, 0, 2).reshape(n, 16 * 441)

    h1 = fc1_relu(xf, pp["fc1_w"], pp["fc1_b"])        # (N, 640) bf16
    out = head(h1, pp["fc2_w"], pp["fc2_b"], pp["fc3_w"], pp["fc3_b"])
    return out                                          # (N, 10) f32


# ----------------------------------------------------------------------------
# Pure-JAX f32 reference (silent numerical sanity check)
# ----------------------------------------------------------------------------
def reference_forward(x_nchw, p):
    n = x_nchw.shape[0]
    x = jnp.transpose(x_nchw, (0, 2, 3, 1)).astype(jnp.float32)
    dn = ("NHWC", "HWIO", "NHWC")

    y = lax.conv_general_dilated(x, jnp.transpose(p["conv1_w"], (2, 3, 1, 0)),
                                 (1, 1), "VALID", dimension_numbers=dn)
    y = jnp.maximum(y + p["conv1_b"], 0.0)
    y = lax.reduce_window(y, -jnp.inf, lax.max, (1, 2, 2, 1), (1, 2, 2, 1), "VALID")

    y = lax.conv_general_dilated(y, jnp.transpose(p["conv2_w"], (2, 3, 1, 0)),
                                 (1, 1), "VALID", dimension_numbers=dn)
    y = jnp.maximum(y + p["conv2_b"], 0.0)
    y = lax.reduce_window(y, -jnp.inf, lax.max, (1, 2, 2, 1), (1, 2, 2, 1), "VALID")

    xf = jnp.transpose(y, (0, 3, 1, 2)).reshape(n, 16 * 21 * 21)
    h = jnp.maximum(xf @ p["fc1_w"].T + p["fc1_b"], 0.0)
    h = jnp.maximum(h @ p["fc2_w"].T + p["fc2_b"], 0.0)
    return h @ p["fc3_w"].T + p["fc3_b"]


def make_params(key):
    ks = jax.random.split(key, 10)
    f32 = jnp.float32
    return {
        "conv1_w": jax.random.normal(ks[0], (6, 3, 3, 3), f32) * 0.10,
        "conv1_b": jax.random.normal(ks[1], (6,), f32) * 0.10,
        "conv2_w": jax.random.normal(ks[2], (16, 6, 5, 5), f32) * 0.05,
        "conv2_b": jax.random.normal(ks[3], (16,), f32) * 0.05,
        "fc1_w": jax.random.normal(ks[4], (640, 16 * 21 * 21), f32) * 0.01,
        "fc1_b": jax.random.normal(ks[5], (640,), f32) * 0.01,
        "fc2_w": jax.random.normal(ks[6], (120, 640), f32) * 0.05,
        "fc2_b": jax.random.normal(ks[7], (120,), f32) * 0.05,
        "fc3_w": jax.random.normal(ks[8], (10, 120), f32) * 0.05,
        "fc3_b": jax.random.normal(ks[9], (10,), f32) * 0.05,
    }


if __name__ == "__main__":
    key = jax.random.PRNGKey(0)
    kx, kp = jax.random.split(key)

    # Net's fc1 = Linear(16*21*21, 640) implies 96x96 spatial input (the
    # smallest shape consistent with the hard-coded flatten).
    x = jax.random.normal(kx, (2, 3, 96, 96), jnp.float32)
    params = make_params(kp)
    prepped = prepare_params(params)          # one-time weight prep (no per-step copies)

    fwd = jax.jit(net_forward)
    out = jax.block_until_ready(fwd(x, prepped))
    assert out.shape == (2, 10), out.shape

    ref = jax.block_until_ready(reference_forward(x, params))
    # bf16 matmul operands (f32 accumulation) -> slightly looser tolerance.
    assert jnp.allclose(out, ref, atol=2e-2, rtol=2e-2), \
        float(jnp.max(jnp.abs(out - ref)))

    print("KERNEL_OK")
</pallas_src>

<mosaic_0001>
module attributes {stable_mosaic.version = 11 : i64} {
  func.func @_conv_pool_kernel(%arg0: i32, %arg1: memref<4x27x4418xbf16, #tpu.memory_space<vmem>>, %arg2: memref<6x27xbf16, #tpu.memory_space<vmem>>, %arg3: memref<6x1xf32, #tpu.memory_space<vmem>>, %arg4: memref<6x4418xbf16, #tpu.memory_space<vmem>>) attributes {dimension_semantics = [#tpu.dimension_semantics<arbitrary>], iteration_bounds = array<i64: 1>, scalar_prefetch = 0 : i64, scratch_operands = 0 : i64, tpu.core_type = #tpu.core_type<tc>, window_params = [{pipeline_mode = #tpu.pipeline_mode<synchronous>, transform_indices = @transform_0, window_bounds = array<i64: 4, 27, 4418>}, {pipeline_mode = #tpu.pipeline_mode<synchronous>, transform_indices = @transform_1, window_bounds = array<i64: 6, 27>}, {pipeline_mode = #tpu.pipeline_mode<synchronous>, transform_indices = @transform_2, window_bounds = array<i64: 6, 1>}, {pipeline_mode = #tpu.pipeline_mode<synchronous>, transform_indices = @transform_3, window_bounds = array<i64: 6, 4418>}]} {
    %c0 = arith.constant 0 : index
    %c0_0 = arith.constant 0 : index
    %0 = vector.load %arg2[%c0, %c0_0] : memref<6x27xbf16, #tpu.memory_space<vmem>>, vector<6x27xbf16>
    %c0_1 = arith.constant 0 : index
    %c0_2 = arith.constant 0 : index
    %c0_3 = arith.constant 0 : index
    %1 = vector.load %arg1[%c0_1, %c0_2, %c0_3] : memref<4x27x4418xbf16, #tpu.memory_space<vmem>>, vector<1x27x4418xbf16>
    %2 = vector.shape_cast %1 : vector<1x27x4418xbf16> to vector<27x4418xbf16>
    %cst = arith.constant dense<0.000000e+00> : vector<6x4418xf32>
    %3 = tpu.matmul %0, %2, %cst {dimension_numbers = #tpu.dot_dimension_numbers<[1], [0], [0], [1], [0, 0, 1, 1], [], []>} : vector<6x27xbf16>, vector<27x4418xbf16>, vector<6x4418xf32> -> vector<6x4418xf32>
    %c1 = arith.constant 1 : index
    %c0_4 = arith.constant 0 : index
    %c0_5 = arith.constant 0 : index
    %4 = vector.load %arg1[%c1, %c0_4, %c0_5] : memref<4x27x4418xbf16, #tpu.memory_space<vmem>>, vector<1x27x4418xbf16>
    %5 = vector.shape_cast %4 : vector<1x27x4418xbf16> to vector<27x4418xbf16>
    %cst_6 = arith.constant dense<0.000000e+00> : vector<6x4418xf32>
    %6 = tpu.matmul %0, %5, %cst_6 {dimension_numbers = #tpu.dot_dimension_numbers<[1], [0], [0], [1], [0, 0, 1, 1], [], []>} : vector<6x27xbf16>, vector<27x4418xbf16>, vector<6x4418xf32> -> vector<6x4418xf32>
    %7 = arith.maximumf %3, %6 : vector<6x4418xf32>
    %c2 = arith.constant 2 : index
    %c0_7 = arith.constant 0 : index
    %c0_8 = arith.constant 0 : index
    %8 = vector.load %arg1[%c2, %c0_7, %c0_8] : memref<4x27x4418xbf16, #tpu.memory_space<vmem>>, vector<1x27x4418xbf16>
    %9 = vector.shape_cast %8 : vector<1x27x4418xbf16> to vector<27x4418xbf16>
    %cst_9 = arith.constant dense<0.000000e+00> : vector<6x4418xf32>
    %10 = tpu.matmul %0, %9, %cst_9 {dimension_numbers = #tpu.dot_dimension_numbers<[1], [0], [0], [1], [0, 0, 1, 1], [], []>} : vector<6x27xbf16>, vector<27x4418xbf16>, vector<6x4418xf32> -> vector<6x4418xf32>
    %11 = arith.maximumf %7, %10 : vector<6x4418xf32>
    %c3 = arith.constant 3 : index
    %c0_10 = arith.constant 0 : index
    %c0_11 = arith.constant 0 : index
    %12 = vector.load %arg1[%c3, %c0_10, %c0_11] : memref<4x27x4418xbf16, #tpu.memory_space<vmem>>, vector<1x27x4418xbf16>
    %13 = vector.shape_cast %12 : vector<1x27x4418xbf16> to vector<27x4418xbf16>
    %cst_12 = arith.constant dense<0.000000e+00> : vector<6x4418xf32>
    %14 = tpu.matmul %0, %13, %cst_12 {dimension_numbers = #tpu.dot_dimension_numbers<[1], [0], [0], [1], [0, 0, 1, 1], [], []>} : vector<6x27xbf16>, vector<27x4418xbf16>, vector<6x4418xf32> -> vector<6x4418xf32>
    %15 = arith.maximumf %11, %14 : vector<6x4418xf32>
    %c0_13 = arith.constant 0 : index
    %c0_14 = arith.constant 0 : index
    %16 = vector.load %arg3[%c0_13, %c0_14] : memref<6x1xf32, #tpu.memory_space<vmem>>, vector<6x1xf32>
    %17 = vector.broadcast %16 : vector<6x1xf32> to vector<6x4418xf32>
    %18 = arith.addf %15, %17 : vector<6x4418xf32>
    %cst_15 = arith.constant 0.000000e+00 : f32
    %19 = vector.broadcast %cst_15 : f32 to vector<6x4418xf32>
    %20 = arith.maximumf %18, %19 : vector<6x4418xf32>
    %21 = arith.truncf %20 : vector<6x4418xf32> to vector<6x4418xbf16>
    %c0_16 = arith.constant 0 : index
    %c0_17 = arith.constant 0 : index
    %22 = vector.load %arg4[%c0_16, %c0_17] : memref<6x4418xbf16, #tpu.memory_space<vmem>>, vector<6x4418xbf16>
    tpu.vector_store %arg4[%c0_16, %c0_17], %21 {strides = array<i32>} : memref<6x4418xbf16, #tpu.memory_space<vmem>>, vector<6x4418xbf16>,
    return
  }
  func.func @transform_0(%arg0: i32) -> (i32, i32, i32) {
    %c0_i32 = arith.constant 0 : i32
    %c0_i32_0 = arith.constant 0 : i32
    %c0_i32_1 = arith.constant 0 : i32
    %c0_i32_2 = arith.constant 0 : i32
    return %c0_i32, %c0_i32_0, %c0_i32_1 : i32, i32, i32
  }
  func.func @transform_1(%arg0: i32) -> (i32, i32) {
    %c0_i32 = arith.constant 0 : i32
    %c0_i32_0 = arith.constant 0 : i32
    %c0_i32_1 = arith.constant 0 : i32
    return %c0_i32, %c0_i32_0 : i32, i32
  }
  func.func @transform_2(%arg0: i32) -> (i32, i32) {
    %c0_i32 = arith.constant 0 : i32
    %c0_i32_0 = arith.constant 0 : i32
    %c0_i32_1 = arith.constant 0 : i32
    return %c0_i32, %c0_i32_0 : i32, i32
  }
  func.func @transform_3(%arg0: i32) -> (i32, i32) {
    %c0_i32 = arith.constant 0 : i32
    %c0_i32_0 = arith.constant 0 : i32
    %c0_i32_1 = arith.constant 0 : i32
    return %c0_i32, %c0_i32_0 : i32, i32
  }
}

module attributes {stable_mosaic.version = 11 : i64} {
  func.func @_conv_pool_kernel(%arg0: i32, %arg1: memref<4x150x882xbf16, #tpu.memory_space<vmem>>, %arg2: memref<16x150xbf16, #tpu.memory_space<vmem>>, %arg3: memref<16x1xf32, #tpu.memory_space<vmem>>, %arg4: memref<16x882xbf16, #tpu.memory_space<vmem>>) attributes {dimension_semantics = [#tpu.dimension_semantics<arbitrary>], iteration_bounds = array<i64: 1>, scalar_prefetch = 0 : i64, scratch_operands = 0 : i64, tpu.core_type = #tpu.core_type<tc>, window_params = [{pipeline_mode = #tpu.pipeline_mode<synchronous>, transform_indices = @transform_0, window_bounds = array<i64: 4, 150, 882>}, {pipeline_mode = #tpu.pipeline_mode<synchronous>, transform_indices = @transform_1, window_bounds = array<i64: 16, 150>}, {pipeline_mode = #tpu.pipeline_mode<synchronous>, transform_indices = @transform_2, window_bounds = array<i64: 16, 1>}, {pipeline_mode = #tpu.pipeline_mode<synchronous>, transform_indices = @transform_3, window_bounds = array<i64: 16, 882>}]} {
    %c0 = arith.constant 0 : index
    %c0_0 = arith.constant 0 : index
    %0 = vector.load %arg2[%c0, %c0_0] : memref<16x150xbf16, #tpu.memory_space<vmem>>, vector<16x150xbf16>
    %c0_1 = arith.constant 0 : index
    %c0_2 = arith.constant 0 : index
    %c0_3 = arith.constant 0 : index
    %1 = vector.load %arg1[%c0_1, %c0_2, %c0_3] : memref<4x150x882xbf16, #tpu.memory_space<vmem>>, vector<1x150x882xbf16>
    %2 = vector.shape_cast %1 : vector<1x150x882xbf16> to vector<150x882xbf16>
    %cst = arith.constant dense<0.000000e+00> : vector<16x882xf32>
    %3 = tpu.matmul %0, %2, %cst {dimension_numbers = #tpu.dot_dimension_numbers<[1], [0], [0], [1], [0, 0, 1, 1], [], []>} : vector<16x150xbf16>, vector<150x882xbf16>, vector<16x882xf32> -> vector<16x882xf32>
    %c1 = arith.constant 1 : index
    %c0_4 = arith.constant 0 : index
    %c0_5 = arith.constant 0 : index
    %4 = vector.load %arg1[%c1, %c0_4, %c0_5] : memref<4x150x882xbf16, #tpu.memory_space<vmem>>, vector<1x150x882xbf16>
    %5 = vector.shape_cast %4 : vector<1x150x882xbf16> to vector<150x882xbf16>
    %cst_6 = arith.constant dense<0.000000e+00> : vector<16x882xf32>
    %6 = tpu.matmul %0, %5, %cst_6 {dimension_numbers = #tpu.dot_dimension_numbers<[1], [0], [0], [1], [0, 0, 1, 1], [], []>} : vector<16x150xbf16>, vector<150x882xbf16>, vector<16x882xf32> -> vector<16x882xf32>
    %7 = arith.maximumf %3, %6 : vector<16x882xf32>
    %c2 = arith.constant 2 : index
    %c0_7 = arith.constant 0 : index
    %c0_8 = arith.constant 0 : index
    %8 = vector.load %arg1[%c2, %c0_7, %c0_8] : memref<4x150x882xbf16, #tpu.memory_space<vmem>>, vector<1x150x882xbf16>
    %9 = vector.shape_cast %8 : vector<1x150x882xbf16> to vector<150x882xbf16>
    %cst_9 = arith.constant dense<0.000000e+00> : vector<16x882xf32>
    %10 = tpu.matmul %0, %9, %cst_9 {dimension_numbers = #tpu.dot_dimension_numbers<[1], [0], [0], [1], [0, 0, 1, 1], [], []>} : vector<16x150xbf16>, vector<150x882xbf16>, vector<16x882xf32> -> vector<16x882xf32>
    %11 = arith.maximumf %7, %10 : vector<16x882xf32>
    %c3 = arith.constant 3 : index
    %c0_10 = arith.constant 0 : index
    %c0_11 = arith.constant 0 : index
    %12 = vector.load %arg1[%c3, %c0_10, %c0_11] : memref<4x150x882xbf16, #tpu.memory_space<vmem>>, vector<1x150x882xbf16>
    %13 = vector.shape_cast %12 : vector<1x150x882xbf16> to vector<150x882xbf16>
    %cst_12 = arith.constant dense<0.000000e+00> : vector<16x882xf32>
    %14 = tpu.matmul %0, %13, %cst_12 {dimension_numbers = #tpu.dot_dimension_numbers<[1], [0], [0], [1], [0, 0, 1, 1], [], []>} : vector<16x150xbf16>, vector<150x882xbf16>, vector<16x882xf32> -> vector<16x882xf32>
    %15 = arith.maximumf %11, %14 : vector<16x882xf32>
    %c0_13 = arith.constant 0 : index
    %c0_14 = arith.constant 0 : index
    %16 = vector.load %arg3[%c0_13, %c0_14] : memref<16x1xf32, #tpu.memory_space<vmem>>, vector<16x1xf32>
    %17 = vector.broadcast %16 : vector<16x1xf32> to vector<16x882xf32>
    %18 = arith.addf %15, %17 : vector<16x882xf32>
    %cst_15 = arith.constant 0.000000e+00 : f32
    %19 = vector.broadcast %cst_15 : f32 to vector<16x882xf32>
    %20 = arith.maximumf %18, %19 : vector<16x882xf32>
    %21 = arith.truncf %20 : vector<16x882xf32> to vector<16x882xbf16>
    %c0_16 = arith.constant 0 : index
    %c0_17 = arith.constant 0 : index
    %22 = vector.load %arg4[%c0_16, %c0_17] : memref<16x882xbf16, #tpu.memory_space<vmem>>, vector<16x882xbf16>
    tpu.vector_store %arg4[%c0_16, %c0_17], %21 {strides = array<i32>} : memref<16x882xbf16, #tpu.memory_space<vmem>>, vector<16x882xbf16>,
    return
  }
  func.func @transform_0(%arg0: i32) -> (i32, i32, i32) {
    %c0_i32 = arith.constant 0 : i32
    %c0_i32_0 = arith.constant 0 : i32
    %c0_i32_1 = arith.constant 0 : i32
    %c0_i32_2 = arith.constant 0 : i32
    return %c0_i32, %c0_i32_0, %c0_i32_1 : i32, i32, i32
  }
  func.func @transform_1(%arg0: i32) -> (i32, i32) {
    %c0_i32 = arith.constant 0 : i32
    %c0_i32_0 = arith.constant 0 : i32
    %c0_i32_1 = arith.constant 0 : i32
    return %c0_i32, %c0_i32_0 : i32, i32
  }
  func.func @transform_2(%arg0: i32) -> (i32, i32) {
    %c0_i32 = arith.constant 0 : i32
    %c0_i32_0 = arith.constant 0 : i32
    %c0_i32_1 = arith.constant 0 : i32
    return %c0_i32, %c0_i32_0 : i32, i32
  }
  func.func @transform_3(%arg0: i32) -> (i32, i32) {
    %c0_i32 = arith.constant 0 : i32
    %c0_i32_0 = arith.constant 0 : i32
    %c0_i32_1 = arith.constant 0 : i32
    return %c0_i32, %c0_i32_0 : i32, i32
  }
}

module attributes {stable_mosaic.version = 11 : i64} {
  func.func @_fc_relu_kernel(%arg0: i32, %arg1: memref<2x7056xbf16, #tpu.memory_space<vmem>>, %arg2: memref<7056x128xbf16, #tpu.memory_space<vmem>>, %arg3: memref<1x128xf32, #tpu.memory_space<vmem>>, %arg4: memref<2x128xbf16, #tpu.memory_space<vmem>>) attributes {dimension_semantics = [#tpu.dimension_semantics<parallel>], iteration_bounds = array<i64: 5>, scalar_prefetch = 0 : i64, scratch_operands = 0 : i64, tpu.core_type = #tpu.core_type<tc>, window_params = [{pipeline_mode = #tpu.pipeline_mode<synchronous>, transform_indices = @transform_0, window_bounds = array<i64: 2, 7056>}, {transform_indices = @transform_1, window_bounds = array<i64: 7056, 128>}, {transform_indices = @transform_2, window_bounds = array<i64: 1, 128>}, {transform_indices = @transform_3, window_bounds = array<i64: 2, 128>}]} {
    %c0 = arith.constant 0 : index
    %c0_0 = arith.constant 0 : index
    %0 = vector.load %arg1[%c0, %c0_0] : memref<2x7056xbf16, #tpu.memory_space<vmem>>, vector<2x7056xbf16>
    %c0_1 = arith.constant 0 : index
    %c0_2 = arith.constant 0 : index
    %1 = vector.load %arg2[%c0_1, %c0_2] : memref<7056x128xbf16, #tpu.memory_space<vmem>>, vector<7056x128xbf16>
    %cst = arith.constant dense<0.000000e+00> : vector<2x128xf32>
    %2 = tpu.matmul %0, %1, %cst {dimension_numbers = #tpu.dot_dimension_numbers<[1], [0], [0], [1], [0, 0, 1, 1], [], []>} : vector<2x7056xbf16>, vector<7056x128xbf16>, vector<2x128xf32> -> vector<2x128xf32>
    %c0_3 = arith.constant 0 : index
    %c0_4 = arith.constant 0 : index
    %3 = vector.load %arg3[%c0_3, %c0_4] : memref<1x128xf32, #tpu.memory_space<vmem>>, vector<1x128xf32>
    %4 = vector.broadcast %3 : vector<1x128xf32> to vector<2x128xf32>
    %5 = arith.addf %2, %4 : vector<2x128xf32>
    %cst_5 = arith.constant 0.000000e+00 : f32
    %6 = vector.broadcast %cst_5 : f32 to vector<2x128xf32>
    %7 = arith.maximumf %5, %6 : vector<2x128xf32>
    %8 = arith.truncf %7 : vector<2x128xf32> to vector<2x128xbf16>
    %c0_6 = arith.constant 0 : index
    %c0_7 = arith.constant 0 : index
    %9 = vector.load %arg4[%c0_6, %c0_7] : memref<2x128xbf16, #tpu.memory_space<vmem>>, vector<2x128xbf16>
    tpu.vector_store %arg4[%c0_6, %c0_7], %8 {strides = array<i32>} : memref<2x128xbf16, #tpu.memory_space<vmem>>, vector<2x128xbf16>,
    return
  }
  func.func @transform_0(%arg0: i32) -> (i32, i32) {
    %c0_i32 = arith.constant 0 : i32
    %c0_i32_0 = arith.constant 0 : i32
    %c0_i32_1 = arith.constant 0 : i32
    return %c0_i32, %c0_i32_0 : i32, i32
  }
  func.func @transform_1(%arg0: i32) -> (i32, i32) {
    %c0_i32 = arith.constant 0 : i32
    %c0_i32_0 = arith.constant 0 : i32
    return %c0_i32, %arg0 : i32, i32
  }
  func.func @transform_2(%arg0: i32) -> (i32, i32) {
    %c0_i32 = arith.constant 0 : i32
    %c0_i32_0 = arith.constant 0 : i32
    return %c0_i32, %arg0 : i32, i32
  }
  func.func @transform_3(%arg0: i32) -> (i32, i32) {
    %c0_i32 = arith.constant 0 : i32
    %c0_i32_0 = arith.constant 0 : i32
    return %c0_i32, %arg0 : i32, i32
  }
}

module attributes {stable_mosaic.version = 11 : i64} {
  func.func @_head_kernel(%arg0: i32, %arg1: memref<2x640xbf16, #tpu.memory_space<vmem>>, %arg2: memref<640x120xbf16, #tpu.memory_space<vmem>>, %arg3: memref<1x120xf32, #tpu.memory_space<vmem>>, %arg4: memref<120x10xbf16, #tpu.memory_space<vmem>>, %arg5: memref<1x10xf32, #tpu.memory_space<vmem>>, %arg6: memref<2x10xf32, #tpu.memory_space<vmem>>) attributes {dimension_semantics = [#tpu.dimension_semantics<arbitrary>], iteration_bounds = array<i64: 1>, scalar_prefetch = 0 : i64, scratch_operands = 0 : i64, tpu.core_type = #tpu.core_type<tc>, window_params = [{pipeline_mode = #tpu.pipeline_mode<synchronous>, transform_indices = @transform_0, window_bounds = array<i64: 2, 640>}, {pipeline_mode = #tpu.pipeline_mode<synchronous>, transform_indices = @transform_1, window_bounds = array<i64: 640, 120>}, {pipeline_mode = #tpu.pipeline_mode<synchronous>, transform_indices = @transform_2, window_bounds = array<i64: 1, 120>}, {pipeline_mode = #tpu.pipeline_mode<synchronous>, transform_indices = @transform_3, window_bounds = array<i64: 120, 10>}, {pipeline_mode = #tpu.pipeline_mode<synchronous>, transform_indices = @transform_4, window_bounds = array<i64: 1, 10>}, {pipeline_mode = #tpu.pipeline_mode<synchronous>, transform_indices = @transform_5, window_bounds = array<i64: 2, 10>}]} {
    %c0 = arith.constant 0 : index
    %c0_0 = arith.constant 0 : index
    %0 = vector.load %arg1[%c0, %c0_0] : memref<2x640xbf16, #tpu.memory_space<vmem>>, vector<2x640xbf16>
    %c0_1 = arith.constant 0 : index
    %c0_2 = arith.constant 0 : index
    %1 = vector.load %arg2[%c0_1, %c0_2] : memref<640x120xbf16, #tpu.memory_space<vmem>>, vector<640x120xbf16>
    %cst = arith.constant dense<0.000000e+00> : vector<2x120xf32>
    %2 = tpu.matmul %0, %1, %cst {dimension_numbers = #tpu.dot_dimension_numbers<[1], [0], [0], [1], [0, 0, 1, 1], [], []>} : vector<2x640xbf16>, vector<640x120xbf16>, vector<2x120xf32> -> vector<2x120xf32>
    %c0_3 = arith.constant 0 : index
    %c0_4 = arith.constant 0 : index
    %3 = vector.load %arg3[%c0_3, %c0_4] : memref<1x120xf32, #tpu.memory_space<vmem>>, vector<1x120xf32>
    %4 = vector.broadcast %3 : vector<1x120xf32> to vector<2x120xf32>
    %5 = arith.addf %2, %4 : vector<2x120xf32>
    %cst_5 = arith.constant 0.000000e+00 : f32
    %6 = vector.broadcast %cst_5 : f32 to vector<2x120xf32>
    %7 = arith.maximumf %5, %6 : vector<2x120xf32>
    %8 = arith.truncf %7 : vector<2x120xf32> to vector<2x120xbf16>
    %c0_6 = arith.constant 0 : index
    %c0_7 = arith.constant 0 : index
    %9 = vector.load %arg4[%c0_6, %c0_7] : memref<120x10xbf16, #tpu.memory_space<vmem>>, vector<120x10xbf16>
    %cst_8 = arith.constant dense<0.000000e+00> : vector<2x10xf32>
    %10 = tpu.matmul %8, %9, %cst_8 {dimension_numbers = #tpu.dot_dimension_numbers<[1], [0], [0], [1], [0, 0, 1, 1], [], []>} : vector<2x120xbf16>, vector<120x10xbf16>, vector<2x10xf32> -> vector<2x10xf32>
    %c0_9 = arith.constant 0 : index
    %c0_10 = arith.constant 0 : index
    %11 = vector.load %arg5[%c0_9, %c0_10] : memref<1x10xf32, #tpu.memory_space<vmem>>, vector<1x10xf32>
    %12 = vector.broadcast %11 : vector<1x10xf32> to vector<2x10xf32>
    %13 = arith.addf %10, %12 : vector<2x10xf32>
    %c0_11 = arith.constant 0 : index
    %c0_12 = arith.constant 0 : index
    %14 = vector.load %arg6[%c0_11, %c0_12] : memref<2x10xf32, #tpu.memory_space<vmem>>, vector<2x10xf32>
    tpu.vector_store %arg6[%c0_11, %c0_12], %13 {strides = array<i32>} : memref<2x10xf32, #tpu.memory_space<vmem>>, vector<2x10xf32>,
    return
  }
  func.func @transform_0(%arg0: i32) -> (i32, i32) {
    %c0_i32 = arith.constant 0 : i32
    %c0_i32_0 = arith.constant 0 : i32
    %c0_i32_1 = arith.constant 0 : i32
    return %c0_i32, %c0_i32_0 : i32, i32
  }
  func.func @transform_1(%arg0: i32) -> (i32, i32) {
    %c0_i32 = arith.constant 0 : i32
    %c0_i32_0 = arith.constant 0 : i32
    %c0_i32_1 = arith.constant 0 : i32
    return %c0_i32, %c0_i32_0 : i32, i32
  }
  func.func @transform_2(%arg0: i32) -> (i32, i32) {
    %c0_i32 = arith.constant 0 : i32
    %c0_i32_0 = arith.constant 0 : i32
    %c0_i32_1 = arith.constant 0 : i32
    return %c0_i32, %c0_i32_0 : i32, i32
  }
  func.func @transform_3(%arg0: i32) -> (i32, i32) {
    %c0_i32 = arith.constant 0 : i32
    %c0_i32_0 = arith.constant 0 : i32
    %c0_i32_1 = arith.constant 0 : i32
    return %c0_i32, %c0_i32_0 : i32, i32
  }
  func.func @transform_4(%arg0: i32) -> (i32, i32) {
    %c0_i32 = arith.constant 0 : i32
    %c0_i32_0 = arith.constant 0 : i32
    %c0_i32_1 = arith.constant 0 : i32
    return %c0_i32, %c0_i32_0 : i32, i32
  }
  func.func @transform_5(%arg0: i32) -> (i32, i32) {
    %c0_i32 = arith.constant 0 : i32
    %c0_i32_0 = arith.constant 0 : i32
    %c0_i32_1 = arith.constant 0 : i32
    return %c0_i32, %c0_i32_0 : i32, i32
  }
}

</mosaic_0001>

<bundles_post_ra>
// kernel: net_forward.4
= control target key start
LH: loop header
LB: loop body
LE: loop exit
PB: predicated region body
PF: predicated region fallthrough
CT: control target
= control target key end

     0   :  { %vm409_vm0 = vcmask 1044480   ;;  %vm410_vm1 = vcmask 1045504   ;;  %v6367_v1 = vmov 65535   ;;  %v6368_v3 = vmov 0   ;;  %s8131_s0 = inlined_call_operand.vmem [shape: bf16[4,27,4418], index: 0, kind: input, shape index: {}]   ;;  %s8132_s1 = inlined_call_operand.vmem [shape: bf16[6,27], index: 1, kind: input, shape index: {}]   ;;  %s8133_s2 = inlined_call_operand.vmem [shape: f32[6,1], index: 2, kind: input, shape index: {}]   ;;  %s8134_s3 = inlined_call_operand.vmem [shape: bf16[6,4418], index: 3, kind: output, shape index: {}]  }
   0x1   :  { %v5949_v0 = vld [vmem:[%s8131_s0 + $0x4] ss:$140 sps:$4 sm:$0xff]   ;;  %v411_v2 = vsel %vm409_vm0, 4294967295, %v6367_v1  ;;  %550 = vmatprep.mubr.bf16.mxu0 %v6368_v3  ;;  %591 = vmatprep.mubr.bf16.mxu1 %v6368_v3  ;;  %v5951_v4 = vld [vmem:[%s8131_s0 + $0xc] ss:$140 sps:$4 sm:$0xff]   ;;  %vm405_vm2 = vcmask 220160  }
   0x2   :  { %5948 = vset.pattern.permute.xlu0 %v6368_v3  ;;  %518 = vmatprep.subr.bf16.mxu0 %v5949_v0  ;;  %v5953_v5 = vld [vmem:[%s8131_s0] ss:$140 sps:$4 sm:$0xff]   ;;  %v5954_v6 = vld [vmem:[%s8131_s0 + $0x8] ss:$140 sps:$4 sm:$0xff]   ;;  %v6406_v7 = vsel %vm410_vm1, %v411_v2, 0  ;;  %vm6370_vm3 = vmmov 0  }
   0x3   :  { %559 = vmatprep.subr.bf16.mxu1 %v5951_v4  ;;  %v5955_v8 = vld [vmem:[%s8131_s0 + $0x11c] ss:$140 sps:$4 sm:$0x3f]   ;;  %519 = vmatpush1.bf16.msra.mxu0 %v5953_v5  ;;  %v5957_v9 = vld [vmem:[%s8131_s0 + $0x124] ss:$140 sps:$4 sm:$0x3f]  }
   0x4   :  { %560 = vmatpush1.bf16.msra.mxu1 %v5954_v6  ;;  %v417_v10 = vand.u32 %v5955_v8, %v6406_v7  ;;  %v5959_v11 = vld [vmem:[%s8131_s0 + $0x118] ss:$140 sps:$4 sm:$0x3f]   ;;  %v5960_v12 = vld [vmem:[%s8131_s0 + $0x120] ss:$140 sps:$4 sm:$0x3f]   ;;  %v423_v13 = vand.u32 %v5957_v9, %v6406_v7 }
   0x5   :  { %v414_v14 = vand.u32 %v5959_v11, %v6406_v7  ;;  %v420_v15 = vand.u32 %v5960_v12, %v6406_v7  ;;  %v6427_v16 = vld [vmem:[%s8132_s1] sm:$0x7]  ;;  %v5961_v17 = vld [vmem:[%s8131_s0 + $0x10] ss:$140 sps:$4 sm:$0xff]   ;;  %v5964_v19 = vld [vmem:[%s8131_s0 + $0x18] ss:$140 sps:$4 sm:$0xff]  }
   0x6   :  { %520 = vmatprep.subr.bf16.mxu0 %v417_v10  ;;  %v5963_v18 = vld [vmem:[%s8131_s0 + $0x14] ss:$140 sps:$4 sm:$0xff]   ;;  %561 = vmatprep.subr.bf16.mxu1 %v423_v13  ;;  %v5966_v20 = vld [vmem:[%s8131_s0 + $0x1c] ss:$140 sps:$4 sm:$0xff]   ;;  %v5975_v29 = vld [vmem:[%s8131_s0 + $0x24] ss:$140 sps:$4 sm:$0xff]  }
   0x7   :  { %521 = vmatpush1.bf16.msra.mxu0 %v414_v14  ;;  %v5967_v21 = vld [vmem:[%s8131_s0 + $0x128] ss:$140 sps:$4 sm:$0x3f]   ;;  %v5969_v22 = vld [vmem:[%s8131_s0 + $0x12c] ss:$140 sps:$4 sm:$0x3f]  }
   0x8   :  { %562 = vmatpush1.bf16.msra.mxu1 %v420_v15  ;;  %600 = vmatprep.subr.bf16.mxu0 %v5963_v18  ;;  %v5970_v23 = vld [vmem:[%s8131_s0 + $0x130] ss:$140 sps:$4 sm:$0x3f]   ;;  %v5972_v24 = vld [vmem:[%s8131_s0 + $0x134] ss:$140 sps:$4 sm:$0x3f]   ;;  %v429_v25 = vand.u32 %v5969_v22, %v6406_v7  ;;  %v426_v27 = vand.u32 %v5967_v21, %v6406_v7 }
   0x9   :  { %641 = vmatprep.subr.bf16.mxu1 %v5966_v20  ;;  %v435_v26 = vand.u32 %v5972_v24, %v6406_v7  ;;  %v432_v28 = vand.u32 %v5970_v23, %v6406_v7  ;;  %v5978_v30 = vld [vmem:[%s8131_s0 + $0x2c] ss:$140 sps:$4 sm:$0xff]   ;;  %v5976_v32 = vld [vmem:[%s8131_s0 + $0x28] ss:$140 sps:$4 sm:$0xff]   ;;  %v5985_v45 = vld [vmem:[%s8131_s0 + $0x30] ss:$140 sps:$4 sm:$0xff]  }
   0xa   :  { %5366 = vmatmul.mubr.msk.bf16.vlgmr.msra.gmra.mrb[0].mxu0 %vm405_vm2, %v6427_v16  ;;  %v5973_v31 = vld [vmem:[%s8131_s0 + $0x20] ss:$140 sps:$4 sm:$0xff]   ;;  %v5979_v33 = vld [vmem:[%s8131_s0 + $0x138] ss:$140 sps:$4 sm:$0x3f]   ;;  %vm5290_vm4 = vcmask 534528  }
   0xb   :  { %5367 = vmatmul.mubr.msk.bf16.vlgmr.msra.gmra.mrb[0].mxu1 %vm405_vm2, %v6427_v16  ;;  %601 = vmatpush1.bf16.msra.mxu0 %v5961_v17  ;;  %v5981_v34 = vld [vmem:[%s8131_s0 + $0x13c] ss:$140 sps:$4 sm:$0x3f]   ;;  %v5982_v35 = vld [vmem:[%s8131_s0 + $0x140] ss:$140 sps:$4 sm:$0x3f]   ;;  %v438_v40 = vand.u32 %v5979_v33, %v6406_v7 }
   0xc   :  { %642 = vmatpush1.bf16.msra.mxu1 %v5964_v19  ;;  %602 = vmatprep.subr.bf16.mxu0 %v429_v25  ;;  %v5984_v36 = vld [vmem:[%s8131_s0 + $0x144] ss:$140 sps:$4 sm:$0x3f]   ;;  %v441_v37 = vand.u32 %v5981_v34, %v6406_v7  ;;  %v5987_v39 = vld [vmem:[%s8131_s0 + $0x34] ss:$140 sps:$4 sm:$0xff]   ;;  %v444_v41 = vand.u32 %v5982_v35, %v6406_v7 }
   0xd   :  { %632 = vmatprep.mubr.bf16.mxu0 %v6368_v3  ;;  %643 = vmatprep.subr.bf16.mxu1 %v435_v26  ;;  %v447_v38 = vand.u32 %v5984_v36, %v6406_v7  ;;  %v5990_v42 = vld [vmem:[%s8131_s0 + $0x3c] ss:$140 sps:$4 sm:$0xff]   ;;  %v5993_v43 = vld [vmem:[%s8131_s0 + $0x14c] ss:$140 sps:$4 sm:$0x3f]  }
   0xe   :  { %673 = vmatprep.mubr.bf16.mxu1 %v6368_v3  ;;  %v5996_v44 = vld [vmem:[%s8131_s0 + $0x154] ss:$140 sps:$4 sm:$0x3f]   ;;  %v5988_v47 = vld [vmem:[%s8131_s0 + $0x38] ss:$140 sps:$4 sm:$0xff]   ;;  %v453_v49 = vand.u32 %v5993_v43, %v6406_v7 }
   0xf   :  { %603 = vmatpush1.bf16.msra.mxu0 %v426_v27  ;;  %v5991_v46 = vld [vmem:[%s8131_s0 + $0x148] ss:$140 sps:$4 sm:$0x3f]   ;;  %v5994_v48 = vld [vmem:[%s8131_s0 + $0x150] ss:$140 sps:$4 sm:$0x3f]   ;;  %v459_v50 = vand.u32 %v5996_v44, %v6406_v7 }
  0x10   :  { %644 = vmatpush1.bf16.msra.mxu1 %v432_v28  ;;  %682 = vmatprep.subr.bf16.mxu0 %v5975_v29  ;;  %v5999_v51 = vld [vmem:[%s8131_s0 + $0x44] ss:$140 sps:$4 sm:$0xff]   ;;  %v450_v52 = vand.u32 %v5991_v46, %v6406_v7  ;;  %v456_v53 = vand.u32 %v5994_v48, %v6406_v7  ;;  %v6002_v54 = vld [vmem:[%s8131_s0 + $0x4c] ss:$140 sps:$4 sm:$0xff]   ;;  %v6000_v58 = vld [vmem:[%s8131_s0 + $0x48] ss:$140 sps:$4 sm:$0xff]  }
  0x11   :  { %723 = vmatprep.subr.bf16.mxu1 %v5978_v30  ;;  %v6005_v55 = vld [vmem:[%s8131_s0 + $0x15c] ss:$140 sps:$4 sm:$0x3f]   ;;  %v6008_v56 = vld [vmem:[%s8131_s0 + $0x164] ss:$140 sps:$4 sm:$0x3f]  }
  0x12   :  { %5368 = vmatmul.mubr.msk.bf16.vlgmr.msra.gmra.mrb[4].mxu0 %vm405_vm2, %v6427_v16  ;;  %v5997_v57 = vld [vmem:[%s8131_s0 + $0x40] ss:$140 sps:$4 sm:$0xff]   ;;  %v6003_v59 = vld [vmem:[%s8131_s0 + $0x158] ss:$140 sps:$4 sm:$0x3f]   ;;  %v465_v61 = vand.u32 %v6005_v55, %v6406_v7  ;;  %v471_v62 = vand.u32 %v6008_v56, %v6406_v7  ;;  %v6369_v46 = vmov 0.0  }
  0x13   :  { %5369 = vmatmul.mubr.msk.bf16.vlgmr.msra.gmra.mrb[4].mxu1 %vm405_vm2, %v6427_v16  ;;  %683 = vmatpush1.bf16.msra.mxu0 %v5973_v31  ;;  %v6006_v60 = vld [vmem:[%s8131_s0 + $0x160] ss:$140 sps:$4 sm:$0x3f]   ;;  %v6014_v0 = vld [vmem:[%s8131_s0 + $0x5c] ss:$140 sps:$4 sm:$0xff]   ;;  %v462_v1 = vand.u32 %v6003_v59, %v6406_v7 }
  0x14   :  { %724 = vmatpush1.bf16.msra.mxu1 %v5976_v32  ;;  %684 = vmatprep.subr.bf16.mxu0 %v441_v37  ;;  %v6011_v63 = vld [vmem:[%s8131_s0 + $0x54] ss:$140 sps:$4 sm:$0xff]   ;;  %v468_v2 = vand.u32 %v6006_v60, %v6406_v7  ;;  %v6017_v4 = vld [vmem:[%s8131_s0 + $0x16c] ss:$140 sps:$4 sm:$0x3f]  }
  0x15   :  { %725 = vmatprep.subr.bf16.mxu1 %v447_v38  ;;  %714 = vmatprep.mubr.bf16.mxu0 %v6368_v3  ;;  %v6020_v5 = vld [vmem:[%s8131_s0 + $0x174] ss:$140 sps:$4 sm:$0x3f]   ;;  %v6009_v6 = vld [vmem:[%s8131_s0 + $0x50] ss:$140 sps:$4 sm:$0xff]   ;;  %v477_v11 = vand.u32 %v6017_v4, %v6406_v7 }
  0x16   :  { %755 = vmatprep.mubr.bf16.mxu1 %v6368_v3  ;;  %v6012_v8 = vld [vmem:[%s8131_s0 + $0x58] ss:$140 sps:$4 sm:$0xff]   ;;  %v6015_v9 = vld [vmem:[%s8131_s0 + $0x168] ss:$140 sps:$4 sm:$0x3f]   ;;  %v483_v12 = vand.u32 %v6020_v5, %v6406_v7 }
  0x17   :  { %685 = vmatpush1.bf16.msra.mxu0 %v438_v40  ;;  %v6018_v10 = vld [vmem:[%s8131_s0 + $0x170] ss:$140 sps:$4 sm:$0x3f]   ;;  %v474_v13 = vand.u32 %v6015_v9, %v6406_v7  ;;  %v6026_v18 = vld [vmem:[%s8131_s0 + $0x6c] ss:$140 sps:$4 sm:$0xff]  }
  0x18   :  { %726 = vmatpush1.bf16.msra.mxu1 %v444_v41  ;;  %764 = vmatprep.subr.bf16.mxu0 %v5987_v39  ;;  %v480_v14 = vand.u32 %v6018_v10, %v6406_v7  ;;  %v6023_v15 = vld [vmem:[%s8131_s0 + $0x64] ss:$140 sps:$4 sm:$0xff]   ;;  %v6029_v17 = vld [vmem:[%s8131_s0 + $0x17c] ss:$140 sps:$4 sm:$0x3f]  }
  0x19   :  { %805 = vmatprep.subr.bf16.mxu1 %v5990_v42  ;;  %v6032_v19 = vld [vmem:[%s8131_s0 + $0x184] ss:$140 sps:$4 sm:$0x3f]   ;;  %v6021_v20 = vld [vmem:[%s8131_s0 + $0x60] ss:$140 sps:$4 sm:$0xff]   ;;  %v489_v24 = vand.u32 %v6029_v17, %v6406_v7 }
  0x1a   :  { %5370 = vmatmul.mubr.msk.bf16.vlgmr.msra.gmra.mrb[8].mxu0 %vm405_vm2, %v6427_v16  ;;  %v6024_v21 = vld [vmem:[%s8131_s0 + $0x68] ss:$140 sps:$4 sm:$0xff]   ;;  %v6027_v22 = vld [vmem:[%s8131_s0 + $0x178] ss:$140 sps:$4 sm:$0x3f]   ;;  %v495_v25 = vand.u32 %v6032_v19, %v6406_v7 }
  0x1b   :  { %5371 = vmatmul.mubr.msk.bf16.vlgmr.msra.gmra.mrb[8].mxu1 %vm405_vm2, %v6427_v16  ;;  %765 = vmatpush1.bf16.msra.mxu0 %v5985_v45  ;;  %v6030_v23 = vld [vmem:[%s8131_s0 + $0x180] ss:$140 sps:$4 sm:$0x3f]   ;;  %v6038_v27 = vld [vmem:[%s8131_s0 + $0x7c] ss:$140 sps:$4 sm:$0xff]   ;;  %v486_v28 = vand.u32 %v6027_v22, %v6406_v7 }
  0x1c   :  { %806 = vmatpush1.bf16.msra.mxu1 %v5988_v47  ;;  %766 = vmatprep.subr.bf16.mxu0 %v453_v49  ;;  %v6035_v26 = vld [vmem:[%s8131_s0 + $0x74] ss:$140 sps:$4 sm:$0xff]   ;;  %v492_v29 = vand.u32 %v6030_v23, %v6406_v7  ;;  %v6041_v30 = vld [vmem:[%s8131_s0 + $0x18c] ss:$140 sps:$4 sm:$0x3f]  }
  0x1d   :  { %807 = vmatprep.subr.bf16.mxu1 %v459_v50  ;;  %796 = vmatprep.mubr.bf16.mxu0 %v6368_v3  ;;  %v6044_v31 = vld [vmem:[%s8131_s0 + $0x194] ss:$140 sps:$4 sm:$0x3f]   ;;  %v6033_v32 = vld [vmem:[%s8131_s0 + $0x70] ss:$140 sps:$4 sm:$0xff]   ;;  %v501_v36 = vand.u32 %v6041_v30, %v6406_v7 }
  0x1e   :  { %837 = vmatprep.mubr.bf16.mxu1 %v6368_v3  ;;  %v6036_v33 = vld [vmem:[%s8131_s0 + $0x78] ss:$140 sps:$4 sm:$0xff]   ;;  %v6039_v34 = vld [vmem:[%s8131_s0 + $0x188] ss:$140 sps:$4 sm:$0x3f]   ;;  %v507_v37 = vand.u32 %v6044_v31, %v6406_v7 }
  0x1f   :  { %767 = vmatpush1.bf16.msra.mxu0 %v450_v52  ;;  %v6042_v35 = vld [vmem:[%s8131_s0 + $0x190] ss:$140 sps:$4 sm:$0x3f]   ;;  %v498_v38 = vand.u32 %v6039_v34, %v6406_v7  ;;  %v6045_v42 = vld [vmem:[%s8131_s0 + $0x80] ss:$140 sps:$4 sm:$0xff]  }
  0x20   :  { %808 = vmatpush1.bf16.msra.mxu1 %v456_v53  ;;  %846 = vmatprep.subr.bf16.mxu0 %v5999_v51  ;;  %v504_v39 = vand.u32 %v6042_v35, %v6406_v7  ;;  %v6047_v40 = vld [vmem:[%s8131_s0 + $0x84] ss:$140 sps:$4 sm:$0xff]   ;;  %v6051_v41 = vld [vmem:[%s8131_s0 + $0x19c] ss:$140 sps:$4 sm:$0x3f]  }
  0x21   :  { %887 = vmatprep.subr.bf16.mxu1 %v6002_v54  ;;  %v6048_v43 = vld [vmem:[%s8131_s0 + $0x88] ss:$140 sps:$4 sm:$0xff]   ;;  %v6049_v44 = vld [vmem:[%s8131_s0 + $0x198] ss:$140 sps:$4 sm:$0x3f]   ;;  %v513_v47 = vand.u32 %v6051_v41, %v6406_v7 }
  0x22   :  { %5372 = vmatmul.mubr.msk.bf16.vlgmr.msra.gmra.mrb[12].mxu0 %vm405_vm2, %v6427_v16  ;;  %v6052_v45 = vld [vmem:[%s8131_s0 + $0x1a0] ss:$140 sps:$4 sm:$0x3f]   ;;  %v510_v49 = vand.u32 %v6049_v44, %v6406_v7  ;;  %v6058_v51 = vld [vmem:[%s8131_s0 + $0x23c] ss:$140 sps:$4 sm:$0xff]  }
  0x23   :  { %5373 = vmatmul.mubr.msk.bf16.vlgmr.msra.gmra.mrb[12].mxu1 %vm405_vm2, %v6427_v16  ;;  %847 = vmatpush1.bf16.msra.mxu0 %v5997_v57  ;;  %v6055_v48 = vld [vmem:[%s8131_s0 + $0x234] ss:$140 sps:$4 sm:$0xff]   ;;  %v516_v50 = vand.u32 %v6052_v45, %v6406_v7  ;;  %v6061_v52 = vld [vmem:[%s8131_s0 + $0x34c] ss:$140 sps:$4 sm:$0x3f]  }
  0x24   :  { %888 = vmatpush1.bf16.msra.mxu1 %v6000_v58  ;;  %848 = vmatprep.subr.bf16.mxu0 %v465_v61  ;;  %v6064_v53 = vld [vmem:[%s8131_s0 + $0x354] ss:$140 sps:$4 sm:$0x3f]   ;;  %v6053_v54 = vld [vmem:[%s8131_s0 + $0x230] ss:$140 sps:$4 sm:$0xff]   ;;  %v1649_v58 = vand.u32 %v6061_v52, %v6406_v7 }
  0x25   :  { %889 = vmatprep.subr.bf16.mxu1 %v471_v62  ;;  %878 = vmatprep.mubr.bf16.mxu0 %v6368_v3  ;;  %v6056_v55 = vld [vmem:[%s8131_s0 + $0x238] ss:$140 sps:$4 sm:$0xff]   ;;  %v6059_v56 = vld [vmem:[%s8131_s0 + $0x348] ss:$140 sps:$4 sm:$0x3f]   ;;  %v1655_v59 = vand.u32 %v6064_v53, %v6406_v7 }
  0x26   :  { %919 = vmatprep.mubr.bf16.mxu1 %v6368_v3  ;;  %v6062_v57 = vld [vmem:[%s8131_s0 + $0x350] ss:$140 sps:$4 sm:$0x3f]   ;;  %v1646_v61 = vand.u32 %v6059_v56, %v6406_v7  ;;  %v6068_v4 = vld [vmem:[%s8131_s0 + $0x248] ss:$140 sps:$4 sm:$0xff]  }
  0x27   :  { %849 = vmatpush1.bf16.msra.mxu0 %v462_v1  ;;  %v6067_v60 = vld [vmem:[%s8131_s0 + $0x244] ss:$140 sps:$4 sm:$0xff]   ;;  %v1652_v62 = vand.u32 %v6062_v57, %v6406_v7  ;;  %v6083_v19 = vld [vmem:[%s8131_s0 + $0x368] ss:$140 sps:$4 sm:$0x3f]  }
  0x28   :  { %890 = vmatpush1.bf16.msra.mxu1 %v468_v2  ;;  %928 = vmatprep.subr.bf16.mxu0 %v6011_v63  ;;  %v6070_v63 = vld [vmem:[%s8131_s0 + $0x24c] ss:$140 sps:$4 sm:$0xff]   ;;  %v6076_v1 = vld [vmem:[%s8131_s0 + $0x364] ss:$140 sps:$4 sm:$0x3f]  }
  0x29   :  { %969 = vmatprep.subr.bf16.mxu1 %v6014_v0  ;;  %v6073_v0 = vld [vmem:[%s8131_s0 + $0x35c] ss:$140 sps:$4 sm:$0x3f]   ;;  %v6065_v2 = vld [vmem:[%s8131_s0 + $0x240] ss:$140 sps:$4 sm:$0xff]   ;;  %v1667_v9 = vand.u32 %v6076_v1, %v6406_v7 }
  0x2a   :  { %5374 = vmatmul.mubr.msk.bf16.vlgmr.msra.gmra.mrb[16].mxu0 %vm405_vm2, %v6427_v16  ;;  %v6071_v5 = vld [vmem:[%s8131_s0 + $0x358] ss:$140 sps:$4 sm:$0x3f]   ;;  %v6077_v17 = vld [vmem:[%s8131_s0 + $0x250] ss:$140 sps:$4 sm:$0xff]  }
  0x2b   :  { %5375 = vmatmul.mubr.msk.bf16.vlgmr.msra.gmra.mrb[16].mxu1 %vm405_vm2, %v6427_v16  ;;  %929 = vmatpush1.bf16.msra.mxu0 %v6009_v6  ;;  %v6074_v6 = vld [vmem:[%s8131_s0 + $0x360] ss:$140 sps:$4 sm:$0x3f]   ;;  %v1658_v10 = vand.u32 %v6071_v5, %v6406_v7  ;;  %v6091_v23 = vld [vmem:[%s8131_s0 + $0x264] ss:$140 sps:$4 sm:$0xff]  }
  0x2c   :  { %970 = vmatpush1.bf16.msra.mxu1 %v6012_v8  ;;  %930 = vmatprep.subr.bf16.mxu0 %v477_v11  ;;  %v1661_v8 = vand.u32 %v6073_v0, %v6406_v7  ;;  %v1664_v11 = vand.u32 %v6074_v6, %v6406_v7  ;;  %v6089_v30 = vld [vmem:[%s8131_s0 + $0x260] ss:$140 sps:$4 sm:$0xff]   ;;  %v6101_v41 = vld [vmem:[%s8131_s0 + $0x270] ss:$140 sps:$4 sm:$0xff]  }
  0x2d   :  { %971 = vmatprep.subr.bf16.mxu1 %v483_v12  ;;  %960 = vmatprep.mubr.bf16.mxu0 %v6368_v3  ;;  %v6079_v12 = vld [vmem:[%s8131_s0 + $0x254] ss:$140 sps:$4 sm:$0xff]   ;;  %v6110_v44 = vld [vmem:[%s8131_s0 + $0x390] ss:$140 sps:$4 sm:$0x3f]  }
  0x2e   :  { %1001 = vmatprep.mubr.bf16.mxu1 %v6368_v3  ;;  %v6098_v31 = vld [vmem:[%s8131_s0 + $0x380] ss:$140 sps:$4 sm:$0x3f]   ;;  %v6121_v52 = vld [vmem:[%s8131_s0 + $0x39c] ss:$140 sps:$4 sm:$0x3f]  }
  0x2f   :  { %931 = vmatpush1.bf16.msra.mxu0 %v474_v13  ;;  %v6085_v13 = vld [vmem:[%s8131_s0 + $0x36c] ss:$140 sps:$4 sm:$0x3f]   ;;  %v6124_v53 = vld [vmem:[%s8131_s0 + $0x3a4] ss:$140 sps:$4 sm:$0x3f]  }
  0x30   :  { %972 = vmatpush1.bf16.msra.mxu1 %v480_v14  ;;  %1010 = vmatprep.subr.bf16.mxu0 %v6023_v15  ;;  %v6082_v14 = vld [vmem:[%s8131_s0 + $0x25c] ss:$140 sps:$4 sm:$0xff]   ;;  %v6088_v15 = vld [vmem:[%s8131_s0 + $0x374] ss:$140 sps:$4 sm:$0x3f]  }
  0x31   :  { %1051 = vmatprep.subr.bf16.mxu1 %v6026_v18  ;;  %v6080_v18 = vld [vmem:[%s8131_s0 + $0x258] ss:$140 sps:$4 sm:$0xff]   ;;  %v1679_v22 = vand.u32 %v6088_v15, %v6406_v7  ;;  %v6122_v57 = vld [vmem:[%s8131_s0 + $0x3a0] ss:$140 sps:$4 sm:$0x3f]  }
  0x32   :  { %5376 = vmatmul.mubr.msk.bf16.vlgmr.msra.gmra.mrb[20].mxu0 %vm405_vm2, %v6427_v16  ;;  %v6119_v56 = vld [vmem:[%s8131_s0 + $0x398] ss:$140 sps:$4 sm:$0x3f]   ;;  %v6136_v0 = vld [vmem:[%s8131_s0 + $0x3b4] ss:$140 sps:$4 sm:$0x3f]  }
  0x33   :  { %5377 = vmatmul.mubr.msk.bf16.vlgmr.msra.gmra.mrb[20].mxu1 %vm405_vm2, %v6427_v16  ;;  %1011 = vmatpush1.bf16.msra.mxu0 %v6021_v20  ;;  %v6086_v20 = vld [vmem:[%s8131_s0 + $0x370] ss:$140 sps:$4 sm:$0x3f]  }
  0x34   :  { %1052 = vmatpush1.bf16.msra.mxu1 %v6024_v21  ;;  %1012 = vmatprep.subr.bf16.mxu0 %v489_v24  ;;  %v1673_v21 = vand.u32 %v6085_v13, %v6406_v7  ;;  %v6094_v24 = vld [vmem:[%s8131_s0 + $0x26c] ss:$140 sps:$4 sm:$0xff]   ;;  %v6125_v1 = vld [vmem:[%s8131_s0 + $0x290] ss:$140 sps:$4 sm:$0xff]  }
  0x35   :  { %1053 = vmatprep.subr.bf16.mxu1 %v495_v25  ;;  %1042 = vmatprep.mubr.bf16.mxu0 %v6368_v3  ;;  %v1670_v25 = vand.u32 %v6083_v19, %v6406_v7  ;;  %v6134_v5 = vld [vmem:[%s8131_s0 + $0x3b0] ss:$140 sps:$4 sm:$0x3f]   ;;  %v6142_v13 = vld [vmem:[%s8131_s0 + $0x2ac] ss:$140 sps:$4 sm:$0xff]  }
  0x36   :  { %1083 = vmatprep.mubr.bf16.mxu1 %v6368_v3  ;;  %v6148_v15 = vld [vmem:[%s8131_s0 + $0x3c4] ss:$140 sps:$4 sm:$0x3f]   ;;  %v6140_v19 = vld [vmem:[%s8131_s0 + $0x2a8] ss:$140 sps:$4 sm:$0xff]  }
  0x37   :  { %1013 = vmatpush1.bf16.msra.mxu0 %v486_v28  ;;  %v6100_v28 = vld [vmem:[%s8131_s0 + $0x384] ss:$140 sps:$4 sm:$0x3f]  }
  0x38   :  { %1054 = vmatpush1.bf16.msra.mxu1 %v492_v29  ;;  %1092 = vmatprep.subr.bf16.mxu0 %v6035_v26  ;;  %v1676_v26 = vand.u32 %v6086_v20, %v6406_v7  ;;  %v6095_v29 = vld [vmem:[%s8131_s0 + $0x378] ss:$140 sps:$4 sm:$0x3f]   ;;  %v1691_v34 = vand.u32 %v6100_v28, %v6406_v7  ;;  %v6146_v20 = vld [vmem:[%s8131_s0 + $0x3c0] ss:$140 sps:$4 sm:$0x3f]  }
  0x39   :  { %1133 = vmatprep.subr.bf16.mxu1 %v6038_v27  ;;  %v6097_v27 = vld [vmem:[%s8131_s0 + $0x37c] ss:$140 sps:$4 sm:$0x3f]   ;;  %v1682_v35 = vand.u32 %v6095_v29, %v6406_v7  ;;  %v6152_v28 = vld [vmem:[%s8131_s0 + $0x2b8] ss:$140 sps:$4 sm:$0xff]  }
  0x3a   :  { %5378 = vmatmul.mubr.msk.bf16.vlgmr.msra.gmra.mrb[24].mxu0 %vm405_vm2, %v6427_v16  ;;  %v6153_v29 = vld [vmem:[%s8131_s0 + $0x3c8] ss:$140 sps:$4 sm:$0x3f]  }
  0x3b   :  { %5379 = vmatmul.mubr.msk.bf16.vlgmr.msra.gmra.mrb[24].mxu1 %vm405_vm2, %v6427_v16  ;;  %1093 = vmatpush1.bf16.msra.mxu0 %v6033_v32  ;;  %v6092_v32 = vld [vmem:[%s8131_s0 + $0x268] ss:$140 sps:$4 sm:$0xff]  }
  0x3c   :  { %1134 = vmatpush1.bf16.msra.mxu1 %v6036_v33  ;;  %1094 = vmatprep.subr.bf16.mxu0 %v501_v36  ;;  %v1685_v33 = vand.u32 %v6097_v27, %v6406_v7  ;;  %v1688_v36 = vand.u32 %v6098_v31, %v6406_v7  ;;  %v6149_v27 = vld [vmem:[%s8131_s0 + $0x2b0] ss:$140 sps:$4 sm:$0xff]  }
  0x3d   :  { %1135 = vmatprep.subr.bf16.mxu1 %v507_v37  ;;  %1124 = vmatprep.mubr.bf16.mxu0 %v6368_v3  ;;  %v6103_v37 = vld [vmem:[%s8131_s0 + $0x274] ss:$140 sps:$4 sm:$0xff]  }
  0x3e   :  { %1165 = vmatprep.mubr.bf16.mxu1 %v6368_v3 }
  0x3f   :  { %1095 = vmatpush1.bf16.msra.mxu0 %v498_v38  ;;  %v6109_v38 = vld [vmem:[%s8131_s0 + $0x38c] ss:$140 sps:$4 sm:$0x3f]  }
  0x40   :  { %1136 = vmatpush1.bf16.msra.mxu1 %v504_v39  ;;  %1174 = vmatprep.subr.bf16.mxu0 %v6047_v40  ;;  %v6106_v39 = vld [vmem:[%s8131_s0 + $0x27c] ss:$140 sps:$4 sm:$0xff]   ;;  %v6112_v40 = vld [vmem:[%s8131_s0 + $0x394] ss:$140 sps:$4 sm:$0x3f]   ;;  %v1697_v45 = vand.u32 %v6109_v38, %v6406_v7 }
  0x41   :  { %5912 = vmatprep.subr.bf16.mxu1 %v6369_v46  ;;  %v6157_v38 = vld [vmem:[%s8131_s0 + $0x460] ss:$140 sps:$4 sm:$0xff]  }
  0x42   :  { %5380 = vmatmul.mubr.msk.bf16.vlgmr.msra.gmra.mrb[28].mxu0 %vm405_vm2, %v6427_v16 }
  0x43   :  { %5381 = vmatmul.mubr.msk.bf16.vlgmr.msra.gmra.mrb[28].mxu1 %vm405_vm2, %v6427_v16  ;;  %1175 = vmatpush1.bf16.msra.mxu0 %v6045_v42  ;;  %v6104_v42 = vld [vmem:[%s8131_s0 + $0x278] ss:$140 sps:$4 sm:$0xff]  }
  0x44   :  { %5913 = vmatpush3.bf16.msra.mxu1 %v6048_v43  ;;  %1176 = vmatprep.subr.bf16.mxu0 %v513_v47  ;;  %v6107_v43 = vld [vmem:[%s8131_s0 + $0x388] ss:$140 sps:$4 sm:$0x3f]   ;;  %v1703_v47 = vand.u32 %v6112_v40, %v6406_v7  ;;  %v6163_v40 = vld [vmem:[%s8131_s0 + $0x578] ss:$140 sps:$4 sm:$0x3f]  }
  0x45   :  { %5914 = vmatprep.subr.bf16.mxu1 %v6369_v46  ;;  %1206 = vmatprep.mubr.bf16.mxu0 %v6368_v3 }
  0x46   :  { %5916 = vmatprep.mubr.msk.bf16.mxu1 %vm6370_vm3, %v6369_v46 }
  0x47   :  { %1177 = vmatpush1.bf16.msra.mxu0 %v510_v49  ;;  %v6118_v49 = vld [vmem:[%s8131_s0 + $0x28c] ss:$140 sps:$4 sm:$0xff]  }
  0x48   :  { %5915 = vmatpush3.bf16.msra.mxu1 %v516_v50  ;;  %1750 = vmatprep.subr.bf16.mxu0 %v6055_v48  ;;  %v6115_v48 = vld [vmem:[%s8131_s0 + $0x284] ss:$140 sps:$4 sm:$0xff]   ;;  %v1694_v50 = vand.u32 %v6107_v43, %v6406_v7 }
  0x49   :  { %1791 = vmatprep.subr.bf16.mxu1 %v6058_v51  ;;  %v1700_v51 = vand.u32 %v6110_v44, %v6406_v7  ;;  %v6171_v44 = vld [vmem:[%s8131_s0 + $0x474] ss:$140 sps:$4 sm:$0xff]  }
  0x4a   :  { %5382 = vmatmul.mubr.msk.bf16.vlgmr.msra.gmra.mrb[32].mxu0 %vm405_vm2, %v6427_v16 }
  0x4b   :  { %5917 = vmatmul.mubr.msk.bf16.vlgmr.msra.gmra.mrb[32].mxu1 %vm405_vm2, %v6427_v16  ;;  %1751 = vmatpush1.bf16.msra.mxu0 %v6053_v54  ;;  %v6113_v54 = vld [vmem:[%s8131_s0 + $0x280] ss:$140 sps:$4 sm:$0xff]  }
  0x4c   :  { %1792 = vmatpush1.bf16.msra.mxu1 %v6056_v55  ;;  %1752 = vmatprep.subr.bf16.mxu0 %v1649_v58  ;;  %v6116_v55 = vld [vmem:[%s8131_s0 + $0x288] ss:$140 sps:$4 sm:$0xff]   ;;  %v1709_v58 = vand.u32 %v6121_v52, %v6406_v7  ;;  %v6172_v52 = vld [vmem:[%s8131_s0 + $0x478] ss:$140 sps:$4 sm:$0xff]  }
  0x4d   :  { %1793 = vmatprep.subr.bf16.mxu1 %v1655_v59  ;;  %1782 = vmatprep.mubr.bf16.mxu0 %v6368_v3  ;;  %v1715_v59 = vand.u32 %v6124_v53, %v6406_v7  ;;  %v6175_v53 = vld [vmem:[%s8131_s0 + $0x588] ss:$140 sps:$4 sm:$0x3f]  }
  0x4e   :  { %1823 = vmatprep.mubr.bf16.mxu1 %v6368_v3 }
  0x4f   :  { %1753 = vmatpush1.bf16.msra.mxu0 %v1646_v61  ;;  %v1706_v61 = vand.u32 %v6119_v56, %v6406_v7 }
  0x50   :  { %1794 = vmatpush1.bf16.msra.mxu1 %v1652_v62  ;;  %1832 = vmatprep.subr.bf16.mxu0 %v6067_v60  ;;  %v6127_v60 = vld [vmem:[%s8131_s0 + $0x294] ss:$140 sps:$4 sm:$0xff]   ;;  %v1712_v62 = vand.u32 %v6122_v57, %v6406_v7  ;;  %v6183_v57 = vld [vmem:[%s8131_s0 + $0x484] ss:$140 sps:$4 sm:$0xff]  }
  0x51   :  { %1873 = vmatprep.subr.bf16.mxu1 %v6070_v63  ;;  %v6133_v63 = vld [vmem:[%s8131_s0 + $0x3ac] ss:$140 sps:$4 sm:$0x3f]  }
  0x52   :  { %5526 = vmatmul.mubr.msk.bf16.vlgmr.msra.gmra.mrb[36].mxu0 %vm405_vm2, %v6427_v16  ;;  %v1721_v6 = vand.u32 %v6133_v63, %v6406_v7  ;;  %v6181_v63 = vld [vmem:[%s8131_s0 + $0x480] ss:$140 sps:$4 sm:$0xff]  }
  0x53   :  { %5527 = vmatmul.mubr.msk.bf16.vlgmr.msra.gmra.mrb[36].mxu1 %vm405_vm2, %v6427_v16  ;;  %1833 = vmatpush1.bf16.msra.mxu0 %v6065_v2  ;;  %v6128_v2 = vld [vmem:[%s8131_s0 + $0x298] ss:$140 sps:$4 sm:$0xff]  }
  0x54   :  { %1874 = vmatpush1.bf16.msra.mxu1 %v6068_v4  ;;  %1834 = vmatprep.subr.bf16.mxu0 %v1661_v8  ;;  %v6131_v4 = vld [vmem:[%s8131_s0 + $0x3a8] ss:$140 sps:$4 sm:$0x3f]   ;;  %v1727_v8 = vand.u32 %v6136_v0, %v6406_v7  ;;  %v6187_v0 = vld [vmem:[%s8131_s0 + $0x598] ss:$140 sps:$4 sm:$0x3f]  }
  0x55   :  { %1875 = vmatprep.subr.bf16.mxu1 %v1667_v9  ;;  %1864 = vmatprep.mubr.bf16.mxu0 %v6368_v3  ;;  %v6930_v9 = vld [vmem:[%s8132_s1] sm:$0x7] }
  0x56   :  { %1905 = vmatprep.mubr.bf16.mxu1 %v6368_v3 }
  0x57   :  { %1835 = vmatpush1.bf16.msra.mxu0 %v1658_v10  ;;  %v6139_v10 = vld [vmem:[%s8131_s0 + $0x2a4] ss:$140 sps:$4 sm:$0xff]  }
  0x58   :  { %1876 = vmatpush1.bf16.msra.mxu1 %v1664_v11  ;;  %1914 = vmatprep.subr.bf16.mxu0 %v6079_v12  ;;  %v1718_v11 = vand.u32 %v6131_v4, %v6406_v7  ;;  %v1724_v12 = vand.u32 %v6134_v5, %v6406_v7  ;;  %v6195_v5 = vld [vmem:[%s8131_s0 + $0x494] ss:$140 sps:$4 sm:$0xff]  }
  0x59   :  { %1955 = vmatprep.subr.bf16.mxu1 %v6082_v14  ;;  %v6145_v14 = vld [vmem:[%s8131_s0 + $0x3bc] ss:$140 sps:$4 sm:$0x3f]  }
  0x5a   :  { %5528 = vmatmul.mubr.msk.bf16.vlgmr.msra.gmra.mrb[40].mxu0 %vm405_vm2, %v6427_v16 }
  0x5b   :  { %5529 = vmatmul.mubr.msk.bf16.vlgmr.msra.gmra.mrb[40].mxu1 %vm405_vm2, %v6427_v16  ;;  %1915 = vmatpush1.bf16.msra.mxu0 %v6077_v17  ;;  %v6137_v17 = vld [vmem:[%s8131_s0 + $0x2a0] ss:$140 sps:$4 sm:$0xff]  }
  0x5c   :  { %1956 = vmatpush1.bf16.msra.mxu1 %v6080_v18  ;;  %1916 = vmatprep.subr.bf16.mxu0 %v1673_v21  ;;  %v6143_v18 = vld [vmem:[%s8131_s0 + $0x3b8] ss:$140 sps:$4 sm:$0x3f]   ;;  %v1733_v21 = vand.u32 %v6145_v14, %v6406_v7  ;;  %v6199_v14 = vld [vmem:[%s8131_s0 + $0x5a8] ss:$140 sps:$4 sm:$0x3f]  }
  0x5d   :  { %1957 = vmatprep.subr.bf16.mxu1 %v1679_v22  ;;  %1946 = vmatprep.mubr.bf16.mxu0 %v6368_v3  ;;  %v1739_v22 = vand.u32 %v6148_v15, %v6406_v7  ;;  %v6196_v15 = vld [vmem:[%s8131_s0 + $0x498] ss:$140 sps:$4 sm:$0xff]  }
  0x5e   :  { %1987 = vmatprep.mubr.bf16.mxu1 %v6368_v3 }
  0x5f   :  { %1917 = vmatpush1.bf16.msra.mxu0 %v1670_v25  ;;  %v6151_v25 = vld [vmem:[%s8131_s0 + $0x2b4] ss:$140 sps:$4 sm:$0xff]  }
  0x60   :  { %1958 = vmatpush1.bf16.msra.mxu1 %v1676_v26  ;;  %1996 = vmatprep.subr.bf16.mxu0 %v6091_v23  ;;  %v1730_v23 = vand.u32 %v6143_v18, %v6406_v7  ;;  %v6155_v26 = vld [vmem:[%s8131_s0 + $0x3cc] ss:$140 sps:$4 sm:$0x3f]  }
  0x61   :  { %2037 = vmatprep.subr.bf16.mxu1 %v6094_v24  ;;  %v1736_v24 = vand.u32 %v6146_v20, %v6406_v7  ;;  %v1745_v31 = vand.u32 %v6155_v26, %v6406_v7  ;;  %v6207_v20 = vld [vmem:[%s8131_s0 + $0x4a4] ss:$140 sps:$4 sm:$0xff]   ;;  %v6205_v26 = vld [vmem:[%s8131_s0 + $0x4a0] ss:$140 sps:$4 sm:$0xff]  }
  0x62   :  { %5530 = vmatmul.mubr.msk.bf16.vlgmr.msra.gmra.mrb[44].mxu0 %vm405_vm2, %v6427_v16 }
  0x63   :  { %5531 = vmatmul.mubr.msk.bf16.vlgmr.msra.gmra.mrb[44].mxu1 %vm405_vm2, %v6427_v16  ;;  %1997 = vmatpush1.bf16.msra.mxu0 %v6089_v30  ;;  %v6156_v30 = vld [vmem:[%s8131_s0 + $0x3d0] ss:$140 sps:$4 sm:$0x3f]  }
  0x64   :  { %2038 = vmatpush1.bf16.msra.mxu1 %v6092_v32  ;;  %1998 = vmatprep.subr.bf16.mxu0 %v1685_v33  ;;  %v6159_v32 = vld [vmem:[%s8131_s0 + $0x464] ss:$140 sps:$4 sm:$0xff]   ;;  %v1742_v33 = vand.u32 %v6153_v29, %v6406_v7  ;;  %v6214_v29 = vld [vmem:[%s8131_s0 + $0x5c0] ss:$140 sps:$4 sm:$0x3f]  }
  0x65   :  { %2039 = vmatprep.subr.bf16.mxu1 %v1691_v34  ;;  %2028 = vmatprep.mubr.bf16.mxu0 %v6368_v3  ;;  %v1748_v34 = vand.u32 %v6156_v30, %v6406_v7 }
  0x66   :  { %2069 = vmatprep.mubr.bf16.mxu1 %v6368_v3 }
  0x67   :  { %1999 = vmatpush1.bf16.msra.mxu0 %v1682_v35  ;;  %v6165_v35 = vld [vmem:[%s8131_s0 + $0x57c] ss:$140 sps:$4 sm:$0x3f]  }
  0x68   :  { %2040 = vmatpush1.bf16.msra.mxu1 %v1688_v36  ;;  %2078 = vmatprep.subr.bf16.mxu0 %v6103_v37  ;;  %v6162_v36 = vld [vmem:[%s8131_s0 + $0x46c] ss:$140 sps:$4 sm:$0xff]   ;;  %v6168_v37 = vld [vmem:[%s8131_s0 + $0x584] ss:$140 sps:$4 sm:$0x3f]  }
  0x69   :  { %2119 = vmatprep.subr.bf16.mxu1 %v6106_v39  ;;  %v6160_v39 = vld [vmem:[%s8131_s0 + $0x468] ss:$140 sps:$4 sm:$0xff]   ;;  %v2922_v43 = vand.u32 %v6168_v37, %v6406_v7 }
  0x6a   :  { %5532 = vmatmul.mubr.msk.bf16.vlgmr.msra.gmra.mrb[48].mxu0 %vm405_vm2, %v6427_v16  ;;  %v6228_v37 = vld [vmem:[%s8131_s0 + $0x5d4] ss:$140 sps:$4 sm:$0x3f]  }
  0x6b   :  { %5533 = vmatmul.mubr.msk.bf16.vlgmr.msra.gmra.mrb[48].mxu1 %vm405_vm2, %v6427_v16  ;;  %2079 = vmatpush1.bf16.msra.mxu0 %v6101_v41  ;;  %v6166_v41 = vld [vmem:[%s8131_s0 + $0x580] ss:$140 sps:$4 sm:$0x3f]  }
  0x6c   :  { %2120 = vmatpush1.bf16.msra.mxu1 %v6104_v42  ;;  %2080 = vmatprep.subr.bf16.mxu0 %v1697_v45  ;;  %v2916_v42 = vand.u32 %v6165_v35, %v6406_v7  ;;  %v6174_v45 = vld [vmem:[%s8131_s0 + $0x47c] ss:$140 sps:$4 sm:$0xff]  }
  0x6d   :  { %2121 = vmatprep.subr.bf16.mxu1 %v1703_v47  ;;  %2110 = vmatprep.mubr.bf16.mxu0 %v6368_v3  ;;  %v2913_v47 = vand.u32 %v6163_v40, %v6406_v7  ;;  %v6222_v35 = vld [vmem:[%s8131_s0 + $0x4bc] ss:$140 sps:$4 sm:$0xff]   ;;  %v6220_v40 = vld [vmem:[%s8131_s0 + $0x4b8] ss:$140 sps:$4 sm:$0xff]  }
  0x6e   :  { %2151 = vmatprep.mubr.bf16.mxu1 %v6368_v3 }
  0x6f   :  { %2081 = vmatpush1.bf16.msra.mxu0 %v1694_v50  ;;  %v6180_v50 = vld [vmem:[%s8131_s0 + $0x594] ss:$140 sps:$4 sm:$0x3f]  }
  0x70   :  { %2122 = vmatpush1.bf16.msra.mxu1 %v1700_v51  ;;  %2160 = vmatprep.subr.bf16.mxu0 %v6115_v48  ;;  %v2919_v48 = vand.u32 %v6166_v41, %v6406_v7  ;;  %v6169_v51 = vld [vmem:[%s8131_s0 + $0x470] ss:$140 sps:$4 sm:$0xff]   ;;  %v2934_v56 = vand.u32 %v6180_v50, %v6406_v7 }
  0x71   :  { %2201 = vmatprep.subr.bf16.mxu1 %v6118_v49  ;;  %v6177_v49 = vld [vmem:[%s8131_s0 + $0x58c] ss:$140 sps:$4 sm:$0x3f]   ;;  %v6226_v41 = vld [vmem:[%s8131_s0 + $0x5d0] ss:$140 sps:$4 sm:$0x3f]  }
  0x72   :  { %5534 = vmatmul.mubr.msk.bf16.vlgmr.msra.gmra.mrb[52].mxu0 %vm405_vm2, %v6427_v16  ;;  %v6240_v50 = vld [vmem:[%s8131_s0 + $0x5e4] ss:$140 sps:$4 sm:$0x3f]  }
  0x73   :  { %5535 = vmatmul.mubr.msk.bf16.vlgmr.msra.gmra.mrb[52].mxu1 %vm405_vm2, %v6427_v16  ;;  %2161 = vmatpush1.bf16.msra.mxu0 %v6113_v54  ;;  %v6130_v16 = vld [vmem:[%s8131_s0 + $0x29c] ss:$140 sps:$4 sm:$0xff]  }
  0x74   :  { %2202 = vmatpush1.bf16.msra.mxu1 %v6116_v55  ;;  %2162 = vmatprep.subr.bf16.mxu0 %v1709_v58  ;;  %v6178_v54 = vld [vmem:[%s8131_s0 + $0x590] ss:$140 sps:$4 sm:$0x3f]   ;;  %v2928_v55 = vand.u32 %v6177_v49, %v6406_v7  ;;  %v2925_v58 = vand.u32 %v6175_v53, %v6406_v7  ;;  %v6235_v53 = vld [vmem:[%s8131_s0 + $0x5d8] ss:$140 sps:$4 sm:$0x3f]  }
  0x75   :  { %2203 = vmatprep.subr.bf16.mxu1 %v1715_v59  ;;  %2192 = vmatprep.mubr.bf16.mxu0 %v6368_v3  ;;  %v2931_v59 = vand.u32 %v6178_v54, %v6406_v7  ;;  %v6237_v49 = vld [vmem:[%s8131_s0 + $0x5dc] ss:$140 sps:$4 sm:$0x3f]   ;;  %v6238_v54 = vld [vmem:[%s8131_s0 + $0x5e0] ss:$140 sps:$4 sm:$0x3f]  }
  0x76   :  { %2233 = vmatprep.mubr.bf16.mxu1 %v6368_v3 }
  0x77   :  { %2163 = vmatpush1.bf16.msra.mxu0 %v1706_v61  ;;  %v6186_v61 = vld [vmem:[%s8131_s0 + $0x48c] ss:$140 sps:$4 sm:$0xff]  }
  0x78   :  { %2204 = vmatpush1.bf16.msra.mxu1 %v1712_v62  ;;  %2242 = vmatprep.subr.bf16.mxu0 %v6127_v60  ;;  %v6189_v60 = vld [vmem:[%s8131_s0 + $0x59c] ss:$140 sps:$4 sm:$0x3f]   ;;  %v6192_v62 = vld [vmem:[%s8131_s0 + $0x5a4] ss:$140 sps:$4 sm:$0x3f]  }
  0x79   :  { %2283 = vmatprep.subr.bf16.mxu1 %v6130_v16  ;;  %v6184_v16 = vld [vmem:[%s8131_s0 + $0x488] ss:$140 sps:$4 sm:$0xff]   ;;  %v2946_v4 = vand.u32 %v6192_v62, %v6406_v7 }
  0x7a   :  { %5536 = vmatmul.mubr.msk.bf16.vlgmr.msra.gmra.mrb[56].mxu0 %vm405_vm2, %v6930_v9  ;;  %v6252_v62 = vld [vmem:[%s8131_s0 + $0x5f4] ss:$140 sps:$4 sm:$0x3f]  }
  0x7b   :  { %5537 = vmatmul.mubr.msk.bf16.vlgmr.msra.gmra.mrb[56].mxu1 %vm405_vm2, %v6930_v9  ;;  %2243 = vmatpush1.bf16.msra.mxu0 %v6125_v1  ;;  %v6190_v1 = vld [vmem:[%s8131_s0 + $0x5a0] ss:$140 sps:$4 sm:$0x3f]  }
  0x7c   :  { %2284 = vmatpush1.bf16.msra.mxu1 %v6128_v2  ;;  %2244 = vmatprep.subr.bf16.mxu0 %v1721_v6  ;;  %v2940_v2 = vand.u32 %v6189_v60, %v6406_v7  ;;  %v2937_v6 = vand.u32 %v6187_v0, %v6406_v7  ;;  %v2991_v60 = vand.u32 %v6238_v54, %v6406_v7  ;;  %v6247_v0 = vld [vmem:[%s8131_s0 + $0x5e8] ss:$140 sps:$4 sm:$0x3f]  }
  0x7d   :  { %2285 = vmatprep.subr.bf16.mxu1 %v1727_v8  ;;  %2274 = vmatprep.mubr.bf16.mxu0 %v6368_v3  ;;  %v2943_v8 = vand.u32 %v6190_v1, %v6406_v7  ;;  %v6250_v1 = vld [vmem:[%s8131_s0 + $0x5f0] ss:$140 sps:$4 sm:$0x3f]  }
  0x7e   :  { %2315 = vmatprep.mubr.bf16.mxu1 %v6368_v3  ;;  %v6290_v54 = vld [vmem:[%s8131_s0 + $0x6bc] ss:$140 sps:$4 sm:$0xff]  }
  0x7f   :  { %2245 = vmatpush1.bf16.msra.mxu0 %v1718_v11  ;;  %v6201_v11 = vld [vmem:[%s8131_s0 + $0x5ac] ss:$140 sps:$4 sm:$0x3f]  }
  0x80   :  { %2286 = vmatpush1.bf16.msra.mxu1 %v1724_v12  ;;  %2324 = vmatprep.subr.bf16.mxu0 %v6139_v10  ;;  %v6198_v10 = vld [vmem:[%s8131_s0 + $0x49c] ss:$140 sps:$4 sm:$0xff]   ;;  %v6204_v12 = vld [vmem:[%s8131_s0 + $0x5b4] ss:$140 sps:$4 sm:$0x3f]   ;;  %v2952_v18 = vand.u32 %v6201_v11, %v6406_v7 }
  0x81   :  { %2365 = vmatprep.subr.bf16.mxu1 %v6142_v13  ;;  %v6193_v13 = vld [vmem:[%s8131_s0 + $0x490] ss:$140 sps:$4 sm:$0xff]  }
  0x82   :  { %5538 = vmatmul.mubr.msk.bf16.vlgmr.msra.gmra.mrb[60].mxu0 %vm405_vm2, %v6930_v9  ;;  %v6259_v11 = vld [vmem:[%s8131_s0 + $0x5fc] ss:$140 sps:$4 sm:$0x3f]  }
  0x83   :  { %5539 = vmatmul.mubr.msk.bf16.vlgmr.msra.gmra.mrb[60].mxu1 %vm405_vm2, %v6930_v9  ;;  %2325 = vmatpush1.bf16.msra.mxu0 %v6137_v17  ;;  %v6202_v17 = vld [vmem:[%s8131_s0 + $0x5b0] ss:$140 sps:$4 sm:$0x3f]  }
  0x84   :  { %2366 = vmatpush1.bf16.msra.mxu1 %v6140_v19  ;;  %2326 = vmatprep.subr.bf16.mxu0 %v1733_v21  ;;  %v2958_v19 = vand.u32 %v6204_v12, %v6406_v7  ;;  %v6210_v21 = vld [vmem:[%s8131_s0 + $0x4ac] ss:$140 sps:$4 sm:$0xff]  }
  0x85   :  { %2367 = vmatprep.subr.bf16.mxu1 %v1739_v22  ;;  %2356 = vmatprep.mubr.bf16.mxu0 %v6368_v3  ;;  %v2949_v22 = vand.u32 %v6199_v14, %v6406_v7  ;;  %v6253_v12 = vld [vmem:[%s8131_s0 + $0x4e0] ss:$140 sps:$4 sm:$0xff]   ;;  %v6257_v14 = vld [vmem:[%s8131_s0 + $0x5f8] ss:$140 sps:$4 sm:$0x3f]  }
  0x86   :  { %2397 = vmatprep.mubr.bf16.mxu1 %v6368_v3 }
  0x87   :  { %2327 = vmatpush1.bf16.msra.mxu0 %v1730_v23  ;;  %v2955_v23 = vand.u32 %v6202_v17, %v6406_v7  ;;  %v3012_v17 = vand.u32 %v6259_v11, %v6406_v7  ;;  %v6299_v11 = vld [vmem:[%s8131_s0 + $0x6c4] ss:$140 sps:$4 sm:$0xff]  }
  0x88   :  { %2368 = vmatpush1.bf16.msra.mxu1 %v1736_v24  ;;  %2406 = vmatprep.subr.bf16.mxu0 %v6151_v25  ;;  %v6213_v24 = vld [vmem:[%s8131_s0 + $0x5bc] ss:$140 sps:$4 sm:$0x3f]   ;;  %v6216_v25 = vld [vmem:[%s8131_s0 + $0x5c4] ss:$140 sps:$4 sm:$0x3f]  }
  0x89   :  { %5920 = vmatprep.subr.bf16.mxu1 %v6369_v46  ;;  %v2964_v30 = vand.u32 %v6213_v24, %v6406_v7  ;;  %v6261_v24 = vld [vmem:[%s8131_s0 + $0x690] ss:$140 sps:$4 sm:$0xff]  }
  0x8a   :  { %5540 = vmatmul.mubr.msk.bf16.vlgmr.msra.gmra.mrb[64].mxu0 %vm405_vm2, %v6930_v9 }
  0x8b   :  { %5541 = vmatmul.mubr.msk.bf16.vlgmr.msra.gmra.mrb[64].mxu1 %vm405_vm2, %v6930_v9  ;;  %2407 = vmatpush1.bf16.msra.mxu0 %v6149_v27  ;;  %v6208_v27 = vld [vmem:[%s8131_s0 + $0x4a8] ss:$140 sps:$4 sm:$0xff]  }
  0x8c   :  { %5921 = vmatpush3.bf16.msra.mxu1 %v6152_v28  ;;  %2408 = vmatprep.subr.bf16.mxu0 %v1745_v31  ;;  %v6211_v28 = vld [vmem:[%s8131_s0 + $0x5b8] ss:$140 sps:$4 sm:$0x3f]   ;;  %v2970_v31 = vand.u32 %v6216_v25, %v6406_v7 }
  0x8d   :  { %5922 = vmatprep.subr.bf16.mxu1 %v6369_v46  ;;  %2438 = vmatprep.mubr.bf16.mxu0 %v6368_v3  ;;  %v6264_v25 = vld [vmem:[%s8131_s0 + $0x698] ss:$140 sps:$4 sm:$0xff]  }
  0x8e   :  { %5924 = vmatprep.mubr.msk.bf16.mxu1 %vm6370_vm3, %v6369_v46 }
  0x8f   :  { %2409 = vmatpush1.bf16.msra.mxu0 %v1742_v33  ;;  %v2961_v33 = vand.u32 %v6211_v28, %v6406_v7 }
  0x90   :  { %5923 = vmatpush3.bf16.msra.mxu1 %v1748_v34  ;;  %3017 = vmatprep.subr.bf16.mxu0 %v6159_v32  ;;  %v6219_v32 = vld [vmem:[%s8131_s0 + $0x4b4] ss:$140 sps:$4 sm:$0xff]   ;;  %v2967_v34 = vand.u32 %v6214_v29, %v6406_v7 }
  0x91   :  { %3058 = vmatprep.subr.bf16.mxu1 %v6162_v36  ;;  %v6225_v36 = vld [vmem:[%s8131_s0 + $0x5cc] ss:$140 sps:$4 sm:$0x3f]  }
  0x92   :  { %5542 = vmatmul.mubr.msk.bf16.vlgmr.msra.gmra.mrb[68].mxu0 %vm405_vm2, %v6930_v9 }
  0x93   :  { %5925 = vmatmul.mubr.msk.bf16.vlgmr.msra.gmra.mrb[68].mxu1 %vm405_vm2, %v6930_v9  ;;  %3018 = vmatpush1.bf16.msra.mxu0 %v6157_v38  ;;  %v6217_v38 = vld [vmem:[%s8131_s0 + $0x4b0] ss:$140 sps:$4 sm:$0xff]  }
  0x94   :  { %3059 = vmatpush1.bf16.msra.mxu1 %v6160_v39  ;;  %3019 = vmatprep.subr.bf16.mxu0 %v2916_v42  ;;  %v6223_v39 = vld [vmem:[%s8131_s0 + $0x5c8] ss:$140 sps:$4 sm:$0x3f]   ;;  %v2976_v42 = vand.u32 %v6225_v36, %v6406_v7 }
  0x95   :  { %3060 = vmatprep.subr.bf16.mxu1 %v2922_v43  ;;  %3049 = vmatprep.mubr.bf16.mxu0 %v6368_v3  ;;  %v2982_v43 = vand.u32 %v6228_v37, %v6406_v7 }
  0x96   :  { %3090 = vmatprep.mubr.bf16.mxu1 %v6368_v3 }
  0x97   :  { %3020 = vmatpush1.bf16.msra.mxu0 %v2913_v47  ;;  %v2979_v47 = vand.u32 %v6226_v41, %v6406_v7 }
  0x98   :  { %3061 = vmatpush1.bf16.msra.mxu1 %v2919_v48  ;;  %3099 = vmatprep.subr.bf16.mxu0 %v6171_v44  ;;  %v6231_v44 = vld [vmem:[%s8131_s0 + $0x4c4] ss:$140 sps:$4 sm:$0xff]   ;;  %v6234_v48 = vld [vmem:[%s8131_s0 + $0x4cc] ss:$140 sps:$4 sm:$0xff]  }
  0x99   :  { %3140 = vmatprep.subr.bf16.mxu1 %v6174_v45  ;;  %v2973_v45 = vand.u32 %v6223_v39, %v6406_v7  ;;  %v6276_v39 = vld [vmem:[%s8131_s0 + $0x6a8] ss:$140 sps:$4 sm:$0xff]  }
  0x9a   :  { %5686 = vmatmul.mubr.msk.bf16.vlgmr.msra.gmra.mrb[72].mxu0 %vm405_vm2, %v6930_v9 }
  0x9b   :  { %5687 = vmatmul.mubr.msk.bf16.vlgmr.msra.gmra.mrb[72].mxu1 %vm405_vm2, %v6930_v9  ;;  %3100 = vmatpush1.bf16.msra.mxu0 %v6169_v51  ;;  %v6229_v51 = vld [vmem:[%s8131_s0 + $0x4c0] ss:$140 sps:$4 sm:$0xff]  }
  0x9c   :  { %3141 = vmatpush1.bf16.msra.mxu1 %v6172_v52  ;;  %3101 = vmatprep.subr.bf16.mxu0 %v2928_v55  ;;  %v6232_v52 = vld [vmem:[%s8131_s0 + $0x4c8] ss:$140 sps:$4 sm:$0xff]   ;;  %v2988_v55 = vand.u32 %v6237_v49, %v6406_v7 }
  0x9d   :  { %3142 = vmatprep.subr.bf16.mxu1 %v2934_v56  ;;  %3131 = vmatprep.mubr.bf16.mxu0 %v6368_v3  ;;  %v2994_v56 = vand.u32 %v6240_v50, %v6406_v7 }
  0x9e   :  { %3172 = vmatprep.mubr.bf16.mxu1 %v6368_v3 }
  0x9f   :  { %3102 = vmatpush1.bf16.msra.mxu0 %v2925_v58  ;;  %v6249_v58 = vld [vmem:[%s8131_s0 + $0x5ec] ss:$140 sps:$4 sm:$0x3f]  }
  0xa0   :  { %3143 = vmatpush1.bf16.msra.mxu1 %v2931_v59  ;;  %3181 = vmatprep.subr.bf16.mxu0 %v6183_v57  ;;  %v6243_v57 = vld [vmem:[%s8131_s0 + $0x4d4] ss:$140 sps:$4 sm:$0xff]   ;;  %v2985_v59 = vand.u32 %v6235_v53, %v6406_v7 }
  0xa1   :  { %3222 = vmatprep.subr.bf16.mxu1 %v6186_v61  ;;  %v6246_v61 = vld [vmem:[%s8131_s0 + $0x4dc] ss:$140 sps:$4 sm:$0xff]   ;;  %v6287_v53 = vld [vmem:[%s8131_s0 + $0x6b4] ss:$140 sps:$4 sm:$0xff]  }
  0xa2   :  { %5688 = vmatmul.mubr.msk.bf16.vlgmr.msra.gmra.mrb[76].mxu0 %vm405_vm2, %v6930_v9 }
  0xa3   :  { %5689 = vmatmul.mubr.msk.bf16.vlgmr.msra.gmra.mrb[76].mxu1 %vm405_vm2, %v6930_v9  ;;  %3182 = vmatpush1.bf16.msra.mxu0 %v6181_v63  ;;  %v6241_v63 = vld [vmem:[%s8131_s0 + $0x4d0] ss:$140 sps:$4 sm:$0xff]  }
  0xa4   :  { %3223 = vmatpush1.bf16.msra.mxu1 %v6184_v16  ;;  %3183 = vmatprep.subr.bf16.mxu0 %v2940_v2  ;;  %v6244_v16 = vld [vmem:[%s8131_s0 + $0x4d8] ss:$140 sps:$4 sm:$0xff]  }
  0xa5   :  { %3224 = vmatprep.subr.bf16.mxu1 %v2946_v4  ;;  %3213 = vmatprep.mubr.bf16.mxu0 %v6368_v3  ;;  %v5056_v2 = vld [vmem:[%s8133_s2] sm:$0x3f]  ;;  %v3000_v4 = vand.u32 %v6249_v58, %v6406_v7 }
  0xa6   :  { %3254 = vmatprep.mubr.bf16.mxu1 %v6368_v3  ;;  %5059 = vperm.xlu0 %5948, %v5056_v2  }
  0xa7   :  { %3184 = vmatpush1.bf16.msra.mxu0 %v2937_v6  ;;  %v2997_v6 = vand.u32 %v6247_v0, %v6406_v7 }
  0xa8   :  { %3225 = vmatpush1.bf16.msra.mxu1 %v2943_v8  ;;  %3263 = vmatprep.subr.bf16.mxu0 %v6195_v5  ;;  %v3006_v5 = vand.u32 %v6252_v62, %v6406_v7  ;;  %v3003_v8 = vand.u32 %v6250_v1, %v6406_v7  ;;  %v6294_v1 = vld [vmem:[%s8131_s0 + $0x7d0] ss:$140 sps:$4 sm:$0x3f]  }
  0xa9   :  { %3304 = vmatprep.subr.bf16.mxu1 %v6198_v10  ;;  %v6255_v10 = vld [vmem:[%s8131_s0 + $0x4e4] ss:$140 sps:$4 sm:$0xff]  }
  0xaa   :  { %5690 = vmatmul.mubr.msk.bf16.vlgmr.msra.gmra.mrb[80].mxu0 %vm405_vm2, %v6930_v9 }
  0xab   :  { %5691 = vmatmul.mubr.msk.bf16.vlgmr.msra.gmra.mrb[80].mxu1 %vm405_vm2, %v6930_v9  ;;  %3264 = vmatpush1.bf16.msra.mxu0 %v6193_v13  ;;  %v6256_v13 = vld [vmem:[%s8131_s0 + $0x4e8] ss:$140 sps:$4 sm:$0xff]  }
  0xac   :  { %3305 = vmatpush1.bf16.msra.mxu1 %v6196_v15  ;;  %3265 = vmatprep.subr.bf16.mxu0 %v2952_v18  ;;  %v6260_v15 = vld [vmem:[%s8131_s0 + $0x600] ss:$140 sps:$4 sm:$0x3f]   ;;  %v3009_v18 = vand.u32 %v6257_v14, %v6406_v7  ;;  %v6308_v14 = vld [vmem:[%s8131_s0 + $0x7e4] ss:$140 sps:$4 sm:$0x3f]  }
  0xad   :  { %3306 = vmatprep.subr.bf16.mxu1 %v2958_v19  ;;  %3295 = vmatprep.mubr.bf16.mxu0 %v6368_v3  ;;  %v3015_v19 = vand.u32 %v6260_v15, %v6406_v7 }
  0xae   :  { %3336 = vmatprep.mubr.bf16.mxu1 %v6368_v3 }
  0xaf   :  { %3266 = vmatpush1.bf16.msra.mxu0 %v2949_v22  ;;  %v6269_v22 = vld [vmem:[%s8131_s0 + $0x7ac] ss:$140 sps:$4 sm:$0x3f]  }
  0xb0   :  { %3307 = vmatpush1.bf16.msra.mxu1 %v2955_v23  ;;  %3345 = vmatprep.subr.bf16.mxu0 %v6207_v20  ;;  %v6263_v20 = vld [vmem:[%s8131_s0 + $0x694] ss:$140 sps:$4 sm:$0xff]   ;;  %v4183_v28 = vand.u32 %v6269_v22, %v6406_v7  ;;  %v6303_v22 = vld [vmem:[%s8131_s0 + $0x7d8] ss:$140 sps:$4 sm:$0x3f]  }
  0xb1   :  { %3386 = vmatprep.subr.bf16.mxu1 %v6210_v21  ;;  %v6266_v21 = vld [vmem:[%s8131_s0 + $0x69c] ss:$140 sps:$4 sm:$0xff]   ;;  %v6272_v23 = vld [vmem:[%s8131_s0 + $0x7b4] ss:$140 sps:$4 sm:$0x3f]  }
  0xb2   :  { %5692 = vmatmul.mubr.msk.bf16.vlgmr.msra.gmra.mrb[84].mxu0 %vm405_vm2, %v6930_v9  ;;  %v4189_v29 = vand.u32 %v6272_v23, %v6406_v7 }
  0xb3   :  { %5693 = vmatmul.mubr.msk.bf16.vlgmr.msra.gmra.mrb[84].mxu1 %vm405_vm2, %v6930_v9  ;;  %3346 = vmatpush1.bf16.msra.mxu0 %v6205_v26  ;;  %v6267_v26 = vld [vmem:[%s8131_s0 + $0x7a8] ss:$140 sps:$4 sm:$0x3f]  }
  0xb4   :  { %3387 = vmatpush1.bf16.msra.mxu1 %v6208_v27  ;;  %3347 = vmatprep.subr.bf16.mxu0 %v2964_v30  ;;  %v6270_v27 = vld [vmem:[%s8131_s0 + $0x7b0] ss:$140 sps:$4 sm:$0x3f]   ;;  %v4180_v30 = vand.u32 %v6267_v26, %v6406_v7 }
  0xb5   :  { %3388 = vmatprep.subr.bf16.mxu1 %v2970_v31  ;;  %3377 = vmatprep.mubr.bf16.mxu0 %v6368_v3  ;;  %v4186_v31 = vand.u32 %v6270_v27, %v6406_v7 }
  0xb6   :  { %3418 = vmatprep.mubr.bf16.mxu1 %v6368_v3 }
  0xb7   :  { %3348 = vmatpush1.bf16.msra.mxu0 %v2961_v33  ;;  %v6278_v33 = vld [vmem:[%s8131_s0 + $0x6ac] ss:$140 sps:$4 sm:$0xff]  }
  0xb8   :  { %3389 = vmatpush1.bf16.msra.mxu1 %v2967_v34  ;;  %3427 = vmatprep.subr.bf16.mxu0 %v6219_v32  ;;  %v6275_v32 = vld [vmem:[%s8131_s0 + $0x6a4] ss:$140 sps:$4 sm:$0xff]   ;;  %v6281_v34 = vld [vmem:[%s8131_s0 + $0x7bc] ss:$140 sps:$4 sm:$0x3f]  }
  0xb9   :  { %3468 = vmatprep.subr.bf16.mxu1 %v6222_v35  ;;  %v6284_v35 = vld [vmem:[%s8131_s0 + $0x7c4] ss:$140 sps:$4 sm:$0x3f]   ;;  %v4195_v49 = vand.u32 %v6281_v34, %v6406_v7  ;;  %v6320_v34 = vld [vmem:[%s8131_s0 + $0x7f4] ss:$140 sps:$4 sm:$0x3f]  }
  0xba   :  { %5694 = vmatmul.mubr.msk.bf16.vlgmr.msra.gmra.mrb[88].mxu0 %vm405_vm2, %v6930_v9  ;;  %v4201_v50 = vand.u32 %v6284_v35, %v6406_v7 }
  0xbb   :  { %5695 = vmatmul.mubr.msk.bf16.vlgmr.msra.gmra.mrb[88].mxu1 %vm405_vm2, %v6930_v9  ;;  %3428 = vmatpush1.bf16.msra.mxu0 %v6217_v38  ;;  %v6273_v38 = vld [vmem:[%s8131_s0 + $0x6a0] ss:$140 sps:$4 sm:$0xff]  }
  0xbc   :  { %3469 = vmatpush1.bf16.msra.mxu1 %v6220_v40  ;;  %3429 = vmatprep.subr.bf16.mxu0 %v2976_v42  ;;  %v6279_v42 = vld [vmem:[%s8131_s0 + $0x7b8] ss:$140 sps:$4 sm:$0x3f]  }
  0xbd   :  { %3470 = vmatprep.subr.bf16.mxu1 %v2982_v43  ;;  %3459 = vmatprep.mubr.bf16.mxu0 %v6368_v3 }
  0xbe   :  { %3500 = vmatprep.mubr.bf16.mxu1 %v6368_v3 }
  0xbf   :  { %3430 = vmatpush1.bf16.msra.mxu0 %v2973_v45  ;;  %v6282_v45 = vld [vmem:[%s8131_s0 + $0x7c0] ss:$140 sps:$4 sm:$0x3f]  }
  0xc0   :  { %3471 = vmatpush1.bf16.msra.mxu1 %v2979_v47  ;;  %3509 = vmatprep.subr.bf16.mxu0 %v6231_v44 }
  0xc1   :  { %3550 = vmatprep.subr.bf16.mxu1 %v6234_v48 }
  0xc2   :  { %5696 = vmatmul.mubr.msk.bf16.vlgmr.msra.gmra.mrb[92].mxu0 %vm405_vm2, %v6930_v9 }
  0xc3   :  { %5697 = vmatmul.mubr.msk.bf16.vlgmr.msra.gmra.mrb[92].mxu1 %vm405_vm2, %v6930_v9  ;;  %3510 = vmatpush1.bf16.msra.mxu0 %v6229_v51  ;;  %v4192_v51 = vand.u32 %v6279_v42, %v6406_v7  ;;  %v6312_v42 = vld [vmem:[%s8131_s0 + $0x6d8] ss:$140 sps:$4 sm:$0xff]  }
  0xc4   :  { %3551 = vmatpush1.bf16.msra.mxu1 %v6232_v52  ;;  %3511 = vmatprep.subr.bf16.mxu0 %v2988_v55  ;;  %v4198_v52 = vand.u32 %v6282_v45, %v6406_v7  ;;  %v6293_v55 = vld [vmem:[%s8131_s0 + $0x7cc] ss:$140 sps:$4 sm:$0x3f]   ;;  %v6315_v45 = vld [vmem:[%s8131_s0 + $0x7e8] ss:$140 sps:$4 sm:$0x3f]  }
  0xc5   :  { %3552 = vmatprep.subr.bf16.mxu1 %v2994_v56  ;;  %3541 = vmatprep.mubr.bf16.mxu0 %v6368_v3  ;;  %v6296_v56 = vld [vmem:[%s8131_s0 + $0x7d4] ss:$140 sps:$4 sm:$0x3f]  }
  0xc6   :  { %3582 = vmatprep.mubr.bf16.mxu1 %v6368_v3 }
  0xc7   :  { %3512 = vmatpush1.bf16.msra.mxu0 %v2985_v59  ;;  %v6285_v59 = vld [vmem:[%s8131_s0 + $0x6b0] ss:$140 sps:$4 sm:$0xff]  }
  0xc8   :  { %3553 = vmatpush1.bf16.msra.mxu1 %v2991_v60  ;;  %3591 = vmatprep.subr.bf16.mxu0 %v6243_v57  ;;  %v6288_v60 = vld [vmem:[%s8131_s0 + $0x6b8] ss:$140 sps:$4 sm:$0xff]  }
  0xc9   :  { %3632 = vmatprep.subr.bf16.mxu1 %v6246_v61 }
  0xca   :  { %5698 = vmatmul.mubr.msk.bf16.vlgmr.msra.gmra.mrb[96].mxu0 %vm405_vm2, %v6930_v9 }
  0xcb   :  { %5699 = vmatmul.mubr.msk.bf16.vlgmr.msra.gmra.mrb[96].mxu1 %vm405_vm2, %v6930_v9  ;;  %3592 = vmatpush1.bf16.msra.mxu0 %v6241_v63  ;;  %v6291_v63 = vld [vmem:[%s8131_s0 + $0x7c8] ss:$140 sps:$4 sm:$0x3f]  }
  0xcc   :  { %3633 = vmatpush1.bf16.msra.mxu1 %v6244_v16  ;;  %3593 = vmatprep.subr.bf16.mxu0 %v3000_v4 }
  0xcd   :  { %3634 = vmatprep.subr.bf16.mxu1 %v3006_v5  ;;  %3623 = vmatprep.mubr.bf16.mxu0 %v6368_v3  ;;  %v4207_v5 = vand.u32 %v6293_v55, %v6406_v7  ;;  %v4228_v55 = vand.u32 %v6315_v45, %v6406_v7 }
  0xce   :  { %3664 = vmatprep.mubr.bf16.mxu1 %v6368_v3 }
  0xcf   :  { %3594 = vmatpush1.bf16.msra.mxu0 %v2997_v6  ;;  %v4213_v6 = vand.u32 %v6296_v56, %v6406_v7 }
  0xd0   :  { %3635 = vmatpush1.bf16.msra.mxu1 %v3003_v8  ;;  %3673 = vmatprep.subr.bf16.mxu0 %v6255_v10  ;;  %v4204_v8 = vand.u32 %v6291_v63, %v6406_v7  ;;  %v4210_v10 = vand.u32 %v6294_v1, %v6406_v7  ;;  %v6329_v63 = vld [vmem:[%s8131_s0 + $0x7fc] ss:$140 sps:$4 sm:$0x3f]  }
  0xd1   :  { %5928 = vmatprep.subr.bf16.mxu1 %v6369_v46 }
  0xd2   :  { %5700 = vmatmul.mubr.msk.bf16.vlgmr.msra.gmra.mrb[100].mxu0 %vm405_vm2, %v6930_v9 }
  0xd3   :  { %5701 = vmatmul.mubr.msk.bf16.vlgmr.msra.gmra.mrb[100].mxu1 %vm405_vm2, %v6930_v9  ;;  %3674 = vmatpush1.bf16.msra.mxu0 %v6253_v12  ;;  %v6302_v12 = vld [vmem:[%s8131_s0 + $0x6cc] ss:$140 sps:$4 sm:$0xff]  }
  0xd4   :  { %5929 = vmatpush3.bf16.msra.mxu1 %v6256_v13  ;;  %3675 = vmatprep.subr.bf16.mxu0 %v3012_v17  ;;  %v6305_v13 = vld [vmem:[%s8131_s0 + $0x7dc] ss:$140 sps:$4 sm:$0x3f]  }
  0xd5   :  { %5930 = vmatprep.subr.bf16.mxu1 %v6369_v46  ;;  %3705 = vmatprep.mubr.bf16.mxu0 %v6368_v3 }
  0xd6   :  { %5932 = vmatprep.mubr.msk.bf16.mxu1 %vm6370_vm3, %v6369_v46 }
  0xd7   :  { %3676 = vmatpush1.bf16.msra.mxu0 %v3009_v18  ;;  %v6297_v18 = vld [vmem:[%s8131_s0 + $0x6c0] ss:$140 sps:$4 sm:$0xff]  }
  0xd8   :  { %5931 = vmatpush3.bf16.msra.mxu1 %v3015_v19  ;;  %4284 = vmatprep.subr.bf16.mxu0 %v6263_v20  ;;  %v6300_v19 = vld [vmem:[%s8131_s0 + $0x6c8] ss:$140 sps:$4 sm:$0xff]  }
  0xd9   :  { %4325 = vmatprep.subr.bf16.mxu1 %v6266_v21 }
  0xda   :  { %5702 = vmatmul.mubr.msk.bf16.vlgmr.msra.gmra.mrb[104].mxu0 %vm405_vm2, %v6930_v9 }
  0xdb   :  { %5933 = vmatmul.mubr.msk.bf16.vlgmr.msra.gmra.mrb[104].mxu1 %vm405_vm2, %v6930_v9  ;;  %4285 = vmatpush1.bf16.msra.mxu0 %v6261_v24 }
  0xdc   :  { %4326 = vmatpush1.bf16.msra.mxu1 %v6264_v25  ;;  %4286 = vmatprep.subr.bf16.mxu0 %v4183_v28  ;;  %v6306_v25 = vld [vmem:[%s8131_s0 + $0x7e0] ss:$140 sps:$4 sm:$0x3f]   ;;  %v4219_v28 = vand.u32 %v6305_v13, %v6406_v7 }
  0xdd   :  { %4327 = vmatprep.subr.bf16.mxu1 %v4189_v29  ;;  %v7353_v36 = vpop.f32.mrb[0].mxu0  ;;  %4316 = vmatprep.mubr.bf16.mxu0 %v6368_v3  ;;  %v4225_v29 = vand.u32 %v6308_v14, %v6406_v7 }
  0xde   :  { %v7355_v37 = vpop.f32.mrb[0].mxu1  ;;  %4357 = vmatprep.mubr.bf16.mxu1 %v6368_v3  ;;  %v7365_v40 = vpop.f32.mrb[1].mxu0 }
  0xdf   :  { %v7367_v41 = vpop.f32.mrb[1].mxu1  ;;  %v556_v43 = vpop.f32.mrb[2].mxu0  ;;  %4287 = vmatpush1.bf16.msra.mxu0 %v4180_v30  ;;  %v4216_v30 = vand.u32 %v6303_v22, %v6406_v7 }
  0xe0   :  { %v597_v44 = vpop.f32.mrb[2].mxu1  ;;  %4328 = vmatpush1.bf16.msra.mxu1 %v4186_v31  ;;  %v557_v47 = vpop.f32.mrb[3].mxu0  ;;  %4366 = vmatprep.subr.bf16.mxu0 %v6275_v32  ;;  %v4222_v31 = vand.u32 %v6306_v25, %v6406_v7  ;;  %v6311_v32 = vld [vmem:[%s8131_s0 + $0x6d4] ss:$140 sps:$4 sm:$0xff]   ;;  %v6338_v25 = vld [vmem:[%s8131_s0 + $0x6fc] ss:$140 sps:$4 sm:$0xff]  }
  0xe1   :  { %v598_v48 = vpop.f32.mrb[3].mxu1  ;;  %4407 = vmatprep.subr.bf16.mxu1 %v6278_v33  ;;  %v6314_v33 = vld [vmem:[%s8131_s0 + $0x6dc] ss:$140 sps:$4 sm:$0xff]  }
  0xe2   :  { %5846 = vmatmul.mubr.msk.bf16.vlgmr.msra.gmra.mrb[108].mxu0 %vm405_vm2, %v6930_v9 }
  0xe3   :  { %5847 = vmatmul.mubr.msk.bf16.vlgmr.msra.gmra.mrb[108].mxu1 %vm405_vm2, %v6930_v9  ;;  %4367 = vmatpush1.bf16.msra.mxu0 %v6273_v38 }
  0xe4   :  { %4408 = vmatpush1.bf16.msra.mxu1 %v6276_v39  ;;  %4368 = vmatprep.subr.bf16.mxu0 %v4195_v49  ;;  %v6309_v39 = vld [vmem:[%s8131_s0 + $0x6d0] ss:$140 sps:$4 sm:$0xff]  }
  0xe5   :  { %4409 = vmatprep.subr.bf16.mxu1 %v4201_v50  ;;  %v7395_v57 = vpop.f32.mrb[4].mxu0  ;;  %4398 = vmatprep.mubr.bf16.mxu0 %v6368_v3  ;;  %v6318_v49 = vld [vmem:[%s8131_s0 + $0x7f0] ss:$140 sps:$4 sm:$0x3f]  }
  0xe6   :  { %v7397_v58 = vpop.f32.mrb[4].mxu1  ;;  %4439 = vmatprep.mubr.bf16.mxu1 %v6368_v3  ;;  %v7407_v61 = vpop.f32.mrb[5].mxu0  ;;  %v4234_v56 = vand.u32 %v6318_v49, %v6406_v7 }
  0xe7   :  { %v7409_v62 = vpop.f32.mrb[5].mxu1  ;;  %v638_v16 = vpop.f32.mrb[6].mxu0  ;;  %4369 = vmatpush1.bf16.msra.mxu0 %v4192_v51 }
  0xe8   :  { %v679_v0 = vpop.f32.mrb[6].mxu1  ;;  %4410 = vmatpush1.bf16.msra.mxu1 %v4198_v52  ;;  %v639_v2 = vpop.f32.mrb[7].mxu0  ;;  %4448 = vmatprep.subr.bf16.mxu0 %v6287_v53  ;;  %v4237_v53 = vand.u32 %v6320_v34, %v6406_v7  ;;  %v6332_v16 = vld [vmem:[%s8131_s0 + $0x804] ss:$140 sps:$4 sm:$0x3f]  }
  0xe9   :  { %v680_v4 = vpop.f32.mrb[7].mxu1  ;;  %4489 = vmatprep.subr.bf16.mxu1 %v6290_v54  ;;  %v7506_v54 = vld [vmem:[%s8132_s1] sm:$0x7] }
  0xea   :  { %5848 = vmatmul.mubr.msk.bf16.vlgmr.msra.gmra.mrb[112].mxu0 %vm405_vm2, %v6930_v9  ;;  %v6321_v2 = vld [vmem:[%s8131_s0 + $0x6e0] ss:$140 sps:$4 sm:$0xff]   ;;  %v6324_v4 = vld [vmem:[%s8131_s0 + $0x6e8] ss:$140 sps:$4 sm:$0xff]  }
  0xeb   :  { %5849 = vmatmul.mubr.msk.bf16.vlgmr.msra.gmra.mrb[112].mxu1 %vm405_vm2, %v6930_v9  ;;  %4449 = vmatpush1.bf16.msra.mxu0 %v6285_v59  ;;  %v6323_v59 = vld [vmem:[%s8131_s0 + $0x6e4] ss:$140 sps:$4 sm:$0xff]  }
  0xec   :  { %4490 = vmatpush1.bf16.msra.mxu1 %v6288_v60  ;;  %4450 = vmatprep.subr.bf16.mxu0 %v4207_v5  ;;  %v6326_v60 = vld [vmem:[%s8131_s0 + $0x6ec] ss:$140 sps:$4 sm:$0xff]  }
  0xed   :  { %4491 = vmatprep.subr.bf16.mxu1 %v4213_v6  ;;  %v7437_v15 = vpop.f32.mrb[8].mxu0  ;;  %4480 = vmatprep.mubr.bf16.mxu0 %v6368_v3 }
  0xee   :  { %v7439_v17 = vpop.f32.mrb[8].mxu1  ;;  %4521 = vmatprep.mubr.bf16.mxu1 %v6368_v3  ;;  %v7449_v20 = vpop.f32.mrb[9].mxu0 }
  0xef   :  { %v7451_v21 = vpop.f32.mrb[9].mxu1  ;;  %v720_v23 = vpop.f32.mrb[10].mxu0  ;;  %4451 = vmatpush1.bf16.msra.mxu0 %v4204_v8  ;;  %v6327_v8 = vld [vmem:[%s8131_s0 + $0x7f8] ss:$140 sps:$4 sm:$0x3f]  }
  0xf0   :  { %v761_v24 = vpop.f32.mrb[10].mxu1  ;;  %4492 = vmatpush1.bf16.msra.mxu1 %v4210_v10  ;;  %v721_v26 = vpop.f32.mrb[11].mxu0  ;;  %4530 = vmatprep.subr.bf16.mxu0 %v6299_v11  ;;  %v4240_v22 = vand.u32 %v6327_v8, %v6406_v7  ;;  %v6351_v8 = vld [vmem:[%s8131_s0 + $0x818] ss:$140 sps:$4 sm:$0x3f]  }
  0xf1   :  { %v762_v27 = vpop.f32.mrb[11].mxu1  ;;  %4571 = vmatprep.subr.bf16.mxu1 %v6302_v12  ;;  %v6330_v12 = vld [vmem:[%s8131_s0 + $0x800] ss:$140 sps:$4 sm:$0x3f]  }
  0xf2   :  { %5850 = vmatmul.mubr.msk.bf16.vlgmr.msra.gmra.mrb[116].mxu0 %vm405_vm2, %v6930_v9  ;;  %v4246_v23 = vand.u32 %v6330_v12, %v6406_v7  ;;  %v6335_v24 = vld [vmem:[%s8131_s0 + $0x6f4] ss:$140 sps:$4 sm:$0xff]   ;;  %v6341_v26 = vld [vmem:[%s8131_s0 + $0x80c] ss:$140 sps:$4 sm:$0x3f]  }
  0xf3   :  { %5851 = vmatmul.mubr.msk.bf16.vlgmr.msra.gmra.mrb[116].mxu1 %vm405_vm2, %v6930_v9  ;;  %4531 = vmatpush1.bf16.msra.mxu0 %v6297_v18  ;;  %v6317_v9 = vld [vmem:[%s8131_s0 + $0x7ec] ss:$140 sps:$4 sm:$0x3f]   ;;  %v4243_v18 = vand.u32 %v6329_v63, %v6406_v7  ;;  %v6344_v27 = vld [vmem:[%s8131_s0 + $0x814] ss:$140 sps:$4 sm:$0x3f]  }
  0xf4   :  { %4572 = vmatpush1.bf16.msra.mxu1 %v6300_v19  ;;  %4532 = vmatprep.subr.bf16.mxu0 %v4219_v28  ;;  %v4231_v52 = vand.u32 %v6317_v9, %v6406_v7  ;;  %v4249_v19 = vand.u32 %v6332_v16, %v6406_v7  ;;  %v6339_v9 = vld [vmem:[%s8131_s0 + $0x808] ss:$140 sps:$4 sm:$0x3f]   ;;  %v4261_v49 = vand.u32 %v6344_v27, %v6406_v7  ;;  %v6345_v63 = vld [vmem:[%s8131_s0 + $0x700] ss:$140 sps:$4 sm:$0xff]  }
  0xf5   :  { %4573 = vmatprep.subr.bf16.mxu1 %v4225_v29  ;;  %v7479_v35 = vpop.f32.mrb[12].mxu0  ;;  %4562 = vmatprep.mubr.bf16.mxu0 %v6368_v3  ;;  %v6348_v16 = vld [vmem:[%s8131_s0 + $0x708] ss:$140 sps:$4 sm:$0xff]   ;;  %v6354_v12 = vld [vmem:[%s8131_s0 + $0x820] ss:$140 sps:$4 sm:$0x3f]  }
  0xf6   :  { %v7481_v38 = vpop.f32.mrb[12].mxu1  ;;  %4603 = vmatprep.mubr.bf16.mxu1 %v6368_v3  ;;  %v7491_v43 = vpop.f32.mrb[13].mxu0 }
  0xf7   :  { %v7493_v44 = vpop.f32.mrb[13].mxu1  ;;  %v802_v47 = vpop.f32.mrb[14].mxu0  ;;  %4533 = vmatpush1.bf16.msra.mxu0 %v4216_v30  ;;  %v6333_v30 = vld [vmem:[%s8131_s0 + $0x6f0] ss:$140 sps:$4 sm:$0xff]  }
  0xf8   :  { %v843_v48 = vpop.f32.mrb[14].mxu1  ;;  %4574 = vmatpush1.bf16.msra.mxu1 %v4222_v31  ;;  %v803_v50 = vpop.f32.mrb[15].mxu0  ;;  %4612 = vmatprep.subr.bf16.mxu0 %v6311_v32  ;;  %v6336_v31 = vld [vmem:[%s8131_s0 + $0x6f8] ss:$140 sps:$4 sm:$0xff]  }
  0xf9   :  { %v844_v51 = vpop.f32.mrb[15].mxu1  ;;  %4653 = vmatprep.subr.bf16.mxu1 %v6314_v33  ;;  %v4255_v48 = vand.u32 %v6341_v26, %v6406_v7  ;;  %v4252_v50 = vand.u32 %v6339_v9, %v6406_v7 }
  0xfa   :  { %5852 = vmatmul.mubr.msk.bf16.vlgmr.msra.gmra.mrb[120].mxu0 %vm405_vm2, %v7506_v54 }
  0xfb   :  { %5853 = vmatmul.mubr.msk.bf16.vlgmr.msra.gmra.mrb[120].mxu1 %vm405_vm2, %v7506_v54  ;;  %4613 = vmatpush1.bf16.msra.mxu0 %v6309_v39 }
  0xfc   :  { %4654 = vmatpush1.bf16.msra.mxu1 %v6312_v42  ;;  %4614 = vmatprep.subr.bf16.mxu0 %v4231_v52  ;;  %v6342_v42 = vld [vmem:[%s8131_s0 + $0x810] ss:$140 sps:$4 sm:$0x3f]  }
  0xfd   :  { %4655 = vmatprep.subr.bf16.mxu1 %v4237_v53  ;;  %v7526_v0 = vpop.f32.mrb[16].mxu0  ;;  %4644 = vmatprep.mubr.bf16.mxu0 %v6368_v3  ;;  %v4258_v51 = vand.u32 %v6342_v42, %v6406_v7  ;;  %v6347_v52 = vld [vmem:[%s8131_s0 + $0x704] ss:$140 sps:$4 sm:$0xff]   ;;  %v6350_v53 = vld [vmem:[%s8131_s0 + $0x70c] ss:$140 sps:$4 sm:$0xff]  }
  0xfe   :  { %v7528_v1 = vpop.f32.mrb[16].mxu1  ;;  %4685 = vmatprep.mubr.bf16.mxu1 %v6368_v3  ;;  %v7538_v5 = vpop.f32.mrb[17].mxu0 }
  0xff   :  { %8154 = vst [vmem:[#allocation2_spill] sm:$0xff] %v7528_v1  ;;  %v7540_v6 = vpop.f32.mrb[17].mxu1  ;;  %v884_v10 = vpop.f32.mrb[18].mxu0  ;;  %4615 = vmatpush1.bf16.msra.mxu0 %v4228_v55  ;;  %v6353_v55 = vld [vmem:[%s8131_s0 + $0x81c] ss:$140 sps:$4 sm:$0x3f]  }
 0x100   :  { %8155 = vst [vmem:[#allocation3_spill] sm:$0xff] %v7540_v6  ;;  %v925_v11 = vpop.f32.mrb[18].mxu1  ;;  %4656 = vmatpush1.bf16.msra.mxu1 %v4234_v56  ;;  %v885_v13 = vpop.f32.mrb[19].mxu0  ;;  %4694 = vmatprep.subr.bf16.mxu0 %v6323_v59  ;;  %v6356_v56 = vld [vmem:[%s8131_s0 + $0x824] ss:$140 sps:$4 sm:$0x3f]  }
 0x101   :  { %v926_v14 = vpop.f32.mrb[19].mxu1  ;;  %4735 = vmatprep.subr.bf16.mxu1 %v6326_v60 }
 0x102   :  { %5854 = vmatmul.mubr.msk.bf16.vlgmr.msra.gmra.mrb[124].mxu0 %vm405_vm2, %v7506_v54 }
 0x103   :  { %5855 = vmatmul.mubr.msk.bf16.vlgmr.msra.gmra.mrb[124].mxu1 %vm405_vm2, %v7506_v54  ;;  %4695 = vmatpush1.bf16.msra.mxu0 %v6321_v2 }
 0x104   :  { %4736 = vmatpush1.bf16.msra.mxu1 %v6324_v4  ;;  %4696 = vmatprep.subr.bf16.mxu0 %v4243_v18  ;;  %v4267_v18 = vand.u32 %v6353_v55, %v6406_v7 }
 0x105   :  { %4737 = vmatprep.subr.bf16.mxu1 %v4249_v19  ;;  %v7568_v28 = vpop.f32.mrb[20].mxu0  ;;  %4726 = vmatprep.mubr.bf16.mxu0 %v6368_v3  ;;  %v4273_v19 = vand.u32 %v6356_v56, %v6406_v7 }
 0x106   :  { %v7570_v29 = vpop.f32.mrb[20].mxu1  ;;  %4767 = vmatprep.mubr.bf16.mxu1 %v6368_v3  ;;  %v7580_v32 = vpop.f32.mrb[21].mxu0 }
 0x107   :  { %8156 = vst [vmem:[#allocation4_spill] sm:$0xff] %v7570_v29  ;;  %v7582_v33 = vpop.f32.mrb[21].mxu1  ;;  %v966_v34 = vpop.f32.mrb[22].mxu0  ;;  %4697 = vmatpush1.bf16.msra.mxu0 %v4240_v22  ;;  %v4264_v22 = vand.u32 %v6351_v8, %v6406_v7 }
 0x108   :  { %8157 = vst [vmem:[#allocation5_spill] sm:$0xff] %v7582_v33  ;;  %v1007_v39 = vpop.f32.mrb[22].mxu1  ;;  %4738 = vmatpush1.bf16.msra.mxu1 %v4246_v23  ;;  %v967_v45 = vpop.f32.mrb[23].mxu0  ;;  %4776 = vmatprep.subr.bf16.mxu0 %v6335_v24  ;;  %v4270_v23 = vand.u32 %v6354_v12, %v6406_v7  ;;  %v6359_v24 = vld [vmem:[%s8131_s0 + $0x714] ss:$140 sps:$4 sm:$0xff]  }
 0x109   :  { %v1008_v47 = vpop.f32.mrb[23].mxu1  ;;  %4817 = vmatprep.subr.bf16.mxu1 %v6338_v25  ;;  %v6363_v25 = vld [vmem:[%s8131_s0 + $0x82c] ss:$140 sps:$4 sm:$0x3f]  }
 0x10a   :  { %5856 = vmatmul.mubr.msk.bf16.vlgmr.msra.gmra.mrb[128].mxu0 %vm405_vm2, %v7506_v54  ;;  %v6361_v39 = vld [vmem:[%s8131_s0 + $0x828] ss:$140 sps:$4 sm:$0x3f]   ;;  %v6364_v47 = vld [vmem:[%s8131_s0 + $0x830] ss:$140 sps:$4 sm:$0x3f]  }
 0x10b   :  { %5857 = vmatmul.mubr.msk.bf16.vlgmr.msra.gmra.mrb[128].mxu1 %vm405_vm2, %v7506_v54  ;;  %4777 = vmatpush1.bf16.msra.mxu0 %v6333_v30  ;;  %v6357_v30 = vld [vmem:[%s8131_s0 + $0x710] ss:$140 sps:$4 sm:$0xff]  }
 0x10c   :  { %4818 = vmatpush1.bf16.msra.mxu1 %v6336_v31  ;;  %4778 = vmatprep.subr.bf16.mxu0 %v4255_v48  ;;  %v6360_v31 = vld [vmem:[%s8131_s0 + $0x718] ss:$140 sps:$4 sm:$0xff]  }
 0x10d   :  { %4819 = vmatprep.subr.bf16.mxu1 %v4261_v49  ;;  %v7610_v59 = vpop.f32.mrb[24].mxu0  ;;  %4808 = vmatprep.mubr.bf16.mxu0 %v6368_v3 }
 0x10e   :  { %v7612_v60 = vpop.f32.mrb[24].mxu1  ;;  %4849 = vmatprep.mubr.bf16.mxu1 %v6368_v3  ;;  %v7622_v2 = vpop.f32.mrb[25].mxu0 }
 0x10f   :  { %8158 = vst [vmem:[#allocation6_spill] sm:$0xff] %v7612_v60  ;;  %v7624_v4 = vpop.f32.mrb[25].mxu1  ;;  %v1048_v10 = vpop.f32.mrb[26].mxu0  ;;  %4779 = vmatpush1.bf16.msra.mxu0 %v4252_v50  ;;  %v4279_v50 = vand.u32 %v6363_v25, %v6406_v7 }
 0x110   :  { %8159 = vst [vmem:[#allocation7_spill] sm:$0xff] %v7624_v4  ;;  %v1089_v11 = vpop.f32.mrb[26].mxu1  ;;  %4820 = vmatpush1.bf16.msra.mxu1 %v4258_v51  ;;  %v1049_v13 = vpop.f32.mrb[27].mxu0  ;;  %4858 = vmatprep.subr.bf16.mxu0 %v6347_v52  ;;  %v4276_v51 = vand.u32 %v6361_v39, %v6406_v7  ;;  %v4282_v52 = vand.u32 %v6364_v47, %v6406_v7 }
 0x111   :  { %v1090_v14 = vpop.f32.mrb[27].mxu1  ;;  %4899 = vmatprep.subr.bf16.mxu1 %v6350_v53 }
 0x112   :  { %5858 = vmatmul.mubr.msk.bf16.vlgmr.msra.gmra.mrb[132].mxu0 %vm405_vm2, %v7506_v54 }
 0x113   :  { %5859 = vmatmul.mubr.msk.bf16.vlgmr.msra.gmra.mrb[132].mxu1 %vm405_vm2, %v7506_v54  ;;  %4859 = vmatpush1.bf16.msra.mxu0 %v6345_v63 }
 0x114   :  { %4900 = vmatpush1.bf16.msra.mxu1 %v6348_v16  ;;  %4860 = vmatprep.subr.bf16.mxu0 %v4267_v18 }
 0x115   :  { %4901 = vmatprep.subr.bf16.mxu1 %v4273_v19  ;;  %v7646_v26 = vpop.f32.mrb[28].mxu0  ;;  %4890 = vmatprep.mubr.bf16.mxu0 %v6368_v3 }
 0x116   :  { %v7648_v27 = vpop.f32.mrb[28].mxu1  ;;  %4931 = vmatprep.mubr.bf16.mxu1 %v6368_v3  ;;  %v7658_v9 = vpop.f32.mrb[29].mxu0 }
 0x117   :  { %8160 = vst [vmem:[#allocation8_spill] sm:$0xff] %v7648_v27  ;;  %8161 = vst [vmem:[#allocation9_spill] sm:$0xff] %v7658_v9  ;;  %v7660_v34 = vpop.f32.mrb[29].mxu1  ;;  %v1130_v42 = vpop.f32.mrb[30].mxu0  ;;  %4861 = vmatpush1.bf16.msra.mxu0 %v4264_v22 }
 0x118   :  { %8162 = vst [vmem:[#allocation10_spill] sm:$0xff] %v7660_v34  ;;  %v1171_v45 = vpop.f32.mrb[30].mxu1  ;;  %4902 = vmatpush1.bf16.msra.mxu1 %v4270_v23  ;;  %v1131_v48 = vpop.f32.mrb[31].mxu0  ;;  %4940 = vmatprep.subr.bf16.mxu0 %v6359_v24 }
 0x119   :  { %v1172_v49 = vpop.f32.mrb[31].mxu1  ;;  %5936 = vmatprep.subr.bf16.mxu1 %v6369_v46 }
 0x11a   :  { %5860 = vmatmul.mubr.msk.bf16.vlgmr.msra.gmra.mrb[136].mxu0 %vm405_vm2, %v7506_v54 }
 0x11b   :  { %5861 = vmatmul.mubr.msk.bf16.vlgmr.msra.gmra.mrb[136].mxu1 %vm405_vm2, %v7506_v54  ;;  %4941 = vmatpush1.bf16.msra.mxu0 %v6357_v30 }
 0x11c   :  { %5937 = vmatpush3.bf16.msra.mxu1 %v6360_v31  ;;  %4942 = vmatprep.subr.bf16.mxu0 %v4279_v50 }
 0x11d   :  { %5938 = vmatprep.subr.bf16.mxu1 %v6369_v46  ;;  %v7677_v53 = vpop.f32.mrb[32].mxu0  ;;  %4972 = vmatprep.mubr.bf16.mxu0 %v6368_v3 }
 0x11e   :  { %v7679_v55 = vpop.f32.mrb[32].mxu1  ;;  %5940 = vmatprep.mubr.msk.bf16.mxu1 %vm6370_vm3, %v6369_v46  ;;  %v7684_v56 = vpop.f32.mrb[33].mxu0 }
 0x11f   :  { %v5918_v63 = vpop.f32.mrb[33].mxu1  ;;  %v1212_v16 = vpop.f32.mrb[34].mxu0  ;;  %4943 = vmatpush1.bf16.msra.mxu0 %v4276_v51 }
 0x120   :  { %v1252_v8 = vpop.f32.mrb[34].mxu1  ;;  %5939 = vmatpush3.bf16.msra.mxu1 %v4282_v52  ;;  %v1213_v7 = vpop.f32.mrb[35].mxu0 }
 0x121   :  { %v5919_v10 = vpop.f32.mrb[35].mxu1 }
 0x122   :  { %5862 = vmatmul.mubr.msk.bf16.vlgmr.msra.gmra.mrb[140].mxu0 %vm405_vm2, %v7506_v54 }
 0x123   :  { %5941 = vmatmul.mubr.msk.bf16.vlgmr.msra.gmra.mrb[140].mxu1 %vm405_vm2, %v7506_v54 }
 0x125   :  { %v7690_v11 = vpop.f32.mrb[36].mxu0 }
 0x126   :  { %v7692_v3 = vpop.f32.mrb[36].mxu1  ;;  %v7698_v13 = vpop.f32.mrb[37].mxu0 }
 0x127   :  { %v7700_v14 = vpop.f32.mrb[37].mxu1  ;;  %v1788_v19 = vpop.f32.mrb[38].mxu0 }
 0x128   :  { %v1829_v22 = vpop.f32.mrb[38].mxu1  ;;  %v1789_v23 = vpop.f32.mrb[39].mxu0 }
 0x129   :  { %v1830_v24 = vpop.f32.mrb[39].mxu1 }
 0x12d   :  { %v7706_v25 = vpop.f32.mrb[40].mxu0 }
 0x12e   :  { %v7708_v30 = vpop.f32.mrb[40].mxu1  ;;  %v7714_v42 = vpop.f32.mrb[41].mxu0 }
 0x12f   :  { %v7716_v45 = vpop.f32.mrb[41].mxu1  ;;  %v1870_v49 = vpop.f32.mrb[42].mxu0 }
 0x130   :  { %v1911_v50 = vpop.f32.mrb[42].mxu1  ;;  %v1871_v51 = vpop.f32.mrb[43].mxu0 }
 0x131   :  { %v1912_v52 = vpop.f32.mrb[43].mxu1 }
 0x135   :  { %v7722_v63 = vpop.f32.mrb[44].mxu0 }
 0x136   :  { %v7724_v16 = vpop.f32.mrb[44].mxu1  ;;  %v7730_v10 = vpop.f32.mrb[45].mxu0 }
 0x137   :  { %v7732_v19 = vpop.f32.mrb[45].mxu1  ;;  %v1952_v24 = vpop.f32.mrb[46].mxu0 }
 0x138   :  { %v1993_v49 = vpop.f32.mrb[46].mxu1  ;;  %v1953_v50 = vpop.f32.mrb[47].mxu0 }
 0x139   :  { %v1994_v51 = vpop.f32.mrb[47].mxu1 }
 0x13d   :  { %v7738_v52 = vpop.f32.mrb[48].mxu0 }
 0x13e   :  { %v7740_v8 = vpop.f32.mrb[48].mxu1  ;;  %v7746_v47 = vpop.f32.mrb[49].mxu0 }
 0x13f   :  { %v7748_v22 = vpop.f32.mrb[49].mxu1  ;;  %v2034_v50 = vpop.f32.mrb[50].mxu0 }
 0x140   :  { %v2075_v51 = vpop.f32.mrb[50].mxu1  ;;  %v2035_v23 = vpop.f32.mrb[51].mxu0 }
 0x141   :  { %v2076_v39 = vpop.f32.mrb[51].mxu1 }
 0x145   :  { %v7754_v31 = vpop.f32.mrb[52].mxu0 }
 0x146   :  { %v7756_v7 = vpop.f32.mrb[52].mxu1  ;;  %v7762_v18 = vpop.f32.mrb[53].mxu0 }
 0x147   :  { %8163 = vst [vmem:[#allocation11_spill] sm:$0xff] %v7756_v7  ;;  %v7764_v24 = vpop.f32.mrb[53].mxu1  ;;  %v2116_v23 = vpop.f32.mrb[54].mxu0 }
 0x148   :  { %8164 = vst [vmem:[#allocation12_spill] sm:$0xff] %v7764_v24  ;;  %v2157_v51 = vpop.f32.mrb[54].mxu1  ;;  %v2117_v49 = vpop.f32.mrb[55].mxu0 }
 0x149   :  { %v2158_v12 = vpop.f32.mrb[55].mxu1 }
 0x14d   :  { %v7770_v46 = vpop.f32.mrb[56].mxu0 }
 0x14e   :  { %v7772_v48 = vpop.f32.mrb[56].mxu1  ;;  %v7778_v1 = vpop.f32.mrb[57].mxu0 }
 0x14f   :  { %8165 = vst [vmem:[#allocation13_spill] sm:$0xff] %v7772_v48  ;;  %v7780_v50 = vpop.f32.mrb[57].mxu1  ;;  %v2198_v49 = vpop.f32.mrb[58].mxu0 }
 0x150   :  { %8166 = vst [vmem:[#allocation14_spill] sm:$0xff] %v7780_v50  ;;  %v2239_v51 = vpop.f32.mrb[58].mxu1  ;;  %v2199_v39 = vpop.f32.mrb[59].mxu0 }
 0x151   :  { %v2240_v24 = vpop.f32.mrb[59].mxu1 }
 0x155   :  { %v7786_v6 = vpop.f32.mrb[60].mxu0 }
 0x156   :  { %v7788_v54 = vpop.f32.mrb[60].mxu1  ;;  %v7794_v29 = vpop.f32.mrb[61].mxu0 }
 0x157   :  { %8167 = vst [vmem:[#allocation15_spill] sm:$0xff] %v7788_v54  ;;  %v7796_v23 = vpop.f32.mrb[61].mxu1  ;;  %v2280_v39 = vpop.f32.mrb[62].mxu0 }
 0x158   :  { %8168 = vst [vmem:[#allocation16_spill] sm:$0xff] %v7796_v23  ;;  %v2321_v51 = vpop.f32.mrb[62].mxu1  ;;  %v2281_v12 = vpop.f32.mrb[63].mxu0 }
 0x159   :  { %v2322_v50 = vpop.f32.mrb[63].mxu1 }
 0x15d   :  { %v7802_v33 = vpop.f32.mrb[64].mxu0 }
 0x15e   :  { %v7804_v7 = vpop.f32.mrb[64].mxu1  ;;  %v7810_v60 = vpop.f32.mrb[65].mxu0 }
 0x15f   :  { %8169 = vst [vmem:[#allocation17_spill] sm:$0xff] %v7804_v7  ;;  %8170 = vst [vmem:[#allocation18_spill] sm:$0xff] %v7810_v60  ;;  %v7812_v49 = vpop.f32.mrb[65].mxu1  ;;  %v2362_v12 = vpop.f32.mrb[66].mxu0  ;;  %v8173_v60 = vmax.f32 %v7353_v36, %v7690_v11  ;;  %v8174_v7 = vmax.f32 %v7355_v37, %v7692_v3 }
 0x160   :  { %8171 = vst [vmem:[#allocation19_spill] sm:$0xff] %v7812_v49  ;;  %v2403_v51 = vpop.f32.mrb[66].mxu1  ;;  %v2363_v24 = vpop.f32.mrb[67].mxu0 }
 0x161   :  { %v2404_v23 = vpop.f32.mrb[67].mxu1 }
 0x165   :  { %v7818_v4 = vpop.f32.mrb[68].mxu0 }
 0x166   :  { %v7820_v48 = vpop.f32.mrb[68].mxu1  ;;  %v7826_v27 = vpop.f32.mrb[69].mxu0 }
 0x167   :  { %8172 = vst [vmem:[#allocation20_spill] sm:$0xff] %v7820_v48  ;;  %v5926_v39 = vpop.f32.mrb[69].mxu1  ;;  %v2444_v12 = vpop.f32.mrb[70].mxu0 }
 0x168   :  { %v2484_v51 = vpop.f32.mrb[70].mxu1  ;;  %v2445_v24 = vpop.f32.mrb[71].mxu0  ;;  %v8175_v12 = vmax.f32 %v7365_v40, %v7698_v13  ;;  %v8178_v40 = vmax.f32 %v7397_v58, %v7708_v30  ;;  %v8181_v30 = vmax.f32 %v7437_v15, %v7722_v63 }
 0x169   :  { %v5927_v23 = vpop.f32.mrb[71].mxu1  ;;  %v8176_v24 = vmax.f32 %v7367_v41, %v7700_v14  ;;  %v8179_v14 = vmax.f32 %v7407_v61, %v7714_v42  ;;  %v8182_v61 = vmax.f32 %v7439_v17, %v7724_v16  ;;  %v8185_v16 = vmax.f32 %v7479_v35, %v7738_v52 }
 0x16d   :  { %v3051_v49 = vpop.f32.mrb[72].mxu0 }
 0x16e   :  { %v3092_v34 = vpop.f32.mrb[72].mxu1  ;;  %v7833_v9 = vmax.f32 %v8173_v60, %v3051_v49  ;;  %v3053_v39 = vpop.f32.mrb[73].mxu0 }
 0x16f   :  { %v7838_v54 = vmax.f32 %v8174_v7, %v3092_v34  ;;  %v3094_v48 = vpop.f32.mrb[73].mxu1  ;;  %v7843_v51 = vmax.f32 %v8175_v12, %v3053_v39  ;;  %v3055_v36 = vpop.f32.mrb[74].mxu0  ;;  %v8177_v34 = vmax.f32 %v7395_v57, %v7706_v25  ;;  %v8180_v39 = vmax.f32 %v7409_v62, %v7716_v45 }
 0x170   :  { %v7848_v23 = vmax.f32 %v8176_v24, %v3094_v48  ;;  %v3096_v60 = vpop.f32.mrb[74].mxu1  ;;  %v3056_v11 = vpop.f32.mrb[75].mxu0  ;;  %v8183_v45 = vmax.f32 %v7449_v20, %v7730_v10  ;;  %v8186_v20 = vmax.f32 %v7481_v38, %v7740_v8  ;;  %v8189_v8 = vmax.f32 %v7526_v0, %v7754_v31 }
 0x171   :  { %v3097_v49 = vpop.f32.mrb[75].mxu1 }
 0x175   :  { %v3133_v50 = vpop.f32.mrb[76].mxu0 }
 0x176   :  { %v3174_v37 = vpop.f32.mrb[76].mxu1  ;;  %v7853_v3 = vmax.f32 %v8177_v34, %v3133_v50  ;;  %v3135_v7 = vpop.f32.mrb[77].mxu0 }
 0x177   :  { %v7858_v13 = vmax.f32 %v8178_v40, %v3174_v37  ;;  %v3176_v41 = vpop.f32.mrb[77].mxu1  ;;  %v7863_v48 = vmax.f32 %v8179_v14, %v3135_v7  ;;  %v3137_v57 = vpop.f32.mrb[78].mxu0  ;;  %v8184_v37 = vmax.f32 %v7451_v21, %v7732_v19  ;;  %v8187_v19 = vmax.f32 %v7491_v43, %v7746_v47  ;;  %v8191_v43 = vld [vmem:[#allocation11_spill] sm:$0xff] }
 0x178   :  { %v7868_v12 = vmax.f32 %v8180_v39, %v3176_v41  ;;  %v3178_v25 = vpop.f32.mrb[78].mxu1  ;;  %v3138_v50 = vpop.f32.mrb[79].mxu0 }
 0x179   :  { %v3179_v24 = vpop.f32.mrb[79].mxu1  ;;  %v8188_v25 = vmax.f32 %v7493_v44, %v7748_v22  ;;  %v8193_v22 = vmax.f32 %v7538_v5, %v7762_v18  ;;  %v8199_v5 = vld [vmem:[#allocation13_spill] sm:$0xff] }
 0x17d   :  { %v3215_v36 = vpop.f32.mrb[80].mxu0 }
 0x17e   :  { %v3256_v58 = vpop.f32.mrb[80].mxu1  ;;  %v7873_v60 = vmax.f32 %v8181_v30, %v3215_v36  ;;  %v3217_v11 = vpop.f32.mrb[81].mxu0 }
 0x17f   :  { %v7878_v42 = vmax.f32 %v8182_v61, %v3256_v58  ;;  %v3258_v62 = vpop.f32.mrb[81].mxu1  ;;  %v7883_v49 = vmax.f32 %v8183_v45, %v3217_v11  ;;  %v3219_v15 = vpop.f32.mrb[82].mxu0  ;;  %v8190_v61 = vld [vmem:[#allocation2_spill] sm:$0xff] }
 0x180   :  { %v7888_v34 = vmax.f32 %v8184_v37, %v3258_v62  ;;  %v3260_v63 = vpop.f32.mrb[82].mxu1  ;;  %v3220_v40 = vpop.f32.mrb[83].mxu0  ;;  %v8192_v47 = vmax.f32 %v8190_v61, %v8191_v43  ;;  %v8194_v37 = vld [vmem:[#allocation3_spill] sm:$0xff]  ;;  %v8195_v15 = vld [vmem:[#allocation12_spill] sm:$0xff] }
 0x181   :  { %v3261_v7 = vpop.f32.mrb[83].mxu1  ;;  %v8196_v63 = vmax.f32 %v8194_v37, %v8195_v15  ;;  %v8206_v37 = vld [vmem:[#allocation6_spill] sm:$0xff] }
 0x185   :  { %v3297_v41 = vpop.f32.mrb[84].mxu0 }
 0x186   :  { %v3338_v17 = vpop.f32.mrb[84].mxu1  ;;  %v7893_v14 = vmax.f32 %v8185_v16, %v3297_v41  ;;  %v3299_v39 = vpop.f32.mrb[85].mxu0 }
 0x187   :  { %v7898_v10 = vmax.f32 %v8186_v20, %v3338_v17  ;;  %v3340_v21 = vpop.f32.mrb[85].mxu1  ;;  %v7903_v57 = vmax.f32 %v8187_v19, %v3299_v39  ;;  %v3301_v35 = vpop.f32.mrb[86].mxu0  ;;  %v8197_v20 = vmax.f32 %v7568_v28, %v7770_v46 }
 0x188   :  { %v7908_v50 = vmax.f32 %v8188_v25, %v3340_v21  ;;  %v3342_v52 = vpop.f32.mrb[86].mxu1  ;;  %v3302_v24 = vpop.f32.mrb[87].mxu0  ;;  %v8198_v21 = vld [vmem:[#allocation4_spill] sm:$0xff] }
 0x189   :  { %v3343_v36 = vpop.f32.mrb[87].mxu1  ;;  %v8200_v18 = vmax.f32 %v8198_v21, %v8199_v5  ;;  %v8201_v52 = vmax.f32 %v7580_v32, %v7778_v1  ;;  %v8207_v1 = vld [vmem:[#allocation15_spill] sm:$0xff] }
 0x18a   :  { %v8202_v36 = vld [vmem:[#allocation5_spill] sm:$0xff]  ;;  %v8208_v32 = vmax.f32 %v8206_v37, %v8207_v1 }
 0x18d   :  { %v3379_v58 = vpop.f32.mrb[88].mxu0 }
 0x18e   :  { %v3420_v38 = vpop.f32.mrb[88].mxu1  ;;  %v7913_v30 = vmax.f32 %v8189_v8, %v3379_v58  ;;  %v3381_v62 = vpop.f32.mrb[89].mxu0  ;;  %v8203_v58 = vld [vmem:[#allocation14_spill] sm:$0xff] }
 0x18f   :  { %v7918_v11 = vmax.f32 %v8192_v47, %v3420_v38  ;;  %v3422_v44 = vpop.f32.mrb[89].mxu1  ;;  %v7923_v45 = vmax.f32 %v8193_v22, %v3381_v62  ;;  %v3383_v0 = vpop.f32.mrb[90].mxu0  ;;  %v8204_v38 = vmax.f32 %v8202_v36, %v8203_v58  ;;  %v8214_v36 = vld [vmem:[#allocation8_spill] sm:$0xff] }
 0x190   :  { %v7928_v40 = vmax.f32 %v8196_v63, %v3422_v44  ;;  %v3424_v31 = vpop.f32.mrb[90].mxu1  ;;  %v3384_v7 = vpop.f32.mrb[91].mxu0  ;;  %v8205_v44 = vmax.f32 %v7610_v59, %v7786_v6 }
 0x191   :  { %v3425_v41 = vpop.f32.mrb[91].mxu1  ;;  %v8209_v31 = vmax.f32 %v7622_v2, %v7794_v29  ;;  %v8215_v29 = vld [vmem:[#allocation17_spill] sm:$0xff] }
 0x192   :  { %v8210_v41 = vld [vmem:[#allocation7_spill] sm:$0xff]  ;;  %v8216_v2 = vmax.f32 %v8214_v36, %v8215_v29 }
 0x195   :  { %v3461_v17 = vpop.f32.mrb[92].mxu0 }
 0x196   :  { %v3502_v16 = vpop.f32.mrb[92].mxu1  ;;  %v7933_v39 = vmax.f32 %v8197_v20, %v3461_v17  ;;  %v3463_v25 = vpop.f32.mrb[93].mxu0  ;;  %v8211_v17 = vld [vmem:[#allocation16_spill] sm:$0xff] }
 0x197   :  { %v7938_v19 = vmax.f32 %v8200_v18, %v3502_v16  ;;  %v3504_v35 = vpop.f32.mrb[93].mxu1  ;;  %v7943_v24 = vmax.f32 %v8201_v52, %v3463_v25  ;;  %v3465_v28 = vpop.f32.mrb[94].mxu0  ;;  %v8212_v16 = vmax.f32 %v8210_v41, %v8211_v17  ;;  %v8223_v41 = vmax.f32 %v7677_v53, %v7818_v4 }
 0x198   :  { %v7948_v8 = vmax.f32 %v8204_v38, %v3504_v35  ;;  %v3506_v46 = vpop.f32.mrb[94].mxu1  ;;  %v3466_v61 = vpop.f32.mrb[95].mxu0  ;;  %v8213_v35 = vmax.f32 %v7646_v26, %v7802_v33 }
 0x199   :  { %v3507_v43 = vpop.f32.mrb[95].mxu1  ;;  %v8217_v46 = vld [vmem:[#allocation9_spill] sm:$0xff]  ;;  %v8218_v61 = vld [vmem:[#allocation18_spill] sm:$0xff] }
 0x19a   :  { %v8219_v43 = vmax.f32 %v8217_v46, %v8218_v61 }
 0x19d   :  { %v3543_v47 = vpop.f32.mrb[96].mxu0 }
 0x19e   :  { %v3584_v62 = vpop.f32.mrb[96].mxu1  ;;  %v7953_v22 = vmax.f32 %v8205_v44, %v3543_v47  ;;  %v3545_v63 = vpop.f32.mrb[97].mxu0  ;;  %v8221_v44 = vld [vmem:[#allocation19_spill] sm:$0xff] }
 0x19f   :  { %v7958_v15 = vmax.f32 %v8208_v32, %v3584_v62  ;;  %v3586_v0 = vpop.f32.mrb[97].mxu1  ;;  %v7963_v7 = vmax.f32 %v8209_v31, %v3545_v63  ;;  %v3547_v6 = vpop.f32.mrb[98].mxu0  ;;  %v8220_v62 = vld [vmem:[#allocation10_spill] sm:$0xff] }
 0x1a0   :  { %v7968_v20 = vmax.f32 %v8212_v16, %v3586_v0  ;;  %v3588_v59 = vpop.f32.mrb[98].mxu1  ;;  %v3548_v21 = vpop.f32.mrb[99].mxu0  ;;  %v8222_v37 = vmax.f32 %v8220_v62, %v8221_v44  ;;  %v8224_v16 = vld [vmem:[#allocation20_spill] sm:$0xff] }
 0x1a1   :  { %v3589_v5 = vpop.f32.mrb[99].mxu1  ;;  %v8225_v6 = vmax.f32 %v7679_v55, %v8224_v16 }
 0x1a5   :  { %v3625_v18 = vpop.f32.mrb[100].mxu0 }
 0x1a6   :  { %v3666_v25 = vpop.f32.mrb[100].mxu1  ;;  %v7973_v52 = vmax.f32 %v8213_v35, %v3625_v18  ;;  %v3627_v38 = vpop.f32.mrb[101].mxu0  ;;  %v8226_v18 = vmax.f32 %v7684_v56, %v7826_v27 }
 0x1a7   :  { %v7978_v58 = vmax.f32 %v8216_v2, %v3666_v25  ;;  %v3668_v28 = vpop.f32.mrb[101].mxu1  ;;  %v7983_v47 = vmax.f32 %v8219_v43, %v3627_v38  ;;  %v3629_v33 = vpop.f32.mrb[102].mxu0 }
 0x1a8   :  { %v7988_v1 = vmax.f32 %v8222_v37, %v3668_v28  ;;  %v3670_v26 = vpop.f32.mrb[102].mxu1  ;;  %v3630_v32 = vpop.f32.mrb[103].mxu0 }
 0x1a9   :  { %v3671_v63 = vpop.f32.mrb[103].mxu1  ;;  %v8005_v38 = vpop.permute.xlu0 %5059 }
 0x1ad   :  { %v3707_v0 = vpop.f32.mrb[104].mxu0 }
 0x1ae   :  { %v3748_v31 = vpop.f32.mrb[104].mxu1  ;;  %v7993_v17 = vmax.f32 %v8223_v41, %v3707_v0  ;;  %v3709_v21 = vpop.f32.mrb[105].mxu0 }
 0x1af   :  { %v7998_v59 = vmax.f32 %v8225_v6, %v3748_v31  ;;  %v5934_v5 = vpop.f32.mrb[105].mxu1  ;;  %v8003_v25 = vmax.f32 %v8226_v18, %v3709_v21  ;;  %v3711_v35 = vpop.f32.mrb[106].mxu0 }
 0x1b0   :  { %v3751_v36 = vpop.f32.mrb[106].mxu1  ;;  %v3712_v29 = vpop.f32.mrb[107].mxu0 }
 0x1b1   :  { %v5935_v2 = vpop.f32.mrb[107].mxu1 }
 0x1b5   :  { %v4318_v4 = vpop.f32.mrb[108].mxu0 }
 0x1b6   :  { %v4359_v53 = vpop.f32.mrb[108].mxu1  ;;  %v5021_v28 = vmax.f32 %v7833_v9, %v4318_v4  ;;  %v4320_v46 = vpop.f32.mrb[109].mxu0 }
 0x1b7   :  { %v5023_v55 = vmax.f32 %v7838_v54, %v4359_v53  ;;  %v4361_v61 = vpop.f32.mrb[109].mxu1  ;;  %v5022_v43 = vmax.f32 %v7843_v51, %v4320_v46  ;;  %v4322_v56 = vpop.f32.mrb[110].mxu0 }
 0x1b8   :  { %v5024_v27 = vmax.f32 %v7848_v23, %v4361_v61  ;;  %v4363_v62 = vpop.f32.mrb[110].mxu1  ;;  %v4323_v44 = vpop.f32.mrb[111].mxu0  ;;  %v5062_v33 = vadd.f32 %v8005_v38, %v5021_v28 }
 0x1b9   :  { %v4364_v37 = vpop.f32.mrb[111].mxu1  ;;  %v5064_v26 = vadd.f32 %v8005_v38, %v5023_v55  ;;  %v5063_v32 = vadd.f32 %v8005_v38, %v5022_v43 }
 0x1ba   :  { %v5065_v9 = vadd.f32 %v8005_v38, %v5024_v27  ;;  %v5097_v63 = vmax.f32 %v5062_v33, 0.0 }
 0x1bb   :  { %v5099_v54 = vmax.f32 %v5064_v26, 0.0  ;;  %v5098_v0 = vmax.f32 %v5063_v32, 0.0 }
 0x1bc   :  { %v5100_v31 = vmax.f32 %v5065_v9, 0.0 }
 0x1bd   :  { %v4400_v41 = vpop.f32.mrb[112].mxu0  ;;  %v5882_v16 = vpack.c.bf16 %v5098_v0, %v5097_v63 }
 0x1be   :  { %v4441_v51 = vpop.f32.mrb[112].mxu1  ;;  %v5883_v23 = vpack.c.bf16 %v5100_v31, %v5099_v54  ;;  %v5025_v6 = vmax.f32 %v7853_v3, %v4400_v41  ;;  %v4402_v5 = vpop.f32.mrb[113].mxu0 }
 0x1bf   :  { %v5027_v21 = vmax.f32 %v7858_v13, %v4441_v51  ;;  %v4443_v18 = vpop.f32.mrb[113].mxu1  ;;  %v5026_v35 = vmax.f32 %v7863_v48, %v4402_v5  ;;  %5273 = vst [vmem:[%s8134_s3] sm:$0x77] %v5882_v16  ;;  %v4404_v29 = vpop.f32.mrb[114].mxu0 }
 0x1c0   :  { %5274 = vst [vmem:[%s8134_s3 + $0x8] sm:$0x77] %v5883_v23  ;;  %v5028_v36 = vmax.f32 %v7868_v12, %v4443_v18  ;;  %v4445_v2 = vpop.f32.mrb[114].mxu1  ;;  %v5066_v3 = vadd.f32 %v8005_v38, %v5025_v6  ;;  %v4405_v4 = vpop.f32.mrb[115].mxu0 }
 0x1c1   :  { %v5068_v13 = vadd.f32 %v8005_v38, %v5027_v21  ;;  %v4446_v53 = vpop.f32.mrb[115].mxu1  ;;  %v5067_v48 = vadd.f32 %v8005_v38, %v5026_v35 }
 0x1c2   :  { %v5069_v28 = vadd.f32 %v8005_v38, %v5028_v36  ;;  %v5101_v55 = vmax.f32 %v5066_v3, 0.0 }
 0x1c3   :  { %v5103_v46 = vmax.f32 %v5068_v13, 0.0  ;;  %v5102_v61 = vmax.f32 %v5067_v48, 0.0 }
 0x1c4   :  { %v5104_v43 = vmax.f32 %v5069_v28, 0.0 }
 0x1c5   :  { %v5884_v27 = vpack.c.bf16 %v5102_v61, %v5101_v55  ;;  %v4482_v62 = vpop.f32.mrb[116].mxu0 }
 0x1c6   :  { %v5885_v56 = vpack.c.bf16 %v5104_v43, %v5103_v46  ;;  %v4523_v12 = vpop.f32.mrb[116].mxu1  ;;  %v5029_v44 = vmax.f32 %v7873_v60, %v4482_v62  ;;  %v4484_v33 = vpop.f32.mrb[117].mxu0 }
 0x1c7   :  { %v5031_v37 = vmax.f32 %v7878_v42, %v4523_v12  ;;  %v4525_v26 = vpop.f32.mrb[117].mxu1  ;;  %5275 = vst [vmem:[%s8134_s3 + $0x10] sm:$0x77] %v5884_v27  ;;  %v5030_v32 = vmax.f32 %v7883_v49, %v4484_v33  ;;  %v4486_v63 = vpop.f32.mrb[118].mxu0 }
 0x1c8   :  { %5276 = vst [vmem:[%s8134_s3 + $0x18] sm:$0x77] %v5885_v56  ;;  %v5032_v9 = vmax.f32 %v7888_v34, %v4525_v26  ;;  %v4527_v54 = vpop.f32.mrb[118].mxu1  ;;  %v5070_v60 = vadd.f32 %v8005_v38, %v5029_v44  ;;  %v4487_v0 = vpop.f32.mrb[119].mxu0 }
 0x1c9   :  { %v5072_v42 = vadd.f32 %v8005_v38, %v5031_v37  ;;  %v4528_v31 = vpop.f32.mrb[119].mxu1  ;;  %v5071_v41 = vadd.f32 %v8005_v38, %v5030_v32 }
 0x1ca   :  { %v5073_v51 = vadd.f32 %v8005_v38, %v5032_v9  ;;  %v5105_v16 = vmax.f32 %v5070_v60, 0.0 }
 0x1cb   :  { %v5107_v23 = vmax.f32 %v5072_v42, 0.0  ;;  %v5106_v6 = vmax.f32 %v5071_v41, 0.0 }
 0x1cc   :  { %v5108_v21 = vmax.f32 %v5073_v51, 0.0 }
 0x1cd   :  { %v5886_v5 = vpack.c.bf16 %v5106_v6, %v5105_v16  ;;  %v4564_v18 = vpop.f32.mrb[120].mxu0 }
 0x1ce   :  { %v5887_v49 = vpack.c.bf16 %v5108_v21, %v5107_v23  ;;  %v4605_v34 = vpop.f32.mrb[120].mxu1  ;;  %v5033_v35 = vmax.f32 %v7893_v14, %v4564_v18  ;;  %v4566_v29 = vpop.f32.mrb[121].mxu0 }
 0x1cf   :  { %v5035_v36 = vmax.f32 %v7898_v10, %v4605_v34  ;;  %v4607_v2 = vpop.f32.mrb[121].mxu1  ;;  %5277 = vst [vmem:[%s8134_s3 + $0x20] sm:$0x77] %v5886_v5  ;;  %v5034_v3 = vmax.f32 %v7903_v57, %v4566_v29  ;;  %v4568_v4 = vpop.f32.mrb[122].mxu0 }
 0x1d0   :  { %5278 = vst [vmem:[%s8134_s3 + $0x28] sm:$0x77] %v5887_v49  ;;  %v5036_v13 = vmax.f32 %v7908_v50, %v4607_v2  ;;  %v4609_v53 = vpop.f32.mrb[122].mxu1  ;;  %v5074_v14 = vadd.f32 %v8005_v38, %v5033_v35  ;;  %v4569_v48 = vpop.f32.mrb[123].mxu0 }
 0x1d1   :  { %v5076_v10 = vadd.f32 %v8005_v38, %v5035_v36  ;;  %v4610_v28 = vpop.f32.mrb[123].mxu1  ;;  %v5075_v55 = vadd.f32 %v8005_v38, %v5034_v3 }
 0x1d2   :  { %v5077_v46 = vadd.f32 %v8005_v38, %v5036_v13  ;;  %v5109_v61 = vmax.f32 %v5074_v14, 0.0 }
 0x1d3   :  { %v5111_v43 = vmax.f32 %v5076_v10, 0.0  ;;  %v5110_v27 = vmax.f32 %v5075_v55, 0.0 }
 0x1d4   :  { %v5112_v56 = vmax.f32 %v5077_v46, 0.0 }
 0x1d5   :  { %v5888_v62 = vpack.c.bf16 %v5110_v27, %v5109_v61  ;;  %v4646_v12 = vpop.f32.mrb[124].mxu0 }
 0x1d6   :  { %v5889_v57 = vpack.c.bf16 %v5112_v56, %v5111_v43  ;;  %v4687_v50 = vpop.f32.mrb[124].mxu1  ;;  %v5037_v44 = vmax.f32 %v7913_v30, %v4646_v12  ;;  %v4648_v33 = vpop.f32.mrb[125].mxu0 }
 0x1d7   :  { %v5039_v37 = vmax.f32 %v7918_v11, %v4687_v50  ;;  %v4689_v26 = vpop.f32.mrb[125].mxu1  ;;  %5279 = vst [vmem:[%s8134_s3 + $0x30] sm:$0x77] %v5888_v62  ;;  %v5038_v32 = vmax.f32 %v7923_v45, %v4648_v33  ;;  %v4650_v63 = vpop.f32.mrb[126].mxu0 }
 0x1d8   :  { %5280 = vst [vmem:[%s8134_s3 + $0x38] sm:$0x77] %v5889_v57  ;;  %v5040_v9 = vmax.f32 %v7928_v40, %v4689_v26  ;;  %v4691_v54 = vpop.f32.mrb[126].mxu1  ;;  %v5078_v30 = vadd.f32 %v8005_v38, %v5037_v44  ;;  %v4651_v60 = vpop.f32.mrb[127].mxu0 }
 0x1d9   :  { %v5080_v11 = vadd.f32 %v8005_v38, %v5039_v37  ;;  %v4692_v42 = vpop.f32.mrb[127].mxu1  ;;  %v5079_v0 = vadd.f32 %v8005_v38, %v5038_v32 }
 0x1da   :  { %v5081_v31 = vadd.f32 %v8005_v38, %v5040_v9  ;;  %v5113_v41 = vmax.f32 %v5078_v30, 0.0 }
 0x1db   :  { %v5115_v51 = vmax.f32 %v5080_v11, 0.0  ;;  %v5114_v16 = vmax.f32 %v5079_v0, 0.0 }
 0x1dc   :  { %v5116_v23 = vmax.f32 %v5081_v31, 0.0 }
 0x1dd   :  { %v5890_v6 = vpack.c.bf16 %v5114_v16, %v5113_v41  ;;  %v4728_v21 = vpop.f32.mrb[128].mxu0 }
 0x1de   :  { %v5891_v45 = vpack.c.bf16 %v5116_v23, %v5115_v51  ;;  %v4769_v40 = vpop.f32.mrb[128].mxu1  ;;  %v5041_v5 = vmax.f32 %v7933_v39, %v4728_v21  ;;  %v4730_v18 = vpop.f32.mrb[129].mxu0 }
 0x1df   :  { %v5043_v49 = vmax.f32 %v7938_v19, %v4769_v40  ;;  %v4771_v34 = vpop.f32.mrb[129].mxu1  ;;  %5281 = vst [vmem:[%s8134_s3 + $0x40] sm:$0x77] %v5890_v6  ;;  %v5042_v35 = vmax.f32 %v7943_v24, %v4730_v18  ;;  %v4732_v29 = vpop.f32.mrb[130].mxu0 }
 0x1e0   :  { %5282 = vst [vmem:[%s8134_s3 + $0x48] sm:$0x77] %v5891_v45  ;;  %v5044_v36 = vmax.f32 %v7948_v8, %v4771_v34  ;;  %v4773_v2 = vpop.f32.mrb[130].mxu1  ;;  %v5082_v39 = vadd.f32 %v8005_v38, %v5041_v5  ;;  %v4733_v3 = vpop.f32.mrb[131].mxu0 }
 0x1e1   :  { %v5084_v19 = vadd.f32 %v8005_v38, %v5043_v49  ;;  %v4774_v13 = vpop.f32.mrb[131].mxu1  ;;  %v5083_v4 = vadd.f32 %v8005_v38, %v5042_v35 }
 0x1e2   :  { %v5085_v53 = vadd.f32 %v8005_v38, %v5044_v36  ;;  %v5117_v14 = vmax.f32 %v5082_v39, 0.0 }
 0x1e3   :  { %v5119_v10 = vmax.f32 %v5084_v19, 0.0  ;;  %v5118_v48 = vmax.f32 %v5083_v4, 0.0 }
 0x1e4   :  { %v5120_v28 = vmax.f32 %v5085_v53, 0.0 }
 0x1e5   :  { %v5892_v55 = vpack.c.bf16 %v5118_v48, %v5117_v14  ;;  %v4810_v46 = vpop.f32.mrb[132].mxu0 }
 0x1e6   :  { %v5893_v24 = vpack.c.bf16 %v5120_v28, %v5119_v10  ;;  %v4851_v8 = vpop.f32.mrb[132].mxu1  ;;  %v5045_v61 = vmax.f32 %v7953_v22, %v4810_v46  ;;  %v4812_v27 = vpop.f32.mrb[133].mxu0 }
 0x1e7   :  { %v5047_v43 = vmax.f32 %v7958_v15, %v4851_v8  ;;  %v4853_v56 = vpop.f32.mrb[133].mxu1  ;;  %5283 = vst [vmem:[%s8134_s3 + $0x50] sm:$0x77] %v5892_v55  ;;  %v5046_v62 = vmax.f32 %v7963_v7, %v4812_v27  ;;  %v4814_v12 = vpop.f32.mrb[134].mxu0 }
 0x1e8   :  { %5284 = vst [vmem:[%s8134_s3 + $0x58] sm:$0x77] %v5893_v24  ;;  %v5048_v57 = vmax.f32 %v7968_v20, %v4853_v56  ;;  %v4855_v50 = vpop.f32.mrb[134].mxu1  ;;  %v5086_v22 = vadd.f32 %v8005_v38, %v5045_v61  ;;  %v4815_v44 = vpop.f32.mrb[135].mxu0 }
 0x1e9   :  { %v5088_v15 = vadd.f32 %v8005_v38, %v5047_v43  ;;  %v4856_v37 = vpop.f32.mrb[135].mxu1  ;;  %v5087_v33 = vadd.f32 %v8005_v38, %v5046_v62 }
 0x1ea   :  { %v5089_v26 = vadd.f32 %v8005_v38, %v5048_v57  ;;  %v5121_v32 = vmax.f32 %v5086_v22, 0.0 }
 0x1eb   :  { %v5123_v9 = vmax.f32 %v5088_v15, 0.0  ;;  %v5122_v63 = vmax.f32 %v5087_v33, 0.0 }
 0x1ec   :  { %v5124_v54 = vmax.f32 %v5089_v26, 0.0 }
 0x1ed   :  { %v5894_v30 = vpack.c.bf16 %v5122_v63, %v5121_v32  ;;  %v4892_v11 = vpop.f32.mrb[136].mxu0 }
 0x1ee   :  { %v5895_v7 = vpack.c.bf16 %v5124_v54, %v5123_v9  ;;  %v4933_v20 = vpop.f32.mrb[136].mxu1  ;;  %v5049_v60 = vmax.f32 %v7973_v52, %v4892_v11  ;;  %v4894_v0 = vpop.f32.mrb[137].mxu0 }
 0x1ef   :  { %v5051_v42 = vmax.f32 %v7978_v58, %v4933_v20  ;;  %v4935_v31 = vpop.f32.mrb[137].mxu1  ;;  %5285 = vst [vmem:[%s8134_s3 + $0x60] sm:$0x77] %v5894_v30  ;;  %v5050_v41 = vmax.f32 %v7983_v47, %v4894_v0  ;;  %v4896_v16 = vpop.f32.mrb[138].mxu0 }
 0x1f0   :  { %5286 = vst [vmem:[%s8134_s3 + $0x68] sm:$0x77] %v5895_v7  ;;  %v5052_v51 = vmax.f32 %v7988_v1, %v4935_v31  ;;  %v4937_v23 = vpop.f32.mrb[138].mxu1  ;;  %v5090_v52 = vadd.f32 %v8005_v38, %v5049_v60  ;;  %v4897_v6 = vpop.f32.mrb[139].mxu0 }
 0x1f1   :  { %v5092_v58 = vadd.f32 %v8005_v38, %v5051_v42  ;;  %v4938_v45 = vpop.f32.mrb[139].mxu1  ;;  %v5091_v21 = vadd.f32 %v8005_v38, %v5050_v41 }
 0x1f2   :  { %v5093_v40 = vadd.f32 %v8005_v38, %v5052_v51  ;;  %v5125_v5 = vmax.f32 %v5090_v52, 0.0 }
 0x1f3   :  { %v5127_v49 = vmax.f32 %v5092_v58, 0.0  ;;  %v5126_v18 = vmax.f32 %v5091_v21, 0.0 }
 0x1f4   :  { %v5128_v34 = vmax.f32 %v5093_v40, 0.0 }
 0x1f5   :  { %v5896_v35 = vpack.c.bf16 %v5126_v18, %v5125_v5  ;;  %v4974_v36 = vpop.f32.mrb[140].mxu0 }
 0x1f6   :  { %v5897_v47 = vpack.c.bf16 %v5128_v34, %v5127_v49  ;;  %v5015_v1 = vpop.f32.mrb[140].mxu1  ;;  %v5053_v29 = vmax.f32 %v7993_v17, %v4974_v36  ;;  %v4976_v39 = vpop.f32.mrb[141].mxu0 }
 0x1f7   :  { %v5055_v2 = vmax.f32 %v7998_v59, %v5015_v1  ;;  %v5942_v19 = vpop.f32.mrb[141].mxu1  ;;  %5287 = vst [vmem:[%s8134_s3 + $0x70] sm:$0x77] %v5896_v35  ;;  %v5054_v3 = vmax.f32 %v8003_v25, %v4976_v39  ;;  %v4978_v13 = vpop.f32.mrb[142].mxu0 }
 0x1f8   :  { %5288 = vst [vmem:[%s8134_s3 + $0x78] sm:$0x77] %v5897_v47  ;;  %v5018_v4 = vpop.f32.mrb[142].mxu1  ;;  %v5094_v53 = vadd.f32 %v8005_v38, %v5053_v29  ;;  %v4979_v14 = vpop.f32.mrb[143].mxu0 }
 0x1f9   :  { %v5096_v17 = vadd.f32 %v8005_v38, %v5055_v2  ;;  %v5943_v59 = vpop.f32.mrb[143].mxu1  ;;  %v5095_v10 = vadd.f32 %v8005_v38, %v5054_v3 }
 0x1fa   :  { %v5129_v48 = vmax.f32 %v5094_v53, 0.0 }
 0x1fb   :  { %v5131_v28 = vmax.f32 %v5096_v17, 0.0  ;;  %v5130_v55 = vmax.f32 %v5095_v10, 0.0 }
 0x1fd   :  { %v5899_v24 = vpack.c.bf16 %v5131_v28, %v5131_v28  ;;  %v5898_v46 = vpack.c.bf16 %v5130_v55, %v5129_v48 }
 0x1ff   :  { %5291 = vst.msk [vmem:[%s8134_s3 + $0x88] sm:$0x7] %vm5290_vm4, %v5899_v24  ;;  %5289 = vst [vmem:[%s8134_s3 + $0x80] sm:$0x77] %v5898_v46 }

// kernel: net_forward.5
= control target key start
LH: loop header
LB: loop body
LE: loop exit
PB: predicated region body
PF: predicated region fallthrough
CT: control target
= control target key end

     0   :  { %v3558_v1 = vmov 0   ;;  %vm444_vm0 = vcmask 179200   ;;  %vm448_vm1 = vcmask 1042432   ;;  %vm2599_vm2 = vcmask 928768   ;;  %s4619_s0 = inlined_call_operand.vmem [shape: bf16[4,150,882], index: 0, kind: input, shape index: {}]   ;;  %s4620_s1 = inlined_call_operand.vmem [shape: bf16[16,150], index: 1, kind: input, shape index: {}]   ;;  %s4621_s2 = inlined_call_operand.vmem [shape: f32[16,1], index: 2, kind: input, shape index: {}]   ;;  %s4622_s3 = inlined_call_operand.vmem [shape: bf16[16,882], index: 3, kind: output, shape index: {}]  }
   0x1   :  { %v3165_v0 = vld [vmem:[%s4619_s0 + $0x4] ss:$28 sps:$4 sm:$0xff]   ;;  %3164 = vset.pattern.permute.xlu0 %v3558_v1  ;;  %v3167_v2 = vld [vmem:[%s4619_s0 + $0xc] ss:$28 sps:$4 sm:$0xff]   ;;  %v3171_v5 = vld [vmem:[%s4619_s0 + $0x3c] ss:$28 sps:$4 sm:$0xff]  }
   0x2   :  { %470 = vmatprep.subr.bf16.mxu0 %v3165_v0  ;;  %v3169_v3 = vld [vmem:[%s4619_s0] ss:$28 sps:$4 sm:$0xff]   ;;  %v3170_v4 = vld [vmem:[%s4619_s0 + $0x8] ss:$28 sps:$4 sm:$0xff]   ;;  %513 = vmatprep.subr.bf16.mxu1 %v3167_v2  ;;  %v3175_v7 = vld [vmem:[%s4619_s0 + $0x38] ss:$28 sps:$4 sm:$0xff]  }
   0x3   :  { %471 = vmatpush1.bf16.msra.mxu0 %v3169_v3  ;;  %514 = vmatpush1.bf16.msra.mxu1 %v3170_v4  ;;  %v3173_v6 = vld [vmem:[%s4619_s0 + $0x44] ss:$28 sps:$4 sm:$0xff]   ;;  %v3177_v9 = vld [vmem:[%s4619_s0 + $0x74] ss:$28 sps:$4 sm:$0xff]   ;;  %v3179_v10 = vld [vmem:[%s4619_s0 + $0x7c] ss:$28 sps:$4 sm:$0xff]  }
   0x4   :  { %472 = vmatprep.subr.bf16.mxu0 %v3171_v5  ;;  %v3176_v8 = vld [vmem:[%s4619_s0 + $0x40] ss:$28 sps:$4 sm:$0xff]   ;;  %515 = vmatprep.subr.bf16.mxu1 %v3173_v6  ;;  %v3181_v11 = vld [vmem:[%s4619_s0 + $0x70] ss:$28 sps:$4 sm:$0xff]   ;;  %v3182_v12 = vld [vmem:[%s4619_s0 + $0x78] ss:$28 sps:$4 sm:$0xff]  }
   0x5   :  { %v3183_v13 = vld [vmem:[%s4619_s0 + $0xac] ss:$28 sps:$4 sm:$0xff]   ;;  %v3185_v14 = vld [vmem:[%s4619_s0 + $0xb4] ss:$28 sps:$4 sm:$0xff]   ;;  %v3189_v17 = vld [vmem:[%s4619_s0 + $0xe4] ss:$28 sps:$4 sm:$0xff]  }
   0x6   :  { %v3187_v15 = vld [vmem:[%s4619_s0 + $0xa8] ss:$28 sps:$4 sm:$0xff]   ;;  %v3188_v16 = vld [vmem:[%s4619_s0 + $0xb0] ss:$28 sps:$4 sm:$0xff]   ;;  %v3193_v19 = vld [vmem:[%s4619_s0 + $0xe0] ss:$28 sps:$4 sm:$0xff]  }
   0x7   :  { %473 = vmatpush1.bf16.msra.mxu0 %v3175_v7  ;;  %516 = vmatpush1.bf16.msra.mxu1 %v3176_v8  ;;  %v3191_v18 = vld [vmem:[%s4619_s0 + $0xec] ss:$28 sps:$4 sm:$0xff]   ;;  %v3195_v21 = vld [vmem:[%s4619_s0 + $0x11c] ss:$28 sps:$4 sm:$0xff]   ;;  %v3197_v22 = vld [vmem:[%s4619_s0 + $0x124] ss:$28 sps:$4 sm:$0xff]  }
   0x8   :  { %474 = vmatprep.subr.bf16.mxu0 %v3177_v9  ;;  %517 = vmatprep.subr.bf16.mxu1 %v3179_v10  ;;  %v3194_v20 = vld [vmem:[%s4619_s0 + $0xe8] ss:$28 sps:$4 sm:$0xff]   ;;  %v3199_v23 = vld [vmem:[%s4619_s0 + $0x118] ss:$28 sps:$4 sm:$0xff]   ;;  %v3200_v24 = vld [vmem:[%s4619_s0 + $0x120] ss:$28 sps:$4 sm:$0xff]  }
   0x9   :  { %v3201_v25 = vld [vmem:[%s4619_s0 + $0x154] ss:$28 sps:$4 sm:$0xff]   ;;  %v3203_v26 = vld [vmem:[%s4619_s0 + $0x15c] ss:$28 sps:$4 sm:$0xff]   ;;  %v3207_v29 = vld [vmem:[%s4619_s0 + $0x18c] ss:$28 sps:$4 sm:$0xff]  }
   0xa   :  { %v3205_v27 = vld [vmem:[%s4619_s0 + $0x150] ss:$28 sps:$4 sm:$0xff]   ;;  %v3206_v28 = vld [vmem:[%s4619_s0 + $0x158] ss:$28 sps:$4 sm:$0xff]   ;;  %v3211_v32 = vld [vmem:[%s4619_s0 + $0x188] ss:$28 sps:$4 sm:$0xff]  }
   0xb   :  { %475 = vmatpush1.bf16.msra.mxu0 %v3181_v11  ;;  %518 = vmatpush1.bf16.msra.mxu1 %v3182_v12  ;;  %v3209_v30 = vld [vmem:[%s4619_s0 + $0x194] ss:$28 sps:$4 sm:$0xff]   ;;  %v3673_v31 = vld [vmem:[%s4620_s1 + $0x4] ss:$8 sps:$4 sm:$0xff]   ;;  %v89_v36 = vld [vmem:[%s4619_s0 + $0x1f8] sm:$0x77] }
   0xc   :  { %476 = vmatprep.subr.bf16.mxu0 %v3183_v13  ;;  %519 = vmatprep.subr.bf16.mxu1 %v3185_v14  ;;  %v3212_v33 = vld [vmem:[%s4619_s0 + $0x190] ss:$28 sps:$4 sm:$0xff]   ;;  %v3213_v34 = vld [vmem:[%s4619_s0 + $0x1c4] ss:$28 sps:$4 sm:$0xff]   ;;  %v2674_v40 = vcombine.low %v89_v36, %v89_v36  ;;  %v2675_v41 = vcombine.high %v89_v36, %v89_v36  ;;  %v3229_v49 = vld [vmem:[%s4619_s0 + $0x18] ss:$28 sps:$4 sm:$0xff]  }
   0xd   :  { %2682 = vmatprep.mubr.msk.bf16.mxu0 %vm444_vm0, %v3673_v31  ;;  %2684 = vmatprep.mubr.msk.bf16.mxu1 %vm444_vm0, %v3673_v31  ;;  %v3215_v35 = vld [vmem:[%s4619_s0 + $0x1cc] ss:$28 sps:$4 sm:$0xff]   ;;  %v90_v37 = vld [vmem:[%s4619_s0 + $0x200] sm:$0x77]  ;;  %v3228_v46 = vld [vmem:[%s4619_s0 + $0x14] ss:$28 sps:$4 sm:$0xff]  }
   0xe   :  { %v3217_v38 = vld [vmem:[%s4619_s0 + $0x1c0] ss:$28 sps:$4 sm:$0xff]   ;;  %v3218_v39 = vld [vmem:[%s4619_s0 + $0x1c8] ss:$28 sps:$4 sm:$0xff]   ;;  %v2677_v42 = vcombine.high %v90_v37, %v90_v37  ;;  %v2676_v43 = vcombine.low %v90_v37, %v90_v37  ;;  %v450_v44 = vsel %vm448_vm1, %v2674_v40, 0 }
   0xf   :  { %477 = vmatpush1.bf16.msra.mxu0 %v3187_v15  ;;  %520 = vmatpush1.bf16.msra.mxu1 %v3188_v16  ;;  %v3713_v47 = vld [vmem:[%s4620_s1] ss:$8 sps:$4 sm:$0xff]   ;;  %v3226_v48 = vld [vmem:[%s4619_s0 + $0x10] ss:$28 sps:$4 sm:$0xff]   ;;  %v3240_v56 = vld [vmem:[%s4619_s0 + $0xbc] ss:$28 sps:$4 sm:$0xff]  }
  0x10   :  { %478 = vmatprep.subr.bf16.mxu0 %v3189_v17  ;;  %521 = vmatprep.subr.bf16.mxu1 %v3191_v18  ;;  %v456_v45 = vsel %vm448_vm1, %v2676_v43, 0  ;;  %v3232_v50 = vld [vmem:[%s4619_s0 + $0x4c] ss:$28 sps:$4 sm:$0xff]   ;;  %v3236_v53 = vld [vmem:[%s4619_s0 + $0x84] ss:$28 sps:$4 sm:$0xff]  }
  0x11   :  { %v3230_v51 = vld [vmem:[%s4619_s0 + $0x48] ss:$28 sps:$4 sm:$0xff]   ;;  %v3233_v52 = vld [vmem:[%s4619_s0 + $0x50] ss:$28 sps:$4 sm:$0xff]   ;;  %v3234_v54 = vld [vmem:[%s4619_s0 + $0x80] ss:$28 sps:$4 sm:$0xff]  }
  0x12   :  { %v3237_v55 = vld [vmem:[%s4619_s0 + $0x88] ss:$28 sps:$4 sm:$0xff]   ;;  %v3238_v57 = vld [vmem:[%s4619_s0 + $0xb8] ss:$28 sps:$4 sm:$0xff]   ;;  %v3241_v58 = vld [vmem:[%s4619_s0 + $0xc0] ss:$28 sps:$4 sm:$0xff]  }
  0x13   :  { %479 = vmatpush1.bf16.msra.mxu0 %v3193_v19  ;;  %522 = vmatpush1.bf16.msra.mxu1 %v3194_v20  ;;  %v3244_v59 = vld [vmem:[%s4619_s0 + $0xf4] ss:$28 sps:$4 sm:$0xff]   ;;  %v3248_v62 = vld [vmem:[%s4619_s0 + $0x12c] ss:$28 sps:$4 sm:$0xff]   ;;  %v3252_v2 = vld [vmem:[%s4619_s0 + $0x164] ss:$28 sps:$4 sm:$0xff]  }
  0x14   :  { %480 = vmatprep.subr.bf16.mxu0 %v3195_v21  ;;  %523 = vmatprep.subr.bf16.mxu1 %v3197_v22  ;;  %v3242_v60 = vld [vmem:[%s4619_s0 + $0xf0] ss:$28 sps:$4 sm:$0xff]   ;;  %v3245_v61 = vld [vmem:[%s4619_s0 + $0xf8] ss:$28 sps:$4 sm:$0xff]   ;;  %v3246_v63 = vld [vmem:[%s4619_s0 + $0x128] ss:$28 sps:$4 sm:$0xff]  }
  0x15   :  { %v3249_v0 = vld [vmem:[%s4619_s0 + $0x130] ss:$28 sps:$4 sm:$0xff]   ;;  %v3250_v3 = vld [vmem:[%s4619_s0 + $0x160] ss:$28 sps:$4 sm:$0xff]   ;;  %v3253_v4 = vld [vmem:[%s4619_s0 + $0x168] ss:$28 sps:$4 sm:$0xff]  }
  0x16   :  { %v3256_v5 = vld [vmem:[%s4619_s0 + $0x19c] ss:$28 sps:$4 sm:$0xff]   ;;  %v3260_v8 = vld [vmem:[%s4619_s0 + $0x1d4] ss:$28 sps:$4 sm:$0xff]   ;;  %v91_v9 = vld [vmem:[%s4619_s0 + $0x208] sm:$0x77] }
  0x17   :  { %481 = vmatpush1.bf16.msra.mxu0 %v3199_v23  ;;  %524 = vmatpush1.bf16.msra.mxu1 %v3200_v24  ;;  %v3254_v6 = vld [vmem:[%s4619_s0 + $0x198] ss:$28 sps:$4 sm:$0xff]   ;;  %v3257_v7 = vld [vmem:[%s4619_s0 + $0x1a0] ss:$28 sps:$4 sm:$0xff]   ;;  %v3258_v10 = vld [vmem:[%s4619_s0 + $0x1d0] ss:$28 sps:$4 sm:$0xff]   ;;  %v2678_v12 = vcombine.low %v91_v9, %v91_v9  ;;  %v2679_v14 = vcombine.high %v91_v9, %v91_v9 }
  0x18   :  { %482 = vmatprep.subr.bf16.mxu0 %v3201_v25  ;;  %525 = vmatprep.subr.bf16.mxu1 %v3203_v26  ;;  %v3261_v11 = vld [vmem:[%s4619_s0 + $0x1d8] ss:$28 sps:$4 sm:$0xff]   ;;  %v3264_v13 = vld [vmem:[%s4619_s0 + $0x210] ss:$0 sps:$4 sm:$0x77]  }
  0x19   :  { %v462_v15 = vsel %vm448_vm1, %v2678_v12, 0  ;;  %v468_v16 = vsel %vm448_vm1, %v3264_v13, 0  ;;  %v3267_v17 = vld [vmem:[%s4619_s0 + $0x218] ss:$28 sps:$4 sm:$0xff]   ;;  %v3270_v18 = vld [vmem:[%s4619_s0 + $0x220] ss:$28 sps:$4 sm:$0xff]  }
  0x1a   :  { %v3265_v19 = vld [vmem:[%s4619_s0 + $0x214] ss:$28 sps:$4 sm:$0xff]   ;;  %v3268_v20 = vld [vmem:[%s4619_s0 + $0x21c] ss:$28 sps:$4 sm:$0xff]   ;;  %v3271_v23 = vld [vmem:[%s4619_s0 + $0x24c] ss:$28 sps:$4 sm:$0xff]  }
  0x1b   :  { %483 = vmatpush1.bf16.msra.mxu0 %v3205_v27  ;;  %526 = vmatpush1.bf16.msra.mxu1 %v3206_v28  ;;  %v3273_v21 = vld [vmem:[%s4619_s0 + $0x250] ss:$28 sps:$4 sm:$0xff]   ;;  %v3276_v22 = vld [vmem:[%s4619_s0 + $0x258] ss:$28 sps:$4 sm:$0xff]   ;;  %v3279_v25 = vld [vmem:[%s4619_s0 + $0x288] ss:$28 sps:$4 sm:$0xff]  }
  0x1c   :  { %484 = vmatprep.subr.bf16.mxu0 %v3207_v29  ;;  %527 = vmatprep.subr.bf16.mxu1 %v3209_v30  ;;  %v3274_v24 = vld [vmem:[%s4619_s0 + $0x254] ss:$28 sps:$4 sm:$0xff]   ;;  %v3277_v27 = vld [vmem:[%s4619_s0 + $0x284] ss:$28 sps:$4 sm:$0xff]   ;;  %v3280_v28 = vld [vmem:[%s4619_s0 + $0x28c] ss:$28 sps:$4 sm:$0xff]  }
  0x1d   :  { %v3282_v26 = vld [vmem:[%s4619_s0 + $0x290] ss:$28 sps:$4 sm:$0xff]   ;;  %v3285_v29 = vld [vmem:[%s4619_s0 + $0x2c0] ss:$28 sps:$4 sm:$0xff]   ;;  %v3288_v30 = vld [vmem:[%s4619_s0 + $0x2c8] ss:$28 sps:$4 sm:$0xff]  }
  0x1e   :  { %v3289_v36 = vld [vmem:[%s4619_s0 + $0x2f4] ss:$28 sps:$4 sm:$0xff]   ;;  %v3292_v37 = vld [vmem:[%s4619_s0 + $0x2fc] ss:$28 sps:$4 sm:$0xff]   ;;  %v3295_v40 = vld [vmem:[%s4619_s0 + $0x32c] ss:$28 sps:$4 sm:$0xff]  }
  0x1f   :  { %485 = vmatpush1.bf16.msra.mxu0 %v3211_v32  ;;  %528 = vmatpush1.bf16.msra.mxu1 %v3212_v33  ;;  %v3283_v32 = vld [vmem:[%s4619_s0 + $0x2bc] ss:$28 sps:$4 sm:$0xff]   ;;  %v3286_v33 = vld [vmem:[%s4619_s0 + $0x2c4] ss:$28 sps:$4 sm:$0xff]   ;;  %v3306_v43 = vld [vmem:[%s4619_s0 + $0x370] ss:$28 sps:$4 sm:$0xff]  }
  0x20   :  { %486 = vmatprep.subr.bf16.mxu0 %v3213_v34  ;;  %529 = vmatprep.subr.bf16.mxu1 %v3215_v35  ;;  %v3291_v34 = vld [vmem:[%s4619_s0 + $0x2f8] ss:$28 sps:$4 sm:$0xff]   ;;  %v3294_v35 = vld [vmem:[%s4619_s0 + $0x300] ss:$28 sps:$4 sm:$0xff]   ;;  %v3337_v9 = vld [vmem:[%s4619_s0 + $0x2d0] ss:$28 sps:$4 sm:$0xff]  }
  0x21   :  { %v3339_v12 = vld [vmem:[%s4619_s0 + $0x304] ss:$28 sps:$4 sm:$0xff]   ;;  %v3342_v13 = vld [vmem:[%s4619_s0 + $0x30c] ss:$28 sps:$4 sm:$0xff]  }
  0x23   :  { %487 = vmatpush1.bf16.msra.mxu0 %v3217_v38  ;;  %530 = vmatpush1.bf16.msra.mxu1 %v3218_v39  ;;  %v3297_v38 = vld [vmem:[%s4619_s0 + $0x330] ss:$28 sps:$4 sm:$0xff]   ;;  %v3300_v39 = vld [vmem:[%s4619_s0 + $0x338] ss:$28 sps:$4 sm:$0xff]  }
  0x24   :  { %2681 = vmatprep.subr.msk.bf16.mxu0 %vm448_vm1, %v2675_v41  ;;  %2683 = vmatprep.subr.msk.bf16.mxu1 %vm448_vm1, %v2677_v42  ;;  %v3298_v41 = vld [vmem:[%s4619_s0 + $0x334] ss:$28 sps:$4 sm:$0xff]   ;;  %v3303_v42 = vld [vmem:[%s4619_s0 + $0x368] ss:$28 sps:$4 sm:$0xff]  }
  0x27   :  { %489 = vmatpush1.bf16.msra.mxu0 %v450_v44  ;;  %532 = vmatpush1.bf16.msra.mxu1 %v456_v45  ;;  %v3301_v44 = vld [vmem:[%s4619_s0 + $0x364] ss:$28 sps:$4 sm:$0xff]   ;;  %v3304_v45 = vld [vmem:[%s4619_s0 + $0x36c] ss:$28 sps:$4 sm:$0xff]  }
  0x28   :  { %556 = vmatprep.subr.bf16.mxu0 %v3228_v46  ;;  %599 = vmatprep.subr.bf16.mxu1 %v3558_v1  ;;  %v3309_v46 = vld [vmem:[%s4619_s0 + $0x3a0] ss:$28 sps:$4 sm:$0xff]  }
  0x2a   :  { %503 = vmatmul.mubr.bf16.vlgmr.msra.gmra.mrb[0].mxu0 %v3713_v47  ;;  %546 = vmatmul.mubr.bf16.vlgmr.msra.gmra.mrb[0].mxu1 %v3713_v47 }
  0x2b   :  { %557 = vmatpush1.bf16.msra.mxu0 %v3226_v48  ;;  %600 = vmatpush1.bf16.msra.mxu1 %v3229_v49  ;;  %v3312_v48 = vld [vmem:[%s4619_s0 + $0x3a8] ss:$28 sps:$4 sm:$0xff]   ;;  %v3307_v49 = vld [vmem:[%s4619_s0 + $0x39c] ss:$28 sps:$4 sm:$0xff]  }
  0x2c   :  { %558 = vmatprep.subr.bf16.mxu0 %v3232_v50  ;;  %601 = vmatprep.subr.bf16.mxu1 %v3558_v1  ;;  %v3310_v50 = vld [vmem:[%s4619_s0 + $0x3a4] ss:$28 sps:$4 sm:$0xff]  }
  0x2d   :  { %2686 = vmatprep.mubr.msk.bf16.mxu0 %vm444_vm0, %v3673_v31  ;;  %2687 = vmatprep.mubr.msk.bf16.mxu1 %vm444_vm0, %v3673_v31 }
  0x2f   :  { %559 = vmatpush1.bf16.msra.mxu0 %v3230_v51  ;;  %602 = vmatpush1.bf16.msra.mxu1 %v3233_v52  ;;  %v3315_v51 = vld [vmem:[%s4619_s0 + $0x3d8] ss:$28 sps:$4 sm:$0xff]   ;;  %v3318_v52 = vld [vmem:[%s4619_s0 + $0x3e0] ss:$28 sps:$4 sm:$0xff]  }
  0x30   :  { %560 = vmatprep.subr.bf16.mxu0 %v3236_v53  ;;  %603 = vmatprep.subr.bf16.mxu1 %v3558_v1  ;;  %v2760_v53 = vld [vmem:[%s4619_s0 + $0x40c] sm:$0x77] }
  0x33   :  { %561 = vmatpush1.bf16.msra.mxu0 %v3234_v54  ;;  %604 = vmatpush1.bf16.msra.mxu1 %v3237_v55  ;;  %v2761_v54 = vld [vmem:[%s4619_s0 + $0x414] sm:$0x77] }
  0x34   :  { %562 = vmatprep.subr.bf16.mxu0 %v3240_v56  ;;  %605 = vmatprep.subr.bf16.mxu1 %v3558_v1  ;;  %v3313_v55 = vld [vmem:[%s4619_s0 + $0x3d4] ss:$28 sps:$4 sm:$0xff]   ;;  %v3316_v56 = vld [vmem:[%s4619_s0 + $0x3dc] ss:$28 sps:$4 sm:$0xff]  }
  0x37   :  { %563 = vmatpush1.bf16.msra.mxu0 %v3238_v57  ;;  %606 = vmatpush1.bf16.msra.mxu1 %v3241_v58  ;;  %v2828_v57 = vcombine.high %v2760_v53, %v2760_v53  ;;  %v2830_v58 = vcombine.high %v2761_v54, %v2761_v54 }
  0x38   :  { %564 = vmatprep.subr.bf16.mxu0 %v3244_v59  ;;  %607 = vmatprep.subr.bf16.mxu1 %v3558_v1  ;;  %v2827_v59 = vcombine.low %v2760_v53, %v2760_v53  ;;  %v3389_v53 = vld [vmem:[%s4619_s0 + $0x510] ss:$28 sps:$4 sm:$0xff]  }
  0x3b   :  { %565 = vmatpush1.bf16.msra.mxu0 %v3242_v60  ;;  %608 = vmatpush1.bf16.msra.mxu1 %v3245_v61  ;;  %v2829_v60 = vcombine.low %v2761_v54, %v2761_v54  ;;  %v1060_v61 = vsel %vm448_vm1, %v2827_v59, 0  ;;  %v3394_v54 = vld [vmem:[%s4619_s0 + $0x544] ss:$28 sps:$4 sm:$0xff]  }
  0x3c   :  { %566 = vmatprep.subr.bf16.mxu0 %v3248_v62  ;;  %609 = vmatprep.subr.bf16.mxu1 %v3558_v1  ;;  %v3403_v59 = vld [vmem:[%s4619_s0 + $0x584] ss:$28 sps:$4 sm:$0xff]  }
  0x3d   :  { %v1066_v62 = vsel %vm448_vm1, %v2829_v60, 0  ;;  %v3398_v60 = vld [vmem:[%s4619_s0 + $0x578] ss:$28 sps:$4 sm:$0xff]  }
  0x3f   :  { %567 = vmatpush1.bf16.msra.mxu0 %v3246_v63  ;;  %610 = vmatpush1.bf16.msra.mxu1 %v3249_v0  ;;  %v3325_v63 = vld [vmem:[%s4619_s0 + $0x228] ss:$28 sps:$4 sm:$0xff]  }
  0x40   :  { %568 = vmatprep.subr.bf16.mxu0 %v3252_v2  ;;  %611 = vmatprep.subr.bf16.mxu1 %v3558_v1  ;;  %v3323_v0 = vld [vmem:[%s4619_s0 + $0x224] ss:$28 sps:$4 sm:$0xff]   ;;  %v3326_v2 = vld [vmem:[%s4619_s0 + $0x22c] ss:$28 sps:$4 sm:$0xff]  }
  0x43   :  { %569 = vmatpush1.bf16.msra.mxu0 %v3250_v3  ;;  %612 = vmatpush1.bf16.msra.mxu1 %v3253_v4  ;;  %v3329_v3 = vld [vmem:[%s4619_s0 + $0x260] ss:$28 sps:$4 sm:$0xff]  }
  0x44   :  { %570 = vmatprep.subr.bf16.mxu0 %v3256_v5  ;;  %613 = vmatprep.subr.bf16.mxu1 %v3558_v1  ;;  %v3327_v4 = vld [vmem:[%s4619_s0 + $0x25c] ss:$28 sps:$4 sm:$0xff]   ;;  %v3330_v5 = vld [vmem:[%s4619_s0 + $0x264] ss:$28 sps:$4 sm:$0xff]  }
  0x47   :  { %571 = vmatpush1.bf16.msra.mxu0 %v3254_v6  ;;  %614 = vmatpush1.bf16.msra.mxu1 %v3257_v7  ;;  %v3333_v6 = vld [vmem:[%s4619_s0 + $0x298] ss:$28 sps:$4 sm:$0xff]  }
  0x48   :  { %572 = vmatprep.subr.bf16.mxu0 %v3260_v8  ;;  %615 = vmatprep.subr.bf16.mxu1 %v3558_v1  ;;  %v3331_v7 = vld [vmem:[%s4619_s0 + $0x294] ss:$28 sps:$4 sm:$0xff]   ;;  %v3334_v8 = vld [vmem:[%s4619_s0 + $0x29c] ss:$28 sps:$4 sm:$0xff]  }
  0x4b   :  { %573 = vmatpush1.bf16.msra.mxu0 %v3258_v10  ;;  %616 = vmatpush1.bf16.msra.mxu1 %v3261_v11  ;;  %v3338_v10 = vld [vmem:[%s4619_s0 + $0x2d4] ss:$28 sps:$4 sm:$0xff]   ;;  %v3341_v11 = vld [vmem:[%s4619_s0 + $0x308] ss:$28 sps:$4 sm:$0xff]  }
  0x4c   :  { %2685 = vmatprep.subr.msk.bf16.mxu0 %vm448_vm1, %v2679_v14  ;;  %617 = vmatprep.subr.bf16.mxu1 %v3558_v1  ;;  %v3345_v14 = vld [vmem:[%s4619_s0 + $0x340] ss:$28 sps:$4 sm:$0xff]  }
  0x4f   :  { %575 = vmatpush1.bf16.msra.mxu0 %v462_v15  ;;  %618 = vmatpush1.bf16.msra.mxu1 %v468_v16  ;;  %v3343_v15 = vld [vmem:[%s4619_s0 + $0x33c] ss:$28 sps:$4 sm:$0xff]   ;;  %v3346_v16 = vld [vmem:[%s4619_s0 + $0x344] ss:$28 sps:$4 sm:$0xff]  }
  0x50   :  { %1080 = vmatprep.subr.bf16.mxu0 %v3267_v17  ;;  %1123 = vmatprep.subr.bf16.mxu1 %v3270_v18  ;;  %v3349_v17 = vld [vmem:[%s4619_s0 + $0x378] ss:$28 sps:$4 sm:$0xff]  }
  0x51   :  { %v3347_v18 = vld [vmem:[%s4619_s0 + $0x374] ss:$28 sps:$4 sm:$0xff]  }
  0x52   :  { %589 = vmatmul.mubr.bf16.vlgmr.msra.gmra.mrb[4].mxu0 %v3713_v47  ;;  %632 = vmatmul.mubr.bf16.vlgmr.msra.gmra.mrb[4].mxu1 %v3713_v47 }
  0x53   :  { %1081 = vmatpush1.bf16.msra.mxu0 %v3265_v19  ;;  %1124 = vmatpush1.bf16.msra.mxu1 %v3268_v20  ;;  %v3350_v19 = vld [vmem:[%s4619_s0 + $0x37c] ss:$28 sps:$4 sm:$0xff]   ;;  %v3353_v20 = vld [vmem:[%s4619_s0 + $0x3b0] ss:$28 sps:$4 sm:$0xff]  }
  0x54   :  { %1082 = vmatprep.subr.bf16.mxu0 %v3273_v21  ;;  %1125 = vmatprep.subr.bf16.mxu1 %v3276_v22  ;;  %v3351_v21 = vld [vmem:[%s4619_s0 + $0x3ac] ss:$28 sps:$4 sm:$0xff]   ;;  %v3354_v22 = vld [vmem:[%s4619_s0 + $0x3b4] ss:$28 sps:$4 sm:$0xff]  }
  0x55   :  { %2835 = vmatprep.mubr.msk.bf16.mxu0 %vm444_vm0, %v3673_v31  ;;  %2837 = vmatprep.mubr.msk.bf16.mxu1 %vm444_vm0, %v3673_v31 }
  0x57   :  { %1083 = vmatpush1.bf16.msra.mxu0 %v3271_v23  ;;  %1126 = vmatpush1.bf16.msra.mxu1 %v3274_v24  ;;  %v3357_v23 = vld [vmem:[%s4619_s0 + $0x3e8] ss:$28 sps:$4 sm:$0xff]   ;;  %v2762_v24 = vld [vmem:[%s4619_s0 + $0x41c] sm:$0x77] }
  0x58   :  { %1084 = vmatprep.subr.bf16.mxu0 %v3279_v25  ;;  %1127 = vmatprep.subr.bf16.mxu1 %v3282_v26  ;;  %v3355_v25 = vld [vmem:[%s4619_s0 + $0x3e4] ss:$28 sps:$4 sm:$0xff]   ;;  %v3358_v26 = vld [vmem:[%s4619_s0 + $0x3ec] ss:$28 sps:$4 sm:$0xff]  }
  0x5b   :  { %1085 = vmatpush1.bf16.msra.mxu0 %v3277_v27  ;;  %1128 = vmatpush1.bf16.msra.mxu1 %v3280_v28  ;;  %v2832_v27 = vcombine.high %v2762_v24, %v2762_v24  ;;  %v2831_v28 = vcombine.low %v2762_v24, %v2762_v24  ;;  %v3434_v24 = vld [vmem:[%s4619_s0 + $0x4e4] ss:$28 sps:$4 sm:$0xff]  }
  0x5c   :  { %1086 = vmatprep.subr.bf16.mxu0 %v3285_v29  ;;  %1129 = vmatprep.subr.bf16.mxu1 %v3288_v30  ;;  %v3361_v29 = vld [vmem:[%s4619_s0 + $0x424] ss:$0 sps:$4 sm:$0x77]   ;;  %v3364_v30 = vld [vmem:[%s4619_s0 + $0x42c] ss:$28 sps:$4 sm:$0xff]  }
  0x5f   :  { %1087 = vmatpush1.bf16.msra.mxu0 %v3283_v32  ;;  %1130 = vmatpush1.bf16.msra.mxu1 %v3286_v33  ;;  %v1072_v32 = vsel %vm448_vm1, %v2831_v28, 0  ;;  %v1078_v33 = vsel %vm448_vm1, %v3361_v29, 0  ;;  %v3438_v28 = vld [vmem:[%s4619_s0 + $0x51c] ss:$28 sps:$4 sm:$0xff]   ;;  %v2513_v29 = vld [vmem:[%s4621_s2 + $0x8] sm:$0xff] }
  0x60   :  { %1088 = vmatprep.subr.bf16.mxu0 %v3291_v34  ;;  %1131 = vmatprep.subr.bf16.mxu1 %v3294_v35  ;;  %v3367_v34 = vld [vmem:[%s4619_s0 + $0x434] ss:$28 sps:$4 sm:$0xff]   ;;  %v3362_v35 = vld [vmem:[%s4619_s0 + $0x428] ss:$28 sps:$4 sm:$0xff]  }
  0x63   :  { %1089 = vmatpush1.bf16.msra.mxu0 %v3289_v36  ;;  %1132 = vmatpush1.bf16.msra.mxu1 %v3292_v37  ;;  %v3365_v36 = vld [vmem:[%s4619_s0 + $0x430] ss:$28 sps:$4 sm:$0xff]   ;;  %v3370_v37 = vld [vmem:[%s4619_s0 + $0x464] ss:$28 sps:$4 sm:$0xff]  }
  0x64   :  { %1090 = vmatprep.subr.bf16.mxu0 %v3297_v38  ;;  %1133 = vmatprep.subr.bf16.mxu1 %v3300_v39  ;;  %v3373_v38 = vld [vmem:[%s4619_s0 + $0x46c] ss:$28 sps:$4 sm:$0xff]   ;;  %v3368_v39 = vld [vmem:[%s4619_s0 + $0x460] ss:$28 sps:$4 sm:$0xff]  }
  0x67   :  { %1091 = vmatpush1.bf16.msra.mxu0 %v3295_v40  ;;  %1134 = vmatpush1.bf16.msra.mxu1 %v3298_v41  ;;  %v3371_v40 = vld [vmem:[%s4619_s0 + $0x468] ss:$28 sps:$4 sm:$0xff]   ;;  %v3376_v41 = vld [vmem:[%s4619_s0 + $0x49c] ss:$28 sps:$4 sm:$0xff]  }
  0x68   :  { %1092 = vmatprep.subr.bf16.mxu0 %v3303_v42  ;;  %1135 = vmatprep.subr.bf16.mxu1 %v3306_v43  ;;  %v3374_v42 = vld [vmem:[%s4619_s0 + $0x498] ss:$28 sps:$4 sm:$0xff]   ;;  %v4086_v43 = vld [vmem:[%s4620_s1 + $0x4] ss:$8 sps:$4 sm:$0xff]  }
  0x6b   :  { %1093 = vmatpush1.bf16.msra.mxu0 %v3301_v44  ;;  %1136 = vmatpush1.bf16.msra.mxu1 %v3304_v45  ;;  %v3377_v44 = vld [vmem:[%s4619_s0 + $0x4a0] ss:$28 sps:$4 sm:$0xff]   ;;  %v3382_v45 = vld [vmem:[%s4619_s0 + $0x4d4] ss:$28 sps:$4 sm:$0xff]  }
  0x6c   :  { %1094 = vmatprep.subr.bf16.mxu0 %v3309_v46  ;;  %1137 = vmatprep.subr.bf16.mxu1 %v3312_v48  ;;  %v3385_v46 = vld [vmem:[%s4619_s0 + $0x4dc] ss:$28 sps:$4 sm:$0xff]   ;;  %v3380_v48 = vld [vmem:[%s4619_s0 + $0x4d0] ss:$28 sps:$4 sm:$0xff]  }
  0x6f   :  { %1095 = vmatpush1.bf16.msra.mxu0 %v3307_v49  ;;  %1138 = vmatpush1.bf16.msra.mxu1 %v3310_v50  ;;  %v3383_v49 = vld [vmem:[%s4619_s0 + $0x4d8] ss:$28 sps:$4 sm:$0xff]   ;;  %v3388_v50 = vld [vmem:[%s4619_s0 + $0x50c] ss:$28 sps:$4 sm:$0xff]  }
  0x70   :  { %1096 = vmatprep.subr.bf16.mxu0 %v3315_v51  ;;  %1139 = vmatprep.subr.bf16.mxu1 %v3318_v52  ;;  %v3391_v51 = vld [vmem:[%s4619_s0 + $0x514] ss:$28 sps:$4 sm:$0xff]   ;;  %v3386_v52 = vld [vmem:[%s4619_s0 + $0x508] ss:$28 sps:$4 sm:$0xff]  }
  0x73   :  { %1097 = vmatpush1.bf16.msra.mxu0 %v3313_v55  ;;  %1140 = vmatpush1.bf16.msra.mxu1 %v3316_v56  ;;  %v3397_v55 = vld [vmem:[%s4619_s0 + $0x54c] ss:$28 sps:$4 sm:$0xff]   ;;  %v3392_v56 = vld [vmem:[%s4619_s0 + $0x540] ss:$28 sps:$4 sm:$0xff]  }
  0x74   :  { %2834 = vmatprep.subr.msk.bf16.mxu0 %vm448_vm1, %v2828_v57  ;;  %2836 = vmatprep.subr.msk.bf16.mxu1 %vm448_vm1, %v2830_v58  ;;  %v3395_v57 = vld [vmem:[%s4619_s0 + $0x548] ss:$28 sps:$4 sm:$0xff]   ;;  %v3400_v58 = vld [vmem:[%s4619_s0 + $0x57c] ss:$28 sps:$4 sm:$0xff]  }
  0x77   :  { %1099 = vmatpush1.bf16.msra.mxu0 %v1060_v61  ;;  %1142 = vmatpush1.bf16.msra.mxu1 %v1066_v62  ;;  %v3401_v61 = vld [vmem:[%s4619_s0 + $0x580] ss:$28 sps:$4 sm:$0xff]   ;;  %v3406_v62 = vld [vmem:[%s4619_s0 + $0x5b4] ss:$28 sps:$4 sm:$0xff]  }
  0x78   :  { %1166 = vmatprep.subr.bf16.mxu0 %v3325_v63  ;;  %1209 = vmatprep.subr.bf16.mxu1 %v3558_v1  ;;  %v3409_v63 = vld [vmem:[%s4619_s0 + $0x5bc] ss:$28 sps:$4 sm:$0xff]  }
  0x7a   :  { %1113 = vmatmul.mubr.bf16.vlgmr.msra.gmra.mrb[8].mxu0 %v3713_v47  ;;  %1156 = vmatmul.mubr.bf16.vlgmr.msra.gmra.mrb[8].mxu1 %v3713_v47 }
  0x7b   :  { %1167 = vmatpush1.bf16.msra.mxu0 %v3323_v0  ;;  %1210 = vmatpush1.bf16.msra.mxu1 %v3326_v2  ;;  %v3404_v0 = vld [vmem:[%s4619_s0 + $0x5b0] ss:$28 sps:$4 sm:$0xff]   ;;  %v3407_v2 = vld [vmem:[%s4619_s0 + $0x5b8] ss:$28 sps:$4 sm:$0xff]  }
  0x7c   :  { %1168 = vmatprep.subr.bf16.mxu0 %v3329_v3  ;;  %1211 = vmatprep.subr.bf16.mxu1 %v3558_v1  ;;  %v3412_v3 = vld [vmem:[%s4619_s0 + $0x5ec] ss:$28 sps:$4 sm:$0xff]  }
  0x7d   :  { %2839 = vmatprep.mubr.msk.bf16.mxu0 %vm444_vm0, %v3673_v31  ;;  %2840 = vmatprep.mubr.msk.bf16.mxu1 %vm444_vm0, %v3673_v31  ;;  %v3335_v31 = vld [vmem:[%s4619_s0 + $0x2cc] ss:$28 sps:$4 sm:$0xff]  }
  0x7f   :  { %1169 = vmatpush1.bf16.msra.mxu0 %v3327_v4  ;;  %1212 = vmatpush1.bf16.msra.mxu1 %v3330_v5  ;;  %v3415_v4 = vld [vmem:[%s4619_s0 + $0x5f4] ss:$28 sps:$4 sm:$0xff]   ;;  %v2913_v5 = vld [vmem:[%s4619_s0 + $0x620] sm:$0x77] }
  0x80   :  { %1170 = vmatprep.subr.bf16.mxu0 %v3333_v6  ;;  %1213 = vmatprep.subr.bf16.mxu1 %v3558_v1  ;;  %v2914_v6 = vld [vmem:[%s4619_s0 + $0x628] sm:$0x77] }
  0x83   :  { %1171 = vmatpush1.bf16.msra.mxu0 %v3331_v7  ;;  %1214 = vmatpush1.bf16.msra.mxu1 %v3334_v8  ;;  %v3410_v7 = vld [vmem:[%s4619_s0 + $0x5e8] ss:$28 sps:$4 sm:$0xff]   ;;  %v3413_v8 = vld [vmem:[%s4619_s0 + $0x5f0] ss:$28 sps:$4 sm:$0xff]  }
  0x84   :  { %1172 = vmatprep.subr.bf16.mxu0 %v3337_v9  ;;  %1215 = vmatprep.subr.bf16.mxu1 %v3558_v1  ;;  %v2981_v9 = vcombine.high %v2913_v5, %v2913_v5 }
  0x87   :  { %1173 = vmatpush1.bf16.msra.mxu0 %v3335_v31  ;;  %1216 = vmatpush1.bf16.msra.mxu1 %v3338_v10  ;;  %v2983_v31 = vcombine.high %v2914_v6, %v2914_v6  ;;  %v2980_v10 = vcombine.low %v2913_v5, %v2913_v5  ;;  %v3485_v5 = vld [vmem:[%s4619_s0 + $0x720] ss:$28 sps:$4 sm:$0xff]  }
  0x88   :  { %1174 = vmatprep.subr.bf16.mxu0 %v3341_v11  ;;  %1217 = vmatprep.subr.bf16.mxu1 %v3558_v1  ;;  %v2982_v11 = vcombine.low %v2914_v6, %v2914_v6  ;;  %v3488_v6 = vld [vmem:[%s4619_s0 + $0x728] ss:$28 sps:$4 sm:$0xff]  }
  0x8b   :  { %1175 = vmatpush1.bf16.msra.mxu0 %v3339_v12  ;;  %1218 = vmatpush1.bf16.msra.mxu1 %v3342_v13  ;;  %v1684_v12 = vsel %vm448_vm1, %v2980_v10, 0  ;;  %v1690_v13 = vsel %vm448_vm1, %v2982_v11, 0 }
  0x8c   :  { %1176 = vmatprep.subr.bf16.mxu0 %v3345_v14  ;;  %1219 = vmatprep.subr.bf16.mxu1 %v3558_v1  ;;  %v3422_v14 = vld [vmem:[%s4619_s0 + $0x43c] ss:$28 sps:$4 sm:$0xff]  }
  0x8f   :  { %1177 = vmatpush1.bf16.msra.mxu0 %v3343_v15  ;;  %1220 = vmatpush1.bf16.msra.mxu1 %v3346_v16  ;;  %v3420_v15 = vld [vmem:[%s4619_s0 + $0x438] ss:$28 sps:$4 sm:$0xff]   ;;  %v3423_v16 = vld [vmem:[%s4619_s0 + $0x440] ss:$28 sps:$4 sm:$0xff]  }
  0x90   :  { %1178 = vmatprep.subr.bf16.mxu0 %v3349_v17  ;;  %1221 = vmatprep.subr.bf16.mxu1 %v3558_v1  ;;  %v3426_v17 = vld [vmem:[%s4619_s0 + $0x474] ss:$28 sps:$4 sm:$0xff]  }
  0x93   :  { %1179 = vmatpush1.bf16.msra.mxu0 %v3347_v18  ;;  %1222 = vmatpush1.bf16.msra.mxu1 %v3350_v19  ;;  %v4193_v18 = vld [vmem:[%s4620_s1] ss:$8 sps:$4 sm:$0xff]   ;;  %v3424_v19 = vld [vmem:[%s4619_s0 + $0x470] ss:$28 sps:$4 sm:$0xff]  }
  0x94   :  { %1180 = vmatprep.subr.bf16.mxu0 %v3353_v20  ;;  %1223 = vmatprep.subr.bf16.mxu1 %v3558_v1  ;;  %v3427_v20 = vld [vmem:[%s4619_s0 + $0x478] ss:$28 sps:$4 sm:$0xff]  }
  0x97   :  { %1181 = vmatpush1.bf16.msra.mxu0 %v3351_v21  ;;  %1224 = vmatpush1.bf16.msra.mxu1 %v3354_v22  ;;  %v3430_v21 = vld [vmem:[%s4619_s0 + $0x4ac] ss:$28 sps:$4 sm:$0xff]  }
  0x98   :  { %1182 = vmatprep.subr.bf16.mxu0 %v3357_v23  ;;  %1225 = vmatprep.subr.bf16.mxu1 %v3558_v1  ;;  %v3428_v22 = vld [vmem:[%s4619_s0 + $0x4a8] ss:$28 sps:$4 sm:$0xff]   ;;  %v3431_v23 = vld [vmem:[%s4619_s0 + $0x4b0] ss:$28 sps:$4 sm:$0xff]  }
  0x9b   :  { %1183 = vmatpush1.bf16.msra.mxu0 %v3355_v25  ;;  %1226 = vmatpush1.bf16.msra.mxu1 %v3358_v26  ;;  %v2512_v25 = vld [vmem:[%s4621_s2] sm:$0xff] }
  0x9c   :  { %2838 = vmatprep.subr.msk.bf16.mxu0 %vm448_vm1, %v2832_v27  ;;  %1227 = vmatprep.subr.bf16.mxu1 %v3558_v1  ;;  %v3432_v26 = vld [vmem:[%s4619_s0 + $0x4e0] ss:$28 sps:$4 sm:$0xff]   ;;  %v3435_v27 = vld [vmem:[%s4619_s0 + $0x4e8] ss:$28 sps:$4 sm:$0xff]  }
  0x9d   :  { %2516 = vperm.xlu0 %3164, %v2512_v25   ;;  %v3503_v25 = vld [vmem:[%s4619_s0 + $0x7c8] ss:$28 sps:$4 sm:$0xff]  }
  0x9f   :  { %1185 = vmatpush1.bf16.msra.mxu0 %v1072_v32  ;;  %1228 = vmatpush1.bf16.msra.mxu1 %v1078_v33  ;;  %v3439_v32 = vld [vmem:[%s4619_s0 + $0x520] ss:$28 sps:$4 sm:$0xff]   ;;  %v3442_v33 = vld [vmem:[%s4619_s0 + $0x554] ss:$28 sps:$4 sm:$0xff]  }
  0xa0   :  { %1704 = vmatprep.subr.bf16.mxu0 %v3364_v30  ;;  %1747 = vmatprep.subr.bf16.mxu1 %v3367_v34  ;;  %v3436_v30 = vld [vmem:[%s4619_s0 + $0x518] ss:$28 sps:$4 sm:$0xff]   ;;  %v3440_v34 = vld [vmem:[%s4619_s0 + $0x550] ss:$28 sps:$4 sm:$0xff]  }
  0xa1   :  { %2521 = vperm.xlu0 %3164, %v2513_v29   ;;  %v3509_v29 = vld [vmem:[%s4619_s0 + $0x800] ss:$28 sps:$4 sm:$0xff]  }
  0xa2   :  { %1199 = vmatmul.mubr.bf16.vlgmr.msra.gmra.mrb[12].mxu0 %v3713_v47  ;;  %1242 = vmatmul.mubr.bf16.vlgmr.msra.gmra.mrb[12].mxu1 %v3713_v47  ;;  %v3379_v47 = vld [vmem:[%s4619_s0 + $0x4a4] ss:$28 sps:$4 sm:$0xff]  }
  0xa3   :  { %1705 = vmatpush1.bf16.msra.mxu0 %v3362_v35  ;;  %1748 = vmatpush1.bf16.msra.mxu1 %v3365_v36  ;;  %v3443_v35 = vld [vmem:[%s4619_s0 + $0x558] ss:$28 sps:$4 sm:$0xff]   ;;  %v3446_v36 = vld [vmem:[%s4619_s0 + $0x58c] ss:$28 sps:$4 sm:$0xff]  }
  0xa4   :  { %1706 = vmatprep.subr.bf16.mxu0 %v3370_v37  ;;  %1749 = vmatprep.subr.bf16.mxu1 %v3373_v38  ;;  %v3444_v37 = vld [vmem:[%s4619_s0 + $0x588] ss:$28 sps:$4 sm:$0xff]   ;;  %v3447_v38 = vld [vmem:[%s4619_s0 + $0x590] ss:$28 sps:$4 sm:$0xff]  }
  0xa5   :  { %2988 = vmatprep.mubr.msk.bf16.mxu0 %vm444_vm0, %v4086_v43  ;;  %2990 = vmatprep.mubr.msk.bf16.mxu1 %vm444_vm0, %v4086_v43 }
  0xa7   :  { %1707 = vmatpush1.bf16.msra.mxu0 %v3368_v39  ;;  %1750 = vmatpush1.bf16.msra.mxu1 %v3371_v40  ;;  %v3450_v39 = vld [vmem:[%s4619_s0 + $0x5c4] ss:$28 sps:$4 sm:$0xff]  }
  0xa8   :  { %1708 = vmatprep.subr.bf16.mxu0 %v3376_v41  ;;  %1751 = vmatprep.subr.bf16.mxu1 %v3379_v47  ;;  %v3448_v40 = vld [vmem:[%s4619_s0 + $0x5c0] ss:$28 sps:$4 sm:$0xff]   ;;  %v3451_v41 = vld [vmem:[%s4619_s0 + $0x5c8] ss:$28 sps:$4 sm:$0xff]  }
  0xa9   :  { %v3454_v47 = vld [vmem:[%s4619_s0 + $0x5fc] ss:$28 sps:$4 sm:$0xff]  }
  0xab   :  { %1709 = vmatpush1.bf16.msra.mxu0 %v3374_v42  ;;  %1752 = vmatpush1.bf16.msra.mxu1 %v3377_v44  ;;  %v2915_v42 = vld [vmem:[%s4619_s0 + $0x630] sm:$0x77] }
  0xac   :  { %1710 = vmatprep.subr.bf16.mxu0 %v3382_v45  ;;  %1753 = vmatprep.subr.bf16.mxu1 %v3385_v46  ;;  %v3452_v44 = vld [vmem:[%s4619_s0 + $0x5f8] ss:$28 sps:$4 sm:$0xff]   ;;  %v3455_v45 = vld [vmem:[%s4619_s0 + $0x600] ss:$28 sps:$4 sm:$0xff]   ;;  %v2985_v46 = vcombine.high %v2915_v42, %v2915_v42 }
  0xaf   :  { %1711 = vmatpush1.bf16.msra.mxu0 %v3380_v48  ;;  %1754 = vmatpush1.bf16.msra.mxu1 %v3383_v49  ;;  %v2984_v48 = vcombine.low %v2915_v42, %v2915_v42  ;;  %v3458_v49 = vld [vmem:[%s4619_s0 + $0x638] ss:$0 sps:$4 sm:$0x77]   ;;  %v3517_v42 = vld [vmem:[%s4619_s0 + $0x64c] ss:$28 sps:$4 sm:$0xff]  }
  0xb0   :  { %1712 = vmatprep.subr.bf16.mxu0 %v3388_v50  ;;  %1755 = vmatprep.subr.bf16.mxu1 %v3391_v51  ;;  %v1702_v51 = vsel %vm448_vm1, %v3458_v49, 0  ;;  %v3527_v49 = vld [vmem:[%s4619_s0 + $0x6c0] ss:$28 sps:$4 sm:$0xff]  }
  0xb1   :  { %v1696_v50 = vsel %vm448_vm1, %v2984_v48, 0  ;;  %v3524_v48 = vld [vmem:[%s4619_s0 + $0x68c] ss:$28 sps:$4 sm:$0xff]  }
  0xb3   :  { %1713 = vmatpush1.bf16.msra.mxu0 %v3386_v52  ;;  %1756 = vmatpush1.bf16.msra.mxu1 %v3389_v53  ;;  %v3461_v52 = vld [vmem:[%s4619_s0 + $0x640] ss:$28 sps:$4 sm:$0xff]   ;;  %v3464_v53 = vld [vmem:[%s4619_s0 + $0x648] ss:$28 sps:$4 sm:$0xff]  }
  0xb4   :  { %1714 = vmatprep.subr.bf16.mxu0 %v3394_v54  ;;  %1757 = vmatprep.subr.bf16.mxu1 %v3397_v55  ;;  %v3459_v54 = vld [vmem:[%s4619_s0 + $0x63c] ss:$28 sps:$4 sm:$0xff]   ;;  %v3462_v55 = vld [vmem:[%s4619_s0 + $0x644] ss:$28 sps:$4 sm:$0xff]  }
  0xb7   :  { %1715 = vmatpush1.bf16.msra.mxu0 %v3392_v56  ;;  %1758 = vmatpush1.bf16.msra.mxu1 %v3395_v57  ;;  %v3467_v56 = vld [vmem:[%s4619_s0 + $0x678] ss:$28 sps:$4 sm:$0xff]   ;;  %v3470_v57 = vld [vmem:[%s4619_s0 + $0x680] ss:$28 sps:$4 sm:$0xff]  }
  0xb8   :  { %1716 = vmatprep.subr.bf16.mxu0 %v3400_v58  ;;  %1759 = vmatprep.subr.bf16.mxu1 %v3403_v59  ;;  %v3465_v58 = vld [vmem:[%s4619_s0 + $0x674] ss:$28 sps:$4 sm:$0xff]   ;;  %v3468_v59 = vld [vmem:[%s4619_s0 + $0x67c] ss:$28 sps:$4 sm:$0xff]  }
  0xbb   :  { %1717 = vmatpush1.bf16.msra.mxu0 %v3398_v60  ;;  %1760 = vmatpush1.bf16.msra.mxu1 %v3401_v61  ;;  %v3473_v60 = vld [vmem:[%s4619_s0 + $0x6b0] ss:$28 sps:$4 sm:$0xff]   ;;  %v3476_v61 = vld [vmem:[%s4619_s0 + $0x6b8] ss:$28 sps:$4 sm:$0xff]  }
  0xbc   :  { %1718 = vmatprep.subr.bf16.mxu0 %v3406_v62  ;;  %1761 = vmatprep.subr.bf16.mxu1 %v3409_v63  ;;  %v3471_v62 = vld [vmem:[%s4619_s0 + $0x6ac] ss:$28 sps:$4 sm:$0xff]   ;;  %v3474_v63 = vld [vmem:[%s4619_s0 + $0x6b4] ss:$28 sps:$4 sm:$0xff]  }
  0xbf   :  { %1719 = vmatpush1.bf16.msra.mxu0 %v3404_v0  ;;  %1762 = vmatpush1.bf16.msra.mxu1 %v3407_v2  ;;  %v3479_v0 = vld [vmem:[%s4619_s0 + $0x6e8] ss:$28 sps:$4 sm:$0xff]   ;;  %v3482_v2 = vld [vmem:[%s4619_s0 + $0x6f0] ss:$28 sps:$4 sm:$0xff]  }
  0xc0   :  { %1720 = vmatprep.subr.bf16.mxu0 %v3412_v3  ;;  %1763 = vmatprep.subr.bf16.mxu1 %v3415_v4  ;;  %v3477_v3 = vld [vmem:[%s4619_s0 + $0x6e4] ss:$28 sps:$4 sm:$0xff]   ;;  %v3480_v4 = vld [vmem:[%s4619_s0 + $0x6ec] ss:$28 sps:$4 sm:$0xff]  }
  0xc3   :  { %1721 = vmatpush1.bf16.msra.mxu0 %v3410_v7  ;;  %1764 = vmatpush1.bf16.msra.mxu1 %v3413_v8 }
  0xc4   :  { %2987 = vmatprep.subr.msk.bf16.mxu0 %vm448_vm1, %v2981_v9  ;;  %2989 = vmatprep.subr.msk.bf16.mxu1 %vm448_vm1, %v2983_v31 }
  0xc7   :  { %1723 = vmatpush1.bf16.msra.mxu0 %v1684_v12  ;;  %1766 = vmatpush1.bf16.msra.mxu1 %v1690_v13  ;;  %v3483_v12 = vld [vmem:[%s4619_s0 + $0x71c] ss:$28 sps:$4 sm:$0xff]   ;;  %v3486_v13 = vld [vmem:[%s4619_s0 + $0x724] ss:$28 sps:$4 sm:$0xff]  }
  0xc8   :  { %1790 = vmatprep.subr.bf16.mxu0 %v3422_v14  ;;  %1833 = vmatprep.subr.bf16.mxu1 %v3558_v1 }
  0xca   :  { %1737 = vmatmul.mubr.bf16.vlgmr.msra.gmra.mrb[16].mxu0 %v4193_v18  ;;  %1780 = vmatmul.mubr.bf16.vlgmr.msra.gmra.mrb[16].mxu1 %v4193_v18 }
  0xcb   :  { %1791 = vmatpush1.bf16.msra.mxu0 %v3420_v15  ;;  %1834 = vmatpush1.bf16.msra.mxu1 %v3423_v16  ;;  %v3491_v16 = vld [vmem:[%s4619_s0 + $0x758] ss:$28 sps:$4 sm:$0xff]  }
  0xcc   :  { %1792 = vmatprep.subr.bf16.mxu0 %v3426_v17  ;;  %1835 = vmatprep.subr.bf16.mxu1 %v3558_v1  ;;  %v3494_v17 = vld [vmem:[%s4619_s0 + $0x760] ss:$28 sps:$4 sm:$0xff]  }
  0xcd   :  { %2992 = vmatprep.mubr.msk.bf16.mxu0 %vm444_vm0, %v4086_v43  ;;  %2993 = vmatprep.mubr.msk.bf16.mxu1 %vm444_vm0, %v4086_v43 }
  0xcf   :  { %1793 = vmatpush1.bf16.msra.mxu0 %v3424_v19  ;;  %1836 = vmatpush1.bf16.msra.mxu1 %v3427_v20  ;;  %v3489_v19 = vld [vmem:[%s4619_s0 + $0x754] ss:$28 sps:$4 sm:$0xff]   ;;  %v3492_v20 = vld [vmem:[%s4619_s0 + $0x75c] ss:$28 sps:$4 sm:$0xff]  }
  0xd0   :  { %1794 = vmatprep.subr.bf16.mxu0 %v3430_v21  ;;  %1837 = vmatprep.subr.bf16.mxu1 %v3558_v1  ;;  %v3497_v21 = vld [vmem:[%s4619_s0 + $0x790] ss:$28 sps:$4 sm:$0xff]  }
  0xd3   :  { %1795 = vmatpush1.bf16.msra.mxu0 %v3428_v22  ;;  %1838 = vmatpush1.bf16.msra.mxu1 %v3431_v23  ;;  %v3500_v22 = vld [vmem:[%s4619_s0 + $0x798] ss:$28 sps:$4 sm:$0xff]   ;;  %v3495_v23 = vld [vmem:[%s4619_s0 + $0x78c] ss:$28 sps:$4 sm:$0xff]  }
  0xd4   :  { %1796 = vmatprep.subr.bf16.mxu0 %v3434_v24  ;;  %1839 = vmatprep.subr.bf16.mxu1 %v3558_v1  ;;  %v3498_v24 = vld [vmem:[%s4619_s0 + $0x794] ss:$28 sps:$4 sm:$0xff]  }
  0xd7   :  { %1797 = vmatpush1.bf16.msra.mxu0 %v3432_v26  ;;  %1840 = vmatpush1.bf16.msra.mxu1 %v3435_v27  ;;  %v3506_v26 = vld [vmem:[%s4619_s0 + $0x7d0] ss:$28 sps:$4 sm:$0xff]   ;;  %v3501_v27 = vld [vmem:[%s4619_s0 + $0x7c4] ss:$28 sps:$4 sm:$0xff]  }
  0xd8   :  { %1798 = vmatprep.subr.bf16.mxu0 %v3438_v28  ;;  %1841 = vmatprep.subr.bf16.mxu1 %v3558_v1  ;;  %v3504_v28 = vld [vmem:[%s4619_s0 + $0x7cc] ss:$28 sps:$4 sm:$0xff]  }
  0xdb   :  { %1799 = vmatpush1.bf16.msra.mxu0 %v3436_v30  ;;  %1842 = vmatpush1.bf16.msra.mxu1 %v3439_v32  ;;  %v3512_v30 = vld [vmem:[%s4619_s0 + $0x808] ss:$28 sps:$4 sm:$0xff]   ;;  %v3066_v32 = vld [vmem:[%s4619_s0 + $0x834] sm:$0x77] }
  0xdc   :  { %1800 = vmatprep.subr.bf16.mxu0 %v3442_v33  ;;  %1843 = vmatprep.subr.bf16.mxu1 %v3558_v1  ;;  %v3067_v33 = vld [vmem:[%s4619_s0 + $0x83c] sm:$0x77] }
  0xdf   :  { %1801 = vmatpush1.bf16.msra.mxu0 %v3440_v34  ;;  %1844 = vmatpush1.bf16.msra.mxu1 %v3443_v35  ;;  %v3507_v34 = vld [vmem:[%s4619_s0 + $0x7fc] ss:$28 sps:$4 sm:$0xff]   ;;  %v3510_v35 = vld [vmem:[%s4619_s0 + $0x804] ss:$28 sps:$4 sm:$0xff]  }
  0xe0   :  { %1802 = vmatprep.subr.bf16.mxu0 %v3446_v36  ;;  %1845 = vmatprep.subr.bf16.mxu1 %v3558_v1  ;;  %v3134_v36 = vcombine.high %v3066_v32, %v3066_v32 }
  0xe3   :  { %1803 = vmatpush1.bf16.msra.mxu0 %v3444_v37  ;;  %1846 = vmatpush1.bf16.msra.mxu1 %v3447_v38  ;;  %v3136_v37 = vcombine.high %v3067_v33, %v3067_v33  ;;  %v3133_v38 = vcombine.low %v3066_v32, %v3066_v32 }
  0xe4   :  { %1804 = vmatprep.subr.bf16.mxu0 %v3450_v39  ;;  %1847 = vmatprep.subr.bf16.mxu1 %v3558_v1  ;;  %v3135_v39 = vcombine.low %v3067_v33, %v3067_v33 }
  0xe7   :  { %1805 = vmatpush1.bf16.msra.mxu0 %v3448_v40  ;;  %1848 = vmatpush1.bf16.msra.mxu1 %v3451_v41  ;;  %v2308_v40 = vsel %vm448_vm1, %v3133_v38, 0  ;;  %v2314_v41 = vsel %vm448_vm1, %v3135_v39, 0 }
  0xe8   :  { %1806 = vmatprep.subr.bf16.mxu0 %v3454_v47  ;;  %1849 = vmatprep.subr.bf16.mxu1 %v3558_v1  ;;  %v3519_v47 = vld [vmem:[%s4619_s0 + $0x650] ss:$28 sps:$4 sm:$0xff]  }
  0xeb   :  { %1807 = vmatpush1.bf16.msra.mxu0 %v3452_v44  ;;  %1850 = vmatpush1.bf16.msra.mxu1 %v3455_v45  ;;  %v3520_v44 = vld [vmem:[%s4619_s0 + $0x654] ss:$28 sps:$4 sm:$0xff]   ;;  %v3523_v45 = vld [vmem:[%s4619_s0 + $0x688] ss:$28 sps:$4 sm:$0xff]  }
  0xec   :  { %2991 = vmatprep.subr.msk.bf16.mxu0 %vm448_vm1, %v2985_v46  ;;  %1851 = vmatprep.subr.bf16.mxu1 %v3558_v1  ;;  %v3521_v46 = vld [vmem:[%s4619_s0 + $0x684] ss:$28 sps:$4 sm:$0xff]  }
  0xef   :  { %1809 = vmatpush1.bf16.msra.mxu0 %v1696_v50  ;;  %1852 = vmatpush1.bf16.msra.mxu1 %v1702_v51  ;;  %v3525_v50 = vld [vmem:[%s4619_s0 + $0x6bc] ss:$28 sps:$4 sm:$0xff]   ;;  %v3528_v51 = vld [vmem:[%s4619_s0 + $0x6c4] ss:$28 sps:$4 sm:$0xff]  }
  0xf0   :  { %2328 = vmatprep.subr.bf16.mxu0 %v3461_v52  ;;  %2371 = vmatprep.subr.bf16.mxu1 %v3464_v53  ;;  %v3531_v52 = vld [vmem:[%s4619_s0 + $0x6f8] ss:$28 sps:$4 sm:$0xff]  }
  0xf1   :  { %v3532_v53 = vld [vmem:[%s4619_s0 + $0x6fc] ss:$28 sps:$4 sm:$0xff]  }
  0xf2   :  { %1823 = vmatmul.mubr.bf16.vlgmr.msra.gmra.mrb[20].mxu0 %v4193_v18  ;;  %1866 = vmatmul.mubr.bf16.vlgmr.msra.gmra.mrb[20].mxu1 %v4193_v18 }
  0xf3   :  { %2329 = vmatpush1.bf16.msra.mxu0 %v3459_v54  ;;  %2372 = vmatpush1.bf16.msra.mxu1 %v3462_v55  ;;  %v3535_v54 = vld [vmem:[%s4619_s0 + $0x730] ss:$28 sps:$4 sm:$0xff]  }
  0xf4   :  { %2330 = vmatprep.subr.bf16.mxu0 %v3467_v56  ;;  %2373 = vmatprep.subr.bf16.mxu1 %v3470_v57 }
  0xf5   :  { %3141 = vmatprep.mubr.msk.bf16.mxu0 %vm444_vm0, %v4086_v43  ;;  %3143 = vmatprep.mubr.msk.bf16.mxu1 %vm444_vm0, %v4086_v43 }
  0xf7   :  { %2331 = vmatpush1.bf16.msra.mxu0 %v3465_v58  ;;  %2374 = vmatpush1.bf16.msra.mxu1 %v3468_v59 }
  0xf8   :  { %2332 = vmatprep.subr.bf16.mxu0 %v3473_v60  ;;  %2375 = vmatprep.subr.bf16.mxu1 %v3476_v61  ;;  %v3533_v61 = vld [vmem:[%s4619_s0 + $0x72c] ss:$28 sps:$4 sm:$0xff]  }
  0xfb   :  { %2333 = vmatpush1.bf16.msra.mxu0 %v3471_v62  ;;  %2376 = vmatpush1.bf16.msra.mxu1 %v3474_v63  ;;  %v3536_v62 = vld [vmem:[%s4619_s0 + $0x734] ss:$28 sps:$4 sm:$0xff]  }
  0xfc   :  { %2334 = vmatprep.subr.bf16.mxu0 %v3479_v0  ;;  %2377 = vmatprep.subr.bf16.mxu1 %v3482_v2  ;;  %v3539_v2 = vld [vmem:[%s4619_s0 + $0x768] ss:$28 sps:$4 sm:$0xff]  }
  0xfd   :  { %v4354_v7 = vpop.f32.mrb[0].mxu0  ;;  %v4356_v8 = vpop.f32.mrb[0].mxu1 }
  0xfe   :  { %v4358_v9 = vpop.f32.mrb[1].mxu0  ;;  %v4360_v31 = vpop.f32.mrb[1].mxu1 }
  0xff   :  { %v4362_v10 = vpop.f32.mrb[2].mxu0  ;;  %v4364_v11 = vpop.f32.mrb[2].mxu1  ;;  %2335 = vmatpush1.bf16.msra.mxu0 %v3477_v3  ;;  %2378 = vmatpush1.bf16.msra.mxu1 %v3480_v4  ;;  %v3537_v3 = vld [vmem:[%s4619_s0 + $0x764] ss:$28 sps:$4 sm:$0xff]   ;;  %v3540_v4 = vld [vmem:[%s4619_s0 + $0x76c] ss:$28 sps:$4 sm:$0xff]  }
 0x100   :  { %v4372_v14 = vpop.f32.mrb[3].mxu0  ;;  %v4374_v15 = vpop.f32.mrb[3].mxu1  ;;  %2336 = vmatprep.subr.bf16.mxu0 %v3485_v5  ;;  %2379 = vmatprep.subr.bf16.mxu1 %v3488_v6  ;;  %v3543_v5 = vld [vmem:[%s4619_s0 + $0x7a0] ss:$28 sps:$4 sm:$0xff]  }
 0x101   :  { %v3541_v6 = vld [vmem:[%s4619_s0 + $0x79c] ss:$28 sps:$4 sm:$0xff]  }
 0x103   :  { %2337 = vmatpush1.bf16.msra.mxu0 %v3483_v12  ;;  %2380 = vmatpush1.bf16.msra.mxu1 %v3486_v13  ;;  %v3544_v12 = vld [vmem:[%s4619_s0 + $0x7a4] ss:$28 sps:$4 sm:$0xff]   ;;  %v3547_v13 = vld [vmem:[%s4619_s0 + $0x7d8] ss:$28 sps:$4 sm:$0xff]  }
 0x104   :  { %2338 = vmatprep.subr.bf16.mxu0 %v3491_v16  ;;  %2381 = vmatprep.subr.bf16.mxu1 %v3494_v17  ;;  %v3545_v16 = vld [vmem:[%s4619_s0 + $0x7d4] ss:$28 sps:$4 sm:$0xff]   ;;  %v3548_v17 = vld [vmem:[%s4619_s0 + $0x7dc] ss:$28 sps:$4 sm:$0xff]  }
 0x107   :  { %2339 = vmatpush1.bf16.msra.mxu0 %v3489_v19  ;;  %2382 = vmatpush1.bf16.msra.mxu1 %v3492_v20  ;;  %v3551_v19 = vld [vmem:[%s4619_s0 + $0x810] ss:$28 sps:$4 sm:$0xff]   ;;  %v3068_v20 = vld [vmem:[%s4619_s0 + $0x844] sm:$0x77] }
 0x108   :  { %2340 = vmatprep.subr.bf16.mxu0 %v3497_v21  ;;  %2383 = vmatprep.subr.bf16.mxu1 %v3500_v22  ;;  %v3549_v21 = vld [vmem:[%s4619_s0 + $0x80c] ss:$28 sps:$4 sm:$0xff]   ;;  %v3552_v22 = vld [vmem:[%s4619_s0 + $0x814] ss:$28 sps:$4 sm:$0xff]  }
 0x10b   :  { %2341 = vmatpush1.bf16.msra.mxu0 %v3495_v23  ;;  %2384 = vmatpush1.bf16.msra.mxu1 %v3498_v24  ;;  %v3138_v23 = vcombine.high %v3068_v20, %v3068_v20  ;;  %v3137_v24 = vcombine.low %v3068_v20, %v3068_v20 }
 0x10c   :  { %2342 = vmatprep.subr.bf16.mxu0 %v3503_v25  ;;  %2385 = vmatprep.subr.bf16.mxu1 %v3506_v26  ;;  %v3555_v25 = vld [vmem:[%s4619_s0 + $0x84c] ss:$0 sps:$4 sm:$0x77]  }
 0x10d   :  { %v2320_v26 = vsel %vm448_vm1, %v3137_v24, 0 }
 0x10f   :  { %2343 = vmatpush1.bf16.msra.mxu0 %v3501_v27  ;;  %2386 = vmatpush1.bf16.msra.mxu1 %v3504_v28  ;;  %v2326_v27 = vsel %vm448_vm1, %v3555_v25, 0 }
 0x110   :  { %2344 = vmatprep.subr.bf16.mxu0 %v3509_v29  ;;  %2387 = vmatprep.subr.bf16.mxu1 %v3512_v30 }
 0x113   :  { %2345 = vmatpush1.bf16.msra.mxu0 %v3507_v34  ;;  %2388 = vmatpush1.bf16.msra.mxu1 %v3510_v35 }
 0x114   :  { %3140 = vmatprep.subr.msk.bf16.mxu0 %vm448_vm1, %v3134_v36  ;;  %3142 = vmatprep.subr.msk.bf16.mxu1 %vm448_vm1, %v3136_v37 }
 0x117   :  { %2347 = vmatpush1.bf16.msra.mxu0 %v2308_v40  ;;  %2390 = vmatpush1.bf16.msra.mxu1 %v2314_v41 }
 0x118   :  { %2414 = vmatprep.subr.bf16.mxu0 %v3519_v47  ;;  %2457 = vmatprep.subr.bf16.mxu1 %v3558_v1 }
 0x11a   :  { %2361 = vmatmul.mubr.bf16.vlgmr.msra.gmra.mrb[24].mxu0 %v4193_v18  ;;  %2404 = vmatmul.mubr.bf16.vlgmr.msra.gmra.mrb[24].mxu1 %v4193_v18 }
 0x11b   :  { %2415 = vmatpush1.bf16.msra.mxu0 %v3517_v42  ;;  %2458 = vmatpush1.bf16.msra.mxu1 %v3520_v44 }
 0x11c   :  { %2416 = vmatprep.subr.bf16.mxu0 %v3523_v45  ;;  %2459 = vmatprep.subr.bf16.mxu1 %v3558_v1  ;;  %v2517_v24 = vpop.permute.xlu0 %2516 }
 0x11d   :  { %3145 = vmatprep.mubr.msk.bf16.mxu0 %vm444_vm0, %v4086_v43  ;;  %3146 = vmatprep.mubr.msk.bf16.mxu1 %vm444_vm0, %v4086_v43  ;;  %v3529_v43 = vld [vmem:[%s4619_s0 + $0x6f4] ss:$28 sps:$4 sm:$0xff]  }
 0x11f   :  { %2417 = vmatpush1.bf16.msra.mxu0 %v3521_v46  ;;  %2460 = vmatpush1.bf16.msra.mxu1 %v3524_v48 }
 0x120   :  { %2418 = vmatprep.subr.bf16.mxu0 %v3527_v49  ;;  %2461 = vmatprep.subr.bf16.mxu1 %v3558_v1  ;;  %v4580_v25 = vpop.permute.xlu0 %2521 }
 0x123   :  { %2419 = vmatpush1.bf16.msra.mxu0 %v3525_v50  ;;  %2462 = vmatpush1.bf16.msra.mxu1 %v3528_v51 }
 0x124   :  { %2420 = vmatprep.subr.bf16.mxu0 %v3531_v52  ;;  %2463 = vmatprep.subr.bf16.mxu1 %v3558_v1 }
 0x125   :  { %v4483_v55 = vpop.f32.mrb[4].mxu0  ;;  %v4485_v56 = vpop.f32.mrb[4].mxu1 }
 0x126   :  { %v4487_v57 = vpop.f32.mrb[5].mxu0  ;;  %v635_v58 = vpop.f32.mrb[5].mxu1 }
 0x127   :  { %v4489_v59 = vpop.f32.mrb[6].mxu0  ;;  %v4491_v60 = vpop.f32.mrb[6].mxu1  ;;  %2421 = vmatpush1.bf16.msra.mxu0 %v3529_v43  ;;  %2464 = vmatpush1.bf16.msra.mxu1 %v3532_v53 }
 0x128   :  { %v4499_v63 = vpop.f32.mrb[7].mxu0  ;;  %v638_v0 = vpop.f32.mrb[7].mxu1  ;;  %2422 = vmatprep.subr.bf16.mxu0 %v3535_v54  ;;  %2465 = vmatprep.subr.bf16.mxu1 %v3558_v1 }
 0x12b   :  { %2423 = vmatpush1.bf16.msra.mxu0 %v3533_v61  ;;  %2466 = vmatpush1.bf16.msra.mxu1 %v3536_v62 }
 0x12c   :  { %2424 = vmatprep.subr.bf16.mxu0 %v3539_v2  ;;  %2467 = vmatprep.subr.bf16.mxu1 %v3558_v1 }
 0x12f   :  { %2425 = vmatpush1.bf16.msra.mxu0 %v3537_v3  ;;  %2468 = vmatpush1.bf16.msra.mxu1 %v3540_v4 }
 0x130   :  { %2426 = vmatprep.subr.bf16.mxu0 %v3543_v5  ;;  %2469 = vmatprep.subr.bf16.mxu1 %v3558_v1 }
 0x133   :  { %2427 = vmatpush1.bf16.msra.mxu0 %v3541_v6  ;;  %2470 = vmatpush1.bf16.msra.mxu1 %v3544_v12 }
 0x134   :  { %2428 = vmatprep.subr.bf16.mxu0 %v3547_v13  ;;  %2471 = vmatprep.subr.bf16.mxu1 %v3558_v1 }
 0x137   :  { %2429 = vmatpush1.bf16.msra.mxu0 %v3545_v16  ;;  %2472 = vmatpush1.bf16.msra.mxu1 %v3548_v17 }
 0x138   :  { %2430 = vmatprep.subr.bf16.mxu0 %v3551_v19  ;;  %2473 = vmatprep.subr.bf16.mxu1 %v3558_v1 }
 0x13b   :  { %2431 = vmatpush1.bf16.msra.mxu0 %v3549_v21  ;;  %2474 = vmatpush1.bf16.msra.mxu1 %v3552_v22 }
 0x13c   :  { %3144 = vmatprep.subr.msk.bf16.mxu0 %vm448_vm1, %v3138_v23  ;;  %2475 = vmatprep.subr.bf16.mxu1 %v3558_v1 }
 0x13f   :  { %2433 = vmatpush1.bf16.msra.mxu0 %v2320_v26  ;;  %2476 = vmatpush1.bf16.msra.mxu1 %v2326_v27 }
 0x142   :  { %2447 = vmatmul.mubr.bf16.vlgmr.msra.gmra.mrb[28].mxu0 %v4193_v18  ;;  %2490 = vmatmul.mubr.bf16.vlgmr.msra.gmra.mrb[28].mxu1 %v4193_v18 }
 0x14d   :  { %v1114_v28 = vpop.f32.mrb[8].mxu0  ;;  %v1157_v29 = vpop.f32.mrb[8].mxu1 }
 0x14e   :  { %v1250_v30 = vmax.f32 %v4354_v7, %v1114_v28  ;;  %v1252_v32 = vmax.f32 %v4356_v8, %v1157_v29  ;;  %v1116_v33 = vpop.f32.mrb[9].mxu0  ;;  %v1159_v34 = vpop.f32.mrb[9].mxu1 }
 0x14f   :  { %v1251_v1 = vmax.f32 %v4358_v9, %v1116_v33  ;;  %v1253_v35 = vmax.f32 %v4360_v31, %v1159_v34  ;;  %v1118_v36 = vpop.f32.mrb[10].mxu0  ;;  %v1161_v37 = vpop.f32.mrb[10].mxu1 }
 0x150   :  { %v1257_v38 = vmax.f32 %v4362_v10, %v1118_v36  ;;  %v1259_v39 = vmax.f32 %v4364_v11, %v1161_v37  ;;  %v1120_v40 = vpop.f32.mrb[11].mxu0  ;;  %v1163_v18 = vpop.f32.mrb[11].mxu1 }
 0x151   :  { %v1258_v41 = vmax.f32 %v4372_v14, %v1120_v40  ;;  %v1260_v7 = vmax.f32 %v4374_v15, %v1163_v18 }
 0x175   :  { %v1200_v47 = vpop.f32.mrb[12].mxu0  ;;  %v1243_v8 = vpop.f32.mrb[12].mxu1 }
 0x176   :  { %v1254_v42 = vmax.f32 %v4483_v55, %v1200_v47  ;;  %v1256_v9 = vmax.f32 %v4485_v56, %v1243_v8  ;;  %v1202_v44 = vpop.f32.mrb[13].mxu0  ;;  %v1245_v31 = vpop.f32.mrb[13].mxu1 }
 0x177   :  { %v1255_v45 = vmax.f32 %v4487_v57, %v1202_v44  ;;  %v1204_v46 = vpop.f32.mrb[14].mxu0  ;;  %v1246_v10 = vpop.f32.mrb[14].mxu1 }
 0x178   :  { %v1261_v11 = vmax.f32 %v4489_v59, %v1204_v46  ;;  %v1263_v48 = vmax.f32 %v4491_v60, %v1246_v10  ;;  %v1206_v49 = vpop.f32.mrb[15].mxu0  ;;  %v1248_v14 = vpop.f32.mrb[15].mxu1 }
 0x179   :  { %v1262_v15 = vmax.f32 %v4499_v63, %v1206_v49 }
 0x19d   :  { %v1738_v50 = vpop.f32.mrb[16].mxu0  ;;  %v1781_v51 = vpop.f32.mrb[16].mxu1 }
 0x19e   :  { %v1874_v52 = vmax.f32 %v1250_v30, %v1738_v50  ;;  %v1876_v43 = vmax.f32 %v1252_v32, %v1781_v51  ;;  %v1740_v53 = vpop.f32.mrb[17].mxu0  ;;  %v1783_v54 = vpop.f32.mrb[17].mxu1 }
 0x19f   :  { %v1875_v55 = vmax.f32 %v1251_v1, %v1740_v53  ;;  %v1877_v56 = vmax.f32 %v1253_v35, %v1783_v54  ;;  %v1742_v58 = vpop.f32.mrb[18].mxu0  ;;  %v1785_v57 = vpop.f32.mrb[18].mxu1 }
 0x1a0   :  { %v1881_v61 = vmax.f32 %v1257_v38, %v1742_v58  ;;  %v1883_v62 = vmax.f32 %v1259_v39, %v1785_v57  ;;  %v1744_v0 = vpop.f32.mrb[19].mxu0  ;;  %v1787_v59 = vpop.f32.mrb[19].mxu1 }
 0x1a1   :  { %v1882_v2 = vmax.f32 %v1258_v41, %v1744_v0  ;;  %v1884_v60 = vmax.f32 %v1260_v7, %v1787_v59 }
 0x1c5   :  { %v1824_v3 = vpop.f32.mrb[20].mxu0  ;;  %v1867_v4 = vpop.f32.mrb[20].mxu1 }
 0x1c6   :  { %v4568_v5 = vmax.f32 %v1254_v42, %v1824_v3  ;;  %v4570_v63 = vmax.f32 %v1256_v9, %v1867_v4  ;;  %v1826_v6 = vpop.f32.mrb[21].mxu0  ;;  %v1869_v12 = vpop.f32.mrb[21].mxu1 }
 0x1c7   :  { %v4572_v13 = vmax.f32 %v1255_v45, %v1826_v6  ;;  %v1828_v16 = vpop.f32.mrb[22].mxu0  ;;  %v1870_v17 = vpop.f32.mrb[22].mxu1 }
 0x1c8   :  { %v4574_v19 = vmax.f32 %v1261_v11, %v1828_v16  ;;  %v4576_v20 = vmax.f32 %v1263_v48, %v1870_v17  ;;  %v1830_v21 = vpop.f32.mrb[23].mxu0  ;;  %v1872_v22 = vpop.f32.mrb[23].mxu1 }
 0x1c9   :  { %v4578_v23 = vmax.f32 %v1262_v15, %v1830_v21 }
 0x1ed   :  { %v2362_v26 = vpop.f32.mrb[24].mxu0  ;;  %v2405_v27 = vpop.f32.mrb[24].mxu1 }
 0x1ee   :  { %v2498_v28 = vmax.f32 %v1874_v52, %v2362_v26  ;;  %v2500_v29 = vmax.f32 %v1876_v43, %v2405_v27  ;;  %v2364_v30 = vpop.f32.mrb[25].mxu0  ;;  %v2407_v32 = vpop.f32.mrb[25].mxu1 }
 0x1ef   :  { %v2499_v33 = vmax.f32 %v1875_v55, %v2364_v30  ;;  %v2501_v34 = vmax.f32 %v1877_v56, %v2407_v32  ;;  %v2366_v1 = vpop.f32.mrb[26].mxu0  ;;  %v2409_v35 = vpop.f32.mrb[26].mxu1 }
 0x1f0   :  { %v2524_v36 = vadd.f32 %v2517_v24, %v2498_v28  ;;  %v2526_v37 = vadd.f32 %v2517_v24, %v2500_v29  ;;  %v2505_v38 = vmax.f32 %v1881_v61, %v2366_v1  ;;  %v2507_v39 = vmax.f32 %v1883_v62, %v2409_v35  ;;  %v2368_v40 = vpop.f32.mrb[27].mxu0  ;;  %v2411_v18 = vpop.f32.mrb[27].mxu1 }
 0x1f1   :  { %v2525_v41 = vadd.f32 %v2517_v24, %v2499_v33  ;;  %v2527_v7 = vadd.f32 %v2517_v24, %v2501_v34  ;;  %v2506_v47 = vmax.f32 %v1882_v2, %v2368_v40  ;;  %v2508_v8 = vmax.f32 %v1884_v60, %v2411_v18 }
 0x1f2   :  { %v2538_v42 = vmax.f32 %v2524_v36, 0.0  ;;  %v2540_v9 = vmax.f32 %v2526_v37, 0.0  ;;  %v2531_v44 = vadd.f32 %v4580_v25, %v2505_v38  ;;  %v2533_v31 = vadd.f32 %v4580_v25, %v2507_v39 }
 0x1f3   :  { %v2539_v45 = vmax.f32 %v2525_v41, 0.0  ;;  %v2541_v46 = vmax.f32 %v2527_v7, 0.0  ;;  %v2532_v10 = vadd.f32 %v4580_v25, %v2506_v47  ;;  %v2534_v11 = vadd.f32 %v4580_v25, %v2508_v8 }
 0x1f4   :  { %v2545_v48 = vmax.f32 %v2531_v44, 0.0  ;;  %v2547_v49 = vmax.f32 %v2533_v31, 0.0 }
 0x1f5   :  { %v3155_v14 = vpack.c.bf16 %v2539_v45, %v2538_v42  ;;  %v3156_v15 = vpack.c.bf16 %v2541_v46, %v2540_v9  ;;  %v2546_v50 = vmax.f32 %v2532_v10, 0.0  ;;  %v2548_v51 = vmax.f32 %v2534_v11, 0.0 }
 0x1f7   :  { %2596 = vst [vmem:[%s4622_s3] sm:$0xff] %v3155_v14  ;;  %2597 = vst [vmem:[%s4622_s3 + $0x8] sm:$0xff] %v3156_v15  ;;  %v3159_v52 = vpack.c.bf16 %v2546_v50, %v2545_v48  ;;  %v3160_v43 = vpack.c.bf16 %v2548_v51, %v2547_v49 }
 0x1f9   :  { %2601 = vst [vmem:[%s4622_s3 + $0x1c] sm:$0xff] %v3159_v52  ;;  %2602 = vst [vmem:[%s4622_s3 + $0x24] sm:$0xff] %v3160_v43 }
 0x215   :  { %v2448_v53 = vpop.f32.mrb[28].mxu0  ;;  %v2491_v54 = vpop.f32.mrb[28].mxu1 }
 0x216   :  { %v2502_v55 = vmax.f32 %v4568_v5, %v2448_v53  ;;  %v2504_v56 = vmax.f32 %v4570_v63, %v2491_v54  ;;  %v2450_v58 = vpop.f32.mrb[29].mxu0  ;;  %v2493_v57 = vpop.f32.mrb[29].mxu1 }
 0x217   :  { %v2503_v61 = vmax.f32 %v4572_v13, %v2450_v58  ;;  %v2452_v62 = vpop.f32.mrb[30].mxu0  ;;  %v2494_v0 = vpop.f32.mrb[30].mxu1 }
 0x218   :  { %v2528_v59 = vadd.f32 %v2517_v24, %v2502_v55  ;;  %v2530_v2 = vadd.f32 %v2517_v24, %v2504_v56  ;;  %v2509_v60 = vmax.f32 %v4574_v19, %v2452_v62  ;;  %v2511_v3 = vmax.f32 %v4576_v20, %v2494_v0  ;;  %v2454_v4 = vpop.f32.mrb[31].mxu0  ;;  %v2496_v6 = vpop.f32.mrb[31].mxu1 }
 0x219   :  { %v2529_v12 = vadd.f32 %v2517_v24, %v2503_v61  ;;  %v2510_v16 = vmax.f32 %v4578_v23, %v2454_v4 }
 0x21a   :  { %v2542_v5 = vmax.f32 %v2528_v59, 0.0  ;;  %v2544_v17 = vmax.f32 %v2530_v2, 0.0  ;;  %v2535_v63 = vadd.f32 %v4580_v25, %v2509_v60  ;;  %v2537_v21 = vadd.f32 %v4580_v25, %v2511_v3 }
 0x21b   :  { %v2543_v13 = vmax.f32 %v2529_v12, 0.0  ;;  %v2536_v22 = vadd.f32 %v4580_v25, %v2510_v16 }
 0x21c   :  { %v3158_v26 = vpack.c.bf16 %v2544_v17, %v2544_v17  ;;  %v2549_v27 = vmax.f32 %v2535_v63, 0.0  ;;  %v2551_v19 = vmax.f32 %v2537_v21, 0.0 }
 0x21d   :  { %v3157_v28 = vpack.c.bf16 %v2543_v13, %v2542_v5  ;;  %v2550_v20 = vmax.f32 %v2536_v22, 0.0 }
 0x21e   :  { %2600 = vst.msk [vmem:[%s4622_s3 + $0x18] sm:$0xf] %vm2599_vm2, %v3158_v26  ;;  %v3162_v23 = vpack.c.bf16 %v2551_v19, %v2551_v19 }
 0x21f   :  { %2598 = vst [vmem:[%s4622_s3 + $0x10] sm:$0xff] %v3157_v28  ;;  %v3161_v24 = vpack.c.bf16 %v2550_v20, %v2549_v27 }
 0x220   :  { %2604 = vst.msk [vmem:[%s4622_s3 + $0x34] sm:$0xf] %vm2599_vm2, %v3162_v23 }
 0x221   :  { %2603 = vst [vmem:[%s4622_s3 + $0x2c] sm:$0xff] %v3161_v24 }

// kernel: net_forward.7
= control target key start
LH: loop header
LB: loop body
LE: loop exit
PB: predicated region body
PF: predicated region fallthrough
CT: control target
= control target key end

     0   :  { %v115_v29 = vlaneseq  ;;  %v878_v32 = vmov 1966171168   ;;  %v879_v36 = vmov 0.0   ;;  %s1095_s0 = inlined_call_operand.vmem [shape: bf16[2,640], index: 0, kind: input, shape index: {}]   ;;  %s1096_s1 = inlined_call_operand.vmem [shape: bf16[640,120], index: 1, kind: input, shape index: {}]   ;;  %s1097_s2 = inlined_call_operand.vmem [shape: f32[1,120], index: 2, kind: input, shape index: {}]   ;;  %s1098_s3 = inlined_call_operand.vmem [shape: bf16[120,10], index: 3, kind: input, shape index: {}]   ;;  %s1099_s4 = inlined_call_operand.vmem [shape: f32[1,10], index: 4, kind: input, shape index: {}]   ;;  %s1100_s5 = inlined_call_operand.hbm [shape: f32[2,10], index: 5, kind: output, shape index: {}]  }
   0x1   :  { %v805_v0 = vld [vmem:[%s1096_s1 + $0x40] sm:$0xff]   ;;  %v809_v4 = vld [vmem:[%s1096_s1 + $0x48] sm:$0xff]   ;;  %v813_v8 = vld [vmem:[%s1096_s1 + $0x50] sm:$0xff]   ;;  %v113_v33 = vunpack.c.l.s4 %v878_v32 }
   0x2   :  { %v806_v1 = vld [vmem:[%s1096_s1] sm:$0xff]   ;;  %699 = vmatprep.subr.bf16.mxu0 %v805_v0  ;;  %v810_v5 = vld [vmem:[%s1096_s1 + $0x8] sm:$0xff]   ;;  %v814_v9 = vld [vmem:[%s1096_s1 + $0x10] sm:$0xff]   ;;  %v116_v34 = vshrl.u32 %v115_v29, 7 }
   0x3   :  { %v807_v2 = vld [vmem:[%s1096_s1 + $0xc0] sm:$0xff]   ;;  %700 = vmatpush3.bf16.msra.mxu0 %v806_v1  ;;  %v811_v6 = vld [vmem:[%s1096_s1 + $0xc8] sm:$0xff]   ;;  %v815_v10 = vld [vmem:[%s1096_s1 + $0xd0] sm:$0xff]   ;;  %v114_v37 = vunpack.c.0.s8 %v113_v33 }
   0x4   :  { %v808_v3 = vld [vmem:[%s1096_s1 + $0x80] sm:$0xff]   ;;  %721 = vmatprep.subr.bf16.mxu1 %v807_v2  ;;  %701 = vmatprep.subr.bf16.mxu0 %v809_v4  ;;  %v812_v7 = vld [vmem:[%s1096_s1 + $0x88] sm:$0xff]   ;;  %v816_v11 = vld [vmem:[%s1096_s1 + $0x90] sm:$0xff]  }
   0x5   :  { %722 = vmatpush3.bf16.msra.mxu1 %v808_v3  ;;  %v817_v12 = vld [vmem:[%s1096_s1 + $0x58] sm:$0xff]   ;;  %v821_v16 = vld [vmem:[%s1096_s1 + $0x60] sm:$0xff]   ;;  %v825_v20 = vld [vmem:[%s1096_s1 + $0x68] sm:$0xff]   ;;  %v117_v39 = vsub.s32 %v114_v37, %v116_v34 }
   0x6   :  { %723 = vmatprep.subr.bf16.mxu1 %v811_v6  ;;  %v818_v13 = vld [vmem:[%s1096_s1 + $0x18] sm:$0xff]   ;;  %v822_v17 = vld [vmem:[%s1096_s1 + $0x20] sm:$0xff]   ;;  %v826_v21 = vld [vmem:[%s1096_s1 + $0x28] sm:$0xff]  }
   0x7   :  { %702 = vmatpush3.bf16.msra.mxu0 %v810_v5  ;;  %v819_v14 = vld [vmem:[%s1096_s1 + $0xd8] sm:$0xff]   ;;  %v823_v18 = vld [vmem:[%s1096_s1 + $0xe0] sm:$0xff]   ;;  %v827_v22 = vld [vmem:[%s1096_s1 + $0xe8] sm:$0xff]  }
   0x8   :  { %703 = vmatprep.subr.bf16.mxu0 %v813_v8  ;;  %v820_v15 = vld [vmem:[%s1096_s1 + $0x98] sm:$0xff]   ;;  %v824_v19 = vld [vmem:[%s1096_s1 + $0xa0] sm:$0xff]   ;;  %v828_v23 = vld [vmem:[%s1096_s1 + $0xa8] sm:$0xff]  }
   0x9   :  { %724 = vmatpush3.bf16.msra.mxu1 %v812_v7  ;;  %v829_v24 = vld [vmem:[%s1096_s1 + $0x70] sm:$0xff]   ;;  %v833_v28 = vld [vmem:[%s1096_s1 + $0x78] sm:$0xff]   ;;  %v22_v38 = vld [vmem:[%s1095_s0] sm:$0x1f] }
   0xa   :  { %725 = vmatprep.subr.bf16.mxu1 %v815_v10  ;;  %v830_v25 = vld [vmem:[%s1096_s1 + $0x30] sm:$0xff]   ;;  %v834_v30 = vld [vmem:[%s1096_s1 + $0x38] sm:$0xff]   ;;  %v118_v40 = vrot.slane %v22_v38, %v117_v39  ;;  %v838_v43 = vld [vmem:[%s1096_s1 + $0x100] sm:$0xff]  }
   0xb   :  { %704 = vmatpush3.bf16.msra.mxu0 %v814_v9  ;;  %v831_v26 = vld [vmem:[%s1096_s1 + $0xf0] sm:$0xff]   ;;  %v835_v31 = vld [vmem:[%s1096_s1 + $0xf8] sm:$0xff]  }
   0xc   :  { %705 = vmatprep.subr.bf16.mxu0 %v817_v12  ;;  %v832_v27 = vld [vmem:[%s1096_s1 + $0xb0] sm:$0xff]   ;;  %v837_v35 = vld [vmem:[%s1096_s1 + $0xb8] sm:$0xff]   ;;  %v126_v41 = vcombine.high %v118_v40, %v118_v40  ;;  %v133_v42 = vrot.slane %v118_v40, %v117_v39 }
   0xd   :  { %726 = vmatpush3.bf16.msra.mxu1 %v816_v11 }
   0xe   :  { %727 = vmatprep.subr.bf16.mxu1 %v819_v14  ;;  %v147_v44 = vrot.slane %v126_v41, %v117_v39  ;;  %v148_v45 = vcombine.high %v133_v42, %v133_v42 }
   0xf   :  { %706 = vmatpush3.bf16.msra.mxu0 %v818_v13 }
  0x10   :  { %707 = vmatprep.subr.bf16.mxu0 %v821_v16  ;;  %427 = vmatprep.mubr.bf16.mxu0 %v147_v44  ;;  %v149_v46 = vcombine.high %v147_v44, %v147_v44 }
  0x11   :  { %728 = vmatpush3.bf16.msra.mxu1 %v820_v15 }
  0x12   :  { %729 = vmatprep.subr.bf16.mxu1 %v823_v18 }
  0x13   :  { %708 = vmatpush3.bf16.msra.mxu0 %v822_v17 }
  0x14   :  { %709 = vmatprep.subr.bf16.mxu0 %v825_v20 }
  0x15   :  { %730 = vmatpush3.bf16.msra.mxu1 %v824_v19 }
  0x16   :  { %731 = vmatprep.subr.bf16.mxu1 %v827_v22 }
  0x17   :  { %710 = vmatpush3.bf16.msra.mxu0 %v826_v21 }
  0x18   :  { %711 = vmatprep.subr.bf16.mxu0 %v829_v24 }
  0x19   :  { %732 = vmatpush3.bf16.msra.mxu1 %v828_v23 }
  0x1a   :  { %733 = vmatprep.subr.bf16.mxu1 %v831_v26 }
  0x1b   :  { %712 = vmatpush3.bf16.msra.mxu0 %v830_v25 }
  0x1c   :  { %713 = vmatprep.subr.bf16.mxu0 %v833_v28 }
  0x1d   :  { %734 = vmatpush3.bf16.msra.mxu1 %v832_v27 }
  0x1e   :  { %735 = vmatprep.subr.bf16.mxu1 %v835_v31 }
  0x1f   :  { %714 = vmatpush3.bf16.msra.mxu0 %v834_v30 }
  0x20   :  { %761 = vmatprep.subr.bf16.mxu0 %v879_v36 }
  0x21   :  { %736 = vmatpush3.bf16.msra.mxu1 %v837_v35 }
  0x22   :  { %781 = vmatprep.subr.bf16.mxu1 %v879_v36  ;;  %428 = vmatmul.mubr.bf16.vlgmr.msra.gmra.mrb[0].mxu0 %v133_v42 }
  0x23   :  { %10 = vsyncpa [#allocation3], 0  ;;  %467 = vmatprep.mubr.bf16.mxu1 %v149_v46  ;;  %762 = vmatpush3.bf16.msra.mxu0 %v838_v43  ;;  %v839_v47 = vld [vmem:[%s1096_s1 + $0x108] sm:$0xff]   ;;  %vm880_vm0 = vmmov 0   ;;  %v840_v48 = vld [vmem:[%s1096_s1 + $0x110] sm:$0xff]   ;;  %v111_v52 = vcombine.high %v22_v38, %v22_v38  ;;  %vm588_vm1 = vcmask 1043456  }
  0x24   :  { %468 = vmatmul.mubr.bf16.vlgmr.msra.gmra.mrb[0].mxu1 %v148_v45  ;;  %763 = vmatprep.subr.bf16.mxu0 %v879_v36  ;;  %v841_v49 = vld [vmem:[%s1096_s1 + $0x118] sm:$0xff]   ;;  %v842_v50 = vld [vmem:[%s1096_s1 + $0x120] sm:$0xff]   ;;  %v843_v51 = vld [vmem:[%s1096_s1 + $0x128] sm:$0xff]   ;;  %vm584_vm2 = vcmask 982016   ;;  %s881_s15 = smov [#allocation2]   ;;  %vm632_vm3 = vcmask 74752  }
  0x25   :  { %777 = vmatprep.mubr.msk.bf16.mxu0 %vm880_vm0, %v879_v36  ;;  %797 = vmatprep.mubr.msk.bf16.mxu1 %vm880_vm0, %v879_v36  ;;  %v844_v53 = vld [vmem:[%s1096_s1 + $0x130] sm:$0xff]   ;;  %v125_v54 = vrot.slane %v111_v52, %v117_v39  ;;  %v845_v55 = vld [vmem:[%s1096_s1 + $0x138] sm:$0xff]   ;;  %v846_v57 = vld [vmem:[%s1098_s3] sm:$0xff]   ;;  %s640_s16 = sshll.u32 %s881_s15, 4  ;;  %s641_s16 = int_to_ptr.vmem [resolvable:$true] %s640_s16 }
  0x26   :  { %782 = vmatpush3.bf16.msra.mxu1 %v846_v57  ;;  %v847_v58 = vld [vmem:[%s1098_s3 + $0x8] sm:$0xff]   ;;  %v848_v59 = vld [vmem:[%s1098_s3 + $0x10] sm:$0xff]   ;;  %v849_v60 = vld [vmem:[%s1098_s3 + $0x18] sm:$0xff]   ;;  %s854_s17 = scalar_lea.vmem %s641_s16, 32  ;;  %p859_p1 = scmp.lt.s32.totalorder %s641_s16, %s641_s16 }
  0x27   :  { %764 = vmatpush3.bf16.msra.mxu0 %v839_v47  ;;  %v140_v56 = vrot.slane %v125_v54, %v117_v39  ;;  %783 = vmatprep.subr.bf16.mxu1 %v879_v36  ;;  %v850_v61 = vld [vmem:[%s1098_s3 + $0x20] sm:$0xff]   ;;  %v851_v62 = vld [vmem:[%s1098_s3 + $0x28] sm:$0xff]   ;;  %v852_v63 = vld [vmem:[%s1098_s3 + $0x30] sm:$0xff]   ;;  %p855_p0 = scmp.ne.s32.totalorder %s641_s16, %s854_s17  ;;  %p860_p2 = scmp.lt.s32.totalorder %s854_s17, %s854_s17 }
  0x28   :  { %765 = vmatprep.subr.bf16.mxu0 %v879_v36  ;;  %v853_v0 = vld [vmem:[%s1098_s3 + $0x38] ss:$0 sps:$4 sm:$0xff]   ;;  %v648_v3 = vld [vmem:[%s1097_s2] ss:$0 sm:$0xff] }
  0x29   :  { %v590_v1 = vsel %vm588_vm1, %v853_v0, 0  ;;  %v689_v22 = vld [vmem:[%s1099_s4] ss:$0 sm:$0xff]  ;;  %p861_p3 = por %p860_p2, %p859_p1 }
  0x2a   :  { %784 = vmatpush3.bf16.msra.mxu1 %v847_v58 }
  0x2b   :  { %766 = vmatpush3.bf16.msra.mxu0 %v840_v48  ;;  %785 = vmatprep.subr.bf16.mxu1 %v879_v36  ;;  %p862_p4 = pnand %p861_p3, %p855_p0 }
  0x2c   :  { %767 = vmatprep.subr.bf16.mxu0 %v879_v36 }
  0x2e   :  { %786 = vmatpush3.bf16.msra.mxu1 %v848_v59 }
  0x2f   :  { %768 = vmatpush3.bf16.msra.mxu0 %v841_v49  ;;  %787 = vmatprep.subr.bf16.mxu1 %v879_v36 }
  0x30   :  { %769 = vmatprep.subr.bf16.mxu0 %v879_v36 }
  0x32   :  { %788 = vmatpush3.bf16.msra.mxu1 %v849_v60 }
  0x33   :  { %770 = vmatpush3.bf16.msra.mxu0 %v842_v50  ;;  %789 = vmatprep.subr.bf16.mxu1 %v879_v36 }
  0x34   :  { %771 = vmatprep.subr.bf16.mxu0 %v879_v36 }
  0x36   :  { %790 = vmatpush3.bf16.msra.mxu1 %v850_v61 }
  0x37   :  { %772 = vmatpush3.bf16.msra.mxu0 %v843_v51  ;;  %791 = vmatprep.subr.bf16.mxu1 %v879_v36 }
  0x38   :  { %773 = vmatprep.subr.bf16.mxu0 %v879_v36 }
  0x3a   :  { %792 = vmatpush3.bf16.msra.mxu1 %v851_v62 }
  0x3b   :  { %774 = vmatpush3.bf16.msra.mxu0 %v844_v53  ;;  %793 = vmatprep.subr.bf16.mxu1 %v879_v36 }
  0x3c   :  { %775 = vmatprep.subr.bf16.mxu0 %v879_v36 }
  0x3e   :  { %794 = vmatpush3.bf16.msra.mxu1 %v852_v63 }
  0x3f   :  { %776 = vmatpush3.bf16.msra.mxu0 %v845_v55  ;;  %795 = vmatprep.subr.bf16.mxu1 %v879_v36 }
  0x42   :  { %778 = vmatmul.mubr.bf16.vlgmr.msra.gmra.mrb[4].mxu0 %v140_v56  ;;  %796 = vmatpush3.bf16.msra.mxu1 %v590_v1 }
  0xf5   :  { %v715_v2 = vpop.f32.mrb[0].mxu0 }
  0xf6   :  { %v716_v4 = vpop.f32.mrb[1].mxu0 }
  0xf7   :  { %v717_v5 = vadd.f32 %v716_v4, %v715_v2  ;;  %v718_v6 = vpop.f32.mrb[2].mxu0  ;;  %v737_v7 = vpop.f32.mrb[0].mxu1 }
  0xf8   :  { %v719_v8 = vpop.f32.mrb[3].mxu0  ;;  %v738_v9 = vpop.f32.mrb[1].mxu1 }
  0xf9   :  { %v430_v10 = vadd.f32 %v717_v5, %v648_v3  ;;  %v739_v11 = vadd.f32 %v738_v9, %v737_v7  ;;  %v740_v12 = vpop.f32.mrb[2].mxu1 }
  0xfa   :  { %v741_v13 = vpop.f32.mrb[3].mxu1 }
  0xfb   :  { %v470_v14 = vadd.f32 %v739_v11, %v430_v10 }
 0x115   :  { %v509_v15 = vpop.f32.mrb[4].mxu0 }
 0x116   :  { %v510_v16 = vadd.f32 %v509_v15, %v470_v14  ;;  %v779_v17 = vpop.f32.mrb[5].mxu0 }
 0x117   :  { %v512_v18 = vpop.f32.mrb[6].mxu0 }
 0x118   :  { %v515_v19 = vmax.f32 %v510_v16, 0.0  ;;  %v780_v20 = vpop.f32.mrb[7].mxu0 }
 0x11a   :  { %v516_v21 = vpack.c.bf16 %v515_v19, %v515_v19 }
 0x11c   :  { %798 = vmatmul.mubr.msk.bf16.vlgmr.msra.gmra.mrb[4].mxu1 %vm584_vm2, %v516_v21 }
 0x1ef   :  { %v626_v23 = vpop.f32.mrb[4].mxu1 }
 0x1f0   :  { %v627_v24 = vadd.f32 %v689_v22, %v626_v23  ;;  %v799_v25 = vpop.f32.mrb[5].mxu1 }
 0x1f1   :  { %v629_v26 = vpop.f32.mrb[6].mxu1 }
 0x1f2   :  { %v800_v27 = vpop.f32.mrb[7].mxu1  ;;  %633 = vst.msk [vmem:[#allocation2] sm:$0x3] %vm632_vm3, %v627_v24 }
 0x1f3   :  { %865 = shalt.err (!%p862_p4)
}
 0x1f4   :  { %s866_s4 = scalar_lea.hbm %s1100_s5, 32 }
 0x1f5   :  { %p867_p5 = scmp.ne.s32.totalorder %s1100_s5, %s866_s4  ;;  %p870_p6 = scmp.lt.u32.totalorder %s866_s4, %s1100_s5 }
 0x1f7   :  { %p872_p7 = pnand %p870_p6, %p867_p5 }
 0x1f9   :  { %875 = shalt.err (!%p872_p7)
}
 0x1fa   :  { %643 = dma.vmem_to_hbm [thread:$0]  %s641_s16, 32, %s1100_s5, [#allocation3]  }
 0x1fb   :  { %876 = dma.done.wait [#allocation3], 32  }
 0x1fc   :  { %877 = vsyncadd [#allocation3], 4294967264 }
 0x1fd   :  { %647 = vsyncpa [#allocation3], 1 }

// kernel: net_forward.6
= control target key start
LH: loop header
LB: loop body
LE: loop exit
PB: predicated region body
PF: predicated region fallthrough
CT: control target
= control target key end

     0   :  { %s14016_s12 = smov 0   ;;  %s14018_s13 = smov 0   ;;  %s16425_s0 = inlined_call_operand.vmem [shape: bf16[2,7056], index: 0, kind: input, shape index: {}]   ;;  %s16426_s1 = inlined_call_operand.vmem [shape: bf16[7056,640], index: 1, kind: input, shape index: {}]   ;;  %s16427_s2 = inlined_call_operand.vmem [shape: f32[1,640], index: 2, kind: input, shape index: {}]   ;;  %s16428_s3 = inlined_call_operand.vmem [shape: bf16[2,640], index: 3, kind: output, shape index: {}]  }
   0x1   :  { %s14020_s14 = smov 0  }
   0x2 LB: > { %s12449_s15 = sadd.s32 4294967295, %s13992_s14   ;;  %s14033_s16 = sadd.s32 1, %s13992_s14   ;;  %s13992_s14 = sphi %s14020_s14, %s16431_s14   ;;  %s13988_s13 = sphi %s14018_s13, %s16430_s13   ;;  %s13984_s12 = sphi %s14016_s12, %s16429_s12  }
   0x3   : > { %s38_s17 = ssub.s32 %s13992_s14, %s14033_s16  ;;  %s41_s18 = sadd.s32 1, %s13988_s13 }
   0x4   : > { %p39_p0 = scmp.eq.s32.totalorder %s38_s17, 0  ;;  %p48_p1 = scmp.ne.s32.totalorder %s13988_s13, %s13984_s12 }
   0x5   : > { %p49_p2 = scmp.eq.s32.totalorder %s13992_s14, 0  ;;  %p12452_p4 = scmp.ge.s32.totalorder %s13992_s14, 5 }
   0x6   : > { %s14042_s19 = scalar_select %p39_p0, %s13988_s13, %s41_s18  }
   0x7   : > { %p50_p3 = por %p49_p2, %p48_p1  ;;  %129 = sbr.rel (%p12452_p4) target bundleno = 606 (0x25e), region = 20 }
   0xe   : > { %132 = sbr.rel (!%p50_p3) target bundleno = 606 (0x25e), region = 24  ;;  %s134_s20 = sand.u32 (%p50_p3), 1, %s13988_s13  }
   0xf   : > { %s12453_s21 = sshll.u32 (%p50_p3), %s13992_s14, 2  ;;  %s13494_s22 = smul.u32 (%p50_p3), 3528, %s134_s20 }
  0x10   : > { %s14050_s25 = scalar_lea.vmem (%p50_p3), %s16426_s1, %s12453_s21 }
  0x11   : > { %v154_v0 = vld [vmem:[%s14050_s25] sm:$0xf] (%p50_p3)  ;;  %v156_v1 = vld [vmem:[%s14050_s25 + $0x14] sm:$0xf] (%p50_p3)  ;;  %v158_v2 = vld [vmem:[%s14050_s25 + $0x28] sm:$0xf] (%p50_p3) }
  0x12   : > { %v160_v3 = vld [vmem:[%s14050_s25 + $0x3c] sm:$0xf] (%p50_p3)  ;;  %v162_v4 = vld [vmem:[%s14050_s25 + $0x50] sm:$0xf] (%p50_p3)  ;;  %s14057_s26 = scalar_lea.vmem (%p50_p3), [#allocation2], %s13494_s22 }
  0x13   : > { %155 = vst [vmem:[%s14057_s26] sm:$0xf] (%p50_p3), %v154_v0  ;;  %157 = vst [vmem:[%s14057_s26 + $0x4] sm:$0xf] (%p50_p3), %v156_v1  ;;  %v164_v5 = vld [vmem:[%s14050_s25 + $0x64] sm:$0xf] (%p50_p3) }
  0x14   : > { %159 = vst [vmem:[%s14057_s26 + $0x8] sm:$0xf] (%p50_p3), %v158_v2  ;;  %161 = vst [vmem:[%s14057_s26 + $0xc] sm:$0xf] (%p50_p3), %v160_v3  ;;  %v166_v6 = vld [vmem:[%s14050_s25 + $0x78] sm:$0xf] (%p50_p3) }
  0x15   : > { %163 = vst [vmem:[%s14057_s26 + $0x10] sm:$0xf] %v162_v4  ;;  %v168_v7 = vld [vmem:[%s14050_s25 + $0x8c] sm:$0xf]  ;;  %165 = vst [vmem:[%s14057_s26 + $0x14] sm:$0xf] %v164_v5 }
  0x16   : > { %167 = vst [vmem:[%s14057_s26 + $0x18] sm:$0xf] %v166_v6  ;;  %169 = vst [vmem:[%s14057_s26 + $0x1c] sm:$0xf] %v168_v7  ;;  %v170_v8 = vld [vmem:[%s14050_s25 + $0xa0] sm:$0xf] }
  0x17   : > { %v172_v9 = vld [vmem:[%s14050_s25 + $0xb4] sm:$0xf]  ;;  %v174_v10 = vld [vmem:[%s14050_s25 + $0xc8] sm:$0xf]  ;;  %171 = vst [vmem:[%s14057_s26 + $0x20] sm:$0xf] %v170_v8 }
  0x18   : > { %173 = vst [vmem:[%s14057_s26 + $0x24] sm:$0xf] %v172_v9  ;;  %175 = vst [vmem:[%s14057_s26 + $0x28] sm:$0xf] %v174_v10  ;;  %v176_v11 = vld [vmem:[%s14050_s25 + $0xdc] sm:$0xf] }
  0x19   : > { %v178_v12 = vld [vmem:[%s14050_s25 + $0xf0] sm:$0xf]  ;;  %v180_v13 = vld [vmem:[%s14050_s25 + $0x104] sm:$0xf]  ;;  %177 = vst [vmem:[%s14057_s26 + $0x2c] sm:$0xf] %v176_v11 }
  0x1a   : > { %179 = vst [vmem:[%s14057_s26 + $0x30] sm:$0xf] %v178_v12  ;;  %181 = vst [vmem:[%s14057_s26 + $0x34] sm:$0xf] %v180_v13  ;;  %v182_v14 = vld [vmem:[%s14050_s25 + $0x118] sm:$0xf] }
  0x1b   : > { %v184_v15 = vld [vmem:[%s14050_s25 + $0x12c] sm:$0xf]  ;;  %v186_v16 = vld [vmem:[%s14050_s25 + $0x140] sm:$0xf]  ;;  %183 = vst [vmem:[%s14057_s26 + $0x38] sm:$0xf] %v182_v14 }
  0x1c   : > { %185 = vst [vmem:[%s14057_s26 + $0x3c] sm:$0xf] %v184_v15  ;;  %187 = vst [vmem:[%s14057_s26 + $0x40] sm:$0xf] %v186_v16  ;;  %v188_v17 = vld [vmem:[%s14050_s25 + $0x154] sm:$0xf] }
  0x1d   : > { %v190_v18 = vld [vmem:[%s14050_s25 + $0x168] sm:$0xf]  ;;  %v192_v19 = vld [vmem:[%s14050_s25 + $0x17c] sm:$0xf]  ;;  %189 = vst [vmem:[%s14057_s26 + $0x44] sm:$0xf] %v188_v17 }
  0x1e   : > { %191 = vst [vmem:[%s14057_s26 + $0x48] sm:$0xf] %v190_v18  ;;  %193 = vst [vmem:[%s14057_s26 + $0x4c] sm:$0xf] %v192_v19  ;;  %v194_v20 = vld [vmem:[%s14050_s25 + $0x190] sm:$0xf] }
  0x1f   : > { %v196_v21 = vld [vmem:[%s14050_s25 + $0x1a4] sm:$0xf]  ;;  %v198_v22 = vld [vmem:[%s14050_s25 + $0x1b8] sm:$0xf]  ;;  %195 = vst [vmem:[%s14057_s26 + $0x50] sm:$0xf] %v194_v20 }
  0x20   : > { %197 = vst [vmem:[%s14057_s26 + $0x54] sm:$0xf] %v196_v21  ;;  %199 = vst [vmem:[%s14057_s26 + $0x58] sm:$0xf] %v198_v22  ;;  %v200_v23 = vld [vmem:[%s14050_s25 + $0x1cc] sm:$0xf] }
  0x21   : > { %v202_v24 = vld [vmem:[%s14050_s25 + $0x1e0] sm:$0xf]  ;;  %v204_v25 = vld [vmem:[%s14050_s25 + $0x1f4] sm:$0xf]  ;;  %201 = vst [vmem:[%s14057_s26 + $0x5c] sm:$0xf] %v200_v23 }
  0x22   : > { %203 = vst [vmem:[%s14057_s26 + $0x60] sm:$0xf] %v202_v24  ;;  %205 = vst [vmem:[%s14057_s26 + $0x64] sm:$0xf] %v204_v25  ;;  %v206_v26 = vld [vmem:[%s14050_s25 + $0x208] sm:$0xf] }
  0x23   : > { %v208_v27 = vld [vmem:[%s14050_s25 + $0x21c] sm:$0xf]  ;;  %v210_v28 = vld [vmem:[%s14050_s25 + $0x230] sm:$0xf]  ;;  %207 = vst [vmem:[%s14057_s26 + $0x68] sm:$0xf] %v206_v26 }
  0x24   : > { %209 = vst [vmem:[%s14057_s26 + $0x6c] sm:$0xf] %v208_v27  ;;  %211 = vst [vmem:[%s14057_s26 + $0x70] sm:$0xf] %v210_v28  ;;  %v212_v29 = vld [vmem:[%s14050_s25 + $0x244] sm:$0xf] }
  0x25   : > { %v214_v30 = vld [vmem:[%s14050_s25 + $0x258] sm:$0xf]  ;;  %v216_v31 = vld [vmem:[%s14050_s25 + $0x26c] sm:$0xf]  ;;  %213 = vst [vmem:[%s14057_s26 + $0x74] sm:$0xf] %v212_v29 }
  0x26   : > { %215 = vst [vmem:[%s14057_s26 + $0x78] sm:$0xf] %v214_v30  ;;  %217 = vst [vmem:[%s14057_s26 + $0x7c] sm:$0xf] %v216_v31  ;;  %v218_v32 = vld [vmem:[%s14050_s25 + $0x280] sm:$0xf] }
  0x27   : > { %v220_v33 = vld [vmem:[%s14050_s25 + $0x294] sm:$0xf]  ;;  %v222_v34 = vld [vmem:[%s14050_s25 + $0x2a8] sm:$0xf]  ;;  %219 = vst [vmem:[%s14057_s26 + $0x80] sm:$0xf] %v218_v32 }
  0x28   : > { %221 = vst [vmem:[%s14057_s26 + $0x84] sm:$0xf] %v220_v33  ;;  %223 = vst [vmem:[%s14057_s26 + $0x88] sm:$0xf] %v222_v34  ;;  %v224_v35 = vld [vmem:[%s14050_s25 + $0x2bc] sm:$0xf] }
  0x29   : > { %v226_v36 = vld [vmem:[%s14050_s25 + $0x2d0] sm:$0xf]  ;;  %v228_v37 = vld [vmem:[%s14050_s25 + $0x2e4] sm:$0xf]  ;;  %225 = vst [vmem:[%s14057_s26 + $0x8c] sm:$0xf] %v224_v35 }
  0x2a   : > { %227 = vst [vmem:[%s14057_s26 + $0x90] sm:$0xf] %v226_v36  ;;  %229 = vst [vmem:[%s14057_s26 + $0x94] sm:$0xf] %v228_v37  ;;  %v230_v38 = vld [vmem:[%s14050_s25 + $0x2f8] sm:$0xf] }
  0x2b   : > { %v232_v39 = vld [vmem:[%s14050_s25 + $0x30c] sm:$0xf]  ;;  %v234_v40 = vld [vmem:[%s14050_s25 + $0x320] sm:$0xf]  ;;  %231 = vst [vmem:[%s14057_s26 + $0x98] sm:$0xf] %v230_v38 }
  0x2c   : > { %233 = vst [vmem:[%s14057_s26 + $0x9c] sm:$0xf] %v232_v39  ;;  %235 = vst [vmem:[%s14057_s26 + $0xa0] sm:$0xf] %v234_v40  ;;  %v236_v41 = vld [vmem:[%s14050_s25 + $0x334] sm:$0xf] }
  0x2d   : > { %v238_v42 = vld [vmem:[%s14050_s25 + $0x348] sm:$0xf]  ;;  %v240_v43 = vld [vmem:[%s14050_s25 + $0x35c] sm:$0xf]  ;;  %237 = vst [vmem:[%s14057_s26 + $0xa4] sm:$0xf] %v236_v41 }
  0x2e   : > { %239 = vst [vmem:[%s14057_s26 + $0xa8] sm:$0xf] %v238_v42  ;;  %241 = vst [vmem:[%s14057_s26 + $0xac] sm:$0xf] %v240_v43  ;;  %v242_v44 = vld [vmem:[%s14050_s25 + $0x370] sm:$0xf] }
  0x2f   : > { %v244_v45 = vld [vmem:[%s14050_s25 + $0x384] sm:$0xf]  ;;  %v246_v46 = vld [vmem:[%s14050_s25 + $0x398] sm:$0xf]  ;;  %243 = vst [vmem:[%s14057_s26 + $0xb0] sm:$0xf] %v242_v44 }
  0x30   : > { %245 = vst [vmem:[%s14057_s26 + $0xb4] sm:$0xf] %v244_v45  ;;  %247 = vst [vmem:[%s14057_s26 + $0xb8] sm:$0xf] %v246_v46  ;;  %v248_v47 = vld [vmem:[%s14050_s25 + $0x3ac] sm:$0xf] }
  0x31   : > { %v250_v48 = vld [vmem:[%s14050_s25 + $0x3c0] sm:$0xf]  ;;  %v252_v49 = vld [vmem:[%s14050_s25 + $0x3d4] sm:$0xf]  ;;  %249 = vst [vmem:[%s14057_s26 + $0xbc] sm:$0xf] %v248_v47 }
  0x32   : > { %251 = vst [vmem:[%s14057_s26 + $0xc0] sm:$0xf] %v250_v48  ;;  %253 = vst [vmem:[%s14057_s26 + $0xc4] sm:$0xf] %v252_v49  ;;  %v254_v50 = vld [vmem:[%s14050_s25 + $0x3e8] sm:$0xf] }
  0x33   : > { %v256_v51 = vld [vmem:[%s14050_s25 + $0x3fc] sm:$0xf]  ;;  %v258_v52 = vld [vmem:[%s14050_s25 + $0x410] sm:$0xf]  ;;  %255 = vst [vmem:[%s14057_s26 + $0xc8] sm:$0xf] %v254_v50 }
  0x34   : > { %257 = vst [vmem:[%s14057_s26 + $0xcc] sm:$0xf] %v256_v51  ;;  %259 = vst [vmem:[%s14057_s26 + $0xd0] sm:$0xf] %v258_v52  ;;  %v260_v53 = vld [vmem:[%s14050_s25 + $0x424] sm:$0xf] }
  0x35   : > { %v262_v54 = vld [vmem:[%s14050_s25 + $0x438] sm:$0xf]  ;;  %v264_v55 = vld [vmem:[%s14050_s25 + $0x44c] sm:$0xf]  ;;  %261 = vst [vmem:[%s14057_s26 + $0xd4] sm:$0xf] %v260_v53 }
  0x36   : > { %263 = vst [vmem:[%s14057_s26 + $0xd8] sm:$0xf] %v262_v54  ;;  %265 = vst [vmem:[%s14057_s26 + $0xdc] sm:$0xf] %v264_v55  ;;  %v266_v56 = vld [vmem:[%s14050_s25 + $0x460] sm:$0xf] }
  0x37   : > { %v268_v57 = vld [vmem:[%s14050_s25 + $0x474] sm:$0xf]  ;;  %v270_v58 = vld [vmem:[%s14050_s25 + $0x488] sm:$0xf]  ;;  %267 = vst [vmem:[%s14057_s26 + $0xe0] sm:$0xf] %v266_v56 }
  0x38   : > { %269 = vst [vmem:[%s14057_s26 + $0xe4] sm:$0xf] %v268_v57  ;;  %271 = vst [vmem:[%s14057_s26 + $0xe8] sm:$0xf] %v270_v58  ;;  %v272_v59 = vld [vmem:[%s14050_s25 + $0x49c] sm:$0xf] }
  0x39   : > { %v274_v60 = vld [vmem:[%s14050_s25 + $0x4b0] sm:$0xf]  ;;  %v276_v61 = vld [vmem:[%s14050_s25 + $0x4c4] sm:$0xf]  ;;  %273 = vst [vmem:[%s14057_s26 + $0xec] sm:$0xf] %v272_v59 }
  0x3a   : > { %275 = vst [vmem:[%s14057_s26 + $0xf0] sm:$0xf] %v274_v60  ;;  %277 = vst [vmem:[%s14057_s26 + $0xf4] sm:$0xf] %v276_v61  ;;  %v278_v62 = vld [vmem:[%s14050_s25 + $0x4d8] sm:$0xf] }
  0x3b   : > { %v280_v63 = vld [vmem:[%s14050_s25 + $0x4ec] sm:$0xf]  ;;  %v282_v0 = vld [vmem:[%s14050_s25 + $0x500] sm:$0xf]  ;;  %279 = vst [vmem:[%s14057_s26 + $0xf8] sm:$0xf] %v278_v62 }
  0x3c   : > { %281 = vst [vmem:[%s14057_s26 + $0xfc] sm:$0xf] %v280_v63  ;;  %283 = vst [vmem:[%s14057_s26 + $0x100] sm:$0xf] %v282_v0  ;;  %v284_v1 = vld [vmem:[%s14050_s25 + $0x514] sm:$0xf] }
  0x3d   : > { %v286_v2 = vld [vmem:[%s14050_s25 + $0x528] sm:$0xf]  ;;  %v288_v3 = vld [vmem:[%s14050_s25 + $0x53c] sm:$0xf]  ;;  %285 = vst [vmem:[%s14057_s26 + $0x104] sm:$0xf] %v284_v1 }
  0x3e   : > { %287 = vst [vmem:[%s14057_s26 + $0x108] sm:$0xf] %v286_v2  ;;  %289 = vst [vmem:[%s14057_s26 + $0x10c] sm:$0xf] %v288_v3  ;;  %v290_v4 = vld [vmem:[%s14050_s25 + $0x550] sm:$0xf] }
  0x3f   : > { %v292_v5 = vld [vmem:[%s14050_s25 + $0x564] sm:$0xf]  ;;  %v294_v6 = vld [vmem:[%s14050_s25 + $0x578] sm:$0xf]  ;;  %291 = vst [vmem:[%s14057_s26 + $0x110] sm:$0xf] %v290_v4 }
  0x40   : > { %293 = vst [vmem:[%s14057_s26 + $0x114] sm:$0xf] %v292_v5  ;;  %295 = vst [vmem:[%s14057_s26 + $0x118] sm:$0xf] %v294_v6  ;;  %v296_v7 = vld [vmem:[%s14050_s25 + $0x58c] sm:$0xf] }
  0x41   : > { %v298_v8 = vld [vmem:[%s14050_s25 + $0x5a0] sm:$0xf]  ;;  %v300_v9 = vld [vmem:[%s14050_s25 + $0x5b4] sm:$0xf]  ;;  %297 = vst [vmem:[%s14057_s26 + $0x11c] sm:$0xf] %v296_v7 }
  0x42   : > { %299 = vst [vmem:[%s14057_s26 + $0x120] sm:$0xf] %v298_v8  ;;  %301 = vst [vmem:[%s14057_s26 + $0x124] sm:$0xf] %v300_v9  ;;  %v302_v10 = vld [vmem:[%s14050_s25 + $0x5c8] sm:$0xf] }
  0x43   : > { %v304_v11 = vld [vmem:[%s14050_s25 + $0x5dc] sm:$0xf]  ;;  %v306_v12 = vld [vmem:[%s14050_s25 + $0x5f0] sm:$0xf]  ;;  %303 = vst [vmem:[%s14057_s26 + $0x128] sm:$0xf] %v302_v10 }
  0x44   : > { %305 = vst [vmem:[%s14057_s26 + $0x12c] sm:$0xf] %v304_v11  ;;  %307 = vst [vmem:[%s14057_s26 + $0x130] sm:$0xf] %v306_v12  ;;  %v308_v13 = vld [vmem:[%s14050_s25 + $0x604] sm:$0xf] }
  0x45   : > { %v310_v14 = vld [vmem:[%s14050_s25 + $0x618] sm:$0xf]  ;;  %v312_v15 = vld [vmem:[%s14050_s25 + $0x62c] sm:$0xf]  ;;  %309 = vst [vmem:[%s14057_s26 + $0x134] sm:$0xf] %v308_v13 }
  0x46   : > { %311 = vst [vmem:[%s14057_s26 + $0x138] sm:$0xf] %v310_v14  ;;  %313 = vst [vmem:[%s14057_s26 + $0x13c] sm:$0xf] %v312_v15  ;;  %v314_v16 = vld [vmem:[%s14050_s25 + $0x640] sm:$0xf] }
  0x47   : > { %v316_v17 = vld [vmem:[%s14050_s25 + $0x654] sm:$0xf]  ;;  %v318_v18 = vld [vmem:[%s14050_s25 + $0x668] sm:$0xf]  ;;  %315 = vst [vmem:[%s14057_s26 + $0x140] sm:$0xf] %v314_v16 }
  0x48   : > { %317 = vst [vmem:[%s14057_s26 + $0x144] sm:$0xf] %v316_v17  ;;  %319 = vst [vmem:[%s14057_s26 + $0x148] sm:$0xf] %v318_v18  ;;  %v320_v19 = vld [vmem:[%s14050_s25 + $0x67c] sm:$0xf] }
  0x49   : > { %v322_v20 = vld [vmem:[%s14050_s25 + $0x690] sm:$0xf]  ;;  %v324_v21 = vld [vmem:[%s14050_s25 + $0x6a4] sm:$0xf]  ;;  %321 = vst [vmem:[%s14057_s26 + $0x14c] sm:$0xf] %v320_v19 }
  0x4a   : > { %323 = vst [vmem:[%s14057_s26 + $0x150] sm:$0xf] %v322_v20  ;;  %325 = vst [vmem:[%s14057_s26 + $0x154] sm:$0xf] %v324_v21  ;;  %v326_v22 = vld [vmem:[%s14050_s25 + $0x6b8] sm:$0xf] }
  0x4b   : > { %v328_v23 = vld [vmem:[%s14050_s25 + $0x6cc] sm:$0xf]  ;;  %v330_v24 = vld [vmem:[%s14050_s25 + $0x6e0] sm:$0xf]  ;;  %327 = vst [vmem:[%s14057_s26 + $0x158] sm:$0xf] %v326_v22 }
  0x4c   : > { %329 = vst [vmem:[%s14057_s26 + $0x15c] sm:$0xf] %v328_v23  ;;  %331 = vst [vmem:[%s14057_s26 + $0x160] sm:$0xf] %v330_v24  ;;  %v332_v25 = vld [vmem:[%s14050_s25 + $0x6f4] sm:$0xf] }
  0x4d   : > { %v334_v26 = vld [vmem:[%s14050_s25 + $0x708] sm:$0xf]  ;;  %v336_v27 = vld [vmem:[%s14050_s25 + $0x71c] sm:$0xf]  ;;  %333 = vst [vmem:[%s14057_s26 + $0x164] sm:$0xf] %v332_v25 }
  0x4e   : > { %335 = vst [vmem:[%s14057_s26 + $0x168] sm:$0xf] %v334_v26  ;;  %337 = vst [vmem:[%s14057_s26 + $0x16c] sm:$0xf] %v336_v27  ;;  %v338_v28 = vld [vmem:[%s14050_s25 + $0x730] sm:$0xf] }
  0x4f   : > { %v340_v29 = vld [vmem:[%s14050_s25 + $0x744] sm:$0xf]  ;;  %v342_v30 = vld [vmem:[%s14050_s25 + $0x758] sm:$0xf]  ;;  %339 = vst [vmem:[%s14057_s26 + $0x170] sm:$0xf] %v338_v28 }
  0x50   : > { %341 = vst [vmem:[%s14057_s26 + $0x174] sm:$0xf] %v340_v29  ;;  %343 = vst [vmem:[%s14057_s26 + $0x178] sm:$0xf] %v342_v30  ;;  %v344_v31 = vld [vmem:[%s14050_s25 + $0x76c] sm:$0xf] }
  0x51   : > { %v346_v32 = vld [vmem:[%s14050_s25 + $0x780] sm:$0xf]  ;;  %v348_v33 = vld [vmem:[%s14050_s25 + $0x794] sm:$0xf]  ;;  %345 = vst [vmem:[%s14057_s26 + $0x17c] sm:$0xf] %v344_v31 }
  0x52   : > { %347 = vst [vmem:[%s14057_s26 + $0x180] sm:$0xf] %v346_v32  ;;  %349 = vst [vmem:[%s14057_s26 + $0x184] sm:$0xf] %v348_v33  ;;  %v350_v34 = vld [vmem:[%s14050_s25 + $0x7a8] sm:$0xf] }
  0x53   : > { %v352_v35 = vld [vmem:[%s14050_s25 + $0x7bc] sm:$0xf]  ;;  %v354_v36 = vld [vmem:[%s14050_s25 + $0x7d0] sm:$0xf]  ;;  %351 = vst [vmem:[%s14057_s26 + $0x188] sm:$0xf] %v350_v34 }
  0x54   : > { %353 = vst [vmem:[%s14057_s26 + $0x18c] sm:$0xf] %v352_v35  ;;  %355 = vst [vmem:[%s14057_s26 + $0x190] sm:$0xf] %v354_v36  ;;  %v356_v37 = vld [vmem:[%s14050_s25 + $0x7e4] sm:$0xf] }
  0x55   : > { %v358_v38 = vld [vmem:[%s14050_s25 + $0x7f8] sm:$0xf]  ;;  %v360_v39 = vld [vmem:[%s14050_s25 + $0x80c] sm:$0xf]  ;;  %357 = vst [vmem:[%s14057_s26 + $0x194] sm:$0xf] %v356_v37 }
  0x56   : > { %359 = vst [vmem:[%s14057_s26 + $0x198] sm:$0xf] %v358_v38  ;;  %361 = vst [vmem:[%s14057_s26 + $0x19c] sm:$0xf] %v360_v39  ;;  %v362_v40 = vld [vmem:[%s14050_s25 + $0x820] sm:$0xf] }
  0x57   : > { %v364_v41 = vld [vmem:[%s14050_s25 + $0x834] sm:$0xf]  ;;  %v366_v42 = vld [vmem:[%s14050_s25 + $0x848] sm:$0xf]  ;;  %363 = vst [vmem:[%s14057_s26 + $0x1a0] sm:$0xf] %v362_v40 }
  0x58   : > { %365 = vst [vmem:[%s14057_s26 + $0x1a4] sm:$0xf] %v364_v41  ;;  %367 = vst [vmem:[%s14057_s26 + $0x1a8] sm:$0xf] %v366_v42  ;;  %v368_v43 = vld [vmem:[%s14050_s25 + $0x85c] sm:$0xf] }
  0x59   : > { %v370_v44 = vld [vmem:[%s14050_s25 + $0x870] sm:$0xf]  ;;  %v372_v45 = vld [vmem:[%s14050_s25 + $0x884] sm:$0xf]  ;;  %369 = vst [vmem:[%s14057_s26 + $0x1ac] sm:$0xf] %v368_v43 }
  0x5a   : > { %371 = vst [vmem:[%s14057_s26 + $0x1b0] sm:$0xf] %v370_v44  ;;  %373 = vst [vmem:[%s14057_s26 + $0x1b4] sm:$0xf] %v372_v45  ;;  %v374_v46 = vld [vmem:[%s14050_s25 + $0x898] sm:$0xf] }
  0x5b   : > { %v376_v47 = vld [vmem:[%s14050_s25 + $0x8ac] sm:$0xf]  ;;  %v378_v48 = vld [vmem:[%s14050_s25 + $0x8c0] sm:$0xf]  ;;  %375 = vst [vmem:[%s14057_s26 + $0x1b8] sm:$0xf] %v374_v46 }
  0x5c   : > { %377 = vst [vmem:[%s14057_s26 + $0x1bc] sm:$0xf] %v376_v47  ;;  %379 = vst [vmem:[%s14057_s26 + $0x1c0] sm:$0xf] %v378_v48  ;;  %v380_v49 = vld [vmem:[%s14050_s25 + $0x8d4] sm:$0xf] }
  0x5d   : > { %v382_v50 = vld [vmem:[%s14050_s25 + $0x8e8] sm:$0xf]  ;;  %v384_v51 = vld [vmem:[%s14050_s25 + $0x8fc] sm:$0xf]  ;;  %381 = vst [vmem:[%s14057_s26 + $0x1c4] sm:$0xf] %v380_v49 }
  0x5e   : > { %383 = vst [vmem:[%s14057_s26 + $0x1c8] sm:$0xf] %v382_v50  ;;  %385 = vst [vmem:[%s14057_s26 + $0x1cc] sm:$0xf] %v384_v51  ;;  %v386_v52 = vld [vmem:[%s14050_s25 + $0x910] sm:$0xf] }
  0x5f   : > { %v388_v53 = vld [vmem:[%s14050_s25 + $0x924] sm:$0xf]  ;;  %v390_v54 = vld [vmem:[%s14050_s25 + $0x938] sm:$0xf]  ;;  %387 = vst [vmem:[%s14057_s26 + $0x1d0] sm:$0xf] %v386_v52 }
  0x60   : > { %389 = vst [vmem:[%s14057_s26 + $0x1d4] sm:$0xf] %v388_v53  ;;  %391 = vst [vmem:[%s14057_s26 + $0x1d8] sm:$0xf] %v390_v54  ;;  %v392_v55 = vld [vmem:[%s14050_s25 + $0x94c] sm:$0xf] }
  0x61   : > { %v394_v56 = vld [vmem:[%s14050_s25 + $0x960] sm:$0xf]  ;;  %v396_v57 = vld [vmem:[%s14050_s25 + $0x974] sm:$0xf]  ;;  %393 = vst [vmem:[%s14057_s26 + $0x1dc] sm:$0xf] %v392_v55 }
  0x62   : > { %395 = vst [vmem:[%s14057_s26 + $0x1e0] sm:$0xf] %v394_v56  ;;  %397 = vst [vmem:[%s14057_s26 + $0x1e4] sm:$0xf] %v396_v57  ;;  %v398_v58 = vld [vmem:[%s14050_s25 + $0x988] sm:$0xf] }
  0x63   : > { %v400_v59 = vld [vmem:[%s14050_s25 + $0x99c] sm:$0xf]  ;;  %v402_v60 = vld [vmem:[%s14050_s25 + $0x9b0] sm:$0xf]  ;;  %399 = vst [vmem:[%s14057_s26 + $0x1e8] sm:$0xf] %v398_v58 }
  0x64   : > { %401 = vst [vmem:[%s14057_s26 + $0x1ec] sm:$0xf] %v400_v59  ;;  %403 = vst [vmem:[%s14057_s26 + $0x1f0] sm:$0xf] %v402_v60  ;;  %v404_v61 = vld [vmem:[%s14050_s25 + $0x9c4] sm:$0xf] }
  0x65   : > { %v406_v62 = vld [vmem:[%s14050_s25 + $0x9d8] sm:$0xf]  ;;  %v408_v63 = vld [vmem:[%s14050_s25 + $0x9ec] sm:$0xf]  ;;  %405 = vst [vmem:[%s14057_s26 + $0x1f4] sm:$0xf] %v404_v61 }
  0x66   : > { %407 = vst [vmem:[%s14057_s26 + $0x1f8] sm:$0xf] %v406_v62  ;;  %409 = vst [vmem:[%s14057_s26 + $0x1fc] sm:$0xf] %v408_v63  ;;  %v410_v0 = vld [vmem:[%s14050_s25 + $0xa00] sm:$0xf] }
  0x67   : > { %v412_v1 = vld [vmem:[%s14050_s25 + $0xa14] sm:$0xf]  ;;  %v414_v2 = vld [vmem:[%s14050_s25 + $0xa28] sm:$0xf]  ;;  %411 = vst [vmem:[%s14057_s26 + $0x200] sm:$0xf] %v410_v0 }
  0x68   : > { %413 = vst [vmem:[%s14057_s26 + $0x204] sm:$0xf] %v412_v1  ;;  %415 = vst [vmem:[%s14057_s26 + $0x208] sm:$0xf] %v414_v2  ;;  %v416_v3 = vld [vmem:[%s14050_s25 + $0xa3c] sm:$0xf] }
  0x69   : > { %v418_v4 = vld [vmem:[%s14050_s25 + $0xa50] sm:$0xf]  ;;  %v420_v5 = vld [vmem:[%s14050_s25 + $0xa64] sm:$0xf]  ;;  %417 = vst [vmem:[%s14057_s26 + $0x20c] sm:$0xf] %v416_v3 }
  0x6a   : > { %419 = vst [vmem:[%s14057_s26 + $0x210] sm:$0xf] %v418_v4  ;;  %421 = vst [vmem:[%s14057_s26 + $0x214] sm:$0xf] %v420_v5  ;;  %v422_v6 = vld [vmem:[%s14050_s25 + $0xa78] sm:$0xf] }
  0x6b   : > { %v424_v7 = vld [vmem:[%s14050_s25 + $0xa8c] sm:$0xf]  ;;  %v426_v8 = vld [vmem:[%s14050_s25 + $0xaa0] sm:$0xf]  ;;  %423 = vst [vmem:[%s14057_s26 + $0x218] sm:$0xf] %v422_v6 }
  0x6c   : > { %425 = vst [vmem:[%s14057_s26 + $0x21c] sm:$0xf] %v424_v7  ;;  %427 = vst [vmem:[%s14057_s26 + $0x220] sm:$0xf] %v426_v8  ;;  %v428_v9 = vld [vmem:[%s14050_s25 + $0xab4] sm:$0xf] }
  0x6d   : > { %v430_v10 = vld [vmem:[%s14050_s25 + $0xac8] sm:$0xf]  ;;  %v432_v11 = vld [vmem:[%s14050_s25 + $0xadc] sm:$0xf]  ;;  %429 = vst [vmem:[%s14057_s26 + $0x224] sm:$0xf] %v428_v9 }
  0x6e   : > { %431 = vst [vmem:[%s14057_s26 + $0x228] sm:$0xf] %v430_v10  ;;  %433 = vst [vmem:[%s14057_s26 + $0x22c] sm:$0xf] %v432_v11  ;;  %v434_v12 = vld [vmem:[%s14050_s25 + $0xaf0] sm:$0xf] }
  0x6f   : > { %v436_v13 = vld [vmem:[%s14050_s25 + $0xb04] sm:$0xf]  ;;  %v438_v14 = vld [vmem:[%s14050_s25 + $0xb18] sm:$0xf]  ;;  %435 = vst [vmem:[%s14057_s26 + $0x230] sm:$0xf] %v434_v12 }
  0x70   : > { %437 = vst [vmem:[%s14057_s26 + $0x234] sm:$0xf] %v436_v13  ;;  %439 = vst [vmem:[%s14057_s26 + $0x238] sm:$0xf] %v438_v14  ;;  %v440_v15 = vld [vmem:[%s14050_s25 + $0xb2c] sm:$0xf] }
  0x71   : > { %v442_v16 = vld [vmem:[%s14050_s25 + $0xb40] sm:$0xf]  ;;  %v444_v17 = vld [vmem:[%s14050_s25 + $0xb54] sm:$0xf]  ;;  %441 = vst [vmem:[%s14057_s26 + $0x23c] sm:$0xf] %v440_v15 }
  0x72   : > { %443 = vst [vmem:[%s14057_s26 + $0x240] sm:$0xf] %v442_v16  ;;  %445 = vst [vmem:[%s14057_s26 + $0x244] sm:$0xf] %v444_v17  ;;  %v446_v18 = vld [vmem:[%s14050_s25 + $0xb68] sm:$0xf] }
  0x73   : > { %v448_v19 = vld [vmem:[%s14050_s25 + $0xb7c] sm:$0xf]  ;;  %v450_v20 = vld [vmem:[%s14050_s25 + $0xb90] sm:$0xf]  ;;  %447 = vst [vmem:[%s14057_s26 + $0x248] sm:$0xf] %v446_v18 }
  0x74   : > { %449 = vst [vmem:[%s14057_s26 + $0x24c] sm:$0xf] %v448_v19  ;;  %451 = vst [vmem:[%s14057_s26 + $0x250] sm:$0xf] %v450_v20  ;;  %v452_v21 = vld [vmem:[%s14050_s25 + $0xba4] sm:$0xf] }
  0x75   : > { %v454_v22 = vld [vmem:[%s14050_s25 + $0xbb8] sm:$0xf]  ;;  %v456_v23 = vld [vmem:[%s14050_s25 + $0xbcc] sm:$0xf]  ;;  %453 = vst [vmem:[%s14057_s26 + $0x254] sm:$0xf] %v452_v21 }
  0x76   : > { %455 = vst [vmem:[%s14057_s26 + $0x258] sm:$0xf] %v454_v22  ;;  %457 = vst [vmem:[%s14057_s26 + $0x25c] sm:$0xf] %v456_v23  ;;  %v458_v24 = vld [vmem:[%s14050_s25 + $0xbe0] sm:$0xf] }
  0x77   : > { %v460_v25 = vld [vmem:[%s14050_s25 + $0xbf4] sm:$0xf]  ;;  %v462_v26 = vld [vmem:[%s14050_s25 + $0xc08] sm:$0xf]  ;;  %459 = vst [vmem:[%s14057_s26 + $0x260] sm:$0xf] %v458_v24 }
  0x78   : > { %461 = vst [vmem:[%s14057_s26 + $0x264] sm:$0xf] %v460_v25  ;;  %463 = vst [vmem:[%s14057_s26 + $0x268] sm:$0xf] %v462_v26  ;;  %v464_v27 = vld [vmem:[%s14050_s25 + $0xc1c] sm:$0xf] }
  0x79   : > { %v466_v28 = vld [vmem:[%s14050_s25 + $0xc30] sm:$0xf]  ;;  %v468_v29 = vld [vmem:[%s14050_s25 + $0xc44] sm:$0xf]  ;;  %465 = vst [vmem:[%s14057_s26 + $0x26c] sm:$0xf] %v464_v27 }
  0x7a   : > { %467 = vst [vmem:[%s14057_s26 + $0x270] sm:$0xf] %v466_v28  ;;  %469 = vst [vmem:[%s14057_s26 + $0x274] sm:$0xf] %v468_v29  ;;  %v470_v30 = vld [vmem:[%s14050_s25 + $0xc58] sm:$0xf] }
  0x7b   : > { %v472_v31 = vld [vmem:[%s14050_s25 + $0xc6c] sm:$0xf]  ;;  %v474_v32 = vld [vmem:[%s14050_s25 + $0xc80] sm:$0xf]  ;;  %471 = vst [vmem:[%s14057_s26 + $0x278] sm:$0xf] %v470_v30 }
  0x7c   : > { %473 = vst [vmem:[%s14057_s26 + $0x27c] sm:$0xf] %v472_v31  ;;  %475 = vst [vmem:[%s14057_s26 + $0x280] sm:$0xf] %v474_v32  ;;  %v476_v33 = vld [vmem:[%s14050_s25 + $0xc94] sm:$0xf] }
  0x7d   : > { %v478_v34 = vld [vmem:[%s14050_s25 + $0xca8] sm:$0xf]  ;;  %v480_v35 = vld [vmem:[%s14050_s25 + $0xcbc] sm:$0xf]  ;;  %477 = vst [vmem:[%s14057_s26 + $0x284] sm:$0xf] %v476_v33 }
  0x7e   : > { %479 = vst [vmem:[%s14057_s26 + $0x288] sm:$0xf] %v478_v34  ;;  %481 = vst [vmem:[%s14057_s26 + $0x28c] sm:$0xf] %v480_v35  ;;  %v482_v36 = vld [vmem:[%s14050_s25 + $0xcd0] sm:$0xf] }
  0x7f   : > { %v484_v37 = vld [vmem:[%s14050_s25 + $0xce4] sm:$0xf]  ;;  %v486_v38 = vld [vmem:[%s14050_s25 + $0xcf8] sm:$0xf]  ;;  %483 = vst [vmem:[%s14057_s26 + $0x290] sm:$0xf] %v482_v36 }
  0x80   : > { %485 = vst [vmem:[%s14057_s26 + $0x294] sm:$0xf] %v484_v37  ;;  %487 = vst [vmem:[%s14057_s26 + $0x298] sm:$0xf] %v486_v38  ;;  %v488_v39 = vld [vmem:[%s14050_s25 + $0xd0c] sm:$0xf] }
  0x81   : > { %v490_v40 = vld [vmem:[%s14050_s25 + $0xd20] sm:$0xf]  ;;  %v492_v41 = vld [vmem:[%s14050_s25 + $0xd34] sm:$0xf]  ;;  %489 = vst [vmem:[%s14057_s26 + $0x29c] sm:$0xf] %v488_v39 }
  0x82   : > { %491 = vst [vmem:[%s14057_s26 + $0x2a0] sm:$0xf] %v490_v40  ;;  %493 = vst [vmem:[%s14057_s26 + $0x2a4] sm:$0xf] %v492_v41  ;;  %v494_v42 = vld [vmem:[%s14050_s25 + $0xd48] sm:$0xf] }
  0x83   : > { %v496_v43 = vld [vmem:[%s14050_s25 + $0xd5c] sm:$0xf]  ;;  %v498_v44 = vld [vmem:[%s14050_s25 + $0xd70] sm:$0xf]  ;;  %495 = vst [vmem:[%s14057_s26 + $0x2a8] sm:$0xf] %v494_v42 }
  0x84   : > { %497 = vst [vmem:[%s14057_s26 + $0x2ac] sm:$0xf] %v496_v43  ;;  %499 = vst [vmem:[%s14057_s26 + $0x2b0] sm:$0xf] %v498_v44  ;;  %v500_v45 = vld [vmem:[%s14050_s25 + $0xd84] sm:$0xf] }
  0x85   : > { %v502_v46 = vld [vmem:[%s14050_s25 + $0xd98] sm:$0xf]  ;;  %v504_v47 = vld [vmem:[%s14050_s25 + $0xdac] sm:$0xf]  ;;  %501 = vst [vmem:[%s14057_s26 + $0x2b4] sm:$0xf] %v500_v45 }
  0x86   : > { %503 = vst [vmem:[%s14057_s26 + $0x2b8] sm:$0xf] %v502_v46  ;;  %505 = vst [vmem:[%s14057_s26 + $0x2bc] sm:$0xf] %v504_v47  ;;  %v506_v48 = vld [vmem:[%s14050_s25 + $0xdc0] sm:$0xf] }
  0x87   : > { %v508_v49 = vld [vmem:[%s14050_s25 + $0xdd4] sm:$0xf]  ;;  %v510_v50 = vld [vmem:[%s14050_s25 + $0xde8] sm:$0xf]  ;;  %507 = vst [vmem:[%s14057_s26 + $0x2c0] sm:$0xf] %v506_v48 }
  0x88   : > { %509 = vst [vmem:[%s14057_s26 + $0x2c4] sm:$0xf] %v508_v49  ;;  %511 = vst [vmem:[%s14057_s26 + $0x2c8] sm:$0xf] %v510_v50  ;;  %v512_v51 = vld [vmem:[%s14050_s25 + $0xdfc] sm:$0xf] }
  0x89   : > { %v514_v52 = vld [vmem:[%s14050_s25 + $0xe10] sm:$0xf]  ;;  %v516_v53 = vld [vmem:[%s14050_s25 + $0xe24] sm:$0xf]  ;;  %513 = vst [vmem:[%s14057_s26 + $0x2cc] sm:$0xf] %v512_v51 }
  0x8a   : > { %515 = vst [vmem:[%s14057_s26 + $0x2d0] sm:$0xf] %v514_v52  ;;  %517 = vst [vmem:[%s14057_s26 + $0x2d4] sm:$0xf] %v516_v53  ;;  %v518_v54 = vld [vmem:[%s14050_s25 + $0xe38] sm:$0xf] }
  0x8b   : > { %v520_v55 = vld [vmem:[%s14050_s25 + $0xe4c] sm:$0xf]  ;;  %v522_v56 = vld [vmem:[%s14050_s25 + $0xe60] sm:$0xf]  ;;  %519 = vst [vmem:[%s14057_s26 + $0x2d8] sm:$0xf] %v518_v54 }
  0x8c   : > { %521 = vst [vmem:[%s14057_s26 + $0x2dc] sm:$0xf] %v520_v55  ;;  %523 = vst [vmem:[%s14057_s26 + $0x2e0] sm:$0xf] %v522_v56  ;;  %v524_v57 = vld [vmem:[%s14050_s25 + $0xe74] sm:$0xf] }
  0x8d   : > { %v526_v58 = vld [vmem:[%s14050_s25 + $0xe88] sm:$0xf]  ;;  %v528_v59 = vld [vmem:[%s14050_s25 + $0xe9c] sm:$0xf]  ;;  %525 = vst [vmem:[%s14057_s26 + $0x2e4] sm:$0xf] %v524_v57 }
  0x8e   : > { %527 = vst [vmem:[%s14057_s26 + $0x2e8] sm:$0xf] %v526_v58  ;;  %529 = vst [vmem:[%s14057_s26 + $0x2ec] sm:$0xf] %v528_v59  ;;  %v530_v60 = vld [vmem:[%s14050_s25 + $0xeb0] sm:$0xf] }
  0x8f   : > { %v532_v61 = vld [vmem:[%s14050_s25 + $0xec4] sm:$0xf]  ;;  %v534_v62 = vld [vmem:[%s14050_s25 + $0xed8] sm:$0xf]  ;;  %531 = vst [vmem:[%s14057_s26 + $0x2f0] sm:$0xf] %v530_v60 }
  0x90   : > { %533 = vst [vmem:[%s14057_s26 + $0x2f4] sm:$0xf] %v532_v61  ;;  %535 = vst [vmem:[%s14057_s26 + $0x2f8] sm:$0xf] %v534_v62  ;;  %v536_v63 = vld [vmem:[%s14050_s25 + $0xeec] sm:$0xf] }
  0x91   : > { %v538_v0 = vld [vmem:[%s14050_s25 + $0xf00] sm:$0xf]  ;;  %v540_v1 = vld [vmem:[%s14050_s25 + $0xf14] sm:$0xf]  ;;  %537 = vst [vmem:[%s14057_s26 + $0x2fc] sm:$0xf] %v536_v63 }
  0x92   : > { %539 = vst [vmem:[%s14057_s26 + $0x300] sm:$0xf] %v538_v0  ;;  %541 = vst [vmem:[%s14057_s26 + $0x304] sm:$0xf] %v540_v1  ;;  %v542_v2 = vld [vmem:[%s14050_s25 + $0xf28] sm:$0xf] }
  0x93   : > { %v544_v3 = vld [vmem:[%s14050_s25 + $0xf3c] sm:$0xf]  ;;  %v546_v4 = vld [vmem:[%s14050_s25 + $0xf50] sm:$0xf]  ;;  %543 = vst [vmem:[%s14057_s26 + $0x308] sm:$0xf] %v542_v2 }
  0x94   : > { %545 = vst [vmem:[%s14057_s26 + $0x30c] sm:$0xf] %v544_v3  ;;  %547 = vst [vmem:[%s14057_s26 + $0x310] sm:$0xf] %v546_v4  ;;  %v548_v5 = vld [vmem:[%s14050_s25 + $0xf64] sm:$0xf] }
  0x95   : > { %v550_v6 = vld [vmem:[%s14050_s25 + $0xf78] sm:$0xf]  ;;  %v552_v7 = vld [vmem:[%s14050_s25 + $0xf8c] sm:$0xf]  ;;  %549 = vst [vmem:[%s14057_s26 + $0x314] sm:$0xf] %v548_v5 }
  0x96   : > { %551 = vst [vmem:[%s14057_s26 + $0x318] sm:$0xf] %v550_v6  ;;  %553 = vst [vmem:[%s14057_s26 + $0x31c] sm:$0xf] %v552_v7  ;;  %v554_v8 = vld [vmem:[%s14050_s25 + $0xfa0] sm:$0xf] }
  0x97   : > { %v556_v9 = vld [vmem:[%s14050_s25 + $0xfb4] sm:$0xf]  ;;  %v558_v10 = vld [vmem:[%s14050_s25 + $0xfc8] sm:$0xf]  ;;  %555 = vst [vmem:[%s14057_s26 + $0x320] sm:$0xf] %v554_v8 }
  0x98   : > { %557 = vst [vmem:[%s14057_s26 + $0x324] sm:$0xf] %v556_v9  ;;  %559 = vst [vmem:[%s14057_s26 + $0x328] sm:$0xf] %v558_v10  ;;  %v560_v11 = vld [vmem:[%s14050_s25 + $0xfdc] sm:$0xf] }
  0x99   : > { %v562_v12 = vld [vmem:[%s14050_s25 + $0xff0] sm:$0xf]  ;;  %v564_v13 = vld [vmem:[%s14050_s25 + $0x1004] sm:$0xf]  ;;  %561 = vst [vmem:[%s14057_s26 + $0x32c] sm:$0xf] %v560_v11 }
  0x9a   : > { %563 = vst [vmem:[%s14057_s26 + $0x330] sm:$0xf] %v562_v12  ;;  %565 = vst [vmem:[%s14057_s26 + $0x334] sm:$0xf] %v564_v13  ;;  %v566_v14 = vld [vmem:[%s14050_s25 + $0x1018] sm:$0xf] }
  0x9b   : > { %v568_v15 = vld [vmem:[%s14050_s25 + $0x102c] sm:$0xf]  ;;  %v570_v16 = vld [vmem:[%s14050_s25 + $0x1040] sm:$0xf]  ;;  %567 = vst [vmem:[%s14057_s26 + $0x338] sm:$0xf] %v566_v14 }
  0x9c   : > { %569 = vst [vmem:[%s14057_s26 + $0x33c] sm:$0xf] %v568_v15  ;;  %571 = vst [vmem:[%s14057_s26 + $0x340] sm:$0xf] %v570_v16  ;;  %v572_v17 = vld [vmem:[%s14050_s25 + $0x1054] sm:$0xf] }
  0x9d   : > { %v574_v18 = vld [vmem:[%s14050_s25 + $0x1068] sm:$0xf]  ;;  %v576_v19 = vld [vmem:[%s14050_s25 + $0x107c] sm:$0xf]  ;;  %573 = vst [vmem:[%s14057_s26 + $0x344] sm:$0xf] %v572_v17 }
  0x9e   : > { %575 = vst [vmem:[%s14057_s26 + $0x348] sm:$0xf] %v574_v18  ;;  %577 = vst [vmem:[%s14057_s26 + $0x34c] sm:$0xf] %v576_v19  ;;  %v578_v20 = vld [vmem:[%s14050_s25 + $0x1090] sm:$0xf] }
  0x9f   : > { %v580_v21 = vld [vmem:[%s14050_s25 + $0x10a4] sm:$0xf]  ;;  %v582_v22 = vld [vmem:[%s14050_s25 + $0x10b8] sm:$0xf]  ;;  %579 = vst [vmem:[%s14057_s26 + $0x350] sm:$0xf] %v578_v20 }
  0xa0   : > { %581 = vst [vmem:[%s14057_s26 + $0x354] sm:$0xf] %v580_v21  ;;  %583 = vst [vmem:[%s14057_s26 + $0x358] sm:$0xf] %v582_v22  ;;  %v584_v23 = vld [vmem:[%s14050_s25 + $0x10cc] sm:$0xf] }
  0xa1   : > { %v586_v24 = vld [vmem:[%s14050_s25 + $0x10e0] sm:$0xf]  ;;  %v588_v25 = vld [vmem:[%s14050_s25 + $0x10f4] sm:$0xf]  ;;  %585 = vst [vmem:[%s14057_s26 + $0x35c] sm:$0xf] %v584_v23 }
  0xa2   : > { %587 = vst [vmem:[%s14057_s26 + $0x360] sm:$0xf] %v586_v24  ;;  %589 = vst [vmem:[%s14057_s26 + $0x364] sm:$0xf] %v588_v25  ;;  %v590_v26 = vld [vmem:[%s14050_s25 + $0x1108] sm:$0xf] }
  0xa3   : > { %v592_v27 = vld [vmem:[%s14050_s25 + $0x111c] sm:$0xf]  ;;  %v594_v28 = vld [vmem:[%s14050_s25 + $0x1130] sm:$0xf]  ;;  %591 = vst [vmem:[%s14057_s26 + $0x368] sm:$0xf] %v590_v26 }
  0xa4   : > { %593 = vst [vmem:[%s14057_s26 + $0x36c] sm:$0xf] %v592_v27  ;;  %595 = vst [vmem:[%s14057_s26 + $0x370] sm:$0xf] %v594_v28  ;;  %v596_v29 = vld [vmem:[%s14050_s25 + $0x1144] sm:$0xf] }
  0xa5   : > { %v598_v30 = vld [vmem:[%s14050_s25 + $0x1158] sm:$0xf]  ;;  %v600_v31 = vld [vmem:[%s14050_s25 + $0x116c] sm:$0xf]  ;;  %597 = vst [vmem:[%s14057_s26 + $0x374] sm:$0xf] %v596_v29 }
  0xa6   : > { %599 = vst [vmem:[%s14057_s26 + $0x378] sm:$0xf] %v598_v30  ;;  %601 = vst [vmem:[%s14057_s26 + $0x37c] sm:$0xf] %v600_v31  ;;  %v602_v32 = vld [vmem:[%s14050_s25 + $0x1180] sm:$0xf] }
  0xa7   : > { %v604_v33 = vld [vmem:[%s14050_s25 + $0x1194] sm:$0xf]  ;;  %v606_v34 = vld [vmem:[%s14050_s25 + $0x11a8] sm:$0xf]  ;;  %603 = vst [vmem:[%s14057_s26 + $0x380] sm:$0xf] %v602_v32 }
  0xa8   : > { %605 = vst [vmem:[%s14057_s26 + $0x384] sm:$0xf] %v604_v33  ;;  %607 = vst [vmem:[%s14057_s26 + $0x388] sm:$0xf] %v606_v34  ;;  %v608_v35 = vld [vmem:[%s14050_s25 + $0x11bc] sm:$0xf] }
  0xa9   : > { %v610_v36 = vld [vmem:[%s14050_s25 + $0x11d0] sm:$0xf]  ;;  %v612_v37 = vld [vmem:[%s14050_s25 + $0x11e4] sm:$0xf]  ;;  %609 = vst [vmem:[%s14057_s26 + $0x38c] sm:$0xf] %v608_v35 }
  0xaa   : > { %611 = vst [vmem:[%s14057_s26 + $0x390] sm:$0xf] %v610_v36  ;;  %613 = vst [vmem:[%s14057_s26 + $0x394] sm:$0xf] %v612_v37  ;;  %v614_v38 = vld [vmem:[%s14050_s25 + $0x11f8] sm:$0xf] }
  0xab   : > { %v616_v39 = vld [vmem:[%s14050_s25 + $0x120c] sm:$0xf]  ;;  %v618_v40 = vld [vmem:[%s14050_s25 + $0x1220] sm:$0xf]  ;;  %615 = vst [vmem:[%s14057_s26 + $0x398] sm:$0xf] %v614_v38 }
  0xac   : > { %617 = vst [vmem:[%s14057_s26 + $0x39c] sm:$0xf] %v616_v39  ;;  %619 = vst [vmem:[%s14057_s26 + $0x3a0] sm:$0xf] %v618_v40  ;;  %v620_v41 = vld [vmem:[%s14050_s25 + $0x1234] sm:$0xf] }
  0xad   : > { %v622_v42 = vld [vmem:[%s14050_s25 + $0x1248] sm:$0xf]  ;;  %v624_v43 = vld [vmem:[%s14050_s25 + $0x125c] sm:$0xf]  ;;  %621 = vst [vmem:[%s14057_s26 + $0x3a4] sm:$0xf] %v620_v41 }
  0xae   : > { %623 = vst [vmem:[%s14057_s26 + $0x3a8] sm:$0xf] %v622_v42  ;;  %625 = vst [vmem:[%s14057_s26 + $0x3ac] sm:$0xf] %v624_v43  ;;  %v626_v44 = vld [vmem:[%s14050_s25 + $0x1270] sm:$0xf] }
  0xaf   : > { %v628_v45 = vld [vmem:[%s14050_s25 + $0x1284] sm:$0xf]  ;;  %v630_v46 = vld [vmem:[%s14050_s25 + $0x1298] sm:$0xf]  ;;  %627 = vst [vmem:[%s14057_s26 + $0x3b0] sm:$0xf] %v626_v44 }
  0xb0   : > { %629 = vst [vmem:[%s14057_s26 + $0x3b4] sm:$0xf] %v628_v45  ;;  %631 = vst [vmem:[%s14057_s26 + $0x3b8] sm:$0xf] %v630_v46  ;;  %v632_v47 = vld [vmem:[%s14050_s25 + $0x12ac] sm:$0xf] }
  0xb1   : > { %v634_v48 = vld [vmem:[%s14050_s25 + $0x12c0] sm:$0xf]  ;;  %v636_v49 = vld [vmem:[%s14050_s25 + $0x12d4] sm:$0xf]  ;;  %633 = vst [vmem:[%s14057_s26 + $0x3bc] sm:$0xf] %v632_v47 }
  0xb2   : > { %635 = vst [vmem:[%s14057_s26 + $0x3c0] sm:$0xf] %v634_v48  ;;  %637 = vst [vmem:[%s14057_s26 + $0x3c4] sm:$0xf] %v636_v49  ;;  %v638_v50 = vld [vmem:[%s14050_s25 + $0x12e8] sm:$0xf] }
  0xb3   : > { %v640_v51 = vld [vmem:[%s14050_s25 + $0x12fc] sm:$0xf]  ;;  %v642_v52 = vld [vmem:[%s14050_s25 + $0x1310] sm:$0xf]  ;;  %639 = vst [vmem:[%s14057_s26 + $0x3c8] sm:$0xf] %v638_v50 }
  0xb4   : > { %641 = vst [vmem:[%s14057_s26 + $0x3cc] sm:$0xf] %v640_v51  ;;  %643 = vst [vmem:[%s14057_s26 + $0x3d0] sm:$0xf] %v642_v52  ;;  %v644_v53 = vld [vmem:[%s14050_s25 + $0x1324] sm:$0xf] }
  0xb5   : > { %v646_v54 = vld [vmem:[%s14050_s25 + $0x1338] sm:$0xf]  ;;  %v648_v55 = vld [vmem:[%s14050_s25 + $0x134c] sm:$0xf]  ;;  %645 = vst [vmem:[%s14057_s26 + $0x3d4] sm:$0xf] %v644_v53 }
  0xb6   : > { %647 = vst [vmem:[%s14057_s26 + $0x3d8] sm:$0xf] %v646_v54  ;;  %649 = vst [vmem:[%s14057_s26 + $0x3dc] sm:$0xf] %v648_v55  ;;  %v650_v56 = vld [vmem:[%s14050_s25 + $0x1360] sm:$0xf] }
  0xb7   : > { %v652_v57 = vld [vmem:[%s14050_s25 + $0x1374] sm:$0xf]  ;;  %v654_v58 = vld [vmem:[%s14050_s25 + $0x1388] sm:$0xf]  ;;  %651 = vst [vmem:[%s14057_s26 + $0x3e0] sm:$0xf] %v650_v56 }
  0xb8   : > { %653 = vst [vmem:[%s14057_s26 + $0x3e4] sm:$0xf] %v652_v57  ;;  %655 = vst [vmem:[%s14057_s26 + $0x3e8] sm:$0xf] %v654_v58  ;;  %v656_v59 = vld [vmem:[%s14050_s25 + $0x139c] sm:$0xf] }
  0xb9   : > { %v658_v60 = vld [vmem:[%s14050_s25 + $0x13b0] sm:$0xf]  ;;  %v660_v61 = vld [vmem:[%s14050_s25 + $0x13c4] sm:$0xf]  ;;  %657 = vst [vmem:[%s14057_s26 + $0x3ec] sm:$0xf] %v656_v59 }
  0xba   : > { %659 = vst [vmem:[%s14057_s26 + $0x3f0] sm:$0xf] %v658_v60  ;;  %661 = vst [vmem:[%s14057_s26 + $0x3f4] sm:$0xf] %v660_v61  ;;  %v662_v62 = vld [vmem:[%s14050_s25 + $0x13d8] sm:$0xf] }
  0xbb   : > { %v664_v63 = vld [vmem:[%s14050_s25 + $0x13ec] sm:$0xf]  ;;  %v666_v0 = vld [vmem:[%s14050_s25 + $0x1400] sm:$0xf]  ;;  %663 = vst [vmem:[%s14057_s26 + $0x3f8] sm:$0xf] %v662_v62 }
  0xbc   : > { %665 = vst [vmem:[%s14057_s26 + $0x3fc] sm:$0xf] %v664_v63  ;;  %667 = vst [vmem:[%s14057_s26 + $0x400] sm:$0xf] %v666_v0  ;;  %v668_v1 = vld [vmem:[%s14050_s25 + $0x1414] sm:$0xf] }
  0xbd   : > { %v670_v2 = vld [vmem:[%s14050_s25 + $0x1428] sm:$0xf]  ;;  %v672_v3 = vld [vmem:[%s14050_s25 + $0x143c] sm:$0xf]  ;;  %669 = vst [vmem:[%s14057_s26 + $0x404] sm:$0xf] %v668_v1 }
  0xbe   : > { %671 = vst [vmem:[%s14057_s26 + $0x408] sm:$0xf] %v670_v2  ;;  %673 = vst [vmem:[%s14057_s26 + $0x40c] sm:$0xf] %v672_v3  ;;  %v674_v4 = vld [vmem:[%s14050_s25 + $0x1450] sm:$0xf] }
  0xbf   : > { %v676_v5 = vld [vmem:[%s14050_s25 + $0x1464] sm:$0xf]  ;;  %v678_v6 = vld [vmem:[%s14050_s25 + $0x1478] sm:$0xf]  ;;  %675 = vst [vmem:[%s14057_s26 + $0x410] sm:$0xf] %v674_v4 }
  0xc0   : > { %677 = vst [vmem:[%s14057_s26 + $0x414] sm:$0xf] %v676_v5  ;;  %679 = vst [vmem:[%s14057_s26 + $0x418] sm:$0xf] %v678_v6  ;;  %v680_v7 = vld [vmem:[%s14050_s25 + $0x148c] sm:$0xf] }
  0xc1   : > { %v682_v8 = vld [vmem:[%s14050_s25 + $0x14a0] sm:$0xf]  ;;  %v684_v9 = vld [vmem:[%s14050_s25 + $0x14b4] sm:$0xf]  ;;  %681 = vst [vmem:[%s14057_s26 + $0x41c] sm:$0xf] %v680_v7 }
  0xc2   : > { %683 = vst [vmem:[%s14057_s26 + $0x420] sm:$0xf] %v682_v8  ;;  %685 = vst [vmem:[%s14057_s26 + $0x424] sm:$0xf] %v684_v9  ;;  %v686_v10 = vld [vmem:[%s14050_s25 + $0x14c8] sm:$0xf] }
  0xc3   : > { %v688_v11 = vld [vmem:[%s14050_s25 + $0x14dc] sm:$0xf]  ;;  %v690_v12 = vld [vmem:[%s14050_s25 + $0x14f0] sm:$0xf]  ;;  %687 = vst [vmem:[%s14057_s26 + $0x428] sm:$0xf] %v686_v10 }
  0xc4   : > { %689 = vst [vmem:[%s14057_s26 + $0x42c] sm:$0xf] %v688_v11  ;;  %691 = vst [vmem:[%s14057_s26 + $0x430] sm:$0xf] %v690_v12  ;;  %v692_v13 = vld [vmem:[%s14050_s25 + $0x1504] sm:$0xf] }
  0xc5   : > { %v694_v14 = vld [vmem:[%s14050_s25 + $0x1518] sm:$0xf]  ;;  %v696_v15 = vld [vmem:[%s14050_s25 + $0x152c] sm:$0xf]  ;;  %693 = vst [vmem:[%s14057_s26 + $0x434] sm:$0xf] %v692_v13 }
  0xc6   : > { %695 = vst [vmem:[%s14057_s26 + $0x438] sm:$0xf] %v694_v14  ;;  %697 = vst [vmem:[%s14057_s26 + $0x43c] sm:$0xf] %v696_v15  ;;  %v698_v16 = vld [vmem:[%s14050_s25 + $0x1540] sm:$0xf] }
  0xc7   : > { %v700_v17 = vld [vmem:[%s14050_s25 + $0x1554] sm:$0xf]  ;;  %v702_v18 = vld [vmem:[%s14050_s25 + $0x1568] sm:$0xf]  ;;  %699 = vst [vmem:[%s14057_s26 + $0x440] sm:$0xf] %v698_v16 }
  0xc8   : > { %701 = vst [vmem:[%s14057_s26 + $0x444] sm:$0xf] %v700_v17  ;;  %703 = vst [vmem:[%s14057_s26 + $0x448] sm:$0xf] %v702_v18  ;;  %v704_v19 = vld [vmem:[%s14050_s25 + $0x157c] sm:$0xf] }
  0xc9   : > { %v706_v20 = vld [vmem:[%s14050_s25 + $0x1590] sm:$0xf]  ;;  %v708_v21 = vld [vmem:[%s14050_s25 + $0x15a4] sm:$0xf]  ;;  %705 = vst [vmem:[%s14057_s26 + $0x44c] sm:$0xf] %v704_v19 }
  0xca   : > { %707 = vst [vmem:[%s14057_s26 + $0x450] sm:$0xf] %v706_v20  ;;  %709 = vst [vmem:[%s14057_s26 + $0x454] sm:$0xf] %v708_v21  ;;  %v710_v22 = vld [vmem:[%s14050_s25 + $0x15b8] sm:$0xf] }
  0xcb   : > { %v712_v23 = vld [vmem:[%s14050_s25 + $0x15cc] sm:$0xf]  ;;  %v714_v24 = vld [vmem:[%s14050_s25 + $0x15e0] sm:$0xf]  ;;  %711 = vst [vmem:[%s14057_s26 + $0x458] sm:$0xf] %v710_v22 }
  0xcc   : > { %713 = vst [vmem:[%s14057_s26 + $0x45c] sm:$0xf] %v712_v23  ;;  %715 = vst [vmem:[%s14057_s26 + $0x460] sm:$0xf] %v714_v24  ;;  %v716_v25 = vld [vmem:[%s14050_s25 + $0x15f4] sm:$0xf] }
  0xcd   : > { %v718_v26 = vld [vmem:[%s14050_s25 + $0x1608] sm:$0xf]  ;;  %v720_v27 = vld [vmem:[%s14050_s25 + $0x161c] sm:$0xf]  ;;  %717 = vst [vmem:[%s14057_s26 + $0x464] sm:$0xf] %v716_v25 }
  0xce   : > { %719 = vst [vmem:[%s14057_s26 + $0x468] sm:$0xf] %v718_v26  ;;  %721 = vst [vmem:[%s14057_s26 + $0x46c] sm:$0xf] %v720_v27  ;;  %v722_v28 = vld [vmem:[%s14050_s25 + $0x1630] sm:$0xf] }
  0xcf   : > { %v724_v29 = vld [vmem:[%s14050_s25 + $0x1644] sm:$0xf]  ;;  %v726_v30 = vld [vmem:[%s14050_s25 + $0x1658] sm:$0xf]  ;;  %723 = vst [vmem:[%s14057_s26 + $0x470] sm:$0xf] %v722_v28 }
  0xd0   : > { %725 = vst [vmem:[%s14057_s26 + $0x474] sm:$0xf] %v724_v29  ;;  %727 = vst [vmem:[%s14057_s26 + $0x478] sm:$0xf] %v726_v30  ;;  %v728_v31 = vld [vmem:[%s14050_s25 + $0x166c] sm:$0xf] }
  0xd1   : > { %v730_v32 = vld [vmem:[%s14050_s25 + $0x1680] sm:$0xf]  ;;  %v732_v33 = vld [vmem:[%s14050_s25 + $0x1694] sm:$0xf]  ;;  %729 = vst [vmem:[%s14057_s26 + $0x47c] sm:$0xf] %v728_v31 }
  0xd2   : > { %731 = vst [vmem:[%s14057_s26 + $0x480] sm:$0xf] %v730_v32  ;;  %733 = vst [vmem:[%s14057_s26 + $0x484] sm:$0xf] %v732_v33  ;;  %v734_v34 = vld [vmem:[%s14050_s25 + $0x16a8] sm:$0xf] }
  0xd3   : > { %v736_v35 = vld [vmem:[%s14050_s25 + $0x16bc] sm:$0xf]  ;;  %v738_v36 = vld [vmem:[%s14050_s25 + $0x16d0] sm:$0xf]  ;;  %735 = vst [vmem:[%s14057_s26 + $0x488] sm:$0xf] %v734_v34 }
  0xd4   : > { %737 = vst [vmem:[%s14057_s26 + $0x48c] sm:$0xf] %v736_v35  ;;  %739 = vst [vmem:[%s14057_s26 + $0x490] sm:$0xf] %v738_v36  ;;  %v740_v37 = vld [vmem:[%s14050_s25 + $0x16e4] sm:$0xf] }
  0xd5   : > { %v742_v38 = vld [vmem:[%s14050_s25 + $0x16f8] sm:$0xf]  ;;  %v744_v39 = vld [vmem:[%s14050_s25 + $0x170c] sm:$0xf]  ;;  %741 = vst [vmem:[%s14057_s26 + $0x494] sm:$0xf] %v740_v37 }
  0xd6   : > { %743 = vst [vmem:[%s14057_s26 + $0x498] sm:$0xf] %v742_v38  ;;  %745 = vst [vmem:[%s14057_s26 + $0x49c] sm:$0xf] %v744_v39  ;;  %v746_v40 = vld [vmem:[%s14050_s25 + $0x1720] sm:$0xf] }
  0xd7   : > { %v748_v41 = vld [vmem:[%s14050_s25 + $0x1734] sm:$0xf]  ;;  %v750_v42 = vld [vmem:[%s14050_s25 + $0x1748] sm:$0xf]  ;;  %747 = vst [vmem:[%s14057_s26 + $0x4a0] sm:$0xf] %v746_v40 }
  0xd8   : > { %749 = vst [vmem:[%s14057_s26 + $0x4a4] sm:$0xf] %v748_v41  ;;  %751 = vst [vmem:[%s14057_s26 + $0x4a8] sm:$0xf] %v750_v42  ;;  %v752_v43 = vld [vmem:[%s14050_s25 + $0x175c] sm:$0xf] }
  0xd9   : > { %v754_v44 = vld [vmem:[%s14050_s25 + $0x1770] sm:$0xf]  ;;  %v756_v45 = vld [vmem:[%s14050_s25 + $0x1784] sm:$0xf]  ;;  %753 = vst [vmem:[%s14057_s26 + $0x4ac] sm:$0xf] %v752_v43 }
  0xda   : > { %755 = vst [vmem:[%s14057_s26 + $0x4b0] sm:$0xf] %v754_v44  ;;  %757 = vst [vmem:[%s14057_s26 + $0x4b4] sm:$0xf] %v756_v45  ;;  %v758_v46 = vld [vmem:[%s14050_s25 + $0x1798] sm:$0xf] }
  0xdb   : > { %v760_v47 = vld [vmem:[%s14050_s25 + $0x17ac] sm:$0xf]  ;;  %v762_v48 = vld [vmem:[%s14050_s25 + $0x17c0] sm:$0xf]  ;;  %759 = vst [vmem:[%s14057_s26 + $0x4b8] sm:$0xf] %v758_v46 }
  0xdc   : > { %761 = vst [vmem:[%s14057_s26 + $0x4bc] sm:$0xf] %v760_v47  ;;  %763 = vst [vmem:[%s14057_s26 + $0x4c0] sm:$0xf] %v762_v48  ;;  %v764_v49 = vld [vmem:[%s14050_s25 + $0x17d4] sm:$0xf] }
  0xdd   : > { %v766_v50 = vld [vmem:[%s14050_s25 + $0x17e8] sm:$0xf]  ;;  %v768_v51 = vld [vmem:[%s14050_s25 + $0x17fc] sm:$0xf]  ;;  %765 = vst [vmem:[%s14057_s26 + $0x4c4] sm:$0xf] %v764_v49 }
  0xde   : > { %767 = vst [vmem:[%s14057_s26 + $0x4c8] sm:$0xf] %v766_v50  ;;  %769 = vst [vmem:[%s14057_s26 + $0x4cc] sm:$0xf] %v768_v51  ;;  %v770_v52 = vld [vmem:[%s14050_s25 + $0x1810] sm:$0xf] }
  0xdf   : > { %v772_v53 = vld [vmem:[%s14050_s25 + $0x1824] sm:$0xf]  ;;  %v774_v54 = vld [vmem:[%s14050_s25 + $0x1838] sm:$0xf]  ;;  %771 = vst [vmem:[%s14057_s26 + $0x4d0] sm:$0xf] %v770_v52 }
  0xe0   : > { %773 = vst [vmem:[%s14057_s26 + $0x4d4] sm:$0xf] %v772_v53  ;;  %775 = vst [vmem:[%s14057_s26 + $0x4d8] sm:$0xf] %v774_v54  ;;  %v776_v55 = vld [vmem:[%s14050_s25 + $0x184c] sm:$0xf] }
  0xe1   : > { %v778_v56 = vld [vmem:[%s14050_s25 + $0x1860] sm:$0xf]  ;;  %v780_v57 = vld [vmem:[%s14050_s25 + $0x1874] sm:$0xf]  ;;  %777 = vst [vmem:[%s14057_s26 + $0x4dc] sm:$0xf] %v776_v55 }
  0xe2   : > { %779 = vst [vmem:[%s14057_s26 + $0x4e0] sm:$0xf] %v778_v56  ;;  %781 = vst [vmem:[%s14057_s26 + $0x4e4] sm:$0xf] %v780_v57  ;;  %v782_v58 = vld [vmem:[%s14050_s25 + $0x1888] sm:$0xf] }
  0xe3   : > { %v784_v59 = vld [vmem:[%s14050_s25 + $0x189c] sm:$0xf]  ;;  %v786_v60 = vld [vmem:[%s14050_s25 + $0x18b0] sm:$0xf]  ;;  %783 = vst [vmem:[%s14057_s26 + $0x4e8] sm:$0xf] %v782_v58 }
  0xe4   : > { %785 = vst [vmem:[%s14057_s26 + $0x4ec] sm:$0xf] %v784_v59  ;;  %787 = vst [vmem:[%s14057_s26 + $0x4f0] sm:$0xf] %v786_v60  ;;  %v788_v61 = vld [vmem:[%s14050_s25 + $0x18c4] sm:$0xf] }
  0xe5   : > { %v790_v62 = vld [vmem:[%s14050_s25 + $0x18d8] sm:$0xf]  ;;  %v792_v63 = vld [vmem:[%s14050_s25 + $0x18ec] sm:$0xf]  ;;  %789 = vst [vmem:[%s14057_s26 + $0x4f4] sm:$0xf] %v788_v61 }
  0xe6   : > { %791 = vst [vmem:[%s14057_s26 + $0x4f8] sm:$0xf] %v790_v62  ;;  %793 = vst [vmem:[%s14057_s26 + $0x4fc] sm:$0xf] %v792_v63  ;;  %v794_v0 = vld [vmem:[%s14050_s25 + $0x1900] sm:$0xf] }
  0xe7   : > { %v796_v1 = vld [vmem:[%s14050_s25 + $0x1914] sm:$0xf]  ;;  %v798_v2 = vld [vmem:[%s14050_s25 + $0x1928] sm:$0xf]  ;;  %795 = vst [vmem:[%s14057_s26 + $0x500] sm:$0xf] %v794_v0 }
  0xe8   : > { %797 = vst [vmem:[%s14057_s26 + $0x504] sm:$0xf] %v796_v1  ;;  %799 = vst [vmem:[%s14057_s26 + $0x508] sm:$0xf] %v798_v2  ;;  %v800_v3 = vld [vmem:[%s14050_s25 + $0x193c] sm:$0xf] }
  0xe9   : > { %v802_v4 = vld [vmem:[%s14050_s25 + $0x1950] sm:$0xf]  ;;  %v804_v5 = vld [vmem:[%s14050_s25 + $0x1964] sm:$0xf]  ;;  %801 = vst [vmem:[%s14057_s26 + $0x50c] sm:$0xf] %v800_v3 }
  0xea   : > { %803 = vst [vmem:[%s14057_s26 + $0x510] sm:$0xf] %v802_v4  ;;  %805 = vst [vmem:[%s14057_s26 + $0x514] sm:$0xf] %v804_v5  ;;  %v806_v6 = vld [vmem:[%s14050_s25 + $0x1978] sm:$0xf] }
  0xeb   : > { %v808_v7 = vld [vmem:[%s14050_s25 + $0x198c] sm:$0xf]  ;;  %v810_v8 = vld [vmem:[%s14050_s25 + $0x19a0] sm:$0xf]  ;;  %807 = vst [vmem:[%s14057_s26 + $0x518] sm:$0xf] %v806_v6 }
  0xec   : > { %809 = vst [vmem:[%s14057_s26 + $0x51c] sm:$0xf] %v808_v7  ;;  %811 = vst [vmem:[%s14057_s26 + $0x520] sm:$0xf] %v810_v8  ;;  %v812_v9 = vld [vmem:[%s14050_s25 + $0x19b4] sm:$0xf] }
  0xed   : > { %v814_v10 = vld [vmem:[%s14050_s25 + $0x19c8] sm:$0xf]  ;;  %v816_v11 = vld [vmem:[%s14050_s25 + $0x19dc] sm:$0xf]  ;;  %813 = vst [vmem:[%s14057_s26 + $0x524] sm:$0xf] %v812_v9 }
  0xee   : > { %815 = vst [vmem:[%s14057_s26 + $0x528] sm:$0xf] %v814_v10  ;;  %817 = vst [vmem:[%s14057_s26 + $0x52c] sm:$0xf] %v816_v11  ;;  %v818_v12 = vld [vmem:[%s14050_s25 + $0x19f0] sm:$0xf] }
  0xef   : > { %v820_v13 = vld [vmem:[%s14050_s25 + $0x1a04] sm:$0xf]  ;;  %v822_v14 = vld [vmem:[%s14050_s25 + $0x1a18] sm:$0xf]  ;;  %819 = vst [vmem:[%s14057_s26 + $0x530] sm:$0xf] %v818_v12 }
  0xf0   : > { %821 = vst [vmem:[%s14057_s26 + $0x534] sm:$0xf] %v820_v13  ;;  %823 = vst [vmem:[%s14057_s26 + $0x538] sm:$0xf] %v822_v14  ;;  %v824_v15 = vld [vmem:[%s14050_s25 + $0x1a2c] sm:$0xf] }
  0xf1   : > { %v826_v16 = vld [vmem:[%s14050_s25 + $0x1a40] sm:$0xf]  ;;  %v828_v17 = vld [vmem:[%s14050_s25 + $0x1a54] sm:$0xf]  ;;  %825 = vst [vmem:[%s14057_s26 + $0x53c] sm:$0xf] %v824_v15 }
  0xf2   : > { %827 = vst [vmem:[%s14057_s26 + $0x540] sm:$0xf] %v826_v16  ;;  %829 = vst [vmem:[%s14057_s26 + $0x544] sm:$0xf] %v828_v17  ;;  %v830_v18 = vld [vmem:[%s14050_s25 + $0x1a68] sm:$0xf] }
  0xf3   : > { %v832_v19 = vld [vmem:[%s14050_s25 + $0x1a7c] sm:$0xf]  ;;  %v834_v20 = vld [vmem:[%s14050_s25 + $0x1a90] sm:$0xf]  ;;  %831 = vst [vmem:[%s14057_s26 + $0x548] sm:$0xf] %v830_v18 }
  0xf4   : > { %833 = vst [vmem:[%s14057_s26 + $0x54c] sm:$0xf] %v832_v19  ;;  %835 = vst [vmem:[%s14057_s26 + $0x550] sm:$0xf] %v834_v20  ;;  %v836_v21 = vld [vmem:[%s14050_s25 + $0x1aa4] sm:$0xf] }
  0xf5   : > { %v838_v22 = vld [vmem:[%s14050_s25 + $0x1ab8] sm:$0xf]  ;;  %v840_v23 = vld [vmem:[%s14050_s25 + $0x1acc] sm:$0xf]  ;;  %837 = vst [vmem:[%s14057_s26 + $0x554] sm:$0xf] %v836_v21 }
  0xf6   : > { %839 = vst [vmem:[%s14057_s26 + $0x558] sm:$0xf] %v838_v22  ;;  %841 = vst [vmem:[%s14057_s26 + $0x55c] sm:$0xf] %v840_v23  ;;  %v842_v24 = vld [vmem:[%s14050_s25 + $0x1ae0] sm:$0xf] }
  0xf7   : > { %v844_v25 = vld [vmem:[%s14050_s25 + $0x1af4] sm:$0xf]  ;;  %v846_v26 = vld [vmem:[%s14050_s25 + $0x1b08] sm:$0xf]  ;;  %843 = vst [vmem:[%s14057_s26 + $0x560] sm:$0xf] %v842_v24 }
  0xf8   : > { %845 = vst [vmem:[%s14057_s26 + $0x564] sm:$0xf] %v844_v25  ;;  %847 = vst [vmem:[%s14057_s26 + $0x568] sm:$0xf] %v846_v26  ;;  %v848_v27 = vld [vmem:[%s14050_s25 + $0x1b1c] sm:$0xf] }
  0xf9   : > { %v850_v28 = vld [vmem:[%s14050_s25 + $0x1b30] sm:$0xf]  ;;  %v852_v29 = vld [vmem:[%s14050_s25 + $0x1b44] sm:$0xf]  ;;  %849 = vst [vmem:[%s14057_s26 + $0x56c] sm:$0xf] %v848_v27 }
  0xfa   : > { %851 = vst [vmem:[%s14057_s26 + $0x570] sm:$0xf] %v850_v28  ;;  %853 = vst [vmem:[%s14057_s26 + $0x574] sm:$0xf] %v852_v29  ;;  %v854_v30 = vld [vmem:[%s14050_s25 + $0x1b58] sm:$0xf] }
  0xfb   : > { %v856_v31 = vld [vmem:[%s14050_s25 + $0x1b6c] sm:$0xf]  ;;  %v858_v32 = vld [vmem:[%s14050_s25 + $0x1b80] sm:$0xf]  ;;  %855 = vst [vmem:[%s14057_s26 + $0x578] sm:$0xf] %v854_v30 }
  0xfc   : > { %857 = vst [vmem:[%s14057_s26 + $0x57c] sm:$0xf] %v856_v31  ;;  %859 = vst [vmem:[%s14057_s26 + $0x580] sm:$0xf] %v858_v32  ;;  %v860_v33 = vld [vmem:[%s14050_s25 + $0x1b94] sm:$0xf] }
  0xfd   : > { %v862_v34 = vld [vmem:[%s14050_s25 + $0x1ba8] sm:$0xf]  ;;  %v864_v35 = vld [vmem:[%s14050_s25 + $0x1bbc] sm:$0xf]  ;;  %861 = vst [vmem:[%s14057_s26 + $0x584] sm:$0xf] %v860_v33 }
  0xfe   : > { %863 = vst [vmem:[%s14057_s26 + $0x588] sm:$0xf] %v862_v34  ;;  %865 = vst [vmem:[%s14057_s26 + $0x58c] sm:$0xf] %v864_v35  ;;  %v866_v36 = vld [vmem:[%s14050_s25 + $0x1bd0] sm:$0xf] }
  0xff   : > { %v868_v37 = vld [vmem:[%s14050_s25 + $0x1be4] sm:$0xf]  ;;  %v870_v38 = vld [vmem:[%s14050_s25 + $0x1bf8] sm:$0xf]  ;;  %867 = vst [vmem:[%s14057_s26 + $0x590] sm:$0xf] %v866_v36 }
 0x100   : > { %869 = vst [vmem:[%s14057_s26 + $0x594] sm:$0xf] %v868_v37  ;;  %871 = vst [vmem:[%s14057_s26 + $0x598] sm:$0xf] %v870_v38  ;;  %v872_v39 = vld [vmem:[%s14050_s25 + $0x1c0c] sm:$0xf] }
 0x101   : > { %v874_v40 = vld [vmem:[%s14050_s25 + $0x1c20] sm:$0xf]  ;;  %v876_v41 = vld [vmem:[%s14050_s25 + $0x1c34] sm:$0xf]  ;;  %873 = vst [vmem:[%s14057_s26 + $0x59c] sm:$0xf] %v872_v39 }
 0x102   : > { %875 = vst [vmem:[%s14057_s26 + $0x5a0] sm:$0xf] %v874_v40  ;;  %877 = vst [vmem:[%s14057_s26 + $0x5a4] sm:$0xf] %v876_v41  ;;  %v878_v42 = vld [vmem:[%s14050_s25 + $0x1c48] sm:$0xf] }
 0x103   : > { %v880_v43 = vld [vmem:[%s14050_s25 + $0x1c5c] sm:$0xf]  ;;  %v882_v44 = vld [vmem:[%s14050_s25 + $0x1c70] sm:$0xf]  ;;  %879 = vst [vmem:[%s14057_s26 + $0x5a8] sm:$0xf] %v878_v42 }
 0x104   : > { %881 = vst [vmem:[%s14057_s26 + $0x5ac] sm:$0xf] %v880_v43  ;;  %883 = vst [vmem:[%s14057_s26 + $0x5b0] sm:$0xf] %v882_v44  ;;  %v884_v45 = vld [vmem:[%s14050_s25 + $0x1c84] sm:$0xf] }
 0x105   : > { %v886_v46 = vld [vmem:[%s14050_s25 + $0x1c98] sm:$0xf]  ;;  %v888_v47 = vld [vmem:[%s14050_s25 + $0x1cac] sm:$0xf]  ;;  %885 = vst [vmem:[%s14057_s26 + $0x5b4] sm:$0xf] %v884_v45 }
 0x106   : > { %887 = vst [vmem:[%s14057_s26 + $0x5b8] sm:$0xf] %v886_v46  ;;  %889 = vst [vmem:[%s14057_s26 + $0x5bc] sm:$0xf] %v888_v47  ;;  %v890_v48 = vld [vmem:[%s14050_s25 + $0x1cc0] sm:$0xf] }
 0x107   : > { %v892_v49 = vld [vmem:[%s14050_s25 + $0x1cd4] sm:$0xf]  ;;  %v894_v50 = vld [vmem:[%s14050_s25 + $0x1ce8] sm:$0xf]  ;;  %891 = vst [vmem:[%s14057_s26 + $0x5c0] sm:$0xf] %v890_v48 }
 0x108   : > { %893 = vst [vmem:[%s14057_s26 + $0x5c4] sm:$0xf] %v892_v49  ;;  %895 = vst [vmem:[%s14057_s26 + $0x5c8] sm:$0xf] %v894_v50  ;;  %v896_v51 = vld [vmem:[%s14050_s25 + $0x1cfc] sm:$0xf] }
 0x109   : > { %v898_v52 = vld [vmem:[%s14050_s25 + $0x1d10] sm:$0xf]  ;;  %v900_v53 = vld [vmem:[%s14050_s25 + $0x1d24] sm:$0xf]  ;;  %897 = vst [vmem:[%s14057_s26 + $0x5cc] sm:$0xf] %v896_v51 }
 0x10a   : > { %899 = vst [vmem:[%s14057_s26 + $0x5d0] sm:$0xf] %v898_v52  ;;  %901 = vst [vmem:[%s14057_s26 + $0x5d4] sm:$0xf] %v900_v53  ;;  %v902_v54 = vld [vmem:[%s14050_s25 + $0x1d38] sm:$0xf] }
 0x10b   : > { %v904_v55 = vld [vmem:[%s14050_s25 + $0x1d4c] sm:$0xf]  ;;  %v906_v56 = vld [vmem:[%s14050_s25 + $0x1d60] sm:$0xf]  ;;  %903 = vst [vmem:[%s14057_s26 + $0x5d8] sm:$0xf] %v902_v54 }
 0x10c   : > { %905 = vst [vmem:[%s14057_s26 + $0x5dc] sm:$0xf] %v904_v55  ;;  %907 = vst [vmem:[%s14057_s26 + $0x5e0] sm:$0xf] %v906_v56  ;;  %v908_v57 = vld [vmem:[%s14050_s25 + $0x1d74] sm:$0xf] }
 0x10d   : > { %v910_v58 = vld [vmem:[%s14050_s25 + $0x1d88] sm:$0xf]  ;;  %v912_v59 = vld [vmem:[%s14050_s25 + $0x1d9c] sm:$0xf]  ;;  %909 = vst [vmem:[%s14057_s26 + $0x5e4] sm:$0xf] %v908_v57 }
 0x10e   : > { %911 = vst [vmem:[%s14057_s26 + $0x5e8] sm:$0xf] %v910_v58  ;;  %913 = vst [vmem:[%s14057_s26 + $0x5ec] sm:$0xf] %v912_v59  ;;  %v914_v60 = vld [vmem:[%s14050_s25 + $0x1db0] sm:$0xf] }
 0x10f   : > { %v916_v61 = vld [vmem:[%s14050_s25 + $0x1dc4] sm:$0xf]  ;;  %v918_v62 = vld [vmem:[%s14050_s25 + $0x1dd8] sm:$0xf]  ;;  %915 = vst [vmem:[%s14057_s26 + $0x5f0] sm:$0xf] %v914_v60 }
 0x110   : > { %917 = vst [vmem:[%s14057_s26 + $0x5f4] sm:$0xf] %v916_v61  ;;  %919 = vst [vmem:[%s14057_s26 + $0x5f8] sm:$0xf] %v918_v62  ;;  %v920_v63 = vld [vmem:[%s14050_s25 + $0x1dec] sm:$0xf] }
 0x111   : > { %v922_v0 = vld [vmem:[%s14050_s25 + $0x1e00] sm:$0xf]  ;;  %v924_v1 = vld [vmem:[%s14050_s25 + $0x1e14] sm:$0xf]  ;;  %921 = vst [vmem:[%s14057_s26 + $0x5fc] sm:$0xf] %v920_v63 }
 0x112   : > { %923 = vst [vmem:[%s14057_s26 + $0x600] sm:$0xf] %v922_v0  ;;  %925 = vst [vmem:[%s14057_s26 + $0x604] sm:$0xf] %v924_v1  ;;  %v926_v2 = vld [vmem:[%s14050_s25 + $0x1e28] sm:$0xf] }
 0x113   : > { %v928_v3 = vld [vmem:[%s14050_s25 + $0x1e3c] sm:$0xf]  ;;  %v930_v4 = vld [vmem:[%s14050_s25 + $0x1e50] sm:$0xf]  ;;  %927 = vst [vmem:[%s14057_s26 + $0x608] sm:$0xf] %v926_v2 }
 0x114   : > { %929 = vst [vmem:[%s14057_s26 + $0x60c] sm:$0xf] %v928_v3  ;;  %931 = vst [vmem:[%s14057_s26 + $0x610] sm:$0xf] %v930_v4  ;;  %v932_v5 = vld [vmem:[%s14050_s25 + $0x1e64] sm:$0xf] }
 0x115   : > { %v934_v6 = vld [vmem:[%s14050_s25 + $0x1e78] sm:$0xf]  ;;  %v936_v7 = vld [vmem:[%s14050_s25 + $0x1e8c] sm:$0xf]  ;;  %933 = vst [vmem:[%s14057_s26 + $0x614] sm:$0xf] %v932_v5 }
 0x116   : > { %935 = vst [vmem:[%s14057_s26 + $0x618] sm:$0xf] %v934_v6  ;;  %937 = vst [vmem:[%s14057_s26 + $0x61c] sm:$0xf] %v936_v7  ;;  %v938_v8 = vld [vmem:[%s14050_s25 + $0x1ea0] sm:$0xf] }
 0x117   : > { %v940_v9 = vld [vmem:[%s14050_s25 + $0x1eb4] sm:$0xf]  ;;  %v942_v10 = vld [vmem:[%s14050_s25 + $0x1ec8] sm:$0xf]  ;;  %939 = vst [vmem:[%s14057_s26 + $0x620] sm:$0xf] %v938_v8 }
 0x118   : > { %941 = vst [vmem:[%s14057_s26 + $0x624] sm:$0xf] %v940_v9  ;;  %943 = vst [vmem:[%s14057_s26 + $0x628] sm:$0xf] %v942_v10  ;;  %v944_v11 = vld [vmem:[%s14050_s25 + $0x1edc] sm:$0xf] }
 0x119   : > { %v946_v12 = vld [vmem:[%s14050_s25 + $0x1ef0] sm:$0xf]  ;;  %v948_v13 = vld [vmem:[%s14050_s25 + $0x1f04] sm:$0xf]  ;;  %945 = vst [vmem:[%s14057_s26 + $0x62c] sm:$0xf] %v944_v11 }
 0x11a   : > { %947 = vst [vmem:[%s14057_s26 + $0x630] sm:$0xf] %v946_v12  ;;  %949 = vst [vmem:[%s14057_s26 + $0x634] sm:$0xf] %v948_v13  ;;  %v950_v14 = vld [vmem:[%s14050_s25 + $0x1f18] sm:$0xf] }
 0x11b   : > { %v952_v15 = vld [vmem:[%s14050_s25 + $0x1f2c] sm:$0xf]  ;;  %v954_v16 = vld [vmem:[%s14050_s25 + $0x1f40] sm:$0xf]  ;;  %951 = vst [vmem:[%s14057_s26 + $0x638] sm:$0xf] %v950_v14 }
 0x11c   : > { %953 = vst [vmem:[%s14057_s26 + $0x63c] sm:$0xf] %v952_v15  ;;  %955 = vst [vmem:[%s14057_s26 + $0x640] sm:$0xf] %v954_v16  ;;  %v956_v17 = vld [vmem:[%s14050_s25 + $0x1f54] sm:$0xf] }
 0x11d   : > { %v958_v18 = vld [vmem:[%s14050_s25 + $0x1f68] sm:$0xf]  ;;  %v960_v19 = vld [vmem:[%s14050_s25 + $0x1f7c] sm:$0xf]  ;;  %957 = vst [vmem:[%s14057_s26 + $0x644] sm:$0xf] %v956_v17 }
 0x11e   : > { %959 = vst [vmem:[%s14057_s26 + $0x648] sm:$0xf] %v958_v18  ;;  %961 = vst [vmem:[%s14057_s26 + $0x64c] sm:$0xf] %v960_v19  ;;  %v962_v20 = vld [vmem:[%s14050_s25 + $0x1f90] sm:$0xf] }
 0x11f   : > { %v964_v21 = vld [vmem:[%s14050_s25 + $0x1fa4] sm:$0xf]  ;;  %v966_v22 = vld [vmem:[%s14050_s25 + $0x1fb8] sm:$0xf]  ;;  %963 = vst [vmem:[%s14057_s26 + $0x650] sm:$0xf] %v962_v20 }
 0x120   : > { %965 = vst [vmem:[%s14057_s26 + $0x654] sm:$0xf] %v964_v21  ;;  %967 = vst [vmem:[%s14057_s26 + $0x658] sm:$0xf] %v966_v22  ;;  %v968_v23 = vld [vmem:[%s14050_s25 + $0x1fcc] sm:$0xf] }
 0x121   : > { %v970_v24 = vld [vmem:[%s14050_s25 + $0x1fe0] sm:$0xf]  ;;  %v972_v25 = vld [vmem:[%s14050_s25 + $0x1ff4] sm:$0xf]  ;;  %969 = vst [vmem:[%s14057_s26 + $0x65c] sm:$0xf] %v968_v23 }
 0x122   : > { %971 = vst [vmem:[%s14057_s26 + $0x660] sm:$0xf] %v970_v24  ;;  %973 = vst [vmem:[%s14057_s26 + $0x664] sm:$0xf] %v972_v25  ;;  %v974_v26 = vld [vmem:[%s14050_s25 + $0x2008] sm:$0xf] }
 0x123   : > { %v976_v27 = vld [vmem:[%s14050_s25 + $0x201c] sm:$0xf]  ;;  %v978_v28 = vld [vmem:[%s14050_s25 + $0x2030] sm:$0xf]  ;;  %975 = vst [vmem:[%s14057_s26 + $0x668] sm:$0xf] %v974_v26 }
 0x124   : > { %977 = vst [vmem:[%s14057_s26 + $0x66c] sm:$0xf] %v976_v27  ;;  %979 = vst [vmem:[%s14057_s26 + $0x670] sm:$0xf] %v978_v28  ;;  %v980_v29 = vld [vmem:[%s14050_s25 + $0x2044] sm:$0xf] }
 0x125   : > { %v982_v30 = vld [vmem:[%s14050_s25 + $0x2058] sm:$0xf]  ;;  %v984_v31 = vld [vmem:[%s14050_s25 + $0x206c] sm:$0xf]  ;;  %981 = vst [vmem:[%s14057_s26 + $0x674] sm:$0xf] %v980_v29 }
 0x126   : > { %983 = vst [vmem:[%s14057_s26 + $0x678] sm:$0xf] %v982_v30  ;;  %985 = vst [vmem:[%s14057_s26 + $0x67c] sm:$0xf] %v984_v31  ;;  %v986_v32 = vld [vmem:[%s14050_s25 + $0x2080] sm:$0xf] }
 0x127   : > { %v988_v33 = vld [vmem:[%s14050_s25 + $0x2094] sm:$0xf]  ;;  %v990_v34 = vld [vmem:[%s14050_s25 + $0x20a8] sm:$0xf]  ;;  %987 = vst [vmem:[%s14057_s26 + $0x680] sm:$0xf] %v986_v32 }
 0x128   : > { %989 = vst [vmem:[%s14057_s26 + $0x684] sm:$0xf] %v988_v33  ;;  %991 = vst [vmem:[%s14057_s26 + $0x688] sm:$0xf] %v990_v34  ;;  %v992_v35 = vld [vmem:[%s14050_s25 + $0x20bc] sm:$0xf] }
 0x129   : > { %v994_v36 = vld [vmem:[%s14050_s25 + $0x20d0] sm:$0xf]  ;;  %v996_v37 = vld [vmem:[%s14050_s25 + $0x20e4] sm:$0xf]  ;;  %993 = vst [vmem:[%s14057_s26 + $0x68c] sm:$0xf] %v992_v35 }
 0x12a   : > { %995 = vst [vmem:[%s14057_s26 + $0x690] sm:$0xf] %v994_v36  ;;  %997 = vst [vmem:[%s14057_s26 + $0x694] sm:$0xf] %v996_v37  ;;  %v998_v38 = vld [vmem:[%s14050_s25 + $0x20f8] sm:$0xf] }
 0x12b   : > { %v1000_v39 = vld [vmem:[%s14050_s25 + $0x210c] sm:$0xf]  ;;  %v1002_v40 = vld [vmem:[%s14050_s25 + $0x2120] sm:$0xf]  ;;  %999 = vst [vmem:[%s14057_s26 + $0x698] sm:$0xf] %v998_v38 }
 0x12c   : > { %1001 = vst [vmem:[%s14057_s26 + $0x69c] sm:$0xf] %v1000_v39  ;;  %1003 = vst [vmem:[%s14057_s26 + $0x6a0] sm:$0xf] %v1002_v40  ;;  %v1004_v41 = vld [vmem:[%s14050_s25 + $0x2134] sm:$0xf] }
 0x12d   : > { %v1006_v42 = vld [vmem:[%s14050_s25 + $0x2148] sm:$0xf]  ;;  %v1008_v43 = vld [vmem:[%s14050_s25 + $0x215c] sm:$0xf]  ;;  %1005 = vst [vmem:[%s14057_s26 + $0x6a4] sm:$0xf] %v1004_v41 }
 0x12e   : > { %1007 = vst [vmem:[%s14057_s26 + $0x6a8] sm:$0xf] %v1006_v42  ;;  %1009 = vst [vmem:[%s14057_s26 + $0x6ac] sm:$0xf] %v1008_v43  ;;  %v1010_v44 = vld [vmem:[%s14050_s25 + $0x2170] sm:$0xf] }
 0x12f   : > { %v1012_v45 = vld [vmem:[%s14050_s25 + $0x2184] sm:$0xf]  ;;  %v1014_v46 = vld [vmem:[%s14050_s25 + $0x2198] sm:$0xf]  ;;  %1011 = vst [vmem:[%s14057_s26 + $0x6b0] sm:$0xf] %v1010_v44 }
 0x130   : > { %1013 = vst [vmem:[%s14057_s26 + $0x6b4] sm:$0xf] %v1012_v45  ;;  %1015 = vst [vmem:[%s14057_s26 + $0x6b8] sm:$0xf] %v1014_v46  ;;  %v1016_v47 = vld [vmem:[%s14050_s25 + $0x21ac] sm:$0xf] }
 0x131   : > { %v1018_v48 = vld [vmem:[%s14050_s25 + $0x21c0] sm:$0xf]  ;;  %v1020_v49 = vld [vmem:[%s14050_s25 + $0x21d4] sm:$0xf]  ;;  %1017 = vst [vmem:[%s14057_s26 + $0x6bc] sm:$0xf] %v1016_v47 }
 0x132   : > { %1019 = vst [vmem:[%s14057_s26 + $0x6c0] sm:$0xf] %v1018_v48  ;;  %1021 = vst [vmem:[%s14057_s26 + $0x6c4] sm:$0xf] %v1020_v49  ;;  %v1022_v50 = vld [vmem:[%s14050_s25 + $0x21e8] sm:$0xf] }
 0x133   : > { %v1024_v51 = vld [vmem:[%s14050_s25 + $0x21fc] sm:$0xf]  ;;  %v1026_v52 = vld [vmem:[%s14050_s25 + $0x2210] sm:$0xf]  ;;  %1023 = vst [vmem:[%s14057_s26 + $0x6c8] sm:$0xf] %v1022_v50 }
 0x134   : > { %1025 = vst [vmem:[%s14057_s26 + $0x6cc] sm:$0xf] %v1024_v51  ;;  %1027 = vst [vmem:[%s14057_s26 + $0x6d0] sm:$0xf] %v1026_v52  ;;  %v1028_v53 = vld [vmem:[%s14050_s25 + $0x2224] sm:$0xf] }
 0x135   : > { %v1030_v54 = vld [vmem:[%s14050_s25 + $0x2238] sm:$0xf]  ;;  %v1032_v55 = vld [vmem:[%s14050_s25 + $0x224c] sm:$0xf]  ;;  %1029 = vst [vmem:[%s14057_s26 + $0x6d4] sm:$0xf] %v1028_v53 }
 0x136   : > { %1031 = vst [vmem:[%s14057_s26 + $0x6d8] sm:$0xf] %v1030_v54  ;;  %1033 = vst [vmem:[%s14057_s26 + $0x6dc] sm:$0xf] %v1032_v55  ;;  %v1034_v56 = vld [vmem:[%s14050_s25 + $0x2260] sm:$0xf] }
 0x137   : > { %v1036_v57 = vld [vmem:[%s14050_s25 + $0x2274] sm:$0xf]  ;;  %v1038_v58 = vld [vmem:[%s14050_s25 + $0x2288] sm:$0xf]  ;;  %1035 = vst [vmem:[%s14057_s26 + $0x6e0] sm:$0xf] %v1034_v56 }
 0x138   : > { %1037 = vst [vmem:[%s14057_s26 + $0x6e4] sm:$0xf] %v1036_v57  ;;  %1039 = vst [vmem:[%s14057_s26 + $0x6e8] sm:$0xf] %v1038_v58  ;;  %v1040_v59 = vld [vmem:[%s14050_s25 + $0x229c] sm:$0xf] }
 0x139   : > { %v1042_v60 = vld [vmem:[%s14050_s25 + $0x22b0] sm:$0xf]  ;;  %v1044_v61 = vld [vmem:[%s14050_s25 + $0x22c4] sm:$0xf]  ;;  %1041 = vst [vmem:[%s14057_s26 + $0x6ec] sm:$0xf] %v1040_v59 }
 0x13a   : > { %1043 = vst [vmem:[%s14057_s26 + $0x6f0] sm:$0xf] %v1042_v60  ;;  %1045 = vst [vmem:[%s14057_s26 + $0x6f4] sm:$0xf] %v1044_v61  ;;  %v1046_v62 = vld [vmem:[%s14050_s25 + $0x22d8] sm:$0xf] }
 0x13b   : > { %v1048_v63 = vld [vmem:[%s14050_s25 + $0x22ec] sm:$0xf]  ;;  %v1050_v0 = vld [vmem:[%s14050_s25 + $0x2300] sm:$0xf]  ;;  %1047 = vst [vmem:[%s14057_s26 + $0x6f8] sm:$0xf] %v1046_v62 }
 0x13c   : > { %1049 = vst [vmem:[%s14057_s26 + $0x6fc] sm:$0xf] %v1048_v63  ;;  %1051 = vst [vmem:[%s14057_s26 + $0x700] sm:$0xf] %v1050_v0  ;;  %v1052_v1 = vld [vmem:[%s14050_s25 + $0x2314] sm:$0xf] }
 0x13d   : > { %v1054_v2 = vld [vmem:[%s14050_s25 + $0x2328] sm:$0xf]  ;;  %v1056_v3 = vld [vmem:[%s14050_s25 + $0x233c] sm:$0xf]  ;;  %1053 = vst [vmem:[%s14057_s26 + $0x704] sm:$0xf] %v1052_v1 }
 0x13e   : > { %1055 = vst [vmem:[%s14057_s26 + $0x708] sm:$0xf] %v1054_v2  ;;  %1057 = vst [vmem:[%s14057_s26 + $0x70c] sm:$0xf] %v1056_v3  ;;  %v1058_v4 = vld [vmem:[%s14050_s25 + $0x2350] sm:$0xf] }
 0x13f   : > { %v1060_v5 = vld [vmem:[%s14050_s25 + $0x2364] sm:$0xf]  ;;  %v1062_v6 = vld [vmem:[%s14050_s25 + $0x2378] sm:$0xf]  ;;  %1059 = vst [vmem:[%s14057_s26 + $0x710] sm:$0xf] %v1058_v4 }
 0x140   : > { %1061 = vst [vmem:[%s14057_s26 + $0x714] sm:$0xf] %v1060_v5  ;;  %1063 = vst [vmem:[%s14057_s26 + $0x718] sm:$0xf] %v1062_v6  ;;  %v1064_v7 = vld [vmem:[%s14050_s25 + $0x238c] sm:$0xf] }
 0x141   : > { %v1066_v8 = vld [vmem:[%s14050_s25 + $0x23a0] sm:$0xf]  ;;  %v1068_v9 = vld [vmem:[%s14050_s25 + $0x23b4] sm:$0xf]  ;;  %1065 = vst [vmem:[%s14057_s26 + $0x71c] sm:$0xf] %v1064_v7 }
 0x142   : > { %1067 = vst [vmem:[%s14057_s26 + $0x720] sm:$0xf] %v1066_v8  ;;  %1069 = vst [vmem:[%s14057_s26 + $0x724] sm:$0xf] %v1068_v9  ;;  %v1070_v10 = vld [vmem:[%s14050_s25 + $0x23c8] sm:$0xf] }
 0x143   : > { %v1072_v11 = vld [vmem:[%s14050_s25 + $0x23dc] sm:$0xf]  ;;  %v1074_v12 = vld [vmem:[%s14050_s25 + $0x23f0] sm:$0xf]  ;;  %1071 = vst [vmem:[%s14057_s26 + $0x728] sm:$0xf] %v1070_v10 }
 0x144   : > { %1073 = vst [vmem:[%s14057_s26 + $0x72c] sm:$0xf] %v1072_v11  ;;  %1075 = vst [vmem:[%s14057_s26 + $0x730] sm:$0xf] %v1074_v12  ;;  %v1076_v13 = vld [vmem:[%s14050_s25 + $0x2404] sm:$0xf] }
 0x145   : > { %v1078_v14 = vld [vmem:[%s14050_s25 + $0x2418] sm:$0xf]  ;;  %v1080_v15 = vld [vmem:[%s14050_s25 + $0x242c] sm:$0xf]  ;;  %1077 = vst [vmem:[%s14057_s26 + $0x734] sm:$0xf] %v1076_v13 }
 0x146   : > { %1079 = vst [vmem:[%s14057_s26 + $0x738] sm:$0xf] %v1078_v14  ;;  %1081 = vst [vmem:[%s14057_s26 + $0x73c] sm:$0xf] %v1080_v15  ;;  %v1082_v16 = vld [vmem:[%s14050_s25 + $0x2440] sm:$0xf] }
 0x147   : > { %v1084_v17 = vld [vmem:[%s14050_s25 + $0x2454] sm:$0xf]  ;;  %v1086_v18 = vld [vmem:[%s14050_s25 + $0x2468] sm:$0xf]  ;;  %1083 = vst [vmem:[%s14057_s26 + $0x740] sm:$0xf] %v1082_v16 }
 0x148   : > { %1085 = vst [vmem:[%s14057_s26 + $0x744] sm:$0xf] %v1084_v17  ;;  %1087 = vst [vmem:[%s14057_s26 + $0x748] sm:$0xf] %v1086_v18  ;;  %v1088_v19 = vld [vmem:[%s14050_s25 + $0x247c] sm:$0xf] }
 0x149   : > { %v1090_v20 = vld [vmem:[%s14050_s25 + $0x2490] sm:$0xf]  ;;  %v1092_v21 = vld [vmem:[%s14050_s25 + $0x24a4] sm:$0xf]  ;;  %1089 = vst [vmem:[%s14057_s26 + $0x74c] sm:$0xf] %v1088_v19 }
 0x14a   : > { %1091 = vst [vmem:[%s14057_s26 + $0x750] sm:$0xf] %v1090_v20  ;;  %1093 = vst [vmem:[%s14057_s26 + $0x754] sm:$0xf] %v1092_v21  ;;  %v1094_v22 = vld [vmem:[%s14050_s25 + $0x24b8] sm:$0xf] }
 0x14b   : > { %v1096_v23 = vld [vmem:[%s14050_s25 + $0x24cc] sm:$0xf]  ;;  %v1098_v24 = vld [vmem:[%s14050_s25 + $0x24e0] sm:$0xf]  ;;  %1095 = vst [vmem:[%s14057_s26 + $0x758] sm:$0xf] %v1094_v22 }
 0x14c   : > { %1097 = vst [vmem:[%s14057_s26 + $0x75c] sm:$0xf] %v1096_v23  ;;  %1099 = vst [vmem:[%s14057_s26 + $0x760] sm:$0xf] %v1098_v24  ;;  %v1100_v25 = vld [vmem:[%s14050_s25 + $0x24f4] sm:$0xf] }
 0x14d   : > { %v1102_v26 = vld [vmem:[%s14050_s25 + $0x2508] sm:$0xf]  ;;  %v1104_v27 = vld [vmem:[%s14050_s25 + $0x251c] sm:$0xf]  ;;  %1101 = vst [vmem:[%s14057_s26 + $0x764] sm:$0xf] %v1100_v25 }
 0x14e   : > { %1103 = vst [vmem:[%s14057_s26 + $0x768] sm:$0xf] %v1102_v26  ;;  %1105 = vst [vmem:[%s14057_s26 + $0x76c] sm:$0xf] %v1104_v27  ;;  %v1106_v28 = vld [vmem:[%s14050_s25 + $0x2530] sm:$0xf] }
 0x14f   : > { %v1108_v29 = vld [vmem:[%s14050_s25 + $0x2544] sm:$0xf]  ;;  %v1110_v30 = vld [vmem:[%s14050_s25 + $0x2558] sm:$0xf]  ;;  %1107 = vst [vmem:[%s14057_s26 + $0x770] sm:$0xf] %v1106_v28 }
 0x150   : > { %1109 = vst [vmem:[%s14057_s26 + $0x774] sm:$0xf] %v1108_v29  ;;  %1111 = vst [vmem:[%s14057_s26 + $0x778] sm:$0xf] %v1110_v30  ;;  %v1112_v31 = vld [vmem:[%s14050_s25 + $0x256c] sm:$0xf] }
 0x151   : > { %v1114_v32 = vld [vmem:[%s14050_s25 + $0x2580] sm:$0xf]  ;;  %v1116_v33 = vld [vmem:[%s14050_s25 + $0x2594] sm:$0xf]  ;;  %1113 = vst [vmem:[%s14057_s26 + $0x77c] sm:$0xf] %v1112_v31 }
 0x152   : > { %1115 = vst [vmem:[%s14057_s26 + $0x780] sm:$0xf] %v1114_v32  ;;  %1117 = vst [vmem:[%s14057_s26 + $0x784] sm:$0xf] %v1116_v33  ;;  %v1118_v34 = vld [vmem:[%s14050_s25 + $0x25a8] sm:$0xf] }
 0x153   : > { %v1120_v35 = vld [vmem:[%s14050_s25 + $0x25bc] sm:$0xf]  ;;  %v1122_v36 = vld [vmem:[%s14050_s25 + $0x25d0] sm:$0xf]  ;;  %1119 = vst [vmem:[%s14057_s26 + $0x788] sm:$0xf] %v1118_v34 }
 0x154   : > { %1121 = vst [vmem:[%s14057_s26 + $0x78c] sm:$0xf] %v1120_v35  ;;  %1123 = vst [vmem:[%s14057_s26 + $0x790] sm:$0xf] %v1122_v36  ;;  %v1124_v37 = vld [vmem:[%s14050_s25 + $0x25e4] sm:$0xf] }
 0x155   : > { %v1126_v38 = vld [vmem:[%s14050_s25 + $0x25f8] sm:$0xf]  ;;  %v1128_v39 = vld [vmem:[%s14050_s25 + $0x260c] sm:$0xf]  ;;  %1125 = vst [vmem:[%s14057_s26 + $0x794] sm:$0xf] %v1124_v37 }
 0x156   : > { %1127 = vst [vmem:[%s14057_s26 + $0x798] sm:$0xf] %v1126_v38  ;;  %1129 = vst [vmem:[%s14057_s26 + $0x79c] sm:$0xf] %v1128_v39  ;;  %v1130_v40 = vld [vmem:[%s14050_s25 + $0x2620] sm:$0xf] }
 0x157   : > { %v1132_v41 = vld [vmem:[%s14050_s25 + $0x2634] sm:$0xf]  ;;  %v1134_v42 = vld [vmem:[%s14050_s25 + $0x2648] sm:$0xf]  ;;  %1131 = vst [vmem:[%s14057_s26 + $0x7a0] sm:$0xf] %v1130_v40 }
 0x158   : > { %1133 = vst [vmem:[%s14057_s26 + $0x7a4] sm:$0xf] %v1132_v41  ;;  %1135 = vst [vmem:[%s14057_s26 + $0x7a8] sm:$0xf] %v1134_v42  ;;  %v1136_v43 = vld [vmem:[%s14050_s25 + $0x265c] sm:$0xf] }
 0x159   : > { %v1138_v44 = vld [vmem:[%s14050_s25 + $0x2670] sm:$0xf]  ;;  %v1140_v45 = vld [vmem:[%s14050_s25 + $0x2684] sm:$0xf]  ;;  %1137 = vst [vmem:[%s14057_s26 + $0x7ac] sm:$0xf] %v1136_v43 }
 0x15a   : > { %1139 = vst [vmem:[%s14057_s26 + $0x7b0] sm:$0xf] %v1138_v44  ;;  %1141 = vst [vmem:[%s14057_s26 + $0x7b4] sm:$0xf] %v1140_v45  ;;  %v1142_v46 = vld [vmem:[%s14050_s25 + $0x2698] sm:$0xf] }
 0x15b   : > { %v1144_v47 = vld [vmem:[%s14050_s25 + $0x26ac] sm:$0xf]  ;;  %v1146_v48 = vld [vmem:[%s14050_s25 + $0x26c0] sm:$0xf]  ;;  %1143 = vst [vmem:[%s14057_s26 + $0x7b8] sm:$0xf] %v1142_v46 }
 0x15c   : > { %1145 = vst [vmem:[%s14057_s26 + $0x7bc] sm:$0xf] %v1144_v47  ;;  %1147 = vst [vmem:[%s14057_s26 + $0x7c0] sm:$0xf] %v1146_v48  ;;  %v1148_v49 = vld [vmem:[%s14050_s25 + $0x26d4] sm:$0xf] }
 0x15d   : > { %v1150_v50 = vld [vmem:[%s14050_s25 + $0x26e8] sm:$0xf]  ;;  %v1152_v51 = vld [vmem:[%s14050_s25 + $0x26fc] sm:$0xf]  ;;  %1149 = vst [vmem:[%s14057_s26 + $0x7c4] sm:$0xf] %v1148_v49 }
 0x15e   : > { %1151 = vst [vmem:[%s14057_s26 + $0x7c8] sm:$0xf] %v1150_v50  ;;  %1153 = vst [vmem:[%s14057_s26 + $0x7cc] sm:$0xf] %v1152_v51  ;;  %v1154_v52 = vld [vmem:[%s14050_s25 + $0x2710] sm:$0xf] }
 0x15f   : > { %v1156_v53 = vld [vmem:[%s14050_s25 + $0x2724] sm:$0xf]  ;;  %v1158_v54 = vld [vmem:[%s14050_s25 + $0x2738] sm:$0xf]  ;;  %1155 = vst [vmem:[%s14057_s26 + $0x7d0] sm:$0xf] %v1154_v52 }
 0x160   : > { %1157 = vst [vmem:[%s14057_s26 + $0x7d4] sm:$0xf] %v1156_v53  ;;  %1159 = vst [vmem:[%s14057_s26 + $0x7d8] sm:$0xf] %v1158_v54  ;;  %v1160_v55 = vld [vmem:[%s14050_s25 + $0x274c] sm:$0xf] }
 0x161   : > { %v1162_v56 = vld [vmem:[%s14050_s25 + $0x2760] sm:$0xf]  ;;  %v1164_v57 = vld [vmem:[%s14050_s25 + $0x2774] sm:$0xf]  ;;  %1161 = vst [vmem:[%s14057_s26 + $0x7dc] sm:$0xf] %v1160_v55 }
 0x162   : > { %1163 = vst [vmem:[%s14057_s26 + $0x7e0] sm:$0xf] %v1162_v56  ;;  %1165 = vst [vmem:[%s14057_s26 + $0x7e4] sm:$0xf] %v1164_v57  ;;  %v1166_v58 = vld [vmem:[%s14050_s25 + $0x2788] sm:$0xf] }
 0x163   : > { %v1168_v59 = vld [vmem:[%s14050_s25 + $0x279c] sm:$0xf]  ;;  %v1170_v60 = vld [vmem:[%s14050_s25 + $0x27b0] sm:$0xf]  ;;  %1167 = vst [vmem:[%s14057_s26 + $0x7e8] sm:$0xf] %v1166_v58 }
 0x164   : > { %1169 = vst [vmem:[%s14057_s26 + $0x7ec] sm:$0xf] %v1168_v59  ;;  %1171 = vst [vmem:[%s14057_s26 + $0x7f0] sm:$0xf] %v1170_v60  ;;  %v1172_v61 = vld [vmem:[%s14050_s25 + $0x27c4] sm:$0xf] }
 0x165   : > { %v1174_v62 = vld [vmem:[%s14050_s25 + $0x27d8] sm:$0xf]  ;;  %v1176_v63 = vld [vmem:[%s14050_s25 + $0x27ec] sm:$0xf]  ;;  %1173 = vst [vmem:[%s14057_s26 + $0x7f4] sm:$0xf] %v1172_v61 }
 0x166   : > { %1175 = vst [vmem:[%s14057_s26 + $0x7f8] sm:$0xf] %v1174_v62  ;;  %1177 = vst [vmem:[%s14057_s26 + $0x7fc] sm:$0xf] %v1176_v63  ;;  %v1178_v0 = vld [vmem:[%s14050_s25 + $0x2800] sm:$0xf] }
 0x167   : > { %v1180_v1 = vld [vmem:[%s14050_s25 + $0x2814] sm:$0xf]  ;;  %v1182_v2 = vld [vmem:[%s14050_s25 + $0x2828] sm:$0xf]  ;;  %1179 = vst [vmem:[%s14057_s26 + $0x800] sm:$0xf] %v1178_v0 }
 0x168   : > { %1181 = vst [vmem:[%s14057_s26 + $0x804] sm:$0xf] %v1180_v1  ;;  %1183 = vst [vmem:[%s14057_s26 + $0x808] sm:$0xf] %v1182_v2  ;;  %v1184_v3 = vld [vmem:[%s14050_s25 + $0x283c] sm:$0xf] }
 0x169   : > { %v1186_v4 = vld [vmem:[%s14050_s25 + $0x2850] sm:$0xf]  ;;  %v1188_v5 = vld [vmem:[%s14050_s25 + $0x2864] sm:$0xf]  ;;  %1185 = vst [vmem:[%s14057_s26 + $0x80c] sm:$0xf] %v1184_v3 }
 0x16a   : > { %1187 = vst [vmem:[%s14057_s26 + $0x810] sm:$0xf] %v1186_v4  ;;  %1189 = vst [vmem:[%s14057_s26 + $0x814] sm:$0xf] %v1188_v5  ;;  %v1190_v6 = vld [vmem:[%s14050_s25 + $0x2878] sm:$0xf] }
 0x16b   : > { %v1192_v7 = vld [vmem:[%s14050_s25 + $0x288c] sm:$0xf]  ;;  %v1194_v8 = vld [vmem:[%s14050_s25 + $0x28a0] sm:$0xf]  ;;  %1191 = vst [vmem:[%s14057_s26 + $0x818] sm:$0xf] %v1190_v6 }
 0x16c   : > { %1193 = vst [vmem:[%s14057_s26 + $0x81c] sm:$0xf] %v1192_v7  ;;  %1195 = vst [vmem:[%s14057_s26 + $0x820] sm:$0xf] %v1194_v8  ;;  %v1196_v9 = vld [vmem:[%s14050_s25 + $0x28b4] sm:$0xf] }
 0x16d   : > { %v1198_v10 = vld [vmem:[%s14050_s25 + $0x28c8] sm:$0xf]  ;;  %v1200_v11 = vld [vmem:[%s14050_s25 + $0x28dc] sm:$0xf]  ;;  %1197 = vst [vmem:[%s14057_s26 + $0x824] sm:$0xf] %v1196_v9 }
 0x16e   : > { %1199 = vst [vmem:[%s14057_s26 + $0x828] sm:$0xf] %v1198_v10  ;;  %1201 = vst [vmem:[%s14057_s26 + $0x82c] sm:$0xf] %v1200_v11  ;;  %v1202_v12 = vld [vmem:[%s14050_s25 + $0x28f0] sm:$0xf] }
 0x16f   : > { %v1204_v13 = vld [vmem:[%s14050_s25 + $0x2904] sm:$0xf]  ;;  %v1206_v14 = vld [vmem:[%s14050_s25 + $0x2918] sm:$0xf]  ;;  %1203 = vst [vmem:[%s14057_s26 + $0x830] sm:$0xf] %v1202_v12 }
 0x170   : > { %1205 = vst [vmem:[%s14057_s26 + $0x834] sm:$0xf] %v1204_v13  ;;  %1207 = vst [vmem:[%s14057_s26 + $0x838] sm:$0xf] %v1206_v14  ;;  %v1208_v15 = vld [vmem:[%s14050_s25 + $0x292c] sm:$0xf] }
 0x171   : > { %v1210_v16 = vld [vmem:[%s14050_s25 + $0x2940] sm:$0xf]  ;;  %v1212_v17 = vld [vmem:[%s14050_s25 + $0x2954] sm:$0xf]  ;;  %1209 = vst [vmem:[%s14057_s26 + $0x83c] sm:$0xf] %v1208_v15 }
 0x172   : > { %1211 = vst [vmem:[%s14057_s26 + $0x840] sm:$0xf] %v1210_v16  ;;  %1213 = vst [vmem:[%s14057_s26 + $0x844] sm:$0xf] %v1212_v17  ;;  %v1214_v18 = vld [vmem:[%s14050_s25 + $0x2968] sm:$0xf] }
 0x173   : > { %v1216_v19 = vld [vmem:[%s14050_s25 + $0x297c] sm:$0xf]  ;;  %v1218_v20 = vld [vmem:[%s14050_s25 + $0x2990] sm:$0xf]  ;;  %1215 = vst [vmem:[%s14057_s26 + $0x848] sm:$0xf] %v1214_v18 }
 0x174   : > { %1217 = vst [vmem:[%s14057_s26 + $0x84c] sm:$0xf] %v1216_v19  ;;  %1219 = vst [vmem:[%s14057_s26 + $0x850] sm:$0xf] %v1218_v20  ;;  %v1220_v21 = vld [vmem:[%s14050_s25 + $0x29a4] sm:$0xf] }
 0x175   : > { %v1222_v22 = vld [vmem:[%s14050_s25 + $0x29b8] sm:$0xf]  ;;  %v1224_v23 = vld [vmem:[%s14050_s25 + $0x29cc] sm:$0xf]  ;;  %1221 = vst [vmem:[%s14057_s26 + $0x854] sm:$0xf] %v1220_v21 }
 0x176   : > { %1223 = vst [vmem:[%s14057_s26 + $0x858] sm:$0xf] %v1222_v22  ;;  %1225 = vst [vmem:[%s14057_s26 + $0x85c] sm:$0xf] %v1224_v23  ;;  %v1226_v24 = vld [vmem:[%s14050_s25 + $0x29e0] sm:$0xf] }
 0x177   : > { %v1228_v25 = vld [vmem:[%s14050_s25 + $0x29f4] sm:$0xf]  ;;  %v1230_v26 = vld [vmem:[%s14050_s25 + $0x2a08] sm:$0xf]  ;;  %1227 = vst [vmem:[%s14057_s26 + $0x860] sm:$0xf] %v1226_v24 }
 0x178   : > { %1229 = vst [vmem:[%s14057_s26 + $0x864] sm:$0xf] %v1228_v25  ;;  %1231 = vst [vmem:[%s14057_s26 + $0x868] sm:$0xf] %v1230_v26  ;;  %v1232_v27 = vld [vmem:[%s14050_s25 + $0x2a1c] sm:$0xf] }
 0x179   : > { %v1234_v28 = vld [vmem:[%s14050_s25 + $0x2a30] sm:$0xf]  ;;  %v1236_v29 = vld [vmem:[%s14050_s25 + $0x2a44] sm:$0xf]  ;;  %1233 = vst [vmem:[%s14057_s26 + $0x86c] sm:$0xf] %v1232_v27 }
 0x17a   : > { %1235 = vst [vmem:[%s14057_s26 + $0x870] sm:$0xf] %v1234_v28  ;;  %1237 = vst [vmem:[%s14057_s26 + $0x874] sm:$0xf] %v1236_v29  ;;  %v1238_v30 = vld [vmem:[%s14050_s25 + $0x2a58] sm:$0xf] }
 0x17b   : > { %v1240_v31 = vld [vmem:[%s14050_s25 + $0x2a6c] sm:$0xf]  ;;  %v1242_v32 = vld [vmem:[%s14050_s25 + $0x2a80] sm:$0xf]  ;;  %1239 = vst [vmem:[%s14057_s26 + $0x878] sm:$0xf] %v1238_v30 }
 0x17c   : > { %1241 = vst [vmem:[%s14057_s26 + $0x87c] sm:$0xf] %v1240_v31  ;;  %1243 = vst [vmem:[%s14057_s26 + $0x880] sm:$0xf] %v1242_v32  ;;  %v1244_v33 = vld [vmem:[%s14050_s25 + $0x2a94] sm:$0xf] }
 0x17d   : > { %v1246_v34 = vld [vmem:[%s14050_s25 + $0x2aa8] sm:$0xf]  ;;  %v1248_v35 = vld [vmem:[%s14050_s25 + $0x2abc] sm:$0xf]  ;;  %1245 = vst [vmem:[%s14057_s26 + $0x884] sm:$0xf] %v1244_v33 }
 0x17e   : > { %1247 = vst [vmem:[%s14057_s26 + $0x888] sm:$0xf] %v1246_v34  ;;  %1249 = vst [vmem:[%s14057_s26 + $0x88c] sm:$0xf] %v1248_v35  ;;  %v1250_v36 = vld [vmem:[%s14050_s25 + $0x2ad0] sm:$0xf] }
 0x17f   : > { %v1252_v37 = vld [vmem:[%s14050_s25 + $0x2ae4] sm:$0xf]  ;;  %v1254_v38 = vld [vmem:[%s14050_s25 + $0x2af8] sm:$0xf]  ;;  %1251 = vst [vmem:[%s14057_s26 + $0x890] sm:$0xf] %v1250_v36 }
 0x180   : > { %1253 = vst [vmem:[%s14057_s26 + $0x894] sm:$0xf] %v1252_v37  ;;  %1255 = vst [vmem:[%s14057_s26 + $0x898] sm:$0xf] %v1254_v38  ;;  %v1256_v39 = vld [vmem:[%s14050_s25 + $0x2b0c] sm:$0xf] }
 0x181   : > { %v1258_v40 = vld [vmem:[%s14050_s25 + $0x2b20] sm:$0xf]  ;;  %v1260_v41 = vld [vmem:[%s14050_s25 + $0x2b34] sm:$0xf]  ;;  %1257 = vst [vmem:[%s14057_s26 + $0x89c] sm:$0xf] %v1256_v39 }
 0x182   : > { %1259 = vst [vmem:[%s14057_s26 + $0x8a0] sm:$0xf] %v1258_v40  ;;  %1261 = vst [vmem:[%s14057_s26 + $0x8a4] sm:$0xf] %v1260_v41  ;;  %v1262_v42 = vld [vmem:[%s14050_s25 + $0x2b48] sm:$0xf] }
 0x183   : > { %v1264_v43 = vld [vmem:[%s14050_s25 + $0x2b5c] sm:$0xf]  ;;  %v1266_v44 = vld [vmem:[%s14050_s25 + $0x2b70] sm:$0xf]  ;;  %1263 = vst [vmem:[%s14057_s26 + $0x8a8] sm:$0xf] %v1262_v42 }
 0x184   : > { %1265 = vst [vmem:[%s14057_s26 + $0x8ac] sm:$0xf] %v1264_v43  ;;  %1267 = vst [vmem:[%s14057_s26 + $0x8b0] sm:$0xf] %v1266_v44  ;;  %v1268_v45 = vld [vmem:[%s14050_s25 + $0x2b84] sm:$0xf] }
 0x185   : > { %v1270_v46 = vld [vmem:[%s14050_s25 + $0x2b98] sm:$0xf]  ;;  %v1272_v47 = vld [vmem:[%s14050_s25 + $0x2bac] sm:$0xf]  ;;  %1269 = vst [vmem:[%s14057_s26 + $0x8b4] sm:$0xf] %v1268_v45 }
 0x186   : > { %1271 = vst [vmem:[%s14057_s26 + $0x8b8] sm:$0xf] %v1270_v46  ;;  %1273 = vst [vmem:[%s14057_s26 + $0x8bc] sm:$0xf] %v1272_v47  ;;  %v1274_v48 = vld [vmem:[%s14050_s25 + $0x2bc0] sm:$0xf] }
 0x187   : > { %v1276_v49 = vld [vmem:[%s14050_s25 + $0x2bd4] sm:$0xf]  ;;  %v1278_v50 = vld [vmem:[%s14050_s25 + $0x2be8] sm:$0xf]  ;;  %1275 = vst [vmem:[%s14057_s26 + $0x8c0] sm:$0xf] %v1274_v48 }
 0x188   : > { %1277 = vst [vmem:[%s14057_s26 + $0x8c4] sm:$0xf] %v1276_v49  ;;  %1279 = vst [vmem:[%s14057_s26 + $0x8c8] sm:$0xf] %v1278_v50  ;;  %v1280_v51 = vld [vmem:[%s14050_s25 + $0x2bfc] sm:$0xf] }
 0x189   : > { %v1282_v52 = vld [vmem:[%s14050_s25 + $0x2c10] sm:$0xf]  ;;  %v1284_v53 = vld [vmem:[%s14050_s25 + $0x2c24] sm:$0xf]  ;;  %1281 = vst [vmem:[%s14057_s26 + $0x8cc] sm:$0xf] %v1280_v51 }
 0x18a   : > { %1283 = vst [vmem:[%s14057_s26 + $0x8d0] sm:$0xf] %v1282_v52  ;;  %1285 = vst [vmem:[%s14057_s26 + $0x8d4] sm:$0xf] %v1284_v53  ;;  %v1286_v54 = vld [vmem:[%s14050_s25 + $0x2c38] sm:$0xf] }
 0x18b   : > { %v1288_v55 = vld [vmem:[%s14050_s25 + $0x2c4c] sm:$0xf]  ;;  %v1290_v56 = vld [vmem:[%s14050_s25 + $0x2c60] sm:$0xf]  ;;  %1287 = vst [vmem:[%s14057_s26 + $0x8d8] sm:$0xf] %v1286_v54 }
 0x18c   : > { %1289 = vst [vmem:[%s14057_s26 + $0x8dc] sm:$0xf] %v1288_v55  ;;  %1291 = vst [vmem:[%s14057_s26 + $0x8e0] sm:$0xf] %v1290_v56  ;;  %v1292_v57 = vld [vmem:[%s14050_s25 + $0x2c74] sm:$0xf] }
 0x18d   : > { %v1294_v58 = vld [vmem:[%s14050_s25 + $0x2c88] sm:$0xf]  ;;  %v1296_v59 = vld [vmem:[%s14050_s25 + $0x2c9c] sm:$0xf]  ;;  %1293 = vst [vmem:[%s14057_s26 + $0x8e4] sm:$0xf] %v1292_v57 }
 0x18e   : > { %1295 = vst [vmem:[%s14057_s26 + $0x8e8] sm:$0xf] %v1294_v58  ;;  %1297 = vst [vmem:[%s14057_s26 + $0x8ec] sm:$0xf] %v1296_v59  ;;  %v1298_v60 = vld [vmem:[%s14050_s25 + $0x2cb0] sm:$0xf] }
 0x18f   : > { %v1300_v61 = vld [vmem:[%s14050_s25 + $0x2cc4] sm:$0xf]  ;;  %v1302_v62 = vld [vmem:[%s14050_s25 + $0x2cd8] sm:$0xf]  ;;  %1299 = vst [vmem:[%s14057_s26 + $0x8f0] sm:$0xf] %v1298_v60 }
 0x190   : > { %1301 = vst [vmem:[%s14057_s26 + $0x8f4] sm:$0xf] %v1300_v61  ;;  %1303 = vst [vmem:[%s14057_s26 + $0x8f8] sm:$0xf] %v1302_v62  ;;  %v1304_v63 = vld [vmem:[%s14050_s25 + $0x2cec] sm:$0xf] }
 0x191   : > { %v1306_v0 = vld [vmem:[%s14050_s25 + $0x2d00] sm:$0xf]  ;;  %v1308_v1 = vld [vmem:[%s14050_s25 + $0x2d14] sm:$0xf]  ;;  %1305 = vst [vmem:[%s14057_s26 + $0x8fc] sm:$0xf] %v1304_v63 }
 0x192   : > { %1307 = vst [vmem:[%s14057_s26 + $0x900] sm:$0xf] %v1306_v0  ;;  %1309 = vst [vmem:[%s14057_s26 + $0x904] sm:$0xf] %v1308_v1  ;;  %v1310_v2 = vld [vmem:[%s14050_s25 + $0x2d28] sm:$0xf] }
 0x193   : > { %v1312_v3 = vld [vmem:[%s14050_s25 + $0x2d3c] sm:$0xf]  ;;  %v1314_v4 = vld [vmem:[%s14050_s25 + $0x2d50] sm:$0xf]  ;;  %1311 = vst [vmem:[%s14057_s26 + $0x908] sm:$0xf] %v1310_v2 }
 0x194   : > { %1313 = vst [vmem:[%s14057_s26 + $0x90c] sm:$0xf] %v1312_v3  ;;  %1315 = vst [vmem:[%s14057_s26 + $0x910] sm:$0xf] %v1314_v4  ;;  %v1316_v5 = vld [vmem:[%s14050_s25 + $0x2d64] sm:$0xf] }
 0x195   : > { %v1318_v6 = vld [vmem:[%s14050_s25 + $0x2d78] sm:$0xf]  ;;  %v1320_v7 = vld [vmem:[%s14050_s25 + $0x2d8c] sm:$0xf]  ;;  %1317 = vst [vmem:[%s14057_s26 + $0x914] sm:$0xf] %v1316_v5 }
 0x196   : > { %1319 = vst [vmem:[%s14057_s26 + $0x918] sm:$0xf] %v1318_v6  ;;  %1321 = vst [vmem:[%s14057_s26 + $0x91c] sm:$0xf] %v1320_v7  ;;  %v1322_v8 = vld [vmem:[%s14050_s25 + $0x2da0] sm:$0xf] }
 0x197   : > { %v1324_v9 = vld [vmem:[%s14050_s25 + $0x2db4] sm:$0xf]  ;;  %v1326_v10 = vld [vmem:[%s14050_s25 + $0x2dc8] sm:$0xf]  ;;  %1323 = vst [vmem:[%s14057_s26 + $0x920] sm:$0xf] %v1322_v8 }
 0x198   : > { %1325 = vst [vmem:[%s14057_s26 + $0x924] sm:$0xf] %v1324_v9  ;;  %1327 = vst [vmem:[%s14057_s26 + $0x928] sm:$0xf] %v1326_v10  ;;  %v1328_v11 = vld [vmem:[%s14050_s25 + $0x2ddc] sm:$0xf] }
 0x199   : > { %v1330_v12 = vld [vmem:[%s14050_s25 + $0x2df0] sm:$0xf]  ;;  %v1332_v13 = vld [vmem:[%s14050_s25 + $0x2e04] sm:$0xf]  ;;  %1329 = vst [vmem:[%s14057_s26 + $0x92c] sm:$0xf] %v1328_v11 }
 0x19a   : > { %1331 = vst [vmem:[%s14057_s26 + $0x930] sm:$0xf] %v1330_v12  ;;  %1333 = vst [vmem:[%s14057_s26 + $0x934] sm:$0xf] %v1332_v13  ;;  %v1334_v14 = vld [vmem:[%s14050_s25 + $0x2e18] sm:$0xf] }
 0x19b   : > { %v1336_v15 = vld [vmem:[%s14050_s25 + $0x2e2c] sm:$0xf]  ;;  %v1338_v16 = vld [vmem:[%s14050_s25 + $0x2e40] sm:$0xf]  ;;  %1335 = vst [vmem:[%s14057_s26 + $0x938] sm:$0xf] %v1334_v14 }
 0x19c   : > { %1337 = vst [vmem:[%s14057_s26 + $0x93c] sm:$0xf] %v1336_v15  ;;  %1339 = vst [vmem:[%s14057_s26 + $0x940] sm:$0xf] %v1338_v16  ;;  %v1340_v17 = vld [vmem:[%s14050_s25 + $0x2e54] sm:$0xf] }
 0x19d   : > { %v1342_v18 = vld [vmem:[%s14050_s25 + $0x2e68] sm:$0xf]  ;;  %v1344_v19 = vld [vmem:[%s14050_s25 + $0x2e7c] sm:$0xf]  ;;  %1341 = vst [vmem:[%s14057_s26 + $0x944] sm:$0xf] %v1340_v17 }
 0x19e   : > { %1343 = vst [vmem:[%s14057_s26 + $0x948] sm:$0xf] %v1342_v18  ;;  %1345 = vst [vmem:[%s14057_s26 + $0x94c] sm:$0xf] %v1344_v19  ;;  %v1346_v20 = vld [vmem:[%s14050_s25 + $0x2e90] sm:$0xf] }
 0x19f   : > { %v1348_v21 = vld [vmem:[%s14050_s25 + $0x2ea4] sm:$0xf]  ;;  %v1350_v22 = vld [vmem:[%s14050_s25 + $0x2eb8] sm:$0xf]  ;;  %1347 = vst [vmem:[%s14057_s26 + $0x950] sm:$0xf] %v1346_v20 }
 0x1a0   : > { %1349 = vst [vmem:[%s14057_s26 + $0x954] sm:$0xf] %v1348_v21  ;;  %1351 = vst [vmem:[%s14057_s26 + $0x958] sm:$0xf] %v1350_v22  ;;  %v1352_v23 = vld [vmem:[%s14050_s25 + $0x2ecc] sm:$0xf] }
 0x1a1   : > { %v1354_v24 = vld [vmem:[%s14050_s25 + $0x2ee0] sm:$0xf]  ;;  %v1356_v25 = vld [vmem:[%s14050_s25 + $0x2ef4] sm:$0xf]  ;;  %1353 = vst [vmem:[%s14057_s26 + $0x95c] sm:$0xf] %v1352_v23 }
 0x1a2   : > { %1355 = vst [vmem:[%s14057_s26 + $0x960] sm:$0xf] %v1354_v24  ;;  %1357 = vst [vmem:[%s14057_s26 + $0x964] sm:$0xf] %v1356_v25  ;;  %v1358_v26 = vld [vmem:[%s14050_s25 + $0x2f08] sm:$0xf] }
 0x1a3   : > { %v1360_v27 = vld [vmem:[%s14050_s25 + $0x2f1c] sm:$0xf]  ;;  %v1362_v28 = vld [vmem:[%s14050_s25 + $0x2f30] sm:$0xf]  ;;  %1359 = vst [vmem:[%s14057_s26 + $0x968] sm:$0xf] %v1358_v26 }
 0x1a4   : > { %1361 = vst [vmem:[%s14057_s26 + $0x96c] sm:$0xf] %v1360_v27  ;;  %1363 = vst [vmem:[%s14057_s26 + $0x970] sm:$0xf] %v1362_v28  ;;  %v1364_v29 = vld [vmem:[%s14050_s25 + $0x2f44] sm:$0xf] }
 0x1a5   : > { %v1366_v30 = vld [vmem:[%s14050_s25 + $0x2f58] sm:$0xf]  ;;  %v1368_v31 = vld [vmem:[%s14050_s25 + $0x2f6c] sm:$0xf]  ;;  %1365 = vst [vmem:[%s14057_s26 + $0x974] sm:$0xf] %v1364_v29 }
 0x1a6   : > { %1367 = vst [vmem:[%s14057_s26 + $0x978] sm:$0xf] %v1366_v30  ;;  %1369 = vst [vmem:[%s14057_s26 + $0x97c] sm:$0xf] %v1368_v31  ;;  %v1370_v32 = vld [vmem:[%s14050_s25 + $0x2f80] sm:$0xf] }
 0x1a7   : > { %v1372_v33 = vld [vmem:[%s14050_s25 + $0x2f94] sm:$0xf]  ;;  %v1374_v34 = vld [vmem:[%s14050_s25 + $0x2fa8] sm:$0xf]  ;;  %1371 = vst [vmem:[%s14057_s26 + $0x980] sm:$0xf] %v1370_v32 }
 0x1a8   : > { %1373 = vst [vmem:[%s14057_s26 + $0x984] sm:$0xf] %v1372_v33  ;;  %1375 = vst [vmem:[%s14057_s26 + $0x988] sm:$0xf] %v1374_v34  ;;  %v1376_v35 = vld [vmem:[%s14050_s25 + $0x2fbc] sm:$0xf] }
 0x1a9   : > { %v1378_v36 = vld [vmem:[%s14050_s25 + $0x2fd0] sm:$0xf]  ;;  %v1380_v37 = vld [vmem:[%s14050_s25 + $0x2fe4] sm:$0xf]  ;;  %1377 = vst [vmem:[%s14057_s26 + $0x98c] sm:$0xf] %v1376_v35 }
 0x1aa   : > { %1379 = vst [vmem:[%s14057_s26 + $0x990] sm:$0xf] %v1378_v36  ;;  %1381 = vst [vmem:[%s14057_s26 + $0x994] sm:$0xf] %v1380_v37  ;;  %v1382_v38 = vld [vmem:[%s14050_s25 + $0x2ff8] sm:$0xf] }
 0x1ab   : > { %v1384_v39 = vld [vmem:[%s14050_s25 + $0x300c] sm:$0xf]  ;;  %v1386_v40 = vld [vmem:[%s14050_s25 + $0x3020] sm:$0xf]  ;;  %1383 = vst [vmem:[%s14057_s26 + $0x998] sm:$0xf] %v1382_v38 }
 0x1ac   : > { %1385 = vst [vmem:[%s14057_s26 + $0x99c] sm:$0xf] %v1384_v39  ;;  %1387 = vst [vmem:[%s14057_s26 + $0x9a0] sm:$0xf] %v1386_v40  ;;  %v1388_v41 = vld [vmem:[%s14050_s25 + $0x3034] sm:$0xf] }
 0x1ad   : > { %v1390_v42 = vld [vmem:[%s14050_s25 + $0x3048] sm:$0xf]  ;;  %v1392_v43 = vld [vmem:[%s14050_s25 + $0x305c] sm:$0xf]  ;;  %1389 = vst [vmem:[%s14057_s26 + $0x9a4] sm:$0xf] %v1388_v41 }
 0x1ae   : > { %1391 = vst [vmem:[%s14057_s26 + $0x9a8] sm:$0xf] %v1390_v42  ;;  %1393 = vst [vmem:[%s14057_s26 + $0x9ac] sm:$0xf] %v1392_v43  ;;  %v1394_v44 = vld [vmem:[%s14050_s25 + $0x3070] sm:$0xf] }
 0x1af   : > { %v1396_v45 = vld [vmem:[%s14050_s25 + $0x3084] sm:$0xf]  ;;  %v1398_v46 = vld [vmem:[%s14050_s25 + $0x3098] sm:$0xf]  ;;  %1395 = vst [vmem:[%s14057_s26 + $0x9b0] sm:$0xf] %v1394_v44 }
 0x1b0   : > { %1397 = vst [vmem:[%s14057_s26 + $0x9b4] sm:$0xf] %v1396_v45  ;;  %1399 = vst [vmem:[%s14057_s26 + $0x9b8] sm:$0xf] %v1398_v46  ;;  %v1400_v47 = vld [vmem:[%s14050_s25 + $0x30ac] sm:$0xf] }
 0x1b1   : > { %v1402_v48 = vld [vmem:[%s14050_s25 + $0x30c0] sm:$0xf]  ;;  %v1404_v49 = vld [vmem:[%s14050_s25 + $0x30d4] sm:$0xf]  ;;  %1401 = vst [vmem:[%s14057_s26 + $0x9bc] sm:$0xf] %v1400_v47 }
 0x1b2   : > { %1403 = vst [vmem:[%s14057_s26 + $0x9c0] sm:$0xf] %v1402_v48  ;;  %1405 = vst [vmem:[%s14057_s26 + $0x9c4] sm:$0xf] %v1404_v49  ;;  %v1406_v50 = vld [vmem:[%s14050_s25 + $0x30e8] sm:$0xf] }
 0x1b3   : > { %v1408_v51 = vld [vmem:[%s14050_s25 + $0x30fc] sm:$0xf]  ;;  %v1410_v52 = vld [vmem:[%s14050_s25 + $0x3110] sm:$0xf]  ;;  %1407 = vst [vmem:[%s14057_s26 + $0x9c8] sm:$0xf] %v1406_v50 }
 0x1b4   : > { %1409 = vst [vmem:[%s14057_s26 + $0x9cc] sm:$0xf] %v1408_v51  ;;  %1411 = vst [vmem:[%s14057_s26 + $0x9d0] sm:$0xf] %v1410_v52  ;;  %v1412_v53 = vld [vmem:[%s14050_s25 + $0x3124] sm:$0xf] }
 0x1b5   : > { %v1414_v54 = vld [vmem:[%s14050_s25 + $0x3138] sm:$0xf]  ;;  %v1416_v55 = vld [vmem:[%s14050_s25 + $0x314c] sm:$0xf]  ;;  %1413 = vst [vmem:[%s14057_s26 + $0x9d4] sm:$0xf] %v1412_v53 }
 0x1b6   : > { %1415 = vst [vmem:[%s14057_s26 + $0x9d8] sm:$0xf] %v1414_v54  ;;  %1417 = vst [vmem:[%s14057_s26 + $0x9dc] sm:$0xf] %v1416_v55  ;;  %v1418_v56 = vld [vmem:[%s14050_s25 + $0x3160] sm:$0xf] }
 0x1b7   : > { %v1420_v57 = vld [vmem:[%s14050_s25 + $0x3174] sm:$0xf]  ;;  %v1422_v58 = vld [vmem:[%s14050_s25 + $0x3188] sm:$0xf]  ;;  %1419 = vst [vmem:[%s14057_s26 + $0x9e0] sm:$0xf] %v1418_v56 }
 0x1b8   : > { %1421 = vst [vmem:[%s14057_s26 + $0x9e4] sm:$0xf] %v1420_v57  ;;  %1423 = vst [vmem:[%s14057_s26 + $0x9e8] sm:$0xf] %v1422_v58  ;;  %v1424_v59 = vld [vmem:[%s14050_s25 + $0x319c] sm:$0xf] }
 0x1b9   : > { %v1426_v60 = vld [vmem:[%s14050_s25 + $0x31b0] sm:$0xf]  ;;  %v1428_v61 = vld [vmem:[%s14050_s25 + $0x31c4] sm:$0xf]  ;;  %1425 = vst [vmem:[%s14057_s26 + $0x9ec] sm:$0xf] %v1424_v59 }
 0x1ba   : > { %1427 = vst [vmem:[%s14057_s26 + $0x9f0] sm:$0xf] %v1426_v60  ;;  %1429 = vst [vmem:[%s14057_s26 + $0x9f4] sm:$0xf] %v1428_v61  ;;  %v1430_v62 = vld [vmem:[%s14050_s25 + $0x31d8] sm:$0xf] }
 0x1bb   : > { %v1432_v63 = vld [vmem:[%s14050_s25 + $0x31ec] sm:$0xf]  ;;  %v1434_v0 = vld [vmem:[%s14050_s25 + $0x3200] sm:$0xf]  ;;  %1431 = vst [vmem:[%s14057_s26 + $0x9f8] sm:$0xf] %v1430_v62 }
 0x1bc   : > { %1433 = vst [vmem:[%s14057_s26 + $0x9fc] sm:$0xf] %v1432_v63  ;;  %1435 = vst [vmem:[%s14057_s26 + $0xa00] sm:$0xf] %v1434_v0  ;;  %v1436_v1 = vld [vmem:[%s14050_s25 + $0x3214] sm:$0xf] }
 0x1bd   : > { %v1438_v2 = vld [vmem:[%s14050_s25 + $0x3228] sm:$0xf]  ;;  %v1440_v3 = vld [vmem:[%s14050_s25 + $0x323c] sm:$0xf]  ;;  %1437 = vst [vmem:[%s14057_s26 + $0xa04] sm:$0xf] %v1436_v1 }
 0x1be   : > { %1439 = vst [vmem:[%s14057_s26 + $0xa08] sm:$0xf] %v1438_v2  ;;  %1441 = vst [vmem:[%s14057_s26 + $0xa0c] sm:$0xf] %v1440_v3  ;;  %v1442_v4 = vld [vmem:[%s14050_s25 + $0x3250] sm:$0xf] }
 0x1bf   : > { %v1444_v5 = vld [vmem:[%s14050_s25 + $0x3264] sm:$0xf]  ;;  %v1446_v6 = vld [vmem:[%s14050_s25 + $0x3278] sm:$0xf]  ;;  %1443 = vst [vmem:[%s14057_s26 + $0xa10] sm:$0xf] %v1442_v4 }
 0x1c0   : > { %1445 = vst [vmem:[%s14057_s26 + $0xa14] sm:$0xf] %v1444_v5  ;;  %1447 = vst [vmem:[%s14057_s26 + $0xa18] sm:$0xf] %v1446_v6  ;;  %v1448_v7 = vld [vmem:[%s14050_s25 + $0x328c] sm:$0xf] }
 0x1c1   : > { %v1450_v8 = vld [vmem:[%s14050_s25 + $0x32a0] sm:$0xf]  ;;  %v1452_v9 = vld [vmem:[%s14050_s25 + $0x32b4] sm:$0xf]  ;;  %1449 = vst [vmem:[%s14057_s26 + $0xa1c] sm:$0xf] %v1448_v7 }
 0x1c2   : > { %1451 = vst [vmem:[%s14057_s26 + $0xa20] sm:$0xf] %v1450_v8  ;;  %1453 = vst [vmem:[%s14057_s26 + $0xa24] sm:$0xf] %v1452_v9  ;;  %v1454_v10 = vld [vmem:[%s14050_s25 + $0x32c8] sm:$0xf] }
 0x1c3   : > { %v1456_v11 = vld [vmem:[%s14050_s25 + $0x32dc] sm:$0xf]  ;;  %v1458_v12 = vld [vmem:[%s14050_s25 + $0x32f0] sm:$0xf]  ;;  %1455 = vst [vmem:[%s14057_s26 + $0xa28] sm:$0xf] %v1454_v10 }
 0x1c4   : > { %1457 = vst [vmem:[%s14057_s26 + $0xa2c] sm:$0xf] %v1456_v11  ;;  %1459 = vst [vmem:[%s14057_s26 + $0xa30] sm:$0xf] %v1458_v12  ;;  %v1460_v13 = vld [vmem:[%s14050_s25 + $0x3304] sm:$0xf] }
 0x1c5   : > { %v1462_v14 = vld [vmem:[%s14050_s25 + $0x3318] sm:$0xf]  ;;  %v1464_v15 = vld [vmem:[%s14050_s25 + $0x332c] sm:$0xf]  ;;  %1461 = vst [vmem:[%s14057_s26 + $0xa34] sm:$0xf] %v1460_v13 }
 0x1c6   : > { %1463 = vst [vmem:[%s14057_s26 + $0xa38] sm:$0xf] %v1462_v14  ;;  %1465 = vst [vmem:[%s14057_s26 + $0xa3c] sm:$0xf] %v1464_v15  ;;  %v1466_v16 = vld [vmem:[%s14050_s25 + $0x3340] sm:$0xf] }
 0x1c7   : > { %v1468_v17 = vld [vmem:[%s14050_s25 + $0x3354] sm:$0xf]  ;;  %v1470_v18 = vld [vmem:[%s14050_s25 + $0x3368] sm:$0xf]  ;;  %1467 = vst [vmem:[%s14057_s26 + $0xa40] sm:$0xf] %v1466_v16 }
 0x1c8   : > { %1469 = vst [vmem:[%s14057_s26 + $0xa44] sm:$0xf] %v1468_v17  ;;  %1471 = vst [vmem:[%s14057_s26 + $0xa48] sm:$0xf] %v1470_v18  ;;  %v1472_v19 = vld [vmem:[%s14050_s25 + $0x337c] sm:$0xf] }
 0x1c9   : > { %v1474_v20 = vld [vmem:[%s14050_s25 + $0x3390] sm:$0xf]  ;;  %v1476_v21 = vld [vmem:[%s14050_s25 + $0x33a4] sm:$0xf]  ;;  %1473 = vst [vmem:[%s14057_s26 + $0xa4c] sm:$0xf] %v1472_v19 }
 0x1ca   : > { %1475 = vst [vmem:[%s14057_s26 + $0xa50] sm:$0xf] %v1474_v20  ;;  %1477 = vst [vmem:[%s14057_s26 + $0xa54] sm:$0xf] %v1476_v21  ;;  %v1478_v22 = vld [vmem:[%s14050_s25 + $0x33b8] sm:$0xf] }
 0x1cb   : > { %v1480_v23 = vld [vmem:[%s14050_s25 + $0x33cc] sm:$0xf]  ;;  %v1482_v24 = vld [vmem:[%s14050_s25 + $0x33e0] sm:$0xf]  ;;  %1479 = vst [vmem:[%s14057_s26 + $0xa58] sm:$0xf] %v1478_v22 }
 0x1cc   : > { %1481 = vst [vmem:[%s14057_s26 + $0xa5c] sm:$0xf] %v1480_v23  ;;  %1483 = vst [vmem:[%s14057_s26 + $0xa60] sm:$0xf] %v1482_v24  ;;  %v1484_v25 = vld [vmem:[%s14050_s25 + $0x33f4] sm:$0xf] }
 0x1cd   : > { %v1486_v26 = vld [vmem:[%s14050_s25 + $0x3408] sm:$0xf]  ;;  %v1488_v27 = vld [vmem:[%s14050_s25 + $0x341c] sm:$0xf]  ;;  %1485 = vst [vmem:[%s14057_s26 + $0xa64] sm:$0xf] %v1484_v25 }
 0x1ce   : > { %1487 = vst [vmem:[%s14057_s26 + $0xa68] sm:$0xf] %v1486_v26  ;;  %1489 = vst [vmem:[%s14057_s26 + $0xa6c] sm:$0xf] %v1488_v27  ;;  %v1490_v28 = vld [vmem:[%s14050_s25 + $0x3430] sm:$0xf] }
 0x1cf   : > { %v1492_v29 = vld [vmem:[%s14050_s25 + $0x3444] sm:$0xf]  ;;  %v1494_v30 = vld [vmem:[%s14050_s25 + $0x3458] sm:$0xf]  ;;  %1491 = vst [vmem:[%s14057_s26 + $0xa70] sm:$0xf] %v1490_v28 }
 0x1d0   : > { %1493 = vst [vmem:[%s14057_s26 + $0xa74] sm:$0xf] %v1492_v29  ;;  %1495 = vst [vmem:[%s14057_s26 + $0xa78] sm:$0xf] %v1494_v30  ;;  %v1496_v31 = vld [vmem:[%s14050_s25 + $0x346c] sm:$0xf] }
 0x1d1   : > { %v1498_v32 = vld [vmem:[%s14050_s25 + $0x3480] sm:$0xf]  ;;  %v1500_v33 = vld [vmem:[%s14050_s25 + $0x3494] sm:$0xf]  ;;  %1497 = vst [vmem:[%s14057_s26 + $0xa7c] sm:$0xf] %v1496_v31 }
 0x1d2   : > { %1499 = vst [vmem:[%s14057_s26 + $0xa80] sm:$0xf] %v1498_v32  ;;  %1501 = vst [vmem:[%s14057_s26 + $0xa84] sm:$0xf] %v1500_v33  ;;  %v1502_v34 = vld [vmem:[%s14050_s25 + $0x34a8] sm:$0xf] }
 0x1d3   : > { %v1504_v35 = vld [vmem:[%s14050_s25 + $0x34bc] sm:$0xf]  ;;  %v1506_v36 = vld [vmem:[%s14050_s25 + $0x34d0] sm:$0xf]  ;;  %1503 = vst [vmem:[%s14057_s26 + $0xa88] sm:$0xf] %v1502_v34 }
 0x1d4   : > { %1505 = vst [vmem:[%s14057_s26 + $0xa8c] sm:$0xf] %v1504_v35  ;;  %1507 = vst [vmem:[%s14057_s26 + $0xa90] sm:$0xf] %v1506_v36  ;;  %v1508_v37 = vld [vmem:[%s14050_s25 + $0x34e4] sm:$0xf] }
 0x1d5   : > { %v1510_v38 = vld [vmem:[%s14050_s25 + $0x34f8] sm:$0xf]  ;;  %v1512_v39 = vld [vmem:[%s14050_s25 + $0x350c] sm:$0xf]  ;;  %1509 = vst [vmem:[%s14057_s26 + $0xa94] sm:$0xf] %v1508_v37 }
 0x1d6   : > { %1511 = vst [vmem:[%s14057_s26 + $0xa98] sm:$0xf] %v1510_v38  ;;  %1513 = vst [vmem:[%s14057_s26 + $0xa9c] sm:$0xf] %v1512_v39  ;;  %v1514_v40 = vld [vmem:[%s14050_s25 + $0x3520] sm:$0xf] }
 0x1d7   : > { %v1516_v41 = vld [vmem:[%s14050_s25 + $0x3534] sm:$0xf]  ;;  %v1518_v42 = vld [vmem:[%s14050_s25 + $0x3548] sm:$0xf]  ;;  %1515 = vst [vmem:[%s14057_s26 + $0xaa0] sm:$0xf] %v1514_v40 }
 0x1d8   : > { %1517 = vst [vmem:[%s14057_s26 + $0xaa4] sm:$0xf] %v1516_v41  ;;  %1519 = vst [vmem:[%s14057_s26 + $0xaa8] sm:$0xf] %v1518_v42  ;;  %v1520_v43 = vld [vmem:[%s14050_s25 + $0x355c] sm:$0xf] }
 0x1d9   : > { %v1522_v44 = vld [vmem:[%s14050_s25 + $0x3570] sm:$0xf]  ;;  %v1524_v45 = vld [vmem:[%s14050_s25 + $0x3584] sm:$0xf]  ;;  %1521 = vst [vmem:[%s14057_s26 + $0xaac] sm:$0xf] %v1520_v43 }
 0x1da   : > { %1523 = vst [vmem:[%s14057_s26 + $0xab0] sm:$0xf] %v1522_v44  ;;  %1525 = vst [vmem:[%s14057_s26 + $0xab4] sm:$0xf] %v1524_v45  ;;  %v1526_v46 = vld [vmem:[%s14050_s25 + $0x3598] sm:$0xf] }
 0x1db   : > { %v1528_v47 = vld [vmem:[%s14050_s25 + $0x35ac] sm:$0xf]  ;;  %v1530_v48 = vld [vmem:[%s14050_s25 + $0x35c0] sm:$0xf]  ;;  %1527 = vst [vmem:[%s14057_s26 + $0xab8] sm:$0xf] %v1526_v46 }
 0x1dc   : > { %1529 = vst [vmem:[%s14057_s26 + $0xabc] sm:$0xf] %v1528_v47  ;;  %1531 = vst [vmem:[%s14057_s26 + $0xac0] sm:$0xf] %v1530_v48  ;;  %v1532_v49 = vld [vmem:[%s14050_s25 + $0x35d4] sm:$0xf] }
 0x1dd   : > { %v1534_v50 = vld [vmem:[%s14050_s25 + $0x35e8] sm:$0xf]  ;;  %v1536_v51 = vld [vmem:[%s14050_s25 + $0x35fc] sm:$0xf]  ;;  %1533 = vst [vmem:[%s14057_s26 + $0xac4] sm:$0xf] %v1532_v49 }
 0x1de   : > { %1535 = vst [vmem:[%s14057_s26 + $0xac8] sm:$0xf] %v1534_v50  ;;  %1537 = vst [vmem:[%s14057_s26 + $0xacc] sm:$0xf] %v1536_v51  ;;  %v1538_v52 = vld [vmem:[%s14050_s25 + $0x3610] sm:$0xf] }
 0x1df   : > { %v1540_v53 = vld [vmem:[%s14050_s25 + $0x3624] sm:$0xf]  ;;  %v1542_v54 = vld [vmem:[%s14050_s25 + $0x3638] sm:$0xf]  ;;  %1539 = vst [vmem:[%s14057_s26 + $0xad0] sm:$0xf] %v1538_v52 }
 0x1e0   : > { %1541 = vst [vmem:[%s14057_s26 + $0xad4] sm:$0xf] %v1540_v53  ;;  %1543 = vst [vmem:[%s14057_s26 + $0xad8] sm:$0xf] %v1542_v54  ;;  %v1544_v55 = vld [vmem:[%s14050_s25 + $0x364c] sm:$0xf] }
 0x1e1   : > { %v1546_v56 = vld [vmem:[%s14050_s25 + $0x3660] sm:$0xf]  ;;  %v1548_v57 = vld [vmem:[%s14050_s25 + $0x3674] sm:$0xf]  ;;  %1545 = vst [vmem:[%s14057_s26 + $0xadc] sm:$0xf] %v1544_v55 }
 0x1e2   : > { %1547 = vst [vmem:[%s14057_s26 + $0xae0] sm:$0xf] %v1546_v56  ;;  %1549 = vst [vmem:[%s14057_s26 + $0xae4] sm:$0xf] %v1548_v57  ;;  %v1550_v58 = vld [vmem:[%s14050_s25 + $0x3688] sm:$0xf] }
 0x1e3   : > { %v1552_v59 = vld [vmem:[%s14050_s25 + $0x369c] sm:$0xf]  ;;  %v1554_v60 = vld [vmem:[%s14050_s25 + $0x36b0] sm:$0xf]  ;;  %1551 = vst [vmem:[%s14057_s26 + $0xae8] sm:$0xf] %v1550_v58 }
 0x1e4   : > { %1553 = vst [vmem:[%s14057_s26 + $0xaec] sm:$0xf] %v1552_v59  ;;  %1555 = vst [vmem:[%s14057_s26 + $0xaf0] sm:$0xf] %v1554_v60  ;;  %v1556_v61 = vld [vmem:[%s14050_s25 + $0x36c4] sm:$0xf] }
 0x1e5   : > { %v1558_v62 = vld [vmem:[%s14050_s25 + $0x36d8] sm:$0xf]  ;;  %v1560_v63 = vld [vmem:[%s14050_s25 + $0x36ec] sm:$0xf]  ;;  %1557 = vst [vmem:[%s14057_s26 + $0xaf4] sm:$0xf] %v1556_v61 }
 0x1e6   : > { %1559 = vst [vmem:[%s14057_s26 + $0xaf8] sm:$0xf] %v1558_v62  ;;  %1561 = vst [vmem:[%s14057_s26 + $0xafc] sm:$0xf] %v1560_v63  ;;  %v1562_v0 = vld [vmem:[%s14050_s25 + $0x3700] sm:$0xf] }
 0x1e7   : > { %v1564_v1 = vld [vmem:[%s14050_s25 + $0x3714] sm:$0xf]  ;;  %v1566_v2 = vld [vmem:[%s14050_s25 + $0x3728] sm:$0xf]  ;;  %1563 = vst [vmem:[%s14057_s26 + $0xb00] sm:$0xf] %v1562_v0 }
 0x1e8   : > { %1565 = vst [vmem:[%s14057_s26 + $0xb04] sm:$0xf] %v1564_v1  ;;  %1567 = vst [vmem:[%s14057_s26 + $0xb08] sm:$0xf] %v1566_v2  ;;  %v1568_v3 = vld [vmem:[%s14050_s25 + $0x373c] sm:$0xf] }
 0x1e9   : > { %v1570_v4 = vld [vmem:[%s14050_s25 + $0x3750] sm:$0xf]  ;;  %v1572_v5 = vld [vmem:[%s14050_s25 + $0x3764] sm:$0xf]  ;;  %1569 = vst [vmem:[%s14057_s26 + $0xb0c] sm:$0xf] %v1568_v3 }
 0x1ea   : > { %1571 = vst [vmem:[%s14057_s26 + $0xb10] sm:$0xf] %v1570_v4  ;;  %1573 = vst [vmem:[%s14057_s26 + $0xb14] sm:$0xf] %v1572_v5  ;;  %v1574_v6 = vld [vmem:[%s14050_s25 + $0x3778] sm:$0xf] }
 0x1eb   : > { %v1576_v7 = vld [vmem:[%s14050_s25 + $0x378c] sm:$0xf]  ;;  %v1578_v8 = vld [vmem:[%s14050_s25 + $0x37a0] sm:$0xf]  ;;  %1575 = vst [vmem:[%s14057_s26 + $0xb18] sm:$0xf] %v1574_v6 }
 0x1ec   : > { %1577 = vst [vmem:[%s14057_s26 + $0xb1c] sm:$0xf] %v1576_v7  ;;  %1579 = vst [vmem:[%s14057_s26 + $0xb20] sm:$0xf] %v1578_v8  ;;  %v1580_v9 = vld [vmem:[%s14050_s25 + $0x37b4] sm:$0xf] }
 0x1ed   : > { %v1582_v10 = vld [vmem:[%s14050_s25 + $0x37c8] sm:$0xf]  ;;  %v1584_v11 = vld [vmem:[%s14050_s25 + $0x37dc] sm:$0xf]  ;;  %1581 = vst [vmem:[%s14057_s26 + $0xb24] sm:$0xf] %v1580_v9 }
 0x1ee   : > { %1583 = vst [vmem:[%s14057_s26 + $0xb28] sm:$0xf] %v1582_v10  ;;  %1585 = vst [vmem:[%s14057_s26 + $0xb2c] sm:$0xf] %v1584_v11  ;;  %v1586_v12 = vld [vmem:[%s14050_s25 + $0x37f0] sm:$0xf] }
 0x1ef   : > { %v1588_v13 = vld [vmem:[%s14050_s25 + $0x3804] sm:$0xf]  ;;  %v1590_v14 = vld [vmem:[%s14050_s25 + $0x3818] sm:$0xf]  ;;  %1587 = vst [vmem:[%s14057_s26 + $0xb30] sm:$0xf] %v1586_v12 }
 0x1f0   : > { %1589 = vst [vmem:[%s14057_s26 + $0xb34] sm:$0xf] %v1588_v13  ;;  %1591 = vst [vmem:[%s14057_s26 + $0xb38] sm:$0xf] %v1590_v14  ;;  %v1592_v15 = vld [vmem:[%s14050_s25 + $0x382c] sm:$0xf] }
 0x1f1   : > { %v1594_v16 = vld [vmem:[%s14050_s25 + $0x3840] sm:$0xf]  ;;  %v1596_v17 = vld [vmem:[%s14050_s25 + $0x3854] sm:$0xf]  ;;  %1593 = vst [vmem:[%s14057_s26 + $0xb3c] sm:$0xf] %v1592_v15 }
 0x1f2   : > { %1595 = vst [vmem:[%s14057_s26 + $0xb40] sm:$0xf] %v1594_v16  ;;  %1597 = vst [vmem:[%s14057_s26 + $0xb44] sm:$0xf] %v1596_v17  ;;  %v1598_v18 = vld [vmem:[%s14050_s25 + $0x3868] sm:$0xf] }
 0x1f3   : > { %v1600_v19 = vld [vmem:[%s14050_s25 + $0x387c] sm:$0xf]  ;;  %v1602_v20 = vld [vmem:[%s14050_s25 + $0x3890] sm:$0xf]  ;;  %1599 = vst [vmem:[%s14057_s26 + $0xb48] sm:$0xf] %v1598_v18 }
 0x1f4   : > { %1601 = vst [vmem:[%s14057_s26 + $0xb4c] sm:$0xf] %v1600_v19  ;;  %1603 = vst [vmem:[%s14057_s26 + $0xb50] sm:$0xf] %v1602_v20  ;;  %v1604_v21 = vld [vmem:[%s14050_s25 + $0x38a4] sm:$0xf] }
 0x1f5   : > { %v1606_v22 = vld [vmem:[%s14050_s25 + $0x38b8] sm:$0xf]  ;;  %v1608_v23 = vld [vmem:[%s14050_s25 + $0x38cc] sm:$0xf]  ;;  %1605 = vst [vmem:[%s14057_s26 + $0xb54] sm:$0xf] %v1604_v21 }
 0x1f6   : > { %1607 = vst [vmem:[%s14057_s26 + $0xb58] sm:$0xf] %v1606_v22  ;;  %1609 = vst [vmem:[%s14057_s26 + $0xb5c] sm:$0xf] %v1608_v23  ;;  %v1610_v24 = vld [vmem:[%s14050_s25 + $0x38e0] sm:$0xf] }
 0x1f7   : > { %v1612_v25 = vld [vmem:[%s14050_s25 + $0x38f4] sm:$0xf]  ;;  %v1614_v26 = vld [vmem:[%s14050_s25 + $0x3908] sm:$0xf]  ;;  %1611 = vst [vmem:[%s14057_s26 + $0xb60] sm:$0xf] %v1610_v24 }
 0x1f8   : > { %1613 = vst [vmem:[%s14057_s26 + $0xb64] sm:$0xf] %v1612_v25  ;;  %1615 = vst [vmem:[%s14057_s26 + $0xb68] sm:$0xf] %v1614_v26  ;;  %v1616_v27 = vld [vmem:[%s14050_s25 + $0x391c] sm:$0xf] }
 0x1f9   : > { %v1618_v28 = vld [vmem:[%s14050_s25 + $0x3930] sm:$0xf]  ;;  %v1620_v29 = vld [vmem:[%s14050_s25 + $0x3944] sm:$0xf]  ;;  %1617 = vst [vmem:[%s14057_s26 + $0xb6c] sm:$0xf] %v1616_v27 }
 0x1fa   : > { %1619 = vst [vmem:[%s14057_s26 + $0xb70] sm:$0xf] %v1618_v28  ;;  %1621 = vst [vmem:[%s14057_s26 + $0xb74] sm:$0xf] %v1620_v29  ;;  %v1622_v30 = vld [vmem:[%s14050_s25 + $0x3958] sm:$0xf] }
 0x1fb   : > { %v1624_v31 = vld [vmem:[%s14050_s25 + $0x396c] sm:$0xf]  ;;  %v1626_v32 = vld [vmem:[%s14050_s25 + $0x3980] sm:$0xf]  ;;  %1623 = vst [vmem:[%s14057_s26 + $0xb78] sm:$0xf] %v1622_v30 }
 0x1fc   : > { %1625 = vst [vmem:[%s14057_s26 + $0xb7c] sm:$0xf] %v1624_v31  ;;  %1627 = vst [vmem:[%s14057_s26 + $0xb80] sm:$0xf] %v1626_v32  ;;  %v1628_v33 = vld [vmem:[%s14050_s25 + $0x3994] sm:$0xf] }
 0x1fd   : > { %v1630_v34 = vld [vmem:[%s14050_s25 + $0x39a8] sm:$0xf]  ;;  %v1632_v35 = vld [vmem:[%s14050_s25 + $0x39bc] sm:$0xf]  ;;  %1629 = vst [vmem:[%s14057_s26 + $0xb84] sm:$0xf] %v1628_v33 }
 0x1fe   : > { %1631 = vst [vmem:[%s14057_s26 + $0xb88] sm:$0xf] %v1630_v34  ;;  %1633 = vst [vmem:[%s14057_s26 + $0xb8c] sm:$0xf] %v1632_v35  ;;  %v1634_v36 = vld [vmem:[%s14050_s25 + $0x39d0] sm:$0xf] }
 0x1ff   : > { %v1636_v37 = vld [vmem:[%s14050_s25 + $0x39e4] sm:$0xf]  ;;  %v1638_v38 = vld [vmem:[%s14050_s25 + $0x39f8] sm:$0xf]  ;;  %1635 = vst [vmem:[%s14057_s26 + $0xb90] sm:$0xf] %v1634_v36 }
 0x200   : > { %1637 = vst [vmem:[%s14057_s26 + $0xb94] sm:$0xf] %v1636_v37  ;;  %1639 = vst [vmem:[%s14057_s26 + $0xb98] sm:$0xf] %v1638_v38  ;;  %v1640_v39 = vld [vmem:[%s14050_s25 + $0x3a0c] sm:$0xf] }
 0x201   : > { %v1642_v40 = vld [vmem:[%s14050_s25 + $0x3a20] sm:$0xf]  ;;  %v1644_v41 = vld [vmem:[%s14050_s25 + $0x3a34] sm:$0xf]  ;;  %1641 = vst [vmem:[%s14057_s26 + $0xb9c] sm:$0xf] %v1640_v39 }
 0x202   : > { %1643 = vst [vmem:[%s14057_s26 + $0xba0] sm:$0xf] %v1642_v40  ;;  %1645 = vst [vmem:[%s14057_s26 + $0xba4] sm:$0xf] %v1644_v41  ;;  %v1646_v42 = vld [vmem:[%s14050_s25 + $0x3a48] sm:$0xf] }
 0x203   : > { %v1648_v43 = vld [vmem:[%s14050_s25 + $0x3a5c] sm:$0xf]  ;;  %v1650_v44 = vld [vmem:[%s14050_s25 + $0x3a70] sm:$0xf]  ;;  %1647 = vst [vmem:[%s14057_s26 + $0xba8] sm:$0xf] %v1646_v42 }
 0x204   : > { %1649 = vst [vmem:[%s14057_s26 + $0xbac] sm:$0xf] %v1648_v43  ;;  %1651 = vst [vmem:[%s14057_s26 + $0xbb0] sm:$0xf] %v1650_v44  ;;  %v1652_v45 = vld [vmem:[%s14050_s25 + $0x3a84] sm:$0xf] }
 0x205   : > { %v1654_v46 = vld [vmem:[%s14050_s25 + $0x3a98] sm:$0xf]  ;;  %v1656_v47 = vld [vmem:[%s14050_s25 + $0x3aac] sm:$0xf]  ;;  %1653 = vst [vmem:[%s14057_s26 + $0xbb4] sm:$0xf] %v1652_v45 }
 0x206   : > { %1655 = vst [vmem:[%s14057_s26 + $0xbb8] sm:$0xf] %v1654_v46  ;;  %1657 = vst [vmem:[%s14057_s26 + $0xbbc] sm:$0xf] %v1656_v47  ;;  %v1658_v48 = vld [vmem:[%s14050_s25 + $0x3ac0] sm:$0xf] }
 0x207   : > { %v1660_v49 = vld [vmem:[%s14050_s25 + $0x3ad4] sm:$0xf]  ;;  %v1662_v50 = vld [vmem:[%s14050_s25 + $0x3ae8] sm:$0xf]  ;;  %1659 = vst [vmem:[%s14057_s26 + $0xbc0] sm:$0xf] %v1658_v48 }
 0x208   : > { %1661 = vst [vmem:[%s14057_s26 + $0xbc4] sm:$0xf] %v1660_v49  ;;  %1663 = vst [vmem:[%s14057_s26 + $0xbc8] sm:$0xf] %v1662_v50  ;;  %v1664_v51 = vld [vmem:[%s14050_s25 + $0x3afc] sm:$0xf] }
 0x209   : > { %v1666_v52 = vld [vmem:[%s14050_s25 + $0x3b10] sm:$0xf]  ;;  %v1668_v53 = vld [vmem:[%s14050_s25 + $0x3b24] sm:$0xf]  ;;  %1665 = vst [vmem:[%s14057_s26 + $0xbcc] sm:$0xf] %v1664_v51 }
 0x20a   : > { %1667 = vst [vmem:[%s14057_s26 + $0xbd0] sm:$0xf] %v1666_v52  ;;  %1669 = vst [vmem:[%s14057_s26 + $0xbd4] sm:$0xf] %v1668_v53  ;;  %v1670_v54 = vld [vmem:[%s14050_s25 + $0x3b38] sm:$0xf] }
 0x20b   : > { %v1672_v55 = vld [vmem:[%s14050_s25 + $0x3b4c] sm:$0xf]  ;;  %v1674_v56 = vld [vmem:[%s14050_s25 + $0x3b60] sm:$0xf]  ;;  %1671 = vst [vmem:[%s14057_s26 + $0xbd8] sm:$0xf] %v1670_v54 }
 0x20c   : > { %1673 = vst [vmem:[%s14057_s26 + $0xbdc] sm:$0xf] %v1672_v55  ;;  %1675 = vst [vmem:[%s14057_s26 + $0xbe0] sm:$0xf] %v1674_v56  ;;  %v1676_v57 = vld [vmem:[%s14050_s25 + $0x3b74] sm:$0xf] }
 0x20d   : > { %v1678_v58 = vld [vmem:[%s14050_s25 + $0x3b88] sm:$0xf]  ;;  %v1680_v59 = vld [vmem:[%s14050_s25 + $0x3b9c] sm:$0xf]  ;;  %1677 = vst [vmem:[%s14057_s26 + $0xbe4] sm:$0xf] %v1676_v57 }
 0x20e   : > { %1679 = vst [vmem:[%s14057_s26 + $0xbe8] sm:$0xf] %v1678_v58  ;;  %1681 = vst [vmem:[%s14057_s26 + $0xbec] sm:$0xf] %v1680_v59  ;;  %v1682_v60 = vld [vmem:[%s14050_s25 + $0x3bb0] sm:$0xf] }
 0x20f   : > { %v1684_v61 = vld [vmem:[%s14050_s25 + $0x3bc4] sm:$0xf]  ;;  %v1686_v62 = vld [vmem:[%s14050_s25 + $0x3bd8] sm:$0xf]  ;;  %1683 = vst [vmem:[%s14057_s26 + $0xbf0] sm:$0xf] %v1682_v60 }
 0x210   : > { %1685 = vst [vmem:[%s14057_s26 + $0xbf4] sm:$0xf] %v1684_v61  ;;  %1687 = vst [vmem:[%s14057_s26 + $0xbf8] sm:$0xf] %v1686_v62  ;;  %v1688_v63 = vld [vmem:[%s14050_s25 + $0x3bec] sm:$0xf] }
 0x211   : > { %v1690_v0 = vld [vmem:[%s14050_s25 + $0x3c00] sm:$0xf]  ;;  %v1692_v1 = vld [vmem:[%s14050_s25 + $0x3c14] sm:$0xf]  ;;  %1689 = vst [vmem:[%s14057_s26 + $0xbfc] sm:$0xf] %v1688_v63 }
 0x212   : > { %1691 = vst [vmem:[%s14057_s26 + $0xc00] sm:$0xf] %v1690_v0  ;;  %1693 = vst [vmem:[%s14057_s26 + $0xc04] sm:$0xf] %v1692_v1  ;;  %v1694_v2 = vld [vmem:[%s14050_s25 + $0x3c28] sm:$0xf] }
 0x213   : > { %v1696_v3 = vld [vmem:[%s14050_s25 + $0x3c3c] sm:$0xf]  ;;  %v1698_v4 = vld [vmem:[%s14050_s25 + $0x3c50] sm:$0xf]  ;;  %1695 = vst [vmem:[%s14057_s26 + $0xc08] sm:$0xf] %v1694_v2 }
 0x214   : > { %1697 = vst [vmem:[%s14057_s26 + $0xc0c] sm:$0xf] %v1696_v3  ;;  %1699 = vst [vmem:[%s14057_s26 + $0xc10] sm:$0xf] %v1698_v4  ;;  %v1700_v5 = vld [vmem:[%s14050_s25 + $0x3c64] sm:$0xf] }
 0x215   : > { %v1702_v6 = vld [vmem:[%s14050_s25 + $0x3c78] sm:$0xf]  ;;  %v1704_v7 = vld [vmem:[%s14050_s25 + $0x3c8c] sm:$0xf]  ;;  %1701 = vst [vmem:[%s14057_s26 + $0xc14] sm:$0xf] %v1700_v5 }
 0x216   : > { %1703 = vst [vmem:[%s14057_s26 + $0xc18] sm:$0xf] %v1702_v6  ;;  %1705 = vst [vmem:[%s14057_s26 + $0xc1c] sm:$0xf] %v1704_v7  ;;  %v1706_v8 = vld [vmem:[%s14050_s25 + $0x3ca0] sm:$0xf] }
 0x217   : > { %v1708_v9 = vld [vmem:[%s14050_s25 + $0x3cb4] sm:$0xf]  ;;  %v1710_v10 = vld [vmem:[%s14050_s25 + $0x3cc8] sm:$0xf]  ;;  %1707 = vst [vmem:[%s14057_s26 + $0xc20] sm:$0xf] %v1706_v8 }
 0x218   : > { %1709 = vst [vmem:[%s14057_s26 + $0xc24] sm:$0xf] %v1708_v9  ;;  %1711 = vst [vmem:[%s14057_s26 + $0xc28] sm:$0xf] %v1710_v10  ;;  %v1712_v11 = vld [vmem:[%s14050_s25 + $0x3cdc] sm:$0xf] }
 0x219   : > { %v1714_v12 = vld [vmem:[%s14050_s25 + $0x3cf0] sm:$0xf]  ;;  %v1716_v13 = vld [vmem:[%s14050_s25 + $0x3d04] sm:$0xf]  ;;  %1713 = vst [vmem:[%s14057_s26 + $0xc2c] sm:$0xf] %v1712_v11 }
 0x21a   : > { %1715 = vst [vmem:[%s14057_s26 + $0xc30] sm:$0xf] %v1714_v12  ;;  %1717 = vst [vmem:[%s14057_s26 + $0xc34] sm:$0xf] %v1716_v13  ;;  %v1718_v14 = vld [vmem:[%s14050_s25 + $0x3d18] sm:$0xf] }
 0x21b   : > { %v1720_v15 = vld [vmem:[%s14050_s25 + $0x3d2c] sm:$0xf]  ;;  %v1722_v16 = vld [vmem:[%s14050_s25 + $0x3d40] sm:$0xf]  ;;  %1719 = vst [vmem:[%s14057_s26 + $0xc38] sm:$0xf] %v1718_v14 }
 0x21c   : > { %1721 = vst [vmem:[%s14057_s26 + $0xc3c] sm:$0xf] %v1720_v15  ;;  %1723 = vst [vmem:[%s14057_s26 + $0xc40] sm:$0xf] %v1722_v16  ;;  %v1724_v17 = vld [vmem:[%s14050_s25 + $0x3d54] sm:$0xf] }
 0x21d   : > { %v1726_v18 = vld [vmem:[%s14050_s25 + $0x3d68] sm:$0xf]  ;;  %v1728_v19 = vld [vmem:[%s14050_s25 + $0x3d7c] sm:$0xf]  ;;  %1725 = vst [vmem:[%s14057_s26 + $0xc44] sm:$0xf] %v1724_v17 }
 0x21e   : > { %1727 = vst [vmem:[%s14057_s26 + $0xc48] sm:$0xf] %v1726_v18  ;;  %1729 = vst [vmem:[%s14057_s26 + $0xc4c] sm:$0xf] %v1728_v19  ;;  %v1730_v20 = vld [vmem:[%s14050_s25 + $0x3d90] sm:$0xf] }
 0x21f   : > { %v1732_v21 = vld [vmem:[%s14050_s25 + $0x3da4] sm:$0xf]  ;;  %v1734_v22 = vld [vmem:[%s14050_s25 + $0x3db8] sm:$0xf]  ;;  %1731 = vst [vmem:[%s14057_s26 + $0xc50] sm:$0xf] %v1730_v20 }
 0x220   : > { %1733 = vst [vmem:[%s14057_s26 + $0xc54] sm:$0xf] %v1732_v21  ;;  %1735 = vst [vmem:[%s14057_s26 + $0xc58] sm:$0xf] %v1734_v22  ;;  %v1736_v23 = vld [vmem:[%s14050_s25 + $0x3dcc] sm:$0xf] }
 0x221   : > { %v1738_v24 = vld [vmem:[%s14050_s25 + $0x3de0] sm:$0xf]  ;;  %v1740_v25 = vld [vmem:[%s14050_s25 + $0x3df4] sm:$0xf]  ;;  %1737 = vst [vmem:[%s14057_s26 + $0xc5c] sm:$0xf] %v1736_v23 }
 0x222   : > { %1739 = vst [vmem:[%s14057_s26 + $0xc60] sm:$0xf] %v1738_v24  ;;  %1741 = vst [vmem:[%s14057_s26 + $0xc64] sm:$0xf] %v1740_v25  ;;  %v1742_v26 = vld [vmem:[%s14050_s25 + $0x3e08] sm:$0xf] }
 0x223   : > { %v1744_v27 = vld [vmem:[%s14050_s25 + $0x3e1c] sm:$0xf]  ;;  %v1746_v28 = vld [vmem:[%s14050_s25 + $0x3e30] sm:$0xf]  ;;  %1743 = vst [vmem:[%s14057_s26 + $0xc68] sm:$0xf] %v1742_v26 }
 0x224   : > { %1745 = vst [vmem:[%s14057_s26 + $0xc6c] sm:$0xf] %v1744_v27  ;;  %1747 = vst [vmem:[%s14057_s26 + $0xc70] sm:$0xf] %v1746_v28  ;;  %v1748_v29 = vld [vmem:[%s14050_s25 + $0x3e44] sm:$0xf] }
 0x225   : > { %v1750_v30 = vld [vmem:[%s14050_s25 + $0x3e58] sm:$0xf]  ;;  %v1752_v31 = vld [vmem:[%s14050_s25 + $0x3e6c] sm:$0xf]  ;;  %1749 = vst [vmem:[%s14057_s26 + $0xc74] sm:$0xf] %v1748_v29 }
 0x226   : > { %1751 = vst [vmem:[%s14057_s26 + $0xc78] sm:$0xf] %v1750_v30  ;;  %1753 = vst [vmem:[%s14057_s26 + $0xc7c] sm:$0xf] %v1752_v31  ;;  %v1754_v32 = vld [vmem:[%s14050_s25 + $0x3e80] sm:$0xf] }
 0x227   : > { %v1756_v33 = vld [vmem:[%s14050_s25 + $0x3e94] sm:$0xf]  ;;  %v1758_v34 = vld [vmem:[%s14050_s25 + $0x3ea8] sm:$0xf]  ;;  %1755 = vst [vmem:[%s14057_s26 + $0xc80] sm:$0xf] %v1754_v32 }
 0x228   : > { %1757 = vst [vmem:[%s14057_s26 + $0xc84] sm:$0xf] %v1756_v33  ;;  %1759 = vst [vmem:[%s14057_s26 + $0xc88] sm:$0xf] %v1758_v34  ;;  %v1760_v35 = vld [vmem:[%s14050_s25 + $0x3ebc] sm:$0xf] }
 0x229   : > { %v1762_v36 = vld [vmem:[%s14050_s25 + $0x3ed0] sm:$0xf]  ;;  %v1764_v37 = vld [vmem:[%s14050_s25 + $0x3ee4] sm:$0xf]  ;;  %1761 = vst [vmem:[%s14057_s26 + $0xc8c] sm:$0xf] %v1760_v35 }
 0x22a   : > { %1763 = vst [vmem:[%s14057_s26 + $0xc90] sm:$0xf] %v1762_v36  ;;  %1765 = vst [vmem:[%s14057_s26 + $0xc94] sm:$0xf] %v1764_v37  ;;  %v1766_v38 = vld [vmem:[%s14050_s25 + $0x3ef8] sm:$0xf] }
 0x22b   : > { %v1768_v39 = vld [vmem:[%s14050_s25 + $0x3f0c] sm:$0xf]  ;;  %v1770_v40 = vld [vmem:[%s14050_s25 + $0x3f20] sm:$0xf]  ;;  %1767 = vst [vmem:[%s14057_s26 + $0xc98] sm:$0xf] %v1766_v38 }
 0x22c   : > { %1769 = vst [vmem:[%s14057_s26 + $0xc9c] sm:$0xf] %v1768_v39  ;;  %1771 = vst [vmem:[%s14057_s26 + $0xca0] sm:$0xf] %v1770_v40  ;;  %v1772_v41 = vld [vmem:[%s14050_s25 + $0x3f34] sm:$0xf] }
 0x22d   : > { %v1774_v42 = vld [vmem:[%s14050_s25 + $0x3f48] sm:$0xf]  ;;  %v1776_v43 = vld [vmem:[%s14050_s25 + $0x3f5c] sm:$0xf]  ;;  %1773 = vst [vmem:[%s14057_s26 + $0xca4] sm:$0xf] %v1772_v41 }
 0x22e   : > { %1775 = vst [vmem:[%s14057_s26 + $0xca8] sm:$0xf] %v1774_v42  ;;  %1777 = vst [vmem:[%s14057_s26 + $0xcac] sm:$0xf] %v1776_v43  ;;  %v1778_v44 = vld [vmem:[%s14050_s25 + $0x3f70] sm:$0xf] }
 0x22f   : > { %v1780_v45 = vld [vmem:[%s14050_s25 + $0x3f84] sm:$0xf]  ;;  %v1782_v46 = vld [vmem:[%s14050_s25 + $0x3f98] sm:$0xf]  ;;  %1779 = vst [vmem:[%s14057_s26 + $0xcb0] sm:$0xf] %v1778_v44 }
 0x230   : > { %1781 = vst [vmem:[%s14057_s26 + $0xcb4] sm:$0xf] %v1780_v45  ;;  %1783 = vst [vmem:[%s14057_s26 + $0xcb8] sm:$0xf] %v1782_v46  ;;  %v1784_v47 = vld [vmem:[%s14050_s25 + $0x3fac] sm:$0xf] }
 0x231   : > { %v1786_v48 = vld [vmem:[%s14050_s25 + $0x3fc0] sm:$0xf]  ;;  %v1788_v49 = vld [vmem:[%s14050_s25 + $0x3fd4] sm:$0xf]  ;;  %1785 = vst [vmem:[%s14057_s26 + $0xcbc] sm:$0xf] %v1784_v47 }
 0x232   : > { %1787 = vst [vmem:[%s14057_s26 + $0xcc0] sm:$0xf] %v1786_v48  ;;  %1789 = vst [vmem:[%s14057_s26 + $0xcc4] sm:$0xf] %v1788_v49  ;;  %v1790_v50 = vld [vmem:[%s14050_s25 + $0x3fe8] sm:$0xf] }
 0x233   : > { %v1792_v51 = vld [vmem:[%s14050_s25 + $0x3ffc] sm:$0xf]  ;;  %v1794_v52 = vld [vmem:[%s14050_s25 + $0x4010] sm:$0xf]  ;;  %1791 = vst [vmem:[%s14057_s26 + $0xcc8] sm:$0xf] %v1790_v50 }
 0x234   : > { %1793 = vst [vmem:[%s14057_s26 + $0xccc] sm:$0xf] %v1792_v51  ;;  %1795 = vst [vmem:[%s14057_s26 + $0xcd0] sm:$0xf] %v1794_v52  ;;  %v1796_v53 = vld [vmem:[%s14050_s25 + $0x4024] sm:$0xf] }
 0x235   : > { %v1798_v54 = vld [vmem:[%s14050_s25 + $0x4038] sm:$0xf]  ;;  %v1800_v55 = vld [vmem:[%s14050_s25 + $0x404c] sm:$0xf]  ;;  %1797 = vst [vmem:[%s14057_s26 + $0xcd4] sm:$0xf] %v1796_v53 }
 0x236   : > { %1799 = vst [vmem:[%s14057_s26 + $0xcd8] sm:$0xf] %v1798_v54  ;;  %1801 = vst [vmem:[%s14057_s26 + $0xcdc] sm:$0xf] %v1800_v55  ;;  %v1802_v56 = vld [vmem:[%s14050_s25 + $0x4060] sm:$0xf] }
 0x237   : > { %v1804_v57 = vld [vmem:[%s14050_s25 + $0x4074] sm:$0xf]  ;;  %v1806_v58 = vld [vmem:[%s14050_s25 + $0x4088] sm:$0xf]  ;;  %1803 = vst [vmem:[%s14057_s26 + $0xce0] sm:$0xf] %v1802_v56 }
 0x238   : > { %1805 = vst [vmem:[%s14057_s26 + $0xce4] sm:$0xf] %v1804_v57  ;;  %1807 = vst [vmem:[%s14057_s26 + $0xce8] sm:$0xf] %v1806_v58  ;;  %v1808_v59 = vld [vmem:[%s14050_s25 + $0x409c] sm:$0xf] }
 0x239   : > { %v1810_v60 = vld [vmem:[%s14050_s25 + $0x40b0] sm:$0xf]  ;;  %v1812_v61 = vld [vmem:[%s14050_s25 + $0x40c4] sm:$0xf]  ;;  %1809 = vst [vmem:[%s14057_s26 + $0xcec] sm:$0xf] %v1808_v59 }
 0x23a   : > { %1811 = vst [vmem:[%s14057_s26 + $0xcf0] sm:$0xf] %v1810_v60  ;;  %1813 = vst [vmem:[%s14057_s26 + $0xcf4] sm:$0xf] %v1812_v61  ;;  %v1814_v62 = vld [vmem:[%s14050_s25 + $0x40d8] sm:$0xf] }
 0x23b   : > { %v1816_v63 = vld [vmem:[%s14050_s25 + $0x40ec] sm:$0xf]  ;;  %v1818_v0 = vld [vmem:[%s14050_s25 + $0x4100] sm:$0xf]  ;;  %1815 = vst [vmem:[%s14057_s26 + $0xcf8] sm:$0xf] %v1814_v62 }
 0x23c   : > { %1817 = vst [vmem:[%s14057_s26 + $0xcfc] sm:$0xf] %v1816_v63  ;;  %1819 = vst [vmem:[%s14057_s26 + $0xd00] sm:$0xf] %v1818_v0  ;;  %v1820_v1 = vld [vmem:[%s14050_s25 + $0x4114] sm:$0xf] }
 0x23d   : > { %v1822_v2 = vld [vmem:[%s14050_s25 + $0x4128] sm:$0xf]  ;;  %v1824_v3 = vld [vmem:[%s14050_s25 + $0x413c] sm:$0xf]  ;;  %1821 = vst [vmem:[%s14057_s26 + $0xd04] sm:$0xf] %v1820_v1 }
 0x23e   : > { %1823 = vst [vmem:[%s14057_s26 + $0xd08] sm:$0xf] %v1822_v2  ;;  %1825 = vst [vmem:[%s14057_s26 + $0xd0c] sm:$0xf] %v1824_v3  ;;  %v1826_v4 = vld [vmem:[%s14050_s25 + $0x4150] sm:$0xf] }
 0x23f   : > { %v1828_v5 = vld [vmem:[%s14050_s25 + $0x4164] sm:$0xf]  ;;  %v1830_v6 = vld [vmem:[%s14050_s25 + $0x4178] sm:$0xf]  ;;  %1827 = vst [vmem:[%s14057_s26 + $0xd10] sm:$0xf] %v1826_v4 }
 0x240   : > { %1829 = vst [vmem:[%s14057_s26 + $0xd14] sm:$0xf] %v1828_v5  ;;  %1831 = vst [vmem:[%s14057_s26 + $0xd18] sm:$0xf] %v1830_v6  ;;  %v1832_v7 = vld [vmem:[%s14050_s25 + $0x418c] sm:$0xf] }
 0x241   : > { %v1834_v8 = vld [vmem:[%s14050_s25 + $0x41a0] sm:$0xf]  ;;  %v1836_v9 = vld [vmem:[%s14050_s25 + $0x41b4] sm:$0xf]  ;;  %1833 = vst [vmem:[%s14057_s26 + $0xd1c] sm:$0xf] %v1832_v7 }
 0x242   : > { %1835 = vst [vmem:[%s14057_s26 + $0xd20] sm:$0xf] %v1834_v8  ;;  %1837 = vst [vmem:[%s14057_s26 + $0xd24] sm:$0xf] %v1836_v9  ;;  %v1838_v10 = vld [vmem:[%s14050_s25 + $0x41c8] sm:$0xf] }
 0x243   : > { %v1840_v11 = vld [vmem:[%s14050_s25 + $0x41dc] sm:$0xf]  ;;  %v1842_v12 = vld [vmem:[%s14050_s25 + $0x41f0] sm:$0xf]  ;;  %1839 = vst [vmem:[%s14057_s26 + $0xd28] sm:$0xf] %v1838_v10 }
 0x244   : > { %1841 = vst [vmem:[%s14057_s26 + $0xd2c] sm:$0xf] %v1840_v11  ;;  %1843 = vst [vmem:[%s14057_s26 + $0xd30] sm:$0xf] %v1842_v12  ;;  %v1844_v13 = vld [vmem:[%s14050_s25 + $0x4204] sm:$0xf] }
 0x245   : > { %v1846_v14 = vld [vmem:[%s14050_s25 + $0x4218] sm:$0xf]  ;;  %v1848_v15 = vld [vmem:[%s14050_s25 + $0x422c] sm:$0xf]  ;;  %1845 = vst [vmem:[%s14057_s26 + $0xd34] sm:$0xf] %v1844_v13 }
 0x246   : > { %1847 = vst [vmem:[%s14057_s26 + $0xd38] sm:$0xf] %v1846_v14  ;;  %1849 = vst [vmem:[%s14057_s26 + $0xd3c] sm:$0xf] %v1848_v15  ;;  %v1850_v16 = vld [vmem:[%s14050_s25 + $0x4240] sm:$0xf] }
 0x247   : > { %v1852_v17 = vld [vmem:[%s14050_s25 + $0x4254] sm:$0xf]  ;;  %v1854_v18 = vld [vmem:[%s14050_s25 + $0x4268] sm:$0xf]  ;;  %1851 = vst [vmem:[%s14057_s26 + $0xd40] sm:$0xf] %v1850_v16 }
 0x248   : > { %1853 = vst [vmem:[%s14057_s26 + $0xd44] sm:$0xf] %v1852_v17  ;;  %1855 = vst [vmem:[%s14057_s26 + $0xd48] sm:$0xf] %v1854_v18  ;;  %v1856_v19 = vld [vmem:[%s14050_s25 + $0x427c] sm:$0xf] }
 0x249   : > { %v1858_v20 = vld [vmem:[%s14050_s25 + $0x4290] sm:$0xf]  ;;  %v1860_v21 = vld [vmem:[%s14050_s25 + $0x42a4] sm:$0xf]  ;;  %1857 = vst [vmem:[%s14057_s26 + $0xd4c] sm:$0xf] %v1856_v19 }
 0x24a   : > { %1859 = vst [vmem:[%s14057_s26 + $0xd50] sm:$0xf] %v1858_v20  ;;  %1861 = vst [vmem:[%s14057_s26 + $0xd54] sm:$0xf] %v1860_v21  ;;  %v1862_v22 = vld [vmem:[%s14050_s25 + $0x42b8] sm:$0xf] }
 0x24b   : > { %v1864_v23 = vld [vmem:[%s14050_s25 + $0x42cc] sm:$0xf]  ;;  %v1866_v24 = vld [vmem:[%s14050_s25 + $0x42e0] sm:$0xf]  ;;  %1863 = vst [vmem:[%s14057_s26 + $0xd58] sm:$0xf] %v1862_v22 }
 0x24c   : > { %1865 = vst [vmem:[%s14057_s26 + $0xd5c] sm:$0xf] %v1864_v23  ;;  %1867 = vst [vmem:[%s14057_s26 + $0xd60] sm:$0xf] %v1866_v24  ;;  %v1868_v25 = vld [vmem:[%s14050_s25 + $0x42f4] sm:$0xf] }
 0x24d   : > { %v1870_v26 = vld [vmem:[%s14050_s25 + $0x4308] sm:$0xf]  ;;  %v1872_v27 = vld [vmem:[%s14050_s25 + $0x431c] sm:$0xf]  ;;  %1869 = vst [vmem:[%s14057_s26 + $0xd64] sm:$0xf] %v1868_v25 }
 0x24e   : > { %1871 = vst [vmem:[%s14057_s26 + $0xd68] sm:$0xf] %v1870_v26  ;;  %1873 = vst [vmem:[%s14057_s26 + $0xd6c] sm:$0xf] %v1872_v27  ;;  %v1874_v28 = vld [vmem:[%s14050_s25 + $0x4330] sm:$0xf] }
 0x24f   : > { %v1876_v29 = vld [vmem:[%s14050_s25 + $0x4344] sm:$0xf]  ;;  %v1878_v30 = vld [vmem:[%s14050_s25 + $0x4358] sm:$0xf]  ;;  %1875 = vst [vmem:[%s14057_s26 + $0xd70] sm:$0xf] %v1874_v28 }
 0x250   : > { %1877 = vst [vmem:[%s14057_s26 + $0xd74] sm:$0xf] %v1876_v29  ;;  %1879 = vst [vmem:[%s14057_s26 + $0xd78] sm:$0xf] %v1878_v30  ;;  %v1880_v31 = vld [vmem:[%s14050_s25 + $0x436c] sm:$0xf] }
 0x251   : > { %v1882_v32 = vld [vmem:[%s14050_s25 + $0x4380] sm:$0xf]  ;;  %v1884_v33 = vld [vmem:[%s14050_s25 + $0x4394] sm:$0xf]  ;;  %1881 = vst [vmem:[%s14057_s26 + $0xd7c] sm:$0xf] %v1880_v31 }
 0x252   : > { %1883 = vst [vmem:[%s14057_s26 + $0xd80] sm:$0xf] %v1882_v32  ;;  %1885 = vst [vmem:[%s14057_s26 + $0xd84] sm:$0xf] %v1884_v33  ;;  %v1886_v34 = vld [vmem:[%s14050_s25 + $0x43a8] sm:$0xf] }
 0x253   : > { %v1888_v35 = vld [vmem:[%s14050_s25 + $0x43bc] sm:$0xf]  ;;  %v1890_v36 = vld [vmem:[%s14050_s25 + $0x43d0] sm:$0xf]  ;;  %1887 = vst [vmem:[%s14057_s26 + $0xd88] sm:$0xf] %v1886_v34 }
 0x254   : > { %1889 = vst [vmem:[%s14057_s26 + $0xd8c] sm:$0xf] %v1888_v35  ;;  %1891 = vst [vmem:[%s14057_s26 + $0xd90] sm:$0xf] %v1890_v36  ;;  %v1892_v37 = vld [vmem:[%s14050_s25 + $0x43e4] sm:$0xf] }
 0x255   : > { %v1894_v38 = vld [vmem:[%s14050_s25 + $0x43f8] sm:$0xf]  ;;  %v1896_v39 = vld [vmem:[%s14050_s25 + $0x440c] sm:$0xf]  ;;  %1893 = vst [vmem:[%s14057_s26 + $0xd94] sm:$0xf] %v1892_v37 }
 0x256   : > { %1895 = vst [vmem:[%s14057_s26 + $0xd98] sm:$0xf] %v1894_v38  ;;  %1897 = vst [vmem:[%s14057_s26 + $0xd9c] sm:$0xf] %v1896_v39  ;;  %v1898_v40 = vld [vmem:[%s14050_s25 + $0x4420] sm:$0xf] }
 0x257   : > { %v1900_v41 = vld [vmem:[%s14050_s25 + $0x4434] sm:$0xf]  ;;  %v1902_v42 = vld [vmem:[%s14050_s25 + $0x4448] sm:$0xf]  ;;  %1899 = vst [vmem:[%s14057_s26 + $0xda0] sm:$0xf] %v1898_v40 }
 0x258   : > { %1901 = vst [vmem:[%s14057_s26 + $0xda4] sm:$0xf] %v1900_v41  ;;  %1903 = vst [vmem:[%s14057_s26 + $0xda8] sm:$0xf] %v1902_v42  ;;  %v1904_v43 = vld [vmem:[%s14050_s25 + $0x445c] sm:$0xf] }
 0x259   : > { %v1906_v44 = vld [vmem:[%s14050_s25 + $0x4470] sm:$0xf]  ;;  %v1908_v45 = vld [vmem:[%s14050_s25 + $0x4484] sm:$0xf]  ;;  %1905 = vst [vmem:[%s14057_s26 + $0xdac] sm:$0xf] %v1904_v43 }
 0x25a   : > { %1907 = vst [vmem:[%s14057_s26 + $0xdb0] sm:$0xf] %v1906_v44  ;;  %1909 = vst [vmem:[%s14057_s26 + $0xdb4] sm:$0xf] %v1908_v45  ;;  %v1910_v46 = vld [vmem:[%s14050_s25 + $0x4498] sm:$0xf] }
 0x25b   : > { %v1912_v47 = vld [vmem:[%s14050_s25 + $0x44ac] sm:$0xf]  ;;  %v1914_v48 = vld [vmem:[%s14050_s25 + $0x44c0] sm:$0xf]  ;;  %1911 = vst [vmem:[%s14057_s26 + $0xdb8] sm:$0xf] %v1910_v46 }
 0x25c   : > { %1913 = vst [vmem:[%s14057_s26 + $0xdbc] sm:$0xf] %v1912_v47  ;;  %1915 = vst [vmem:[%s14057_s26 + $0xdc0] sm:$0xf] %v1914_v48  ;;  %v1916_v49 = vld [vmem:[%s14050_s25 + $0x44d4] sm:$0xf] }
 0x25d   : > { %1917 = vst [vmem:[%s14057_s26 + $0xdc4] sm:$0xf] %v1916_v49 }
 0x25e PF: > { %p12454_p5 = scmp.ge.s32.totalorder %s13992_s14, 1  ;;  %p7267_p6 = scmp.lt.s32.totalorder %s13992_s14, 6 }
 0x260   : > { %p7268_p7 = pnand %p12454_p5, %p7267_p6 }
 0x261   : > { %s7274_s27 = sand.u32 (!%p7268_p7), 1, %s13984_s12   ;;  %v8212_v50 = vlaneseq (!%p7268_p7)  ;;  %v13994_v51 = vmov (!%p7268_p7), 1966171168   ;;  %v7305_v54 = vld [vmem:[%s16425_s0] sm:$0xff] (!%p7268_p7)  ;;  %p7298_p8 = scmp.lt.s32.totalorder (!%p7268_p7), %s12449_s15, 4  ;;  %vm11252_vm0 = vcmask (!%p7268_p7), 130048  }
 0x262   : > { %7271 = sbr.rel (%p7268_p7) target bundleno = 1288 (0x508), region = 80  ;;  %v8210_v52 = vunpack.c.l.s4 (!%p7268_p7), %v13994_v51  ;;  %v8208_v16 = vcombine.high (!%p7268_p7), %v7305_v54, %v7305_v54 }
 0x263   : > { %s13495_s28 = smul.u32 (!%p7268_p7), 3528, %s7274_s27  ;;  %v8213_v53 = vshrl.u32 (!%p7268_p7), %v8212_v50, 7 }
 0x264   : > { %v8211_v55 = vunpack.c.0.s8 (!%p7268_p7), %v8210_v52 }
 0x265   : > { %s15824_s4 = scalar_lea.vmem (!%p7268_p7), [#allocation2], %s13495_s28 }
 0x266   : > { %v13522_v56 = vld [vmem:[%s15824_s4 + $0x40] sm:$0xff] (!%p7268_p7)   ;;  %v15828_v58 = vsub.s32 (!%p7268_p7), %v8211_v55, %v8213_v53  ;;  %v13526_v62 = vld [vmem:[%s15824_s4 + $0x48] sm:$0xff] (!%p7268_p7)   ;;  %v13530_v4 = vld [vmem:[%s15824_s4 + $0x50] sm:$0xff] (!%p7268_p7)  }
 0x267   : > { %v13523_v57 = vld [vmem:[%s15824_s4 + $0xc0] sm:$0xff] (!%p7268_p7)   ;;  %12900 = vmatprep.subr.bf16.mxu0 (!%p7268_p7), %v13522_v56  ;;  %v13527_v63 = vld [vmem:[%s15824_s4 + $0xc8] sm:$0xff] (!%p7268_p7)   ;;  %v13531_v5 = vld [vmem:[%s15824_s4 + $0xd0] sm:$0xff] (!%p7268_p7)  }
 0x268   : > { %v13524_v59 = vld [vmem:[%s15824_s4] sm:$0xff] (!%p7268_p7)   ;;  %12922 = vmatprep.subr.bf16.mxu1 (!%p7268_p7), %v13523_v57  ;;  %v8215_v61 = vrot.slane (!%p7268_p7), %v7305_v54, %v15828_v58  ;;  %v13528_v1 = vld [vmem:[%s15824_s4 + $0x8] sm:$0xff] (!%p7268_p7)   ;;  %v13532_v7 = vld [vmem:[%s15824_s4 + $0x10] sm:$0xff] (!%p7268_p7)   ;;  %v15854_v21 = vrot.slane (!%p7268_p7), %v8208_v16, %v15828_v58 }
 0x269   : > { %v13525_v60 = vld [vmem:[%s15824_s4 + $0x80] sm:$0xff]   ;;  %12901 = vmatpush3.bf16.msra.mxu0 %v13524_v59  ;;  %v13529_v2 = vld [vmem:[%s15824_s4 + $0x88] sm:$0xff]   ;;  %v13533_v8 = vld [vmem:[%s15824_s4 + $0x90] sm:$0xff]   ;;  %s16433_s15 = smov (!%p7298_p8, %s12449_s15), 4 }
 0x26a   : > { %12923 = vmatpush3.bf16.msra.mxu1 %v13525_v60  ;;  %v8223_v0 = vcombine.high %v8215_v61, %v8215_v61  ;;  %12902 = vmatprep.subr.bf16.mxu0 %v13526_v62  ;;  %v13534_v9 = vld [vmem:[%s15824_s4 + $0x58] sm:$0xff]   ;;  %v13538_v13 = vld [vmem:[%s15824_s4 + $0x60] sm:$0xff]   ;;  %v13542_v18 = vld [vmem:[%s15824_s4 + $0x68] sm:$0xff]   ;;  %v8224_v26 = vcombine.high %v15854_v21, %v15854_v21  ;;  %v8231_v29 = vrot.slane %v8215_v61, %v15828_v58  ;;  %s7300_s17 = scalar_lea.vmem %s16427_s2, %s16433_s15  ;;  %s7303_s26 = scalar_lea.vmem %s16428_s3, %s16433_s15 }
 0x26b   : > { %12924 = vmatprep.subr.bf16.mxu1 %v13527_v63  ;;  %v13535_v10 = vld [vmem:[%s15824_s4 + $0xd8] sm:$0xff]   ;;  %v13539_v14 = vld [vmem:[%s15824_s4 + $0xe0] sm:$0xff]   ;;  %v13543_v19 = vld [vmem:[%s15824_s4 + $0xe8] sm:$0xff]  }
 0x26c   : > { %v8245_v3 = vrot.slane %v8223_v0, %v15828_v58  ;;  %v13536_v11 = vld [vmem:[%s15824_s4 + $0x18] sm:$0xff]   ;;  %v13540_v15 = vld [vmem:[%s15824_s4 + $0x20] sm:$0xff]   ;;  %v13544_v20 = vld [vmem:[%s15824_s4 + $0x28] sm:$0xff]   ;;  %v8252_v32 = vrot.slane %v8224_v26, %v15828_v58  ;;  %v8253_v34 = vcombine.high %v8231_v29, %v8231_v29 }
 0x26d   : > { %12903 = vmatpush3.bf16.msra.mxu0 %v13528_v1  ;;  %v13537_v12 = vld [vmem:[%s15824_s4 + $0x98] sm:$0xff]   ;;  %v13541_v17 = vld [vmem:[%s15824_s4 + $0xa0] sm:$0xff]   ;;  %v13545_v22 = vld [vmem:[%s15824_s4 + $0xa8] sm:$0xff]  }
 0x26e   : > { %12925 = vmatpush3.bf16.msra.mxu1 %v13529_v2  ;;  %11288 = vmatprep.mubr.bf16.mxu0 %v8245_v3  ;;  %v8255_v6 = vcombine.high %v8245_v3, %v8245_v3  ;;  %v13546_v23 = vld [vmem:[%s15824_s4 + $0x70] sm:$0xff]   ;;  %v13550_v28 = vld [vmem:[%s15824_s4 + $0x78] sm:$0xff]   ;;  %v13555_v35 = vld [vmem:[%s15824_s4 + $0x140] sm:$0xff]   ;;  %v8256_v38 = vcombine.high %v8252_v32, %v8252_v32 }
 0x26f   : > { %12904 = vmatprep.subr.bf16.mxu0 %v13530_v4  ;;  %12926 = vmatprep.subr.bf16.mxu1 %v13531_v5  ;;  %v13547_v24 = vld [vmem:[%s15824_s4 + $0xf0] sm:$0xff]   ;;  %v13551_v30 = vld [vmem:[%s15824_s4 + $0xf8] sm:$0xff]   ;;  %v13556_v36 = vld [vmem:[%s15824_s4 + $0x1c0] sm:$0xff]   ;;  %v8238_v5 = vrot.slane %v15854_v21, %v15828_v58 }
 0x270   : > { %11328 = vmatprep.mubr.bf16.mxu1 %v8255_v6  ;;  %v13548_v25 = vld [vmem:[%s15824_s4 + $0x30] sm:$0xff]   ;;  %v13552_v31 = vld [vmem:[%s15824_s4 + $0x38] sm:$0xff]   ;;  %v13557_v37 = vld [vmem:[%s15824_s4 + $0x100] sm:$0xff]  }
 0x271   : > { %12905 = vmatpush3.bf16.msra.mxu0 %v13532_v7  ;;  %v13549_v27 = vld [vmem:[%s15824_s4 + $0xb0] sm:$0xff]   ;;  %v13553_v33 = vld [vmem:[%s15824_s4 + $0xb8] sm:$0xff]   ;;  %v13558_v39 = vld [vmem:[%s15824_s4 + $0x180] sm:$0xff]  }
 0x272   : > { %12927 = vmatpush3.bf16.msra.mxu1 %v13533_v8  ;;  %12906 = vmatprep.subr.bf16.mxu0 %v13534_v9  ;;  %v13559_v40 = vld [vmem:[%s15824_s4 + $0x148] sm:$0xff]   ;;  %v13563_v44 = vld [vmem:[%s15824_s4 + $0x150] sm:$0xff]   ;;  %v13567_v48 = vld [vmem:[%s15824_s4 + $0x158] sm:$0xff]  }
 0x273   : > { %12928 = vmatprep.subr.bf16.mxu1 %v13535_v10  ;;  %v13560_v41 = vld [vmem:[%s15824_s4 + $0x1c8] sm:$0xff]   ;;  %v13564_v45 = vld [vmem:[%s15824_s4 + $0x1d0] sm:$0xff]   ;;  %v13568_v49 = vld [vmem:[%s15824_s4 + $0x1d8] sm:$0xff]   ;;  %v8254_v10 = vcombine.high %v8238_v5, %v8238_v5 }
 0x274   : > { %v13561_v42 = vld [vmem:[%s15824_s4 + $0x108] sm:$0xff]   ;;  %v13565_v46 = vld [vmem:[%s15824_s4 + $0x110] sm:$0xff]   ;;  %v13569_v50 = vld [vmem:[%s15824_s4 + $0x118] sm:$0xff]  }
 0x275   : > { %12907 = vmatpush3.bf16.msra.mxu0 %v13536_v11  ;;  %v13562_v43 = vld [vmem:[%s15824_s4 + $0x188] sm:$0xff]   ;;  %v13566_v47 = vld [vmem:[%s15824_s4 + $0x190] sm:$0xff]   ;;  %v13570_v51 = vld [vmem:[%s15824_s4 + $0x198] sm:$0xff]  }
 0x276   : > { %12929 = vmatpush3.bf16.msra.mxu1 %v13537_v12  ;;  %12908 = vmatprep.subr.bf16.mxu0 %v13538_v13  ;;  %v13571_v52 = vld [vmem:[%s15824_s4 + $0x160] sm:$0xff]   ;;  %v13575_v57 = vld [vmem:[%s15824_s4 + $0x168] sm:$0xff]   ;;  %v13579_v63 = vld [vmem:[%s15824_s4 + $0x170] sm:$0xff]  }
 0x277   : > { %12930 = vmatprep.subr.bf16.mxu1 %v13539_v14  ;;  %v13572_v53 = vld [vmem:[%s15824_s4 + $0x1e0] sm:$0xff]   ;;  %v13576_v59 = vld [vmem:[%s15824_s4 + $0x1e8] sm:$0xff]   ;;  %v13580_v0 = vld [vmem:[%s15824_s4 + $0x1f0] sm:$0xff]  }
 0x278   : > { %v15890_v54 = vld [vmem:[%s16425_s0 + $0x8] sm:$0xff]  ;;  %v13581_v1 = vld [vmem:[%s15824_s4 + $0x130] sm:$0xff]   ;;  %v13583_v4 = vld [vmem:[%s15824_s4 + $0x178] sm:$0xff]  }
 0x279   : > { %12909 = vmatpush3.bf16.msra.mxu0 %v13540_v15  ;;  %v13573_v55 = vld [vmem:[%s15824_s4 + $0x120] sm:$0xff]   ;;  %v13577_v60 = vld [vmem:[%s15824_s4 + $0x128] sm:$0xff]   ;;  %v15899_v61 = vrot.slane %v15890_v54, %v15828_v58  ;;  %v13582_v3 = vld [vmem:[%s15824_s4 + $0x1b0] sm:$0xff]  }
 0x27a   : > { %12931 = vmatpush3.bf16.msra.mxu1 %v13541_v17  ;;  %12910 = vmatprep.subr.bf16.mxu0 %v13542_v18  ;;  %v13574_v56 = vld [vmem:[%s15824_s4 + $0x1a0] sm:$0xff]   ;;  %v13578_v62 = vld [vmem:[%s15824_s4 + $0x1a8] sm:$0xff]   ;;  %v13584_v6 = vld [vmem:[%s15824_s4 + $0x1f8] sm:$0xff]  }
 0x27b   : > { %12932 = vmatprep.subr.bf16.mxu1 %v13543_v19  ;;  %v8272_v2 = vcombine.high %v15899_v61, %v15899_v61  ;;  %v13585_v7 = vld [vmem:[%s15824_s4 + $0x138] sm:$0xff]   ;;  %v13587_v11 = vld [vmem:[%s15824_s4 + $0x240] sm:$0xff]   ;;  %v13591_v16 = vld [vmem:[%s15824_s4 + $0x248] sm:$0xff]  }
 0x27c   : > { %v13586_v9 = vld [vmem:[%s15824_s4 + $0x1b8] sm:$0xff]   ;;  %v13588_v12 = vld [vmem:[%s15824_s4 + $0x2c0] sm:$0xff]   ;;  %v13592_v17 = vld [vmem:[%s15824_s4 + $0x2c8] sm:$0xff]  }
 0x27d   : > { %12911 = vmatpush3.bf16.msra.mxu0 %v13544_v20  ;;  %v8294_v8 = vrot.slane %v8272_v2, %v15828_v58  ;;  %v13589_v13 = vld [vmem:[%s15824_s4 + $0x200] sm:$0xff]   ;;  %v13593_v18 = vld [vmem:[%s15824_s4 + $0x208] sm:$0xff]   ;;  %v13595_v20 = vld [vmem:[%s15824_s4 + $0x250] sm:$0xff]  }
 0x27e   : > { %12933 = vmatpush3.bf16.msra.mxu1 %v13545_v22  ;;  %12912 = vmatprep.subr.bf16.mxu0 %v13546_v23  ;;  %v13590_v15 = vld [vmem:[%s15824_s4 + $0x280] sm:$0xff]   ;;  %v13594_v19 = vld [vmem:[%s15824_s4 + $0x288] sm:$0xff]   ;;  %v13596_v21 = vld [vmem:[%s15824_s4 + $0x2d0] sm:$0xff]  }
 0x27f   : > { %12934 = vmatprep.subr.bf16.mxu1 %v13547_v24  ;;  %v8304_v14 = vcombine.high %v8294_v8, %v8294_v8  ;;  %v13597_v22 = vld [vmem:[%s15824_s4 + $0x210] sm:$0xff]   ;;  %v13599_v24 = vld [vmem:[%s15824_s4 + $0x258] sm:$0xff]  }
 0x280   : > { %v13598_v23 = vld [vmem:[%s15824_s4 + $0x290] sm:$0xff]   ;;  %v13601_v26 = vld [vmem:[%s15824_s4 + $0x218] sm:$0xff]  }
 0x281   : > { %12913 = vmatpush3.bf16.msra.mxu0 %v13548_v25  ;;  %v13600_v25 = vld [vmem:[%s15824_s4 + $0x2d8] sm:$0xff]  }
 0x282   : > { %12935 = vmatpush3.bf16.msra.mxu1 %v13549_v27  ;;  %12914 = vmatprep.subr.bf16.mxu0 %v13550_v28  ;;  %v13602_v27 = vld [vmem:[%s15824_s4 + $0x298] sm:$0xff]   ;;  %v13603_v28 = vld [vmem:[%s15824_s4 + $0x260] sm:$0xff]  }
 0x283   : > { %12936 = vmatprep.subr.bf16.mxu1 %v13551_v30  ;;  %v13605_v30 = vld [vmem:[%s15824_s4 + $0x220] sm:$0xff]   ;;  %v13633_v2 = vld [vmem:[%s15824_s4 + $0x318] sm:$0xff]  }
 0x285   : > { %12915 = vmatpush3.bf16.msra.mxu0 %v13552_v31  ;;  %v8257_v31 = vcombine.high %v15890_v54, %v15890_v54  ;;  %v13622_v54 = vld [vmem:[%s15824_s4 + $0x380] sm:$0xff]  }
 0x286   : > { %12937 = vmatpush3.bf16.msra.mxu1 %v13553_v33  ;;  %12944 = vmatprep.subr.bf16.mxu0 %v13555_v35  ;;  %v13607_v33 = vld [vmem:[%s15824_s4 + $0x268] sm:$0xff]  }
 0x287   : > { %12966 = vmatprep.subr.bf16.mxu1 %v13556_v36  ;;  %v13609_v35 = vld [vmem:[%s15824_s4 + $0x228] sm:$0xff]   ;;  %v15941_v36 = vrot.slane %v8257_v31, %v15828_v58  ;;  %v13661_v31 = vld [vmem:[%s15824_s4 + $0x4d0] sm:$0xff]  }
 0x288   : > { %11289 = vmatmul.mubr.bf16.vlgmr.msra.gmra.mrb[0].mxu0 %v8231_v29  ;;  %v13604_v29 = vld [vmem:[%s15824_s4 + $0x2e0] sm:$0xff]  }
 0x289   : > { %11329 = vmatmul.mubr.bf16.vlgmr.msra.gmra.mrb[0].mxu1 %v8253_v34  ;;  %12945 = vmatpush3.bf16.msra.mxu0 %v13557_v37  ;;  %v13608_v34 = vld [vmem:[%s15824_s4 + $0x2e8] sm:$0xff]  }
 0x28a   : > { %12967 = vmatpush3.bf16.msra.mxu1 %v13558_v39  ;;  %11368 = vmatprep.mubr.bf16.mxu0 %v8252_v32  ;;  %v13606_v32 = vld [vmem:[%s15824_s4 + $0x2a0] sm:$0xff]   ;;  %v13610_v37 = vld [vmem:[%s15824_s4 + $0x2a8] sm:$0xff]   ;;  %v13612_v39 = vld [vmem:[%s15824_s4 + $0x2f0] sm:$0xff]  }
 0x28b   : > { %12946 = vmatprep.subr.bf16.mxu0 %v13559_v40  ;;  %11408 = vmatprep.mubr.bf16.mxu1 %v8256_v38  ;;  %v13611_v38 = vld [vmem:[%s15824_s4 + $0x270] sm:$0xff]  }
 0x28c   : > { %12968 = vmatprep.subr.bf16.mxu1 %v13560_v41  ;;  %v13613_v40 = vld [vmem:[%s15824_s4 + $0x230] sm:$0xff]   ;;  %v8273_v41 = vcombine.high %v15941_v36, %v15941_v36 }
 0x28d   : > { %12947 = vmatpush3.bf16.msra.mxu0 %v13561_v42  ;;  %v13614_v42 = vld [vmem:[%s15824_s4 + $0x2b0] sm:$0xff]  }
 0x28e   : > { %12969 = vmatpush3.bf16.msra.mxu1 %v13562_v43  ;;  %12948 = vmatprep.subr.bf16.mxu0 %v13563_v44  ;;  %v13615_v43 = vld [vmem:[%s15824_s4 + $0x278] sm:$0xff]   ;;  %v8280_v44 = vrot.slane %v15899_v61, %v15828_v58  ;;  %v13628_v61 = vld [vmem:[%s15824_s4 + $0x3d0] sm:$0xff]  }
 0x28f   : > { %12970 = vmatprep.subr.bf16.mxu1 %v13564_v45  ;;  %v13616_v45 = vld [vmem:[%s15824_s4 + $0x2f8] sm:$0xff]  }
 0x291   : > { %12949 = vmatpush3.bf16.msra.mxu0 %v13565_v46  ;;  %v13617_v46 = vld [vmem:[%s15824_s4 + $0x238] sm:$0xff]  }
 0x292   : > { %12971 = vmatpush3.bf16.msra.mxu1 %v13566_v47  ;;  %12950 = vmatprep.subr.bf16.mxu0 %v13567_v48  ;;  %v8301_v47 = vrot.slane %v8273_v41, %v15828_v58  ;;  %v13618_v48 = vld [vmem:[%s15824_s4 + $0x2b8] sm:$0xff]   ;;  %v13671_v41 = vld [vmem:[%s15824_s4 + $0x4a0] sm:$0xff]  }
 0x293   : > { %12972 = vmatprep.subr.bf16.mxu1 %v13568_v49  ;;  %v8302_v49 = vcombine.high %v8280_v44, %v8280_v44 }
 0x295   : > { %12951 = vmatpush3.bf16.msra.mxu0 %v13569_v50  ;;  %v13619_v50 = vld [vmem:[%s15824_s4 + $0x340] sm:$0xff]  }
 0x296   : > { %12973 = vmatpush3.bf16.msra.mxu1 %v13570_v51  ;;  %12952 = vmatprep.subr.bf16.mxu0 %v13571_v52  ;;  %v13620_v51 = vld [vmem:[%s15824_s4 + $0x3c0] sm:$0xff]  }
 0x297   : > { %12974 = vmatprep.subr.bf16.mxu1 %v13572_v53  ;;  %v13621_v52 = vld [vmem:[%s15824_s4 + $0x300] sm:$0xff]   ;;  %v8305_v53 = vcombine.high %v8301_v47, %v8301_v47 }
 0x299   : > { %12953 = vmatpush3.bf16.msra.mxu0 %v13573_v55  ;;  %v13623_v55 = vld [vmem:[%s15824_s4 + $0x348] sm:$0xff]  }
 0x29a   : > { %12975 = vmatpush3.bf16.msra.mxu1 %v13574_v56  ;;  %12954 = vmatprep.subr.bf16.mxu0 %v13575_v57  ;;  %v13624_v56 = vld [vmem:[%s15824_s4 + $0x3c8] sm:$0xff]  }
 0x29b   : > { %12976 = vmatprep.subr.bf16.mxu1 %v13576_v59  ;;  %v13625_v57 = vld [vmem:[%s15824_s4 + $0x308] sm:$0xff]  }
 0x29c   : > { %v13626_v59 = vld [vmem:[%s15824_s4 + $0x388] sm:$0xff]  }
 0x29d   : > { %12955 = vmatpush3.bf16.msra.mxu0 %v13577_v60  ;;  %v13627_v60 = vld [vmem:[%s15824_s4 + $0x350] sm:$0xff]  }
 0x29e   : > { %12977 = vmatpush3.bf16.msra.mxu1 %v13578_v62  ;;  %12956 = vmatprep.subr.bf16.mxu0 %v13579_v63  ;;  %v13629_v62 = vld [vmem:[%s15824_s4 + $0x310] sm:$0xff]  }
 0x29f   : > { %12978 = vmatprep.subr.bf16.mxu1 %v13580_v0  ;;  %v13630_v63 = vld [vmem:[%s15824_s4 + $0x390] sm:$0xff]   ;;  %v13631_v0 = vld [vmem:[%s15824_s4 + $0x358] sm:$0xff]  }
 0x2a1   : > { %12957 = vmatpush3.bf16.msra.mxu0 %v13581_v1  ;;  %v13632_v1 = vld [vmem:[%s15824_s4 + $0x3d8] sm:$0xff]  }
 0x2a2   : > { %12979 = vmatpush3.bf16.msra.mxu1 %v13582_v3  ;;  %12958 = vmatprep.subr.bf16.mxu0 %v13583_v4  ;;  %v13634_v3 = vld [vmem:[%s15824_s4 + $0x398] sm:$0xff]   ;;  %v13635_v4 = vld [vmem:[%s15824_s4 + $0x360] sm:$0xff]  }
 0x2a3   : > { %12980 = vmatprep.subr.bf16.mxu1 %v13584_v6  ;;  %v13637_v6 = vld [vmem:[%s15824_s4 + $0x320] sm:$0xff]  }
 0x2a5   : > { %12959 = vmatpush3.bf16.msra.mxu0 %v13585_v7  ;;  %v13638_v7 = vld [vmem:[%s15824_s4 + $0x3a0] sm:$0xff]  }
 0x2a6   : > { %12981 = vmatpush3.bf16.msra.mxu1 %v13586_v9  ;;  %12988 = vmatprep.subr.bf16.mxu0 %v13587_v11  ;;  %v13640_v9 = vld [vmem:[%s15824_s4 + $0x3e8] sm:$0xff]  }
 0x2a7   : > { %13010 = vmatprep.subr.bf16.mxu1 %v13588_v12  ;;  %v13642_v11 = vld [vmem:[%s15824_s4 + $0x3a8] sm:$0xff]   ;;  %v13643_v12 = vld [vmem:[%s15824_s4 + $0x370] sm:$0xff]  }
 0x2a8   : > { %11369 = vmatmul.mubr.bf16.vlgmr.msra.gmra.mrb[4].mxu0 %v8238_v5  ;;  %v13636_v5 = vld [vmem:[%s15824_s4 + $0x3e0] sm:$0xff]  }
 0x2a9   : > { %11409 = vmatmul.mubr.bf16.vlgmr.msra.gmra.mrb[4].mxu1 %v8254_v10  ;;  %12989 = vmatpush3.bf16.msra.mxu0 %v13589_v13  ;;  %v13641_v10 = vld [vmem:[%s15824_s4 + $0x328] sm:$0xff]   ;;  %v13644_v13 = vld [vmem:[%s15824_s4 + $0x3f0] sm:$0xff]  }
 0x2aa   : > { %13011 = vmatpush3.bf16.msra.mxu1 %v13590_v15  ;;  %11448 = vmatprep.mubr.bf16.mxu0 %v8294_v8  ;;  %v13639_v8 = vld [vmem:[%s15824_s4 + $0x368] sm:$0xff]   ;;  %v13646_v15 = vld [vmem:[%s15824_s4 + $0x3b0] sm:$0xff]  }
 0x2ab   : > { %12990 = vmatprep.subr.bf16.mxu0 %v13591_v16  ;;  %11488 = vmatprep.mubr.bf16.mxu1 %v8304_v14  ;;  %v13645_v14 = vld [vmem:[%s15824_s4 + $0x330] sm:$0xff]   ;;  %v13647_v16 = vld [vmem:[%s15824_s4 + $0x378] sm:$0xff]  }
 0x2ac   : > { %13012 = vmatprep.subr.bf16.mxu1 %v13592_v17  ;;  %v8287_v17 = vrot.slane %v15941_v36, %v15828_v58  ;;  %v13666_v36 = vld [vmem:[%s15824_s4 + $0x418] sm:$0xff]  }
 0x2ad   : > { %12991 = vmatpush3.bf16.msra.mxu0 %v13593_v18  ;;  %v13648_v18 = vld [vmem:[%s15824_s4 + $0x3f8] sm:$0xff]  }
 0x2ae   : > { %13013 = vmatpush3.bf16.msra.mxu1 %v13594_v19  ;;  %12992 = vmatprep.subr.bf16.mxu0 %v13595_v20  ;;  %v13649_v19 = vld [vmem:[%s15824_s4 + $0x338] sm:$0xff]  }
 0x2af   : > { %13014 = vmatprep.subr.bf16.mxu1 %v13596_v21  ;;  %v13650_v20 = vld [vmem:[%s15824_s4 + $0x3b8] sm:$0xff]   ;;  %v8303_v21 = vcombine.high %v8287_v17, %v8287_v17 }
 0x2b1   : > { %12993 = vmatpush3.bf16.msra.mxu0 %v13597_v22  ;;  %v13652_v22 = vld [vmem:[%s15824_s4 + $0x440] sm:$0xff]  }
 0x2b2   : > { %13015 = vmatpush3.bf16.msra.mxu1 %v13598_v23  ;;  %12994 = vmatprep.subr.bf16.mxu0 %v13599_v24  ;;  %v13653_v23 = vld [vmem:[%s15824_s4 + $0x4c0] sm:$0xff]  }
 0x2b3   : > { %13016 = vmatprep.subr.bf16.mxu1 %v13600_v25  ;;  %v13654_v24 = vld [vmem:[%s15824_s4 + $0x400] sm:$0xff]  }
 0x2b4   : > { %v13655_v25 = vld [vmem:[%s15824_s4 + $0x480] sm:$0xff]  }
 0x2b5   : > { %12995 = vmatpush3.bf16.msra.mxu0 %v13601_v26  ;;  %v13656_v26 = vld [vmem:[%s15824_s4 + $0x448] sm:$0xff]  }
 0x2b6   : > { %13017 = vmatpush3.bf16.msra.mxu1 %v13602_v27  ;;  %12996 = vmatprep.subr.bf16.mxu0 %v13603_v28  ;;  %v13657_v27 = vld [vmem:[%s15824_s4 + $0x4c8] sm:$0xff]  }
 0x2b7   : > { %13018 = vmatprep.subr.bf16.mxu1 %v13604_v29  ;;  %v13658_v28 = vld [vmem:[%s15824_s4 + $0x408] sm:$0xff]  }
 0x2b8   : > { %v13659_v29 = vld [vmem:[%s15824_s4 + $0x488] sm:$0xff]  }
 0x2b9   : > { %12997 = vmatpush3.bf16.msra.mxu0 %v13605_v30  ;;  %v13660_v30 = vld [vmem:[%s15824_s4 + $0x450] sm:$0xff]  }
 0x2ba   : > { %13019 = vmatpush3.bf16.msra.mxu1 %v13606_v32  ;;  %12998 = vmatprep.subr.bf16.mxu0 %v13607_v33  ;;  %v13662_v32 = vld [vmem:[%s15824_s4 + $0x410] sm:$0xff]  }
 0x2bb   : > { %13020 = vmatprep.subr.bf16.mxu1 %v13608_v34  ;;  %v13663_v33 = vld [vmem:[%s15824_s4 + $0x490] sm:$0xff]   ;;  %v13664_v34 = vld [vmem:[%s15824_s4 + $0x458] sm:$0xff]  }
 0x2bd   : > { %12999 = vmatpush3.bf16.msra.mxu0 %v13609_v35  ;;  %v13665_v35 = vld [vmem:[%s15824_s4 + $0x4d8] sm:$0xff]  }
 0x2be   : > { %13021 = vmatpush3.bf16.msra.mxu1 %v13610_v37  ;;  %13000 = vmatprep.subr.bf16.mxu0 %v13611_v38  ;;  %v13667_v37 = vld [vmem:[%s15824_s4 + $0x498] sm:$0xff]   ;;  %v13668_v38 = vld [vmem:[%s15824_s4 + $0x460] sm:$0xff]  }
 0x2bf   : > { %13022 = vmatprep.subr.bf16.mxu1 %v13612_v39  ;;  %v13669_v39 = vld [vmem:[%s15824_s4 + $0x4e0] sm:$0xff]  }
 0x2c1   : > { %13001 = vmatpush3.bf16.msra.mxu0 %v13613_v40  ;;  %v13670_v40 = vld [vmem:[%s15824_s4 + $0x420] sm:$0xff]  }
 0x2c2   : > { %13023 = vmatpush3.bf16.msra.mxu1 %v13614_v42  ;;  %13002 = vmatprep.subr.bf16.mxu0 %v13615_v43  ;;  %v13672_v42 = vld [vmem:[%s15824_s4 + $0x468] sm:$0xff]  }
 0x2c3   : > { %13024 = vmatprep.subr.bf16.mxu1 %v13616_v45  ;;  %v13673_v43 = vld [vmem:[%s15824_s4 + $0x4e8] sm:$0xff]  }
 0x2c4   : > { %v13675_v45 = vld [vmem:[%s15824_s4 + $0x4a8] sm:$0xff]  }
 0x2c5   : > { %13003 = vmatpush3.bf16.msra.mxu0 %v13617_v46  ;;  %v13676_v46 = vld [vmem:[%s15824_s4 + $0x470] sm:$0xff]  }
 0x2c6   : > { %13025 = vmatpush3.bf16.msra.mxu1 %v13618_v48  ;;  %13032 = vmatprep.subr.bf16.mxu0 %v13619_v50  ;;  %v13678_v48 = vld [vmem:[%s15824_s4 + $0x430] sm:$0xff]   ;;  %v13680_v50 = vld [vmem:[%s15824_s4 + $0x478] sm:$0xff]  }
 0x2c7   : > { %13054 = vmatprep.subr.bf16.mxu1 %v13620_v51  ;;  %v13681_v51 = vld [vmem:[%s15824_s4 + $0x4f8] sm:$0xff]  }
 0x2c8   : > { %11449 = vmatmul.mubr.bf16.vlgmr.msra.gmra.mrb[8].mxu0 %v8280_v44  ;;  %v13674_v44 = vld [vmem:[%s15824_s4 + $0x428] sm:$0xff]  }
 0x2c9   : > { %11489 = vmatmul.mubr.bf16.vlgmr.msra.gmra.mrb[8].mxu1 %v8302_v49  ;;  %13033 = vmatpush3.bf16.msra.mxu0 %v13621_v52  ;;  %v13679_v49 = vld [vmem:[%s15824_s4 + $0x4b0] sm:$0xff]   ;;  %v13682_v52 = vld [vmem:[%s15824_s4 + $0x438] sm:$0xff]  }
 0x2ca   : > { %13055 = vmatpush3.bf16.msra.mxu1 %v13622_v54  ;;  %11528 = vmatprep.mubr.bf16.mxu0 %v8301_v47  ;;  %v13677_v47 = vld [vmem:[%s15824_s4 + $0x4f0] sm:$0xff]  }
 0x2cb   : > { %13034 = vmatprep.subr.bf16.mxu0 %v13623_v55  ;;  %11568 = vmatprep.mubr.bf16.mxu1 %v8305_v53  ;;  %v13683_v53 = vld [vmem:[%s15824_s4 + $0x4b8] sm:$0xff]   ;;  %v7307_v54 = vld [vmem:[%s16425_s0 + $0x10] sm:$0xff] }
 0x2cc   : > { %13056 = vmatprep.subr.bf16.mxu1 %v13624_v56  ;;  %v8313_v55 = vrot.slane %v7307_v54, %v15828_v58  ;;  %v13684_v56 = vld [vmem:[%s15824_s4 + $0x540] sm:$0xff]  }
 0x2cd   : > { %13035 = vmatpush3.bf16.msra.mxu0 %v13625_v57  ;;  %v8306_v57 = vcombine.high %v7307_v54, %v7307_v54  ;;  %v13734_v54 = vld [vmem:[%s15824_s4 + $0x6e0] sm:$0xff]  }
 0x2ce   : > { %13057 = vmatpush3.bf16.msra.mxu1 %v13626_v59  ;;  %13036 = vmatprep.subr.bf16.mxu0 %v13627_v60  ;;  %v13685_v59 = vld [vmem:[%s15824_s4 + $0x5c0] sm:$0xff]   ;;  %v8321_v60 = vcombine.high %v8313_v55, %v8313_v55 }
 0x2cf   : > { %13058 = vmatprep.subr.bf16.mxu1 %v13628_v61  ;;  %v8329_v61 = vrot.slane %v8313_v55, %v15828_v58  ;;  %v13735_v55 = vld [vmem:[%s15824_s4 + $0x620] sm:$0xff]  }
 0x2d1   : > { %13037 = vmatpush3.bf16.msra.mxu0 %v13629_v62  ;;  %v16031_v62 = vrot.slane %v8306_v57, %v15828_v58  ;;  %v13736_v57 = vld [vmem:[%s15824_s4 + $0x6a0] sm:$0xff]  }
 0x2d2   : > { %13059 = vmatpush3.bf16.msra.mxu1 %v13630_v63  ;;  %13038 = vmatprep.subr.bf16.mxu0 %v13631_v0  ;;  %v8343_v63 = vrot.slane %v8321_v60, %v15828_v58  ;;  %v13686_v0 = vld [vmem:[%s15824_s4 + $0x500] sm:$0xff]   ;;  %v13739_v60 = vld [vmem:[%s15824_s4 + $0x628] sm:$0xff]  }
 0x2d3   : > { %13060 = vmatprep.subr.bf16.mxu1 %v13632_v1  ;;  %v8322_v1 = vcombine.high %v16031_v62, %v16031_v62 }
 0x2d5   : > { %13039 = vmatpush3.bf16.msra.mxu0 %v13633_v2  ;;  %v8351_v2 = vcombine.high %v8329_v61, %v8329_v61 }
 0x2d6   : > { %13061 = vmatpush3.bf16.msra.mxu1 %v13634_v3  ;;  %13040 = vmatprep.subr.bf16.mxu0 %v13635_v4  ;;  %v13688_v3 = vld [vmem:[%s15824_s4 + $0x548] sm:$0xff]   ;;  %v8353_v4 = vcombine.high %v8343_v63, %v8343_v63 }
 0x2d7   : > { %13062 = vmatprep.subr.bf16.mxu1 %v13636_v5  ;;  %v13687_v5 = vld [vmem:[%s15824_s4 + $0x580] sm:$0xff]  }
 0x2d9   : > { %13041 = vmatpush3.bf16.msra.mxu0 %v13637_v6  ;;  %v8350_v6 = vrot.slane %v8322_v1, %v15828_v58  ;;  %v13745_v1 = vld [vmem:[%s15824_s4 + $0x678] sm:$0xff]  }
 0x2da   : > { %13063 = vmatpush3.bf16.msra.mxu1 %v13638_v7  ;;  %13042 = vmatprep.subr.bf16.mxu0 %v13639_v8  ;;  %v13689_v7 = vld [vmem:[%s15824_s4 + $0x5c8] sm:$0xff]  }
 0x2db   : > { %13064 = vmatprep.subr.bf16.mxu1 %v13640_v9  ;;  %v13690_v8 = vld [vmem:[%s15824_s4 + $0x508] sm:$0xff]   ;;  %v8354_v9 = vcombine.high %v8350_v6, %v8350_v6 }
 0x2dd   : > { %13043 = vmatpush3.bf16.msra.mxu0 %v13641_v10  ;;  %v13692_v10 = vld [vmem:[%s15824_s4 + $0x550] sm:$0xff]  }
 0x2de   : > { %13065 = vmatpush3.bf16.msra.mxu1 %v13642_v11  ;;  %13044 = vmatprep.subr.bf16.mxu0 %v13643_v12  ;;  %v13691_v11 = vld [vmem:[%s15824_s4 + $0x588] sm:$0xff]   ;;  %v13693_v12 = vld [vmem:[%s15824_s4 + $0x5d0] sm:$0xff]  }
 0x2df   : > { %13066 = vmatprep.subr.bf16.mxu1 %v13644_v13  ;;  %v13694_v13 = vld [vmem:[%s15824_s4 + $0x510] sm:$0xff]  }
 0x2e1   : > { %13045 = vmatpush3.bf16.msra.mxu0 %v13645_v14  ;;  %v13696_v14 = vld [vmem:[%s15824_s4 + $0x558] sm:$0xff]  }
 0x2e2   : > { %13067 = vmatpush3.bf16.msra.mxu1 %v13646_v15  ;;  %13046 = vmatprep.subr.bf16.mxu0 %v13647_v16  ;;  %v13695_v15 = vld [vmem:[%s15824_s4 + $0x590] sm:$0xff]   ;;  %v13697_v16 = vld [vmem:[%s15824_s4 + $0x5d8] sm:$0xff]  }
 0x2e3   : > { %13068 = vmatprep.subr.bf16.mxu1 %v13648_v18  ;;  %v13700_v18 = vld [vmem:[%s15824_s4 + $0x560] sm:$0xff]  }
 0x2e5   : > { %13047 = vmatpush3.bf16.msra.mxu0 %v13649_v19  ;;  %v13699_v19 = vld [vmem:[%s15824_s4 + $0x598] sm:$0xff]  }
 0x2e6   : > { %13069 = vmatpush3.bf16.msra.mxu1 %v13650_v20  ;;  %13076 = vmatprep.subr.bf16.mxu0 %v13652_v22  ;;  %v13701_v20 = vld [vmem:[%s15824_s4 + $0x5e0] sm:$0xff]   ;;  %v13704_v22 = vld [vmem:[%s15824_s4 + $0x568] sm:$0xff]  }
 0x2e7   : > { %13098 = vmatprep.subr.bf16.mxu1 %v13653_v23  ;;  %v13703_v23 = vld [vmem:[%s15824_s4 + $0x5a0] sm:$0xff]  }
 0x2e8   : > { %11529 = vmatmul.mubr.bf16.vlgmr.msra.gmra.mrb[12].mxu0 %v8287_v17  ;;  %v13698_v17 = vld [vmem:[%s15824_s4 + $0x518] sm:$0xff]  }
 0x2e9   : > { %11569 = vmatmul.mubr.bf16.vlgmr.msra.gmra.mrb[12].mxu1 %v8303_v21  ;;  %13077 = vmatpush3.bf16.msra.mxu0 %v13654_v24  ;;  %v13702_v21 = vld [vmem:[%s15824_s4 + $0x520] sm:$0xff]   ;;  %v13705_v24 = vld [vmem:[%s15824_s4 + $0x5e8] sm:$0xff]  }
 0x2ea   : > { %13099 = vmatpush3.bf16.msra.mxu1 %v13655_v25  ;;  %13078 = vmatprep.subr.bf16.mxu0 %v13656_v26  ;;  %v13706_v25 = vld [vmem:[%s15824_s4 + $0x528] sm:$0xff]   ;;  %v13708_v26 = vld [vmem:[%s15824_s4 + $0x570] sm:$0xff]  }
 0x2eb   : > { %13100 = vmatprep.subr.bf16.mxu1 %v13657_v27  ;;  %11608 = vmatprep.mubr.bf16.mxu0 %v8343_v63  ;;  %v13707_v27 = vld [vmem:[%s15824_s4 + $0x5a8] sm:$0xff]   ;;  %v13742_v63 = vld [vmem:[%s15824_s4 + $0x6f0] sm:$0xff]  }
 0x2ec   : > { %11648 = vmatprep.mubr.bf16.mxu1 %v8353_v4  ;;  %v7308_v4 = vld [vmem:[%s16425_s0 + $0x18] sm:$0xff] }
 0x2ed   : > { %13079 = vmatpush3.bf16.msra.mxu0 %v13658_v28  ;;  %v13709_v28 = vld [vmem:[%s15824_s4 + $0x5f0] sm:$0xff]  }
 0x2ee   : > { %13101 = vmatpush3.bf16.msra.mxu1 %v13659_v29  ;;  %13080 = vmatprep.subr.bf16.mxu0 %v13660_v30  ;;  %v13710_v29 = vld [vmem:[%s15824_s4 + $0x530] sm:$0xff]   ;;  %v13712_v30 = vld [vmem:[%s15824_s4 + $0x578] sm:$0xff]  }
 0x2ef   : > { %13102 = vmatprep.subr.bf16.mxu1 %v13661_v31  ;;  %v13711_v31 = vld [vmem:[%s15824_s4 + $0x5b0] sm:$0xff]  }
 0x2f1   : > { %13081 = vmatpush3.bf16.msra.mxu0 %v13662_v32  ;;  %v13713_v32 = vld [vmem:[%s15824_s4 + $0x5f8] sm:$0xff]  }
 0x2f2   : > { %13103 = vmatpush3.bf16.msra.mxu1 %v13663_v33  ;;  %13082 = vmatprep.subr.bf16.mxu0 %v13664_v34  ;;  %v13714_v33 = vld [vmem:[%s15824_s4 + $0x538] sm:$0xff]   ;;  %v8336_v34 = vrot.slane %v16031_v62, %v15828_v58  ;;  %v13740_v62 = vld [vmem:[%s15824_s4 + $0x6a8] sm:$0xff]  }
 0x2f3   : > { %13104 = vmatprep.subr.bf16.mxu1 %v13665_v35  ;;  %v13717_v35 = vld [vmem:[%s15824_s4 + $0x640] sm:$0xff]  }
 0x2f5   : > { %13083 = vmatpush3.bf16.msra.mxu0 %v13666_v36  ;;  %v13715_v36 = vld [vmem:[%s15824_s4 + $0x5b8] sm:$0xff]  }
 0x2f6   : > { %13105 = vmatpush3.bf16.msra.mxu1 %v13667_v37  ;;  %13084 = vmatprep.subr.bf16.mxu0 %v13668_v38  ;;  %v13718_v37 = vld [vmem:[%s15824_s4 + $0x6c0] sm:$0xff]  }
 0x2f7   : > { %13106 = vmatprep.subr.bf16.mxu1 %v13669_v39  ;;  %v13719_v38 = vld [vmem:[%s15824_s4 + $0x600] sm:$0xff]   ;;  %v8352_v39 = vcombine.high %v8336_v34, %v8336_v34 }
 0x2f9   : > { %13085 = vmatpush3.bf16.msra.mxu0 %v13670_v40  ;;  %v13721_v40 = vld [vmem:[%s15824_s4 + $0x648] sm:$0xff]  }
 0x2fa   : > { %13107 = vmatpush3.bf16.msra.mxu1 %v13671_v41  ;;  %13086 = vmatprep.subr.bf16.mxu0 %v13672_v42  ;;  %v13720_v41 = vld [vmem:[%s15824_s4 + $0x680] sm:$0xff]   ;;  %v13722_v42 = vld [vmem:[%s15824_s4 + $0x6c8] sm:$0xff]  }
 0x2fb   : > { %13108 = vmatprep.subr.bf16.mxu1 %v13673_v43  ;;  %v13723_v43 = vld [vmem:[%s15824_s4 + $0x608] sm:$0xff]  }
 0x2fd   : > { %13087 = vmatpush3.bf16.msra.mxu0 %v13674_v44  ;;  %v13725_v44 = vld [vmem:[%s15824_s4 + $0x650] sm:$0xff]  }
 0x2fe   : > { %13109 = vmatpush3.bf16.msra.mxu1 %v13675_v45  ;;  %13088 = vmatprep.subr.bf16.mxu0 %v13676_v46  ;;  %v13724_v45 = vld [vmem:[%s15824_s4 + $0x688] sm:$0xff]   ;;  %v13726_v46 = vld [vmem:[%s15824_s4 + $0x6d0] sm:$0xff]  }
 0x2ff   : > { %13110 = vmatprep.subr.bf16.mxu1 %v13677_v47  ;;  %v13727_v47 = vld [vmem:[%s15824_s4 + $0x610] sm:$0xff]  }
 0x301   : > { %13089 = vmatpush3.bf16.msra.mxu0 %v13678_v48  ;;  %v13729_v48 = vld [vmem:[%s15824_s4 + $0x658] sm:$0xff]  }
 0x302   : > { %13111 = vmatpush3.bf16.msra.mxu1 %v13679_v49  ;;  %13090 = vmatprep.subr.bf16.mxu0 %v13680_v50  ;;  %v13728_v49 = vld [vmem:[%s15824_s4 + $0x690] sm:$0xff]   ;;  %v13730_v50 = vld [vmem:[%s15824_s4 + $0x6d8] sm:$0xff]  }
 0x303   : > { %13112 = vmatprep.subr.bf16.mxu1 %v13681_v51  ;;  %v13731_v51 = vld [vmem:[%s15824_s4 + $0x618] sm:$0xff]  }
 0x305   : > { %13091 = vmatpush3.bf16.msra.mxu0 %v13682_v52  ;;  %v13733_v52 = vld [vmem:[%s15824_s4 + $0x660] sm:$0xff]  }
 0x306   : > { %13113 = vmatpush3.bf16.msra.mxu1 %v13683_v53  ;;  %13120 = vmatprep.subr.bf16.mxu0 %v13684_v56  ;;  %v13732_v53 = vld [vmem:[%s15824_s4 + $0x698] sm:$0xff]   ;;  %v13737_v56 = vld [vmem:[%s15824_s4 + $0x668] sm:$0xff]  }
 0x307   : > { %13142 = vmatprep.subr.bf16.mxu1 %v13685_v59  ;;  %v13738_v59 = vld [vmem:[%s15824_s4 + $0x6e8] sm:$0xff]  }
 0x308   : > { %11609 = vmatmul.mubr.bf16.vlgmr.msra.gmra.mrb[16].mxu0 %v8329_v61  ;;  %v13741_v61 = vld [vmem:[%s15824_s4 + $0x670] sm:$0xff]  }
 0x309   : > { %13121 = vmatpush3.bf16.msra.mxu0 %v13686_v0  ;;  %11649 = vmatmul.mubr.bf16.vlgmr.msra.gmra.mrb[16].mxu1 %v8351_v2  ;;  %v13743_v0 = vld [vmem:[%s15824_s4 + $0x630] sm:$0xff]  }
 0x30a   : > { %13122 = vmatprep.subr.bf16.mxu0 %v13688_v3  ;;  %13143 = vmatpush3.bf16.msra.mxu1 %v13687_v5  ;;  %v13744_v2 = vld [vmem:[%s15824_s4 + $0x6b0] sm:$0xff]   ;;  %v13746_v3 = vld [vmem:[%s15824_s4 + $0x6f8] sm:$0xff]  }
 0x30b   : > { %11688 = vmatprep.mubr.bf16.mxu0 %v8350_v6  ;;  %13144 = vmatprep.subr.bf16.mxu1 %v13689_v7  ;;  %v13747_v5 = vld [vmem:[%s15824_s4 + $0x638] sm:$0xff]   ;;  %v8362_v6 = vrot.slane %v7308_v4, %v15828_v58  ;;  %v8355_v7 = vcombine.high %v7308_v4, %v7308_v4  ;;  %v13785_v4 = vld [vmem:[%s15824_s4 + $0x880] sm:$0xff]  }
 0x30c   : > { %11728 = vmatprep.mubr.bf16.mxu1 %v8354_v9  ;;  %v13748_v9 = vld [vmem:[%s15824_s4 + $0x6b8] sm:$0xff]  }
 0x30d   : > { %13123 = vmatpush3.bf16.msra.mxu0 %v13690_v8  ;;  %v13749_v8 = vld [vmem:[%s15824_s4 + $0x740] sm:$0xff]  }
 0x30e   : > { %13124 = vmatprep.subr.bf16.mxu0 %v13692_v10  ;;  %13145 = vmatpush3.bf16.msra.mxu1 %v13691_v11  ;;  %v8370_v10 = vcombine.high %v8362_v6, %v8362_v6  ;;  %v8378_v11 = vrot.slane %v8362_v6, %v15828_v58  ;;  %v13786_v6 = vld [vmem:[%s15824_s4 + $0x848] sm:$0xff]  }
 0x30f   : > { %13146 = vmatprep.subr.bf16.mxu1 %v13693_v12  ;;  %v16108_v12 = vrot.slane %v8355_v7, %v15828_v58  ;;  %v13787_v7 = vld [vmem:[%s15824_s4 + $0x8c8] sm:$0xff]  }
 0x311   : > { %13125 = vmatpush3.bf16.msra.mxu0 %v13694_v13  ;;  %v13750_v13 = vld [vmem:[%s15824_s4 + $0x7c0] sm:$0xff]  }
 0x312   : > { %13126 = vmatprep.subr.bf16.mxu0 %v13696_v14  ;;  %13147 = vmatpush3.bf16.msra.mxu1 %v13695_v15  ;;  %v8392_v14 = vrot.slane %v8370_v10, %v15828_v58  ;;  %v13751_v15 = vld [vmem:[%s15824_s4 + $0x700] sm:$0xff]   ;;  %v13790_v10 = vld [vmem:[%s15824_s4 + $0x850] sm:$0xff]  }
 0x313   : > { %13148 = vmatprep.subr.bf16.mxu1 %v13697_v16  ;;  %v8371_v16 = vcombine.high %v16108_v12, %v16108_v12 }
 0x315   : > { %13127 = vmatpush3.bf16.msra.mxu0 %v13698_v17  ;;  %v8400_v17 = vcombine.high %v8378_v11, %v8378_v11 }
 0x316   : > { %13128 = vmatprep.subr.bf16.mxu0 %v13700_v18  ;;  %13149 = vmatpush3.bf16.msra.mxu1 %v13699_v19  ;;  %v13753_v18 = vld [vmem:[%s15824_s4 + $0x748] sm:$0xff]   ;;  %v8402_v19 = vcombine.high %v8392_v14, %v8392_v14 }
 0x317   : > { %13150 = vmatprep.subr.bf16.mxu1 %v13701_v20  ;;  %v13752_v20 = vld [vmem:[%s15824_s4 + $0x780] sm:$0xff]  }
 0x319   : > { %13129 = vmatpush3.bf16.msra.mxu0 %v13702_v21  ;;  %v8399_v21 = vrot.slane %v8371_v16, %v15828_v58  ;;  %v13796_v16 = vld [vmem:[%s15824_s4 + $0x818] sm:$0xff]  }
 0x31a   : > { %13130 = vmatprep.subr.bf16.mxu0 %v13704_v22  ;;  %13151 = vmatpush3.bf16.msra.mxu1 %v13703_v23  ;;  %v13754_v22 = vld [vmem:[%s15824_s4 + $0x7c8] sm:$0xff]  }
 0x31b   : > { %13152 = vmatprep.subr.bf16.mxu1 %v13705_v24  ;;  %v13755_v23 = vld [vmem:[%s15824_s4 + $0x708] sm:$0xff]   ;;  %v8403_v24 = vcombine.high %v8399_v21, %v8399_v21 }
 0x31d   : > { %13131 = vmatpush3.bf16.msra.mxu0 %v13706_v25  ;;  %v13757_v25 = vld [vmem:[%s15824_s4 + $0x750] sm:$0xff]  }
 0x31e   : > { %13132 = vmatprep.subr.bf16.mxu0 %v13708_v26  ;;  %13153 = vmatpush3.bf16.msra.mxu1 %v13707_v27  ;;  %v13756_v26 = vld [vmem:[%s15824_s4 + $0x788] sm:$0xff]   ;;  %v13758_v27 = vld [vmem:[%s15824_s4 + $0x7d0] sm:$0xff]  }
 0x31f   : > { %13154 = vmatprep.subr.bf16.mxu1 %v13709_v28  ;;  %v13759_v28 = vld [vmem:[%s15824_s4 + $0x710] sm:$0xff]  }
 0x321   : > { %13133 = vmatpush3.bf16.msra.mxu0 %v13710_v29  ;;  %v13761_v29 = vld [vmem:[%s15824_s4 + $0x758] sm:$0xff]  }
 0x322   : > { %13134 = vmatprep.subr.bf16.mxu0 %v13712_v30  ;;  %13155 = vmatpush3.bf16.msra.mxu1 %v13711_v31  ;;  %v13760_v30 = vld [vmem:[%s15824_s4 + $0x790] sm:$0xff]   ;;  %v13762_v31 = vld [vmem:[%s15824_s4 + $0x7d8] sm:$0xff]  }
 0x323   : > { %13156 = vmatprep.subr.bf16.mxu1 %v13713_v32  ;;  %v13763_v32 = vld [vmem:[%s15824_s4 + $0x718] sm:$0xff]  }
 0x325   : > { %13135 = vmatpush3.bf16.msra.mxu0 %v13714_v33  ;;  %v13765_v33 = vld [vmem:[%s15824_s4 + $0x760] sm:$0xff]  }
 0x326   : > { %13164 = vmatprep.subr.bf16.mxu0 %v13717_v35  ;;  %13157 = vmatpush3.bf16.msra.mxu1 %v13715_v36  ;;  %v13766_v35 = vld [vmem:[%s15824_s4 + $0x7e0] sm:$0xff]  }
 0x327   : > { %13186 = vmatprep.subr.bf16.mxu1 %v13718_v37  ;;  %v13767_v36 = vld [vmem:[%s15824_s4 + $0x720] sm:$0xff]  }
 0x328   : > { %11689 = vmatmul.mubr.bf16.vlgmr.msra.gmra.mrb[20].mxu0 %v8336_v34  ;;  %v13764_v34 = vld [vmem:[%s15824_s4 + $0x798] sm:$0xff]   ;;  %v13768_v37 = vld [vmem:[%s15824_s4 + $0x7a0] sm:$0xff]  }
 0x329   : > { %13165 = vmatpush3.bf16.msra.mxu0 %v13719_v38  ;;  %11729 = vmatmul.mubr.bf16.vlgmr.msra.gmra.mrb[20].mxu1 %v8352_v39  ;;  %v12455_v38 = vld [vmem:[%s7300_s17] ss:$0 sm:$0xff] }
 0x32a   : > { %13166 = vmatprep.subr.bf16.mxu0 %v13721_v40  ;;  %13187 = vmatpush3.bf16.msra.mxu1 %v13720_v41  ;;  %v13769_v40 = vld [vmem:[%s15824_s4 + $0x768] sm:$0xff]  }
 0x32b   : > { %13188 = vmatprep.subr.bf16.mxu1 %v13722_v42  ;;  %11768 = vmatprep.mubr.bf16.mxu0 %v8392_v14  ;;  %v13794_v14 = vld [vmem:[%s15824_s4 + $0x858] sm:$0xff]  }
 0x32c   : > { %11808 = vmatprep.mubr.bf16.mxu1 %v8402_v19  ;;  %v13799_v19 = vld [vmem:[%s15824_s4 + $0x8e0] sm:$0xff]  }
 0x32d   : > { %13167 = vmatpush3.bf16.msra.mxu0 %v13723_v43 }
 0x32e   : > { %13168 = vmatprep.subr.bf16.mxu0 %v13725_v44  ;;  %13189 = vmatpush3.bf16.msra.mxu1 %v13724_v45  ;;  %v13770_v45 = vld [vmem:[%s15824_s4 + $0x7e8] sm:$0xff]  }
 0x32f   : > { %13190 = vmatprep.subr.bf16.mxu1 %v13726_v46 }
 0x331   : > { %13169 = vmatpush3.bf16.msra.mxu0 %v13727_v47  ;;  %v13771_v47 = vld [vmem:[%s15824_s4 + $0x728] sm:$0xff]  }
 0x332   : > { %13170 = vmatprep.subr.bf16.mxu0 %v13729_v48  ;;  %13191 = vmatpush3.bf16.msra.mxu1 %v13728_v49 }
 0x333   : > { %13192 = vmatprep.subr.bf16.mxu1 %v13730_v50  ;;  %v13772_v50 = vld [vmem:[%s15824_s4 + $0x7a8] sm:$0xff]  }
 0x335   : > { %13171 = vmatpush3.bf16.msra.mxu0 %v13731_v51 }
 0x336   : > { %13172 = vmatprep.subr.bf16.mxu0 %v13733_v52  ;;  %13193 = vmatpush3.bf16.msra.mxu1 %v13732_v53 }
 0x337   : > { %13194 = vmatprep.subr.bf16.mxu1 %v13734_v54  ;;  %v13773_v54 = vld [vmem:[%s15824_s4 + $0x770] sm:$0xff]  }
 0x339   : > { %13173 = vmatpush3.bf16.msra.mxu0 %v13735_v55  ;;  %v13774_v55 = vld [vmem:[%s15824_s4 + $0x7f0] sm:$0xff]  }
 0x33a   : > { %13174 = vmatprep.subr.bf16.mxu0 %v13737_v56  ;;  %13195 = vmatpush3.bf16.msra.mxu1 %v13736_v57  ;;  %v13775_v57 = vld [vmem:[%s15824_s4 + $0x730] sm:$0xff]  }
 0x33b   : > { %13196 = vmatprep.subr.bf16.mxu1 %v13738_v59  ;;  %v13776_v59 = vld [vmem:[%s15824_s4 + $0x7b0] sm:$0xff]  }
 0x33d   : > { %13175 = vmatpush3.bf16.msra.mxu0 %v13739_v60  ;;  %v13777_v60 = vld [vmem:[%s15824_s4 + $0x778] sm:$0xff]  }
 0x33e   : > { %13176 = vmatprep.subr.bf16.mxu0 %v13741_v61  ;;  %13197 = vmatpush3.bf16.msra.mxu1 %v13740_v62  ;;  %v13778_v61 = vld [vmem:[%s15824_s4 + $0x7f8] sm:$0xff]  }
 0x33f   : > { %13198 = vmatprep.subr.bf16.mxu1 %v13742_v63  ;;  %v13779_v62 = vld [vmem:[%s15824_s4 + $0x738] sm:$0xff]  }
 0x340   : > { %v13780_v63 = vld [vmem:[%s15824_s4 + $0x7b8] sm:$0xff]  }
 0x341   : > { %13177 = vmatpush3.bf16.msra.mxu0 %v13743_v0  ;;  %v8385_v0 = vrot.slane %v16108_v12, %v15828_v58  ;;  %v13792_v12 = vld [vmem:[%s15824_s4 + $0x810] sm:$0xff]  }
 0x342   : > { %13178 = vmatprep.subr.bf16.mxu0 %v13745_v1  ;;  %13199 = vmatpush3.bf16.msra.mxu1 %v13744_v2  ;;  %v13782_v1 = vld [vmem:[%s15824_s4 + $0x840] sm:$0xff]  }
 0x343   : > { %13200 = vmatprep.subr.bf16.mxu1 %v13746_v3  ;;  %v13783_v2 = vld [vmem:[%s15824_s4 + $0x8c0] sm:$0xff]  }
 0x344   : > { %v13784_v3 = vld [vmem:[%s15824_s4 + $0x800] sm:$0xff]  }
 0x345   : > { %13179 = vmatpush3.bf16.msra.mxu0 %v13747_v5  ;;  %v8401_v5 = vcombine.high %v8385_v0, %v8385_v0 }
 0x346   : > { %13208 = vmatprep.subr.bf16.mxu0 %v13749_v8  ;;  %13201 = vmatpush3.bf16.msra.mxu1 %v13748_v9  ;;  %v13788_v8 = vld [vmem:[%s15824_s4 + $0x808] sm:$0xff]  }
 0x347   : > { %13230 = vmatprep.subr.bf16.mxu1 %v13750_v13  ;;  %v13789_v9 = vld [vmem:[%s15824_s4 + $0x888] sm:$0xff]   ;;  %v13793_v13 = vld [vmem:[%s15824_s4 + $0x890] sm:$0xff]  }
 0x348   : > { %11769 = vmatmul.mubr.bf16.vlgmr.msra.gmra.mrb[24].mxu0 %v8378_v11  ;;  %v13791_v11 = vld [vmem:[%s15824_s4 + $0x8d0] sm:$0xff]  }
 0x349   : > { %13209 = vmatpush3.bf16.msra.mxu0 %v13751_v15  ;;  %11809 = vmatmul.mubr.bf16.vlgmr.msra.gmra.mrb[24].mxu1 %v8400_v17  ;;  %v13795_v15 = vld [vmem:[%s15824_s4 + $0x8d8] sm:$0xff]  }
 0x34a   : > { %13210 = vmatprep.subr.bf16.mxu0 %v13753_v18  ;;  %13231 = vmatpush3.bf16.msra.mxu1 %v13752_v20  ;;  %v13797_v17 = vld [vmem:[%s15824_s4 + $0x898] sm:$0xff]   ;;  %v13798_v18 = vld [vmem:[%s15824_s4 + $0x860] sm:$0xff]  }
 0x34b   : > { %11848 = vmatprep.mubr.bf16.mxu0 %v8399_v21  ;;  %13232 = vmatprep.subr.bf16.mxu1 %v13754_v22  ;;  %v13800_v20 = vld [vmem:[%s15824_s4 + $0x820] sm:$0xff]  }
 0x34c   : > { %11888 = vmatprep.mubr.bf16.mxu1 %v8403_v24  ;;  %v13801_v21 = vld [vmem:[%s15824_s4 + $0x8a0] sm:$0xff]  }
 0x34d   : > { %13211 = vmatpush3.bf16.msra.mxu0 %v13755_v23  ;;  %v13802_v23 = vld [vmem:[%s15824_s4 + $0x868] sm:$0xff]  }
 0x34e   : > { %13212 = vmatprep.subr.bf16.mxu0 %v13757_v25  ;;  %13233 = vmatpush3.bf16.msra.mxu1 %v13756_v26  ;;  %v13803_v26 = vld [vmem:[%s15824_s4 + $0x8e8] sm:$0xff]  }
 0x34f   : > { %13234 = vmatprep.subr.bf16.mxu1 %v13758_v27  ;;  %v13804_v27 = vld [vmem:[%s15824_s4 + $0x828] sm:$0xff]  }
 0x351   : > { %13213 = vmatpush3.bf16.msra.mxu0 %v13759_v28 }
 0x352   : > { %13214 = vmatprep.subr.bf16.mxu0 %v13761_v29  ;;  %13235 = vmatpush3.bf16.msra.mxu1 %v13760_v30 }
 0x353   : > { %13236 = vmatprep.subr.bf16.mxu1 %v13762_v31 }
 0x355   : > { %13215 = vmatpush3.bf16.msra.mxu0 %v13763_v32 }
 0x356   : > { %13216 = vmatprep.subr.bf16.mxu0 %v13765_v33  ;;  %13237 = vmatpush3.bf16.msra.mxu1 %v13764_v34  ;;  %v13805_v33 = vld [vmem:[%s15824_s4 + $0x8a8] sm:$0xff]  }
 0x357   : > { %13238 = vmatprep.subr.bf16.mxu1 %v13766_v35 }
 0x359   : > { %13217 = vmatpush3.bf16.msra.mxu0 %v13767_v36 }
 0x35a   : > { %13218 = vmatprep.subr.bf16.mxu0 %v13769_v40  ;;  %13239 = vmatpush3.bf16.msra.mxu1 %v13768_v37  ;;  %v13806_v37 = vld [vmem:[%s15824_s4 + $0x870] sm:$0xff]  }
 0x35b   : > { %v12916_v39 = vpop.f32.mrb[0].mxu0  ;;  %13240 = vmatprep.subr.bf16.mxu1 %v13770_v45  ;;  %v13808_v40 = vld [vmem:[%s15824_s4 + $0x830] sm:$0xff]   ;;  %v13813_v45 = vld [vmem:[%s15824_s4 + $0x8b8] sm:$0xff]  }
 0x35c   : > { %v12938_v41 = vpop.f32.mrb[0].mxu1  ;;  %v12917_v42 = vpop.f32.mrb[1].mxu0 }
 0x35d   : > { %v12918_v43 = vadd.f32 %v12917_v42, %v12916_v39  ;;  %v12939_v44 = vpop.f32.mrb[1].mxu1  ;;  %v12919_v46 = vpop.f32.mrb[2].mxu0  ;;  %13219 = vmatpush3.bf16.msra.mxu0 %v13771_v47  ;;  %v13807_v39 = vld [vmem:[%s15824_s4 + $0x8f0] sm:$0xff]   ;;  %v13810_v42 = vld [vmem:[%s15824_s4 + $0x878] sm:$0xff]  }
 0x35e   : > { %v12940_v48 = vadd.f32 %v12939_v44, %v12938_v41  ;;  %v12941_v49 = vpop.f32.mrb[2].mxu1  ;;  %v12920_v51 = vpop.f32.mrb[3].mxu0  ;;  %13220 = vmatprep.subr.bf16.mxu0 %v13773_v54  ;;  %13241 = vmatpush3.bf16.msra.mxu1 %v13772_v50  ;;  %v13809_v41 = vld [vmem:[%s15824_s4 + $0x8b0] sm:$0xff]   ;;  %v13812_v44 = vld [vmem:[%s15824_s4 + $0x838] sm:$0xff]   ;;  %v13815_v50 = vld [vmem:[%s15824_s4 + $0x9c0] sm:$0xff]  }
 0x35f   : > { %v11291_v52 = vadd.f32 %v12918_v43, %v12455_v38  ;;  %v12942_v53 = vpop.f32.mrb[3].mxu1  ;;  %13242 = vmatprep.subr.bf16.mxu1 %v13774_v55  ;;  %v13811_v43 = vld [vmem:[%s15824_s4 + $0x8f8] sm:$0xff]   ;;  %v13816_v54 = vld [vmem:[%s15824_s4 + $0x900] sm:$0xff]  }
 0x360   : > { %v7309_v46 = vld [vmem:[%s16425_s0 + $0x20] sm:$0xff] }
 0x361   : > { %v16149_v56 = vadd.f32 %v12940_v48, %v11291_v52  ;;  %13221 = vmatpush3.bf16.msra.mxu0 %v13775_v57  ;;  %v8411_v47 = vrot.slane %v7309_v46, %v15828_v58  ;;  %v13814_v48 = vld [vmem:[%s15824_s4 + $0x940] sm:$0xff]   ;;  %v8404_v49 = vcombine.high %v7309_v46, %v7309_v46  ;;  %v13852_v46 = vld [vmem:[%s15824_s4 + $0xac8] sm:$0xff]  }
 0x362   : > { %13222 = vmatprep.subr.bf16.mxu0 %v13777_v60  ;;  %13243 = vmatpush3.bf16.msra.mxu1 %v13776_v59  ;;  %v13818_v60 = vld [vmem:[%s15824_s4 + $0x948] sm:$0xff]  }
 0x363   : > { %13244 = vmatprep.subr.bf16.mxu1 %v13778_v61  ;;  %v8419_v51 = vcombine.high %v8411_v47, %v8411_v47  ;;  %v8427_v52 = vrot.slane %v8411_v47, %v15828_v58  ;;  %v16202_v53 = vrot.slane %v8404_v49, %v15828_v58  ;;  %v13853_v47 = vld [vmem:[%s15824_s4 + $0xa08] sm:$0xff]   ;;  %v13855_v49 = vld [vmem:[%s15824_s4 + $0xa50] sm:$0xff]  }
 0x365   : > { %13223 = vmatpush3.bf16.msra.mxu0 %v13779_v62  ;;  %v8441_v55 = vrot.slane %v8419_v51, %v15828_v58  ;;  %v8420_v57 = vcombine.high %v16202_v53, %v16202_v53  ;;  %v8449_v59 = vcombine.high %v8427_v52, %v8427_v52  ;;  %v13819_v62 = vld [vmem:[%s15824_s4 + $0x9c8] sm:$0xff]   ;;  %v13857_v51 = vld [vmem:[%s15824_s4 + $0xa10] sm:$0xff]  }
 0x366   : > { %13252 = vmatprep.subr.bf16.mxu0 %v13782_v1  ;;  %13245 = vmatpush3.bf16.msra.mxu1 %v13780_v63  ;;  %v13821_v1 = vld [vmem:[%s15824_s4 + $0x988] sm:$0xff]  }
 0x367   : > { %13274 = vmatprep.subr.bf16.mxu1 %v13783_v2  ;;  %v8451_v61 = vcombine.high %v8441_v55, %v8441_v55  ;;  %v8448_v63 = vrot.slane %v8420_v57, %v15828_v58  ;;  %v13863_v57 = vld [vmem:[%s15824_s4 + $0xa60] sm:$0xff]  }
 0x368   : > { %11849 = vmatmul.mubr.bf16.vlgmr.msra.gmra.mrb[28].mxu0 %v8385_v0  ;;  %v13820_v0 = vld [vmem:[%s15824_s4 + $0x908] sm:$0xff]  }
 0x369   : > { %13253 = vmatpush3.bf16.msra.mxu0 %v13784_v3  ;;  %11889 = vmatmul.mubr.bf16.vlgmr.msra.gmra.mrb[28].mxu1 %v8401_v5  ;;  %v8452_v2 = vcombine.high %v8448_v63, %v8448_v63  ;;  %v13822_v3 = vld [vmem:[%s15824_s4 + $0x950] sm:$0xff]  }
 0x36a   : > { %13254 = vmatprep.subr.bf16.mxu0 %v13786_v6  ;;  %13275 = vmatpush3.bf16.msra.mxu1 %v13785_v4  ;;  %v13823_v4 = vld [vmem:[%s15824_s4 + $0x9d0] sm:$0xff]  }
 0x36b   : > { %13276 = vmatprep.subr.bf16.mxu1 %v13787_v7  ;;  %11928 = vmatprep.mubr.bf16.mxu0 %v8441_v55  ;;  %v13824_v5 = vld [vmem:[%s15824_s4 + $0x910] sm:$0xff]   ;;  %v13826_v7 = vld [vmem:[%s15824_s4 + $0x958] sm:$0xff]  }
 0x36c   : > { %11968 = vmatprep.mubr.bf16.mxu1 %v8451_v61  ;;  %v13825_v6 = vld [vmem:[%s15824_s4 + $0x990] sm:$0xff]   ;;  %v13861_v55 = vld [vmem:[%s15824_s4 + $0xa18] sm:$0xff]  }
 0x36d   : > { %13255 = vmatpush3.bf16.msra.mxu0 %v13788_v8  ;;  %v13827_v8 = vld [vmem:[%s15824_s4 + $0x9d8] sm:$0xff]  }
 0x36e   : > { %13256 = vmatprep.subr.bf16.mxu0 %v13790_v10  ;;  %13277 = vmatpush3.bf16.msra.mxu1 %v13789_v9  ;;  %v13828_v9 = vld [vmem:[%s15824_s4 + $0x918] sm:$0xff]  }
 0x36f   : > { %13278 = vmatprep.subr.bf16.mxu1 %v13791_v11  ;;  %v13829_v10 = vld [vmem:[%s15824_s4 + $0x998] sm:$0xff]   ;;  %v13830_v11 = vld [vmem:[%s15824_s4 + $0x960] sm:$0xff]  }
 0x371   : > { %13257 = vmatpush3.bf16.msra.mxu0 %v13792_v12  ;;  %v13831_v12 = vld [vmem:[%s15824_s4 + $0x9e0] sm:$0xff]  }
 0x372   : > { %13258 = vmatprep.subr.bf16.mxu0 %v13794_v14  ;;  %13279 = vmatpush3.bf16.msra.mxu1 %v13793_v13  ;;  %v13832_v13 = vld [vmem:[%s15824_s4 + $0x920] sm:$0xff]  }
 0x373   : > { %13280 = vmatprep.subr.bf16.mxu1 %v13795_v15  ;;  %v13833_v15 = vld [vmem:[%s15824_s4 + $0x9a0] sm:$0xff]  }
 0x375   : > { %13259 = vmatpush3.bf16.msra.mxu0 %v13796_v16 }
 0x376   : > { %13260 = vmatprep.subr.bf16.mxu0 %v13798_v18  ;;  %13281 = vmatpush3.bf16.msra.mxu1 %v13797_v17  ;;  %v13834_v18 = vld [vmem:[%s15824_s4 + $0x968] sm:$0xff]  }
 0x377   : > { %13282 = vmatprep.subr.bf16.mxu1 %v13799_v19 }
 0x379   : > { %13261 = vmatpush3.bf16.msra.mxu0 %v13800_v20 }
 0x37a   : > { %13262 = vmatprep.subr.bf16.mxu0 %v13802_v23  ;;  %13283 = vmatpush3.bf16.msra.mxu1 %v13801_v21  ;;  %v13835_v23 = vld [vmem:[%s15824_s4 + $0x9e8] sm:$0xff]  }
 0x37b   : > { %v12960_v22 = vpop.f32.mrb[4].mxu0  ;;  %13284 = vmatprep.subr.bf16.mxu1 %v13803_v26  ;;  %v13836_v26 = vld [vmem:[%s15824_s4 + $0x928] sm:$0xff]  }
 0x37c   : > { %v12982_v24 = vpop.f32.mrb[4].mxu1  ;;  %v12961_v25 = vpop.f32.mrb[5].mxu0 }
 0x37d   : > { %v12962_v28 = vadd.f32 %v12961_v25, %v12960_v22  ;;  %v12983_v29 = vpop.f32.mrb[5].mxu1  ;;  %v12963_v30 = vpop.f32.mrb[6].mxu0  ;;  %13263 = vmatpush3.bf16.msra.mxu0 %v13804_v27 }
 0x37e   : > { %v12984_v31 = vadd.f32 %v12983_v29, %v12982_v24  ;;  %v12985_v32 = vpop.f32.mrb[6].mxu1  ;;  %v12964_v35 = vpop.f32.mrb[7].mxu0  ;;  %13264 = vmatprep.subr.bf16.mxu0 %v13806_v37  ;;  %13285 = vmatpush3.bf16.msra.mxu1 %v13805_v33  ;;  %v13840_v33 = vld [vmem:[%s15824_s4 + $0x930] sm:$0xff]   ;;  %v13844_v37 = vld [vmem:[%s15824_s4 + $0x938] sm:$0xff]  }
 0x37f   : > { %v11371_v34 = vadd.f32 %v12962_v28, %v16149_v56  ;;  %v12986_v36 = vpop.f32.mrb[7].mxu1  ;;  %13286 = vmatprep.subr.bf16.mxu1 %v13807_v39  ;;  %v13817_v56 = vld [vmem:[%s15824_s4 + $0x980] sm:$0xff]   ;;  %v13837_v28 = vld [vmem:[%s15824_s4 + $0x9a8] sm:$0xff]   ;;  %v13839_v32 = vld [vmem:[%s15824_s4 + $0x9f0] sm:$0xff]   ;;  %v8434_v39 = vrot.slane %v16202_v53, %v15828_v58 }
 0x380   : > { %v13842_v35 = vld [vmem:[%s15824_s4 + $0x978] sm:$0xff]  }
 0x381   : > { %v16185_v38 = vadd.f32 %v12984_v31, %v11371_v34  ;;  %13265 = vmatpush3.bf16.msra.mxu0 %v13808_v40  ;;  %v13838_v31 = vld [vmem:[%s15824_s4 + $0x970] sm:$0xff]   ;;  %v13843_v36 = vld [vmem:[%s15824_s4 + $0x9f8] sm:$0xff]   ;;  %v13847_v40 = vld [vmem:[%s15824_s4 + $0xa40] sm:$0xff]  }
 0x382   : > { %13266 = vmatprep.subr.bf16.mxu0 %v13810_v42  ;;  %13287 = vmatpush3.bf16.msra.mxu1 %v13809_v41  ;;  %v13841_v34 = vld [vmem:[%s15824_s4 + $0x9b0] sm:$0xff]   ;;  %v13848_v41 = vld [vmem:[%s15824_s4 + $0xac0] sm:$0xff]   ;;  %v13859_v53 = vld [vmem:[%s15824_s4 + $0xa58] sm:$0xff]  }
 0x383   : > { %13288 = vmatprep.subr.bf16.mxu1 %v13811_v43  ;;  %v13849_v42 = vld [vmem:[%s15824_s4 + $0xa00] sm:$0xff]  }
 0x384   : > { %v13850_v43 = vld [vmem:[%s15824_s4 + $0xa80] sm:$0xff]  }
 0x385   : > { %13267 = vmatpush3.bf16.msra.mxu0 %v13812_v44  ;;  %v8450_v44 = vcombine.high %v8434_v39, %v8434_v39 }
 0x386   : > { %13296 = vmatprep.subr.bf16.mxu0 %v13814_v48  ;;  %13289 = vmatpush3.bf16.msra.mxu1 %v13813_v45  ;;  %v13851_v45 = vld [vmem:[%s15824_s4 + $0xa48] sm:$0xff]  }
 0x387   : > { %13318 = vmatprep.subr.bf16.mxu1 %v13815_v50  ;;  %v13854_v48 = vld [vmem:[%s15824_s4 + $0xa88] sm:$0xff]   ;;  %v13856_v50 = vld [vmem:[%s15824_s4 + $0xad0] sm:$0xff]  }
 0x388   : > { %11929 = vmatmul.mubr.bf16.vlgmr.msra.gmra.mrb[32].mxu0 %v8427_v52  ;;  %v13858_v52 = vld [vmem:[%s15824_s4 + $0xa90] sm:$0xff]  }
 0x389   : > { %13297 = vmatpush3.bf16.msra.mxu0 %v13816_v54  ;;  %11969 = vmatmul.mubr.bf16.vlgmr.msra.gmra.mrb[32].mxu1 %v8449_v59  ;;  %v13860_v54 = vld [vmem:[%s15824_s4 + $0xad8] sm:$0xff]   ;;  %v13864_v59 = vld [vmem:[%s15824_s4 + $0xae0] sm:$0xff]  }
 0x38a   : > { %13298 = vmatprep.subr.bf16.mxu0 %v13818_v60  ;;  %13319 = vmatpush3.bf16.msra.mxu1 %v13817_v56  ;;  %v13862_v56 = vld [vmem:[%s15824_s4 + $0xa98] sm:$0xff]   ;;  %v13865_v60 = vld [vmem:[%s15824_s4 + $0xa20] sm:$0xff]  }
 0x38b   : > { %12008 = vmatprep.mubr.bf16.mxu0 %v8448_v63  ;;  %13320 = vmatprep.subr.bf16.mxu1 %v13819_v62 }
 0x38c   : > { %12048 = vmatprep.mubr.bf16.mxu1 %v8452_v2  ;;  %v13867_v2 = vld [vmem:[%s15824_s4 + $0xa68] sm:$0xff]  }
 0x38d   : > { %13299 = vmatpush3.bf16.msra.mxu0 %v13820_v0 }
 0x38e   : > { %13300 = vmatprep.subr.bf16.mxu0 %v13822_v3  ;;  %13321 = vmatpush3.bf16.msra.mxu1 %v13821_v1  ;;  %v13866_v3 = vld [vmem:[%s15824_s4 + $0xaa0] sm:$0xff]  }
 0x38f   : > { %13322 = vmatprep.subr.bf16.mxu1 %v13823_v4 }
 0x391   : > { %13301 = vmatpush3.bf16.msra.mxu0 %v13824_v5  ;;  %v13868_v5 = vld [vmem:[%s15824_s4 + $0xae8] sm:$0xff]  }
 0x392   : > { %13302 = vmatprep.subr.bf16.mxu0 %v13826_v7  ;;  %13323 = vmatpush3.bf16.msra.mxu1 %v13825_v6 }
 0x393   : > { %13324 = vmatprep.subr.bf16.mxu1 %v13827_v8 }
 0x395   : > { %13303 = vmatpush3.bf16.msra.mxu0 %v13828_v9  ;;  %v13869_v9 = vld [vmem:[%s15824_s4 + $0xa28] sm:$0xff]  }
 0x396   : > { %13304 = vmatprep.subr.bf16.mxu0 %v13830_v11  ;;  %13325 = vmatpush3.bf16.msra.mxu1 %v13829_v10 }
 0x397   : > { %13326 = vmatprep.subr.bf16.mxu1 %v13831_v12  ;;  %v13871_v12 = vld [vmem:[%s15824_s4 + $0xa70] sm:$0xff]  }
 0x399   : > { %13305 = vmatpush3.bf16.msra.mxu0 %v13832_v13 }
 0x39a   : > { %13306 = vmatprep.subr.bf16.mxu0 %v13834_v18  ;;  %13327 = vmatpush3.bf16.msra.mxu1 %v13833_v15  ;;  %v13872_v15 = vld [vmem:[%s15824_s4 + $0xaf0] sm:$0xff]  }
 0x39b   : > { %v13004_v14 = vpop.f32.mrb[8].mxu0  ;;  %13328 = vmatprep.subr.bf16.mxu1 %v13835_v23  ;;  %v13874_v18 = vld [vmem:[%s15824_s4 + $0xab0] sm:$0xff]   ;;  %v13879_v23 = vld [vmem:[%s15824_s4 + $0xb40] sm:$0xff]  }
 0x39c   : > { %v13026_v16 = vpop.f32.mrb[8].mxu1  ;;  %v13005_v17 = vpop.f32.mrb[9].mxu0 }
 0x39d   : > { %v13006_v19 = vadd.f32 %v13005_v17, %v13004_v14  ;;  %v13027_v20 = vpop.f32.mrb[9].mxu1  ;;  %v13007_v21 = vpop.f32.mrb[10].mxu0  ;;  %13307 = vmatpush3.bf16.msra.mxu0 %v13836_v26  ;;  %v13870_v14 = vld [vmem:[%s15824_s4 + $0xaa8] sm:$0xff]   ;;  %v13875_v17 = vld [vmem:[%s15824_s4 + $0xa78] sm:$0xff]  }
 0x39e   : > { %v13028_v22 = vadd.f32 %v13027_v20, %v13026_v16  ;;  %v13029_v24 = vpop.f32.mrb[10].mxu1  ;;  %v13008_v27 = vpop.f32.mrb[11].mxu0  ;;  %13308 = vmatprep.subr.bf16.mxu0 %v13838_v31  ;;  %13329 = vmatpush3.bf16.msra.mxu1 %v13837_v28  ;;  %v13873_v16 = vld [vmem:[%s15824_s4 + $0xa30] sm:$0xff]   ;;  %v13877_v20 = vld [vmem:[%s15824_s4 + $0xa38] sm:$0xff]   ;;  %v7310_v21 = vld [vmem:[%s16425_s0 + $0x28] sm:$0xff] }
 0x39f   : > { %v11451_v25 = vadd.f32 %v13006_v19, %v16185_v38  ;;  %v13030_v29 = vpop.f32.mrb[11].mxu1  ;;  %13330 = vmatprep.subr.bf16.mxu1 %v13839_v32  ;;  %v13845_v38 = vld [vmem:[%s15824_s4 + $0x9b8] sm:$0xff]   ;;  %v8453_v24 = vcombine.high %v7310_v21, %v7310_v21  ;;  %v13880_v28 = vld [vmem:[%s15824_s4 + $0xbc0] sm:$0xff]  }
 0x3a0   : > { %v13876_v19 = vld [vmem:[%s15824_s4 + $0xaf8] sm:$0xff]   ;;  %v13882_v32 = vld [vmem:[%s15824_s4 + $0xb80] sm:$0xff]  }
 0x3a1   : > { %v16231_v30 = vadd.f32 %v13028_v22, %v11451_v25  ;;  %13309 = vmatpush3.bf16.msra.mxu0 %v13840_v33  ;;  %v8460_v22 = vrot.slane %v7310_v21, %v15828_v58  ;;  %v13878_v25 = vld [vmem:[%s15824_s4 + $0xab8] sm:$0xff]   ;;  %v16286_v29 = vrot.slane %v8453_v24, %v15828_v58  ;;  %v13916_v21 = vld [vmem:[%s15824_s4 + $0xc48] sm:$0xff]  }
 0x3a2   : > { %13310 = vmatprep.subr.bf16.mxu0 %v13842_v35  ;;  %13331 = vmatpush3.bf16.msra.mxu1 %v13841_v34  ;;  %v13883_v35 = vld [vmem:[%s15824_s4 + $0xb48] sm:$0xff]  }
 0x3a3   : > { %13332 = vmatprep.subr.bf16.mxu1 %v13843_v36  ;;  %v8468_v26 = vcombine.high %v8460_v22, %v8460_v22  ;;  %v8476_v27 = vrot.slane %v8460_v22, %v15828_v58  ;;  %v8469_v33 = vcombine.high %v16286_v29, %v16286_v29  ;;  %v13917_v22 = vld [vmem:[%s15824_s4 + $0xcc8] sm:$0xff]  }
 0x3a4   : > { %v13919_v24 = vld [vmem:[%s15824_s4 + $0xc88] sm:$0xff]  }
 0x3a5   : > { %13311 = vmatpush3.bf16.msra.mxu0 %v13844_v37  ;;  %v8490_v31 = vrot.slane %v8468_v26, %v15828_v58  ;;  %v8498_v34 = vcombine.high %v8476_v27, %v8476_v27  ;;  %v13884_v37 = vld [vmem:[%s15824_s4 + $0xbc8] sm:$0xff]   ;;  %v13921_v26 = vld [vmem:[%s15824_s4 + $0xcd0] sm:$0xff]  }
 0x3a6   : > { %13340 = vmatprep.subr.bf16.mxu0 %v13847_v40  ;;  %13333 = vmatpush3.bf16.msra.mxu1 %v13845_v38  ;;  %v8497_v38 = vrot.slane %v8469_v33, %v15828_v58  ;;  %v13886_v40 = vld [vmem:[%s15824_s4 + $0xb88] sm:$0xff]   ;;  %v13928_v33 = vld [vmem:[%s15824_s4 + $0xc60] sm:$0xff]  }
 0x3a7   : > { %13362 = vmatprep.subr.bf16.mxu1 %v13848_v41  ;;  %v8500_v36 = vcombine.high %v8490_v31, %v8490_v31 }
 0x3a8   : > { %12009 = vmatmul.mubr.bf16.vlgmr.msra.gmra.mrb[36].mxu0 %v8434_v39  ;;  %v13885_v39 = vld [vmem:[%s15824_s4 + $0xb08] sm:$0xff]   ;;  %v8501_v41 = vcombine.high %v8497_v38, %v8497_v38 }
 0x3a9   : > { %13341 = vmatpush3.bf16.msra.mxu0 %v13849_v42  ;;  %12049 = vmatmul.mubr.bf16.vlgmr.msra.gmra.mrb[36].mxu1 %v8450_v44  ;;  %v13887_v42 = vld [vmem:[%s15824_s4 + $0xb50] sm:$0xff]  }
 0x3aa   : > { %13342 = vmatprep.subr.bf16.mxu0 %v13851_v45  ;;  %13363 = vmatpush3.bf16.msra.mxu1 %v13850_v43  ;;  %v13888_v43 = vld [vmem:[%s15824_s4 + $0xbd0] sm:$0xff]  }
 0x3ab   : > { %13364 = vmatprep.subr.bf16.mxu1 %v13852_v46  ;;  %12088 = vmatprep.mubr.bf16.mxu0 %v8490_v31  ;;  %v13889_v44 = vld [vmem:[%s15824_s4 + $0xb10] sm:$0xff]   ;;  %v13891_v46 = vld [vmem:[%s15824_s4 + $0xb58] sm:$0xff]  }
 0x3ac   : > { %12128 = vmatprep.mubr.bf16.mxu1 %v8500_v36  ;;  %v13890_v45 = vld [vmem:[%s15824_s4 + $0xb90] sm:$0xff]   ;;  %v13926_v31 = vld [vmem:[%s15824_s4 + $0xc18] sm:$0xff]   ;;  %v13931_v36 = vld [vmem:[%s15824_s4 + $0xca0] sm:$0xff]  }
 0x3ad   : > { %13343 = vmatpush3.bf16.msra.mxu0 %v13853_v47  ;;  %v13892_v47 = vld [vmem:[%s15824_s4 + $0xbd8] sm:$0xff]  }
 0x3ae   : > { %13344 = vmatprep.subr.bf16.mxu0 %v13855_v49  ;;  %13365 = vmatpush3.bf16.msra.mxu1 %v13854_v48  ;;  %v13893_v48 = vld [vmem:[%s15824_s4 + $0xb18] sm:$0xff]  }
 0x3af   : > { %13366 = vmatprep.subr.bf16.mxu1 %v13856_v50  ;;  %v13894_v49 = vld [vmem:[%s15824_s4 + $0xb98] sm:$0xff]   ;;  %v13895_v50 = vld [vmem:[%s15824_s4 + $0xb60] sm:$0xff]  }
 0x3b1   : > { %13345 = vmatpush3.bf16.msra.mxu0 %v13857_v51  ;;  %v13896_v51 = vld [vmem:[%s15824_s4 + $0xbe0] sm:$0xff]  }
 0x3b2   : > { %13346 = vmatprep.subr.bf16.mxu0 %v13859_v53  ;;  %13367 = vmatpush3.bf16.msra.mxu1 %v13858_v52  ;;  %v13897_v52 = vld [vmem:[%s15824_s4 + $0xb20] sm:$0xff]  }
 0x3b3   : > { %13368 = vmatprep.subr.bf16.mxu1 %v13860_v54  ;;  %v13898_v53 = vld [vmem:[%s15824_s4 + $0xba0] sm:$0xff]   ;;  %v13899_v54 = vld [vmem:[%s15824_s4 + $0xb68] sm:$0xff]  }
 0x3b5   : > { %13347 = vmatpush3.bf16.msra.mxu0 %v13861_v55  ;;  %v13900_v55 = vld [vmem:[%s15824_s4 + $0xbe8] sm:$0xff]  }
 0x3b6   : > { %13348 = vmatprep.subr.bf16.mxu0 %v13863_v57  ;;  %13369 = vmatpush3.bf16.msra.mxu1 %v13862_v56  ;;  %v13901_v57 = vld [vmem:[%s15824_s4 + $0xb28] sm:$0xff]  }
 0x3b7   : > { %13370 = vmatprep.subr.bf16.mxu1 %v13864_v59 }
 0x3b9   : > { %13349 = vmatpush3.bf16.msra.mxu0 %v13865_v60  ;;  %v13902_v60 = vld [vmem:[%s15824_s4 + $0xba8] sm:$0xff]  }
 0x3ba   : > { %13350 = vmatprep.subr.bf16.mxu0 %v13867_v2  ;;  %13371 = vmatpush3.bf16.msra.mxu1 %v13866_v3 }
 0x3bb   : > { %v13048_v61 = vpop.f32.mrb[12].mxu0  ;;  %13372 = vmatprep.subr.bf16.mxu1 %v13868_v5 }
 0x3bc   : > { %v13070_v62 = vpop.f32.mrb[12].mxu1  ;;  %v13049_v63 = vpop.f32.mrb[13].mxu0 }
 0x3bd   : > { %v13050_v0 = vadd.f32 %v13049_v63, %v13048_v61  ;;  %v13071_v1 = vpop.f32.mrb[13].mxu1  ;;  %v13051_v6 = vpop.f32.mrb[14].mxu0  ;;  %13351 = vmatpush3.bf16.msra.mxu0 %v13869_v9  ;;  %v13906_v9 = vld [vmem:[%s15824_s4 + $0xbb0] sm:$0xff]  }
 0x3be   : > { %v13072_v4 = vadd.f32 %v13071_v1, %v13070_v62  ;;  %v13073_v7 = vpop.f32.mrb[14].mxu1  ;;  %v13052_v10 = vpop.f32.mrb[15].mxu0  ;;  %13352 = vmatprep.subr.bf16.mxu0 %v13871_v12  ;;  %13373 = vmatpush3.bf16.msra.mxu1 %v13870_v14  ;;  %v13904_v1 = vld [vmem:[%s15824_s4 + $0xbf0] sm:$0xff]   ;;  %v13908_v12 = vld [vmem:[%s15824_s4 + $0xbf8] sm:$0xff]  }
 0x3bf   : > { %v11531_v8 = vadd.f32 %v13050_v0, %v16231_v30  ;;  %v13074_v11 = vpop.f32.mrb[15].mxu1  ;;  %13374 = vmatprep.subr.bf16.mxu1 %v13872_v15  ;;  %v13881_v30 = vld [vmem:[%s15824_s4 + $0xb00] sm:$0xff]   ;;  %v13903_v0 = vld [vmem:[%s15824_s4 + $0xb70] sm:$0xff]   ;;  %v13910_v14 = vld [vmem:[%s15824_s4 + $0xbb8] sm:$0xff]   ;;  %v8483_v15 = vrot.slane %v16286_v29, %v15828_v58 }
 0x3c0   : > { %v13905_v7 = vld [vmem:[%s15824_s4 + $0xb30] sm:$0xff]   ;;  %v13907_v11 = vld [vmem:[%s15824_s4 + $0xb78] sm:$0xff]  }
 0x3c1   : > { %v16268_v13 = vadd.f32 %v13072_v4, %v11531_v8  ;;  %13353 = vmatpush3.bf16.msra.mxu0 %v13873_v16  ;;  %v13912_v16 = vld [vmem:[%s15824_s4 + $0xc40] sm:$0xff]   ;;  %v13924_v29 = vld [vmem:[%s15824_s4 + $0xc58] sm:$0xff]  }
 0x3c2   : > { %13354 = vmatprep.subr.bf16.mxu0 %v13875_v17  ;;  %13375 = vmatpush3.bf16.msra.mxu1 %v13874_v18  ;;  %v13913_v17 = vld [vmem:[%s15824_s4 + $0xcc0] sm:$0xff]  }
 0x3c3   : > { %13376 = vmatprep.subr.bf16.mxu1 %v13876_v19  ;;  %v13914_v18 = vld [vmem:[%s15824_s4 + $0xc00] sm:$0xff]  }
 0x3c4   : > { %v13915_v19 = vld [vmem:[%s15824_s4 + $0xc80] sm:$0xff]  }
 0x3c5   : > { %13355 = vmatpush3.bf16.msra.mxu0 %v13877_v20  ;;  %v8499_v20 = vcombine.high %v8483_v15, %v8483_v15 }
 0x3c6   : > { %13384 = vmatprep.subr.bf16.mxu0 %v13879_v23  ;;  %13377 = vmatpush3.bf16.msra.mxu1 %v13878_v25  ;;  %v13918_v23 = vld [vmem:[%s15824_s4 + $0xc08] sm:$0xff]   ;;  %v13920_v25 = vld [vmem:[%s15824_s4 + $0xc50] sm:$0xff]  }
 0x3c7   : > { %13406 = vmatprep.subr.bf16.mxu1 %v13880_v28  ;;  %v13923_v28 = vld [vmem:[%s15824_s4 + $0xc90] sm:$0xff]  }
 0x3c8   : > { %12089 = vmatmul.mubr.bf16.vlgmr.msra.gmra.mrb[40].mxu0 %v8476_v27  ;;  %v13922_v27 = vld [vmem:[%s15824_s4 + $0xc10] sm:$0xff]  }
 0x3c9   : > { %13385 = vmatpush3.bf16.msra.mxu0 %v13881_v30  ;;  %12129 = vmatmul.mubr.bf16.vlgmr.msra.gmra.mrb[40].mxu1 %v8498_v34  ;;  %v13925_v30 = vld [vmem:[%s15824_s4 + $0xcd8] sm:$0xff]   ;;  %v13929_v34 = vld [vmem:[%s15824_s4 + $0xce0] sm:$0xff]  }
 0x3ca   : > { %13386 = vmatprep.subr.bf16.mxu0 %v13883_v35  ;;  %13407 = vmatpush3.bf16.msra.mxu1 %v13882_v32  ;;  %v13927_v32 = vld [vmem:[%s15824_s4 + $0xc98] sm:$0xff]   ;;  %v13930_v35 = vld [vmem:[%s15824_s4 + $0xc20] sm:$0xff]  }
 0x3cb   : > { %12168 = vmatprep.mubr.bf16.mxu0 %v8497_v38  ;;  %13408 = vmatprep.subr.bf16.mxu1 %v13884_v37  ;;  %v13932_v37 = vld [vmem:[%s15824_s4 + $0xc68] sm:$0xff]  }
 0x3cc   : > { %12208 = vmatprep.mubr.bf16.mxu1 %v8501_v41  ;;  %v13933_v38 = vld [vmem:[%s15824_s4 + $0xce8] sm:$0xff]  }
 0x3cd   : > { %13387 = vmatpush3.bf16.msra.mxu0 %v13885_v39 }
 0x3ce   : > { %13388 = vmatprep.subr.bf16.mxu0 %v13887_v42  ;;  %13409 = vmatpush3.bf16.msra.mxu1 %v13886_v40  ;;  %v13934_v40 = vld [vmem:[%s15824_s4 + $0xc28] sm:$0xff]   ;;  %v13936_v42 = vld [vmem:[%s15824_s4 + $0xc70] sm:$0xff]  }
 0x3cf   : > { %13410 = vmatprep.subr.bf16.mxu1 %v13888_v43 }
 0x3d1   : > { %13389 = vmatpush3.bf16.msra.mxu0 %v13889_v44 }
 0x3d2   : > { %13390 = vmatprep.subr.bf16.mxu0 %v13891_v46  ;;  %13411 = vmatpush3.bf16.msra.mxu1 %v13890_v45 }
 0x3d3   : > { %13412 = vmatprep.subr.bf16.mxu1 %v13892_v47  ;;  %v13935_v47 = vld [vmem:[%s15824_s4 + $0xca8] sm:$0xff]  }
 0x3d5   : > { %13391 = vmatpush3.bf16.msra.mxu0 %v13893_v48 }
 0x3d6   : > { %13392 = vmatprep.subr.bf16.mxu0 %v13895_v50  ;;  %13413 = vmatpush3.bf16.msra.mxu1 %v13894_v49  ;;  %v13937_v49 = vld [vmem:[%s15824_s4 + $0xcf0] sm:$0xff]  }
 0x3d7   : > { %13414 = vmatprep.subr.bf16.mxu1 %v13896_v51 }
 0x3d9   : > { %13393 = vmatpush3.bf16.msra.mxu0 %v13897_v52 }
 0x3da   : > { %13394 = vmatprep.subr.bf16.mxu0 %v13899_v54  ;;  %13415 = vmatpush3.bf16.msra.mxu1 %v13898_v53  ;;  %v13938_v53 = vld [vmem:[%s15824_s4 + $0xc30] sm:$0xff]  }
 0x3db   : > { %v13092_v56 = vpop.f32.mrb[16].mxu0  ;;  %13416 = vmatprep.subr.bf16.mxu1 %v13900_v55  ;;  %v13940_v55 = vld [vmem:[%s15824_s4 + $0xc78] sm:$0xff]  }
 0x3dc   : > { %v13093_v59 = vpop.f32.mrb[17].mxu0  ;;  %v13114_v61 = vpop.f32.mrb[16].mxu1 }
 0x3dd   : > { %v13094_v62 = vadd.f32 %v13093_v59, %v13092_v56  ;;  %v13095_v63 = vpop.f32.mrb[18].mxu0  ;;  %v13115_v2 = vpop.f32.mrb[17].mxu1  ;;  %13395 = vmatpush3.bf16.msra.mxu0 %v13901_v57  ;;  %v13939_v57 = vld [vmem:[%s15824_s4 + $0xcb0] sm:$0xff]   ;;  %v13941_v59 = vld [vmem:[%s15824_s4 + $0xcf8] sm:$0xff]  }
 0x3de   : > { %v13096_v3 = vpop.f32.mrb[19].mxu0  ;;  %v13116_v5 = vadd.f32 %v13115_v2, %v13114_v61  ;;  %v13117_v6 = vpop.f32.mrb[18].mxu1  ;;  %13396 = vmatprep.subr.bf16.mxu0 %v13903_v0  ;;  %13417 = vmatpush3.bf16.msra.mxu1 %v13902_v60  ;;  %v13942_v60 = vld [vmem:[%s15824_s4 + $0xc38] sm:$0xff]   ;;  %v7311_v61 = vld [vmem:[%s16425_s0 + $0x30] sm:$0xff]  ;;  %v13944_v63 = vld [vmem:[%s15824_s4 + $0xd40] sm:$0xff]  }
 0x3df   : > { %v11611_v4 = vadd.f32 %v13094_v62, %v16268_v13  ;;  %v13118_v8 = vpop.f32.mrb[19].mxu1  ;;  %13418 = vmatprep.subr.bf16.mxu1 %v13904_v1  ;;  %v13909_v13 = vld [vmem:[%s15824_s4 + $0xb38] sm:$0xff]   ;;  %v8509_v62 = vrot.slane %v7311_v61, %v15828_v58  ;;  %v8502_v0 = vcombine.high %v7311_v61, %v7311_v61  ;;  %v13945_v6 = vld [vmem:[%s15824_s4 + $0xd00] sm:$0xff]  }
 0x3e0   : > { %v13943_v1 = vld [vmem:[%s15824_s4 + $0xcb8] sm:$0xff]  }
 0x3e1   : > { %v16319_v10 = vadd.f32 %v13116_v5, %v11611_v4  ;;  %13397 = vmatpush3.bf16.msra.mxu0 %v13905_v7  ;;  %v8517_v2 = vcombine.high %v8509_v62, %v8509_v62  ;;  %v8525_v3 = vrot.slane %v8509_v62, %v15828_v58  ;;  %v16369_v4 = vrot.slane %v8502_v0, %v15828_v58 }
 0x3e2   : > { %13398 = vmatprep.subr.bf16.mxu0 %v13907_v11  ;;  %13419 = vmatpush3.bf16.msra.mxu1 %v13906_v9  ;;  %v13947_v9 = vld [vmem:[%s15824_s4 + $0xd48] sm:$0xff]   ;;  %v13995_v11 = vmov 0  }
 0x3e3   : > { %13420 = vmatprep.subr.bf16.mxu1 %v13908_v12  ;;  %v8539_v5 = vrot.slane %v8517_v2, %v15828_v58  ;;  %v8518_v7 = vcombine.high %v16369_v4, %v16369_v4  ;;  %v8547_v8 = vcombine.high %v8525_v3, %v8525_v3  ;;  %v13946_v12 = vld [vmem:[%s15824_s4 + $0xd80] sm:$0xff]  }
 0x3e5   : > { %13399 = vmatpush3.bf16.msra.mxu0 %v13909_v13  ;;  %v8546_v13 = vrot.slane %v8518_v7, %v15828_v58 }
 0x3e6   : > { %13428 = vmatprep.subr.bf16.mxu0 %v13912_v16  ;;  %13421 = vmatpush3.bf16.msra.mxu1 %v13910_v14  ;;  %v13948_v14 = vld [vmem:[%s15824_s4 + $0xd08] sm:$0xff]   ;;  %v13950_v16 = vld [vmem:[%s15824_s4 + $0xd50] sm:$0xff]  }
 0x3e7   : > { %13450 = vmatprep.subr.bf16.mxu1 %v13913_v17  ;;  %v13949_v17 = vld [vmem:[%s15824_s4 + $0xd88] sm:$0xff]  }
 0x3e8   : > { %12169 = vmatmul.mubr.bf16.vlgmr.msra.gmra.mrb[44].mxu0 %v8483_v15  ;;  %v8550_v15 = vcombine.high %v8546_v13, %v8546_v13 }
 0x3e9   : > { %13429 = vmatpush3.bf16.msra.mxu0 %v13914_v18  ;;  %12209 = vmatmul.mubr.bf16.vlgmr.msra.gmra.mrb[44].mxu1 %v8499_v20  ;;  %v13951_v18 = vld [vmem:[%s15824_s4 + $0xd10] sm:$0xff]  }
 0x3ea   : > { %13430 = vmatprep.subr.bf16.mxu0 %v13916_v21  ;;  %13451 = vmatpush3.bf16.msra.mxu1 %v13915_v19  ;;  %v13953_v19 = vld [vmem:[%s15824_s4 + $0xd58] sm:$0xff]   ;;  %v13952_v20 = vld [vmem:[%s15824_s4 + $0xd90] sm:$0xff]  }
 0x3eb   : > { %13452 = vmatprep.subr.bf16.mxu1 %v13917_v22  ;;  %12248 = vmatprep.mubr.bf16.mxu0 %v8539_v5  ;;  %v13954_v21 = vld [vmem:[%s15824_s4 + $0xd18] sm:$0xff]   ;;  %v13956_v22 = vld [vmem:[%s15824_s4 + $0xd60] sm:$0xff]  }
 0x3ed   : > { %13431 = vmatpush3.bf16.msra.mxu0 %v13918_v23  ;;  %v13955_v23 = vld [vmem:[%s15824_s4 + $0xd98] sm:$0xff]  }
 0x3ee   : > { %13432 = vmatprep.subr.bf16.mxu0 %v13920_v25  ;;  %13453 = vmatpush3.bf16.msra.mxu1 %v13919_v24  ;;  %v13957_v24 = vld [vmem:[%s15824_s4 + $0xd20] sm:$0xff]   ;;  %v13959_v25 = vld [vmem:[%s15824_s4 + $0xd68] sm:$0xff]  }
 0x3ef   : > { %13454 = vmatprep.subr.bf16.mxu1 %v13921_v26  ;;  %v13958_v26 = vld [vmem:[%s15824_s4 + $0xda0] sm:$0xff]  }
 0x3f1   : > { %13433 = vmatpush3.bf16.msra.mxu0 %v13922_v27 }
 0x3f2   : > { %13434 = vmatprep.subr.bf16.mxu0 %v13924_v29  ;;  %13455 = vmatpush3.bf16.msra.mxu1 %v13923_v28 }
 0x3f3   : > { %13456 = vmatprep.subr.bf16.mxu1 %v13925_v30 }
 0x3f5   : > { %13435 = vmatpush3.bf16.msra.mxu0 %v13926_v31 }
 0x3f6   : > { %13436 = vmatprep.subr.bf16.mxu0 %v13928_v33  ;;  %13457 = vmatpush3.bf16.msra.mxu1 %v13927_v32  ;;  %v13960_v32 = vld [vmem:[%s15824_s4 + $0xd28] sm:$0xff]  }
 0x3f7   : > { %13458 = vmatprep.subr.bf16.mxu1 %v13929_v34 }
 0x3f9   : > { %13437 = vmatpush3.bf16.msra.mxu0 %v13930_v35  ;;  %v13962_v35 = vld [vmem:[%s15824_s4 + $0xd70] sm:$0xff]  }
 0x3fa   : > { %13438 = vmatprep.subr.bf16.mxu0 %v13932_v37  ;;  %13459 = vmatpush3.bf16.msra.mxu1 %v13931_v36 }
 0x3fb   : > { %v13136_v39 = vpop.f32.mrb[20].mxu0  ;;  %13460 = vmatprep.subr.bf16.mxu1 %v13933_v38 }
 0x3fc   : > { %v13137_v41 = vpop.f32.mrb[21].mxu0  ;;  %v13158_v43 = vpop.f32.mrb[20].mxu1 }
 0x3fd   : > { %v13138_v44 = vadd.f32 %v13137_v41, %v13136_v39  ;;  %v13139_v45 = vpop.f32.mrb[22].mxu0  ;;  %v13159_v46 = vpop.f32.mrb[21].mxu1  ;;  %13439 = vmatpush3.bf16.msra.mxu0 %v13934_v40  ;;  %v13961_v39 = vld [vmem:[%s15824_s4 + $0xda8] sm:$0xff]  }
 0x3fe   : > { %v13140_v48 = vpop.f32.mrb[23].mxu0  ;;  %v13160_v51 = vadd.f32 %v13159_v46, %v13158_v43  ;;  %v13161_v52 = vpop.f32.mrb[22].mxu1  ;;  %13440 = vmatprep.subr.bf16.mxu0 %v13936_v42  ;;  %13461 = vmatpush3.bf16.msra.mxu1 %v13935_v47  ;;  %v13963_v42 = vld [vmem:[%s15824_s4 + $0xd30] sm:$0xff]   ;;  %v13965_v43 = vld [vmem:[%s15824_s4 + $0xd78] sm:$0xff]   ;;  %v8532_v47 = vrot.slane %v16369_v4, %v15828_v58 }
 0x3ff   : > { %v11691_v50 = vadd.f32 %v13138_v44, %v16319_v10  ;;  %v13162_v54 = vpop.f32.mrb[23].mxu1  ;;  %13462 = vmatprep.subr.bf16.mxu1 %v13937_v49  ;;  %v8549_v10 = vcombine.high %v8539_v5, %v8539_v5  ;;  %v13964_v44 = vld [vmem:[%s15824_s4 + $0xdb0] sm:$0xff]   ;;  %v13966_v45 = vld [vmem:[%s15824_s4 + $0xd38] sm:$0xff]   ;;  %v13969_v48 = vld [vmem:[%s15824_s4 + $0xdc0] sm:$0xff]  }
 0x400   : > { %v13967_v46 = vld [vmem:[%s15824_s4 + $0xdb8] sm:$0xff]   ;;  %v8548_v49 = vcombine.high %v8532_v47, %v8532_v47 }
 0x401   : > { %v16356_v56 = vadd.f32 %v13160_v51, %v11691_v50  ;;  %13441 = vmatpush3.bf16.msra.mxu0 %v13938_v53  ;;  %12288 = vmatprep.mubr.bf16.mxu1 %v8549_v10 }
 0x402   : > { %13442 = vmatprep.subr.bf16.mxu0 %v13940_v55  ;;  %13463 = vmatpush3.bf16.msra.mxu1 %v13939_v57 }
 0x403   : > { %13464 = vmatprep.subr.bf16.mxu1 %v13941_v59 }
 0x405   : > { %13443 = vmatpush3.bf16.msra.mxu0 %v13942_v60 }
 0x406   : > { %13472 = vmatprep.subr.bf16.mxu0 %v13944_v63  ;;  %13465 = vmatpush3.bf16.msra.mxu1 %v13943_v1 }
 0x407   : > { %12336 = vmatprep.subr.bf16.mxu1 %v13995_v11 }
 0x408   : > { %12249 = vmatmul.mubr.bf16.vlgmr.msra.gmra.mrb[48].mxu0 %v8525_v3 }
 0x409   : > { %13473 = vmatpush3.bf16.msra.mxu0 %v13945_v6  ;;  %12289 = vmatmul.mubr.bf16.vlgmr.msra.gmra.mrb[48].mxu1 %v8547_v8 }
 0x40a   : > { %13474 = vmatprep.subr.bf16.mxu0 %v13947_v9  ;;  %12337 = vmatpush1.bf16.msra.mxu1 %v13946_v12 }
 0x40b   : > { %12328 = vmatprep.mubr.bf16.mxu0 %v8546_v13  ;;  %12338 = vmatprep.subr.bf16.mxu1 %v13995_v11 }
 0x40c   : > { %12897 = vmatprep.mubr.msk.bf16.mxu1 %vm11252_vm0, %v8550_v15 }
 0x40d   : > { %13475 = vmatpush3.bf16.msra.mxu0 %v13948_v14 }
 0x40e   : > { %13476 = vmatprep.subr.bf16.mxu0 %v13950_v16  ;;  %12339 = vmatpush1.bf16.msra.mxu1 %v13949_v17 }
 0x40f   : > { %12340 = vmatprep.subr.bf16.mxu1 %v13995_v11 }
 0x411   : > { %13477 = vmatpush3.bf16.msra.mxu0 %v13951_v18 }
 0x412   : > { %13478 = vmatprep.subr.bf16.mxu0 %v13953_v19  ;;  %12341 = vmatpush1.bf16.msra.mxu1 %v13952_v20 }
 0x413   : > { %12342 = vmatprep.subr.bf16.mxu1 %v13995_v11 }
 0x415   : > { %13479 = vmatpush3.bf16.msra.mxu0 %v13954_v21 }
 0x416   : > { %13480 = vmatprep.subr.bf16.mxu0 %v13956_v22  ;;  %12343 = vmatpush1.bf16.msra.mxu1 %v13955_v23 }
 0x417   : > { %12344 = vmatprep.subr.bf16.mxu1 %v13995_v11 }
 0x419   : > { %13481 = vmatpush3.bf16.msra.mxu0 %v13957_v24 }
 0x41a   : > { %13482 = vmatprep.subr.bf16.mxu0 %v13959_v25  ;;  %12345 = vmatpush1.bf16.msra.mxu1 %v13958_v26 }
 0x41b   : > { %v13180_v27 = vpop.f32.mrb[24].mxu0  ;;  %12346 = vmatprep.subr.bf16.mxu1 %v13995_v11 }
 0x41c   : > { %v13181_v28 = vpop.f32.mrb[25].mxu0  ;;  %v13202_v29 = vpop.f32.mrb[24].mxu1 }
 0x41d   : > { %v13182_v30 = vadd.f32 %v13181_v28, %v13180_v27  ;;  %v13183_v31 = vpop.f32.mrb[26].mxu0  ;;  %v13203_v33 = vpop.f32.mrb[25].mxu1  ;;  %13483 = vmatpush3.bf16.msra.mxu0 %v13960_v32 }
 0x41e   : > { %v13184_v34 = vpop.f32.mrb[27].mxu0  ;;  %v13204_v37 = vadd.f32 %v13203_v33, %v13202_v29  ;;  %v13205_v38 = vpop.f32.mrb[26].mxu1  ;;  %13484 = vmatprep.subr.bf16.mxu0 %v13962_v35  ;;  %12347 = vmatpush1.bf16.msra.mxu1 %v13961_v39 }
 0x41f   : > { %v11771_v36 = vadd.f32 %v13182_v30, %v16356_v56  ;;  %v13206_v40 = vpop.f32.mrb[27].mxu1  ;;  %12348 = vmatprep.subr.bf16.mxu1 %v13995_v11 }
 0x421   : > { %v11811_v41 = vadd.f32 %v13204_v37, %v11771_v36  ;;  %13485 = vmatpush3.bf16.msra.mxu0 %v13963_v42 }
 0x422   : > { %13486 = vmatprep.subr.bf16.mxu0 %v13965_v43  ;;  %12349 = vmatpush1.bf16.msra.mxu1 %v13964_v44 }
 0x423   : > { %12350 = vmatprep.subr.bf16.mxu1 %v13995_v11 }
 0x425   : > { %13487 = vmatpush3.bf16.msra.mxu0 %v13966_v45 }
 0x426   : > { %12351 = vmatpush1.bf16.msra.mxu1 %v13967_v46 }
 0x427   : > { %12352 = vmatprep.subr.bf16.mxu1 %v13995_v11 }
 0x428   : > { %12329 = vmatmul.mubr.bf16.vlgmr.msra.gmra.mrb[52].mxu0 %v8532_v47 }
 0x42a   : > { %12353 = vmatpush1.bf16.msra.mxu1 %v13969_v48 }
 0x42d   : > { %12369 = vmatmul.mubr.bf16.vlgmr.msra.gmra.mrb[52].mxu1 %v8548_v49 }
 0x43b   : > { %v13224_v50 = vpop.f32.mrb[28].mxu0 }
 0x43c   : > { %v13225_v51 = vpop.f32.mrb[29].mxu0  ;;  %v13246_v52 = vpop.f32.mrb[28].mxu1 }
 0x43d   : > { %v13226_v53 = vadd.f32 %v13225_v51, %v13224_v50  ;;  %v13227_v54 = vpop.f32.mrb[30].mxu0  ;;  %v13247_v55 = vpop.f32.mrb[29].mxu1 }
 0x43e   : > { %v13228_v56 = vpop.f32.mrb[31].mxu0  ;;  %v13248_v59 = vadd.f32 %v13247_v55, %v13246_v52  ;;  %v13249_v60 = vpop.f32.mrb[30].mxu1 }
 0x43f   : > { %v11851_v57 = vadd.f32 %v13226_v53, %v11811_v41  ;;  %v13250_v58 = vpop.f32.mrb[31].mxu1 }
 0x441   : > { %v11891_v61 = vadd.f32 %v13248_v59, %v11851_v57 }
 0x45b   : > { %v13268_v62 = vpop.f32.mrb[32].mxu0 }
 0x45c   : > { %v13269_v63 = vpop.f32.mrb[33].mxu0  ;;  %v13290_v0 = vpop.f32.mrb[32].mxu1 }
 0x45d   : > { %v13270_v1 = vadd.f32 %v13269_v63, %v13268_v62  ;;  %v13271_v2 = vpop.f32.mrb[34].mxu0  ;;  %v13291_v3 = vpop.f32.mrb[33].mxu1 }
 0x45e   : > { %v13272_v4 = vpop.f32.mrb[35].mxu0  ;;  %v13292_v6 = vadd.f32 %v13291_v3, %v13290_v0  ;;  %v13293_v7 = vpop.f32.mrb[34].mxu1 }
 0x45f   : > { %v11931_v5 = vadd.f32 %v13270_v1, %v11891_v61  ;;  %v13294_v8 = vpop.f32.mrb[35].mxu1 }
 0x461   : > { %v11971_v9 = vadd.f32 %v13292_v6, %v11931_v5 }
 0x47b   : > { %v13312_v10 = vpop.f32.mrb[36].mxu0 }
 0x47c   : > { %v13313_v11 = vpop.f32.mrb[37].mxu0  ;;  %v13334_v12 = vpop.f32.mrb[36].mxu1 }
 0x47d   : > { %v13314_v13 = vadd.f32 %v13313_v11, %v13312_v10  ;;  %v13315_v14 = vpop.f32.mrb[38].mxu0  ;;  %v13335_v15 = vpop.f32.mrb[37].mxu1 }
 0x47e   : > { %v13316_v16 = vpop.f32.mrb[39].mxu0  ;;  %v13336_v18 = vadd.f32 %v13335_v15, %v13334_v12  ;;  %v13337_v19 = vpop.f32.mrb[38].mxu1 }
 0x47f   : > { %v12011_v17 = vadd.f32 %v13314_v13, %v11971_v9  ;;  %v13338_v20 = vpop.f32.mrb[39].mxu1 }
 0x481   : > { %v12051_v21 = vadd.f32 %v13336_v18, %v12011_v17 }
 0x49b   : > { %v13356_v22 = vpop.f32.mrb[40].mxu0 }
 0x49c   : > { %v13357_v23 = vpop.f32.mrb[41].mxu0  ;;  %v13378_v24 = vpop.f32.mrb[40].mxu1 }
 0x49d   : > { %v13358_v25 = vadd.f32 %v13357_v23, %v13356_v22  ;;  %v13359_v26 = vpop.f32.mrb[42].mxu0  ;;  %v13379_v27 = vpop.f32.mrb[41].mxu1 }
 0x49e   : > { %v13360_v28 = vpop.f32.mrb[43].mxu0  ;;  %v13380_v30 = vadd.f32 %v13379_v27, %v13378_v24  ;;  %v13381_v31 = vpop.f32.mrb[42].mxu1 }
 0x49f   : > { %v12091_v29 = vadd.f32 %v13358_v25, %v12051_v21  ;;  %v13382_v32 = vpop.f32.mrb[43].mxu1 }
 0x4a1   : > { %v12131_v33 = vadd.f32 %v13380_v30, %v12091_v29 }
 0x4bb   : > { %v13400_v34 = vpop.f32.mrb[44].mxu0 }
 0x4bc   : > { %v13401_v35 = vpop.f32.mrb[45].mxu0  ;;  %v13422_v36 = vpop.f32.mrb[44].mxu1 }
 0x4bd   : > { %v13402_v37 = vadd.f32 %v13401_v35, %v13400_v34  ;;  %v13403_v38 = vpop.f32.mrb[46].mxu0  ;;  %v13423_v39 = vpop.f32.mrb[45].mxu1 }
 0x4be   : > { %v13404_v40 = vpop.f32.mrb[47].mxu0  ;;  %v13424_v42 = vadd.f32 %v13423_v39, %v13422_v36  ;;  %v13425_v43 = vpop.f32.mrb[46].mxu1 }
 0x4bf   : > { %v12171_v41 = vadd.f32 %v13402_v37, %v12131_v33  ;;  %v13426_v44 = vpop.f32.mrb[47].mxu1 }
 0x4c1   : > { %v12211_v45 = vadd.f32 %v13424_v42, %v12171_v41 }
 0x4db   : > { %v13444_v46 = vpop.f32.mrb[48].mxu0 }
 0x4dc   : > { %v13445_v47 = vpop.f32.mrb[49].mxu0  ;;  %v13466_v48 = vpop.f32.mrb[48].mxu1 }
 0x4dd   : > { %v13446_v49 = vadd.f32 %v13445_v47, %v13444_v46  ;;  %v13447_v50 = vpop.f32.mrb[50].mxu0  ;;  %v13467_v51 = vpop.f32.mrb[49].mxu1 }
 0x4de   : > { %v13448_v52 = vpop.f32.mrb[51].mxu0  ;;  %v13468_v54 = vadd.f32 %v13467_v51, %v13466_v48  ;;  %v13469_v55 = vpop.f32.mrb[50].mxu1 }
 0x4df   : > { %v12251_v53 = vadd.f32 %v13446_v49, %v12211_v45  ;;  %v13470_v56 = vpop.f32.mrb[51].mxu1 }
 0x4e1   : > { %v12291_v57 = vadd.f32 %v13468_v54, %v12251_v53 }
 0x4fb   : > { %v13488_v59 = vpop.f32.mrb[52].mxu0 }
 0x4fc   : > { %v13489_v60 = vpop.f32.mrb[53].mxu0 }
 0x4fd   : > { %v13490_v58 = vadd.f32 %v13489_v60, %v13488_v59  ;;  %v13491_v61 = vpop.f32.mrb[54].mxu0 }
 0x4fe   : > { %v13492_v62 = vpop.f32.mrb[55].mxu0 }
 0x4ff   : > { %v12331_v63 = vadd.f32 %v13490_v58, %v12291_v57 }
 0x500   : > { %v12370_v0 = vpop.f32.mrb[52].mxu1 }
 0x501   : > { %v12371_v1 = vadd.f32 %v12370_v0, %v12331_v63  ;;  %v12372_v2 = vpop.f32.mrb[53].mxu1 }
 0x502   : > { %v12373_v3 = vpop.f32.mrb[54].mxu1 }
 0x503   : > { %v12376_v4 = vmax.f32 %v12371_v1, 0.0  ;;  %v12374_v5 = vpop.f32.mrb[55].mxu1 }
 0x505   : > { %v12377_v6 = vpack.c.bf16 %v12376_v4, %v12376_v4 }
 0x507   : > { %12378 = vst [vmem:[%s7303_s26] sm:$0x1] %v12377_v6 }
 0x508 PF: > { %p10_p9 = scmp.ge.s32.totalorder %s14033_s16, 7   ;;  %s16429_s12 = smov %s13988_s13 }
 0x509   : > { %s16430_s13 = smov %s14042_s19  ;;  %s16431_s14 = smov %s14033_s16 }
 0x50a   :  { %12 = sbr.rel (!%p10_p9) target bundleno = 2 (0x2), region = 126 }

</bundles_post_ra>
